<compile_context>
chip_gen: v6e
topology: v6e:2x2x1
jax: 0.10.0
libtpu: 0.0.40
codegen_flags: <defaults>
</compile_context>

<pallas_src>
import jax
import jax.numpy as jnp
from jax.experimental import pallas as pl
from jax.experimental.pallas import tpu as pltpu


def bpr_kernel(u_idx_ref, i_idx_ref, j_idx_ref,   # (TB, 1) int32 index tiles
               user_ref, item_ref,                # VMEM-resident padded tables
               out_ref):                          # (2, TB) lane-dense preds
    tb = u_idx_ref.shape[0]
    n_users = user_ref.shape[0]
    n_items = item_ref.shape[0]

    # ---- one-hot gather on the MXU -----------------------------------------
    # onehot[b, r] = (r == idx[b]); padded (zero) table rows are never selected
    # because all real indices are < U (resp. < I).
    iota_u = jax.lax.broadcasted_iota(jnp.int32, (tb, n_users), 1)
    iota_i = jax.lax.broadcasted_iota(jnp.int32, (tb, n_items), 1)

    onehot_u = (iota_u == u_idx_ref[...]).astype(jnp.float32)   # (TB, U_pad)
    onehot_i = (iota_i == i_idx_ref[...]).astype(jnp.float32)   # (TB, I_pad)
    onehot_j = (iota_i == j_idx_ref[...]).astype(jnp.float32)   # (TB, I_pad)

    hi = jax.lax.Precision.HIGHEST   # exact f32 gather (no bf16 demotion)
    u = jnp.dot(onehot_u, user_ref[...],
                preferred_element_type=jnp.float32, precision=hi)   # (TB, F_pad)
    vi = jnp.dot(onehot_i, item_ref[...],
                 preferred_element_type=jnp.float32, precision=hi)  # (TB, F_pad)
    vj = jnp.dot(onehot_j, item_ref[...],
                 preferred_element_type=jnp.float32, precision=hi)  # (TB, F_pad)

    # ---- BPR scores: one gathered user tile feeds both predictions (VPU/XLU)
    pred_i = jnp.sum(u * vi, axis=-1).reshape(1, tb)
    pred_j = jnp.sum(u * vj, axis=-1).reshape(1, tb)

    # Single lane-dense (2, TB) store.
    out_ref[...] = jnp.concatenate([pred_i, pred_j], axis=0)


def mf_bpr_forward(user_table, item_table, user, item_i, item_j, *, tb=256):
    """user_table: [U, F] f32, item_table: [I, F] f32, indices: [B] int."""
    U, F = user_table.shape
    I, F2 = item_table.shape
    assert F == F2
    B = user.shape[0]

    def _round_up(n, m):
        return m * ((n + m - 1) // m)

    # Pad the factor dim to 128 lanes and the table-row (contraction) dims to
    # multiples of 256 (MXU K tiles on v6e/v7x; v5e simply runs them as two
    # 128-wide passes).  Zero padding never changes the results.  One-time
    # wrapper cost; the padded tables are DMA'd into VMEM exactly once.
    F_pad = _round_up(F, 128)
    U_pad = _round_up(U, 256)
    I_pad = _round_up(I, 256)
    user_table = jnp.pad(user_table.astype(jnp.float32),
                         ((0, U_pad - U), (0, F_pad - F)))
    item_table = jnp.pad(item_table.astype(jnp.float32),
                         ((0, I_pad - I), (0, F_pad - F)))

    # Resident-table budget check (v7x has 64 MiB VMEM / 32 MiB scoped default).
    table_bytes = (U_pad + I_pad) * F_pad * 4
    assert table_bytes < 16 * (1 << 20), (
        "embedding tables too large for the resident one-hot gather path; "
        "use the HBM DMA-gather fallback")  # TODO(synk): HBM fallback path.

    # Pad the batch to a multiple of the tile size (index 0 is a valid row;
    # padded lanes are sliced off below).
    n_tiles = pl.cdiv(B, tb)
    B_pad = n_tiles * tb
    pad = B_pad - B
    u_idx = jnp.pad(user.astype(jnp.int32), (0, pad)).reshape(B_pad, 1)
    i_idx = jnp.pad(item_i.astype(jnp.int32), (0, pad)).reshape(B_pad, 1)
    j_idx = jnp.pad(item_j.astype(jnp.int32), (0, pad)).reshape(B_pad, 1)

    grid_spec = pltpu.PrefetchScalarGridSpec(
        num_scalar_prefetch=0,
        grid=(n_tiles,),                                 # one TB batch tile/step
        in_specs=[
            pl.BlockSpec((tb, 1), lambda t: (t, 0)),         # user indices
            pl.BlockSpec((tb, 1), lambda t: (t, 0)),         # item_i indices
            pl.BlockSpec((tb, 1), lambda t: (t, 0)),         # item_j indices
            pl.BlockSpec((U_pad, F_pad), lambda t: (0, 0)),  # resident user table
            pl.BlockSpec((I_pad, F_pad), lambda t: (0, 0)),  # resident item table
        ],
        out_specs=pl.BlockSpec((2, tb), lambda t: (0, t)),   # lane-dense preds
    )

    preds = pl.pallas_call(
        bpr_kernel,
        out_shape=jax.ShapeDtypeStruct((2, B_pad), jnp.float32),
        grid_spec=grid_spec,
        compiler_params=pltpu.CompilerParams(
            dimension_semantics=("parallel",)),   # independent tiles -> v7x 2 TCs
    )(u_idx, i_idx, j_idx, user_table, item_table)

    return preds[0, :B], preds[1, :B]


if __name__ == "__main__":
    # Deterministic synthetic setup (mirrors nn.Embedding init std=0.01).
    user_num, item_num, factor_num = 64, 96, 32
    batch = 300            # -> 2 grid tiles of TB=256 (exercises batch padding)

    key = jax.random.PRNGKey(0)
    k_u, k_i, k_uid, k_ii, k_ij = jax.random.split(key, 5)

    user_table = 0.01 * jax.random.normal(k_u, (user_num, factor_num), jnp.float32)
    item_table = 0.01 * jax.random.normal(k_i, (item_num, factor_num), jnp.float32)

    user = jax.random.randint(k_uid, (batch,), 0, user_num, dtype=jnp.int32)
    item_i = jax.random.randint(k_ii, (batch,), 0, item_num, dtype=jnp.int32)
    item_j = jax.random.randint(k_ij, (batch,), 0, item_num, dtype=jnp.int32)

    pred_i, pred_j = mf_bpr_forward(user_table, item_table, user, item_i, item_j)
    pred_i = jax.block_until_ready(pred_i)
    pred_j = jax.block_until_ready(pred_j)

    # Pure-JAX reference (same semantics as the PyTorch forward).
    ref_i = jnp.sum(user_table[user] * item_table[item_i], axis=-1)
    ref_j = jnp.sum(user_table[user] * item_table[item_j], axis=-1)

    assert pred_i.shape == (batch,) and pred_j.shape == (batch,)
    assert jnp.allclose(pred_i, ref_i, atol=1e-5, rtol=1e-4)
    assert jnp.allclose(pred_j, ref_j, atol=1e-5, rtol=1e-4)

    # TODO(synk): full_matrix() (user_embed @ item_embed.T) is not part of
    # forward(); it would be a standard tiled-matmul Pallas kernel if needed.
    print("KERNEL_OK")
</pallas_src>

<mosaic_0001>
module attributes {stable_mosaic.version = 11 : i64} {
  func.func @bpr_kernel(%arg0: i32, %arg1: memref<256x1xi32, #tpu.memory_space<vmem>>, %arg2: memref<256x1xi32, #tpu.memory_space<vmem>>, %arg3: memref<256x1xi32, #tpu.memory_space<vmem>>, %arg4: memref<256x128xf32, #tpu.memory_space<vmem>>, %arg5: memref<256x128xf32, #tpu.memory_space<vmem>>, %arg6: memref<2x256xf32, #tpu.memory_space<vmem>>) attributes {dimension_semantics = [#tpu.dimension_semantics<parallel>], iteration_bounds = array<i64: 2>, scalar_prefetch = 0 : i64, scratch_operands = 0 : i64, tpu.core_type = #tpu.core_type<tc>, window_params = [{transform_indices = @transform_0, window_bounds = array<i64: 256, 1>}, {transform_indices = @transform_1, window_bounds = array<i64: 256, 1>}, {transform_indices = @transform_2, window_bounds = array<i64: 256, 1>}, {pipeline_mode = #tpu.pipeline_mode<synchronous>, transform_indices = @transform_3, window_bounds = array<i64: 256, 128>}, {pipeline_mode = #tpu.pipeline_mode<synchronous>, transform_indices = @transform_4, window_bounds = array<i64: 256, 128>}, {transform_indices = @transform_5, window_bounds = array<i64: 2, 256>}]} {
    %0 = tpu.iota {dimensions = array<i32: 1>} : vector<256x256xi32>
    %1 = tpu.iota {dimensions = array<i32: 1>} : vector<256x256xi32>
    %c0 = arith.constant 0 : index
    %c0_0 = arith.constant 0 : index
    %2 = vector.load %arg1[%c0, %c0_0] : memref<256x1xi32, #tpu.memory_space<vmem>>, vector<256x1xi32>
    %3 = vector.broadcast %2 : vector<256x1xi32> to vector<256x256xi32>
    %4 = arith.cmpi eq, %0, %3 : vector<256x256xi32>
    %5 = arith.extui %4 : vector<256x256xi1> to vector<256x256xi32>
    %6 = arith.sitofp %5 : vector<256x256xi32> to vector<256x256xf32>
    %c0_1 = arith.constant 0 : index
    %c0_2 = arith.constant 0 : index
    %7 = vector.load %arg2[%c0_1, %c0_2] : memref<256x1xi32, #tpu.memory_space<vmem>>, vector<256x1xi32>
    %8 = vector.broadcast %7 : vector<256x1xi32> to vector<256x256xi32>
    %9 = arith.cmpi eq, %1, %8 : vector<256x256xi32>
    %10 = arith.extui %9 : vector<256x256xi1> to vector<256x256xi32>
    %11 = arith.sitofp %10 : vector<256x256xi32> to vector<256x256xf32>
    %c0_3 = arith.constant 0 : index
    %c0_4 = arith.constant 0 : index
    %12 = vector.load %arg3[%c0_3, %c0_4] : memref<256x1xi32, #tpu.memory_space<vmem>>, vector<256x1xi32>
    %13 = vector.broadcast %12 : vector<256x1xi32> to vector<256x256xi32>
    %14 = arith.cmpi eq, %1, %13 : vector<256x256xi32>
    %15 = arith.extui %14 : vector<256x256xi1> to vector<256x256xi32>
    %16 = arith.sitofp %15 : vector<256x256xi32> to vector<256x256xf32>
    %c0_5 = arith.constant 0 : index
    %c0_6 = arith.constant 0 : index
    %17 = vector.load %arg4[%c0_5, %c0_6] : memref<256x128xf32, #tpu.memory_space<vmem>>, vector<256x128xf32>
    %cst = arith.constant dense<0.000000e+00> : vector<256x128xf32>
    %18 = tpu.matmul %6, %17, %cst {dimension_numbers = #tpu.dot_dimension_numbers<[1], [0], [0], [1], [0, 0, 1, 1], [], []>, precision = #tpu.contract_precision<fp32>} : vector<256x256xf32>, vector<256x128xf32>, vector<256x128xf32> -> vector<256x128xf32>
    %c0_7 = arith.constant 0 : index
    %c0_8 = arith.constant 0 : index
    %19 = vector.load %arg5[%c0_7, %c0_8] : memref<256x128xf32, #tpu.memory_space<vmem>>, vector<256x128xf32>
    %cst_9 = arith.constant dense<0.000000e+00> : vector<256x128xf32>
    %20 = tpu.matmul %11, %19, %cst_9 {dimension_numbers = #tpu.dot_dimension_numbers<[1], [0], [0], [1], [0, 0, 1, 1], [], []>, precision = #tpu.contract_precision<fp32>} : vector<256x256xf32>, vector<256x128xf32>, vector<256x128xf32> -> vector<256x128xf32>
    %c0_10 = arith.constant 0 : index
    %c0_11 = arith.constant 0 : index
    %21 = vector.load %arg5[%c0_10, %c0_11] : memref<256x128xf32, #tpu.memory_space<vmem>>, vector<256x128xf32>
    %cst_12 = arith.constant dense<0.000000e+00> : vector<256x128xf32>
    %22 = tpu.matmul %16, %21, %cst_12 {dimension_numbers = #tpu.dot_dimension_numbers<[1], [0], [0], [1], [0, 0, 1, 1], [], []>, precision = #tpu.contract_precision<fp32>} : vector<256x256xf32>, vector<256x128xf32>, vector<256x128xf32> -> vector<256x128xf32>
    %23 = arith.mulf %18, %20 : vector<256x128xf32>
    %cst_13 = arith.constant dense<0.000000e+00> : vector<256xf32>
    %24 = vector.multi_reduction <add>, %23, %cst_13 [1] : vector<256x128xf32> to vector<256xf32>
    %25 = vector.shape_cast %24 : vector<256xf32> to vector<1x256xf32>
    %26 = arith.mulf %18, %22 : vector<256x128xf32>
    %cst_14 = arith.constant dense<0.000000e+00> : vector<256xf32>
    %27 = vector.multi_reduction <add>, %26, %cst_14 [1] : vector<256x128xf32> to vector<256xf32>
    %28 = vector.shape_cast %27 : vector<256xf32> to vector<1x256xf32>
    %29 = tpu.concatenate %25, %28 in 0 : vector<1x256xf32>, vector<1x256xf32> -> vector<2x256xf32>
    %c0_15 = arith.constant 0 : index
    %c0_16 = arith.constant 0 : index
    %30 = vector.load %arg6[%c0_15, %c0_16] : memref<2x256xf32, #tpu.memory_space<vmem>>, vector<2x256xf32>
    tpu.vector_store %arg6[%c0_15, %c0_16], %29 {strides = array<i32>} : memref<2x256xf32, #tpu.memory_space<vmem>>, vector<2x256xf32>,
    return
  }
  func.func @transform_0(%arg0: i32) -> (i32, i32) {
    %c0_i32 = arith.constant 0 : i32
    %c0_i32_0 = arith.constant 0 : i32
    return %arg0, %c0_i32 : i32, i32
  }
  func.func @transform_1(%arg0: i32) -> (i32, i32) {
    %c0_i32 = arith.constant 0 : i32
    %c0_i32_0 = arith.constant 0 : i32
    return %arg0, %c0_i32 : i32, i32
  }
  func.func @transform_2(%arg0: i32) -> (i32, i32) {
    %c0_i32 = arith.constant 0 : i32
    %c0_i32_0 = arith.constant 0 : i32
    return %arg0, %c0_i32 : i32, i32
  }
  func.func @transform_3(%arg0: i32) -> (i32, i32) {
    %c0_i32 = arith.constant 0 : i32
    %c0_i32_0 = arith.constant 0 : i32
    %c0_i32_1 = arith.constant 0 : i32
    return %c0_i32, %c0_i32_0 : i32, i32
  }
  func.func @transform_4(%arg0: i32) -> (i32, i32) {
    %c0_i32 = arith.constant 0 : i32
    %c0_i32_0 = arith.constant 0 : i32
    %c0_i32_1 = arith.constant 0 : i32
    return %c0_i32, %c0_i32_0 : i32, i32
  }
  func.func @transform_5(%arg0: i32) -> (i32, i32) {
    %c0_i32 = arith.constant 0 : i32
    %c0_i32_0 = arith.constant 0 : i32
    return %c0_i32, %arg0 : i32, i32
  }
}

</mosaic_0001>

<bundles_post_ra>
// kernel: tpu_custom_call.1
= control target key start
LH: loop header
LB: loop body
LE: loop exit
PB: predicated region body
PF: predicated region fallthrough
CT: control target
= control target key end

     0   :  { %10 = vsyncpa [#allocation3], 0  ;;  %s19511_s0 = inlined_call_operand.vmem [shape: s32[512,1], index: 0, kind: input, shape index: {}]   ;;  %s19512_s1 = inlined_call_operand.vmem [shape: s32[512,1], index: 1, kind: input, shape index: {}]   ;;  %s19513_s2 = inlined_call_operand.vmem [shape: s32[512,1], index: 2, kind: input, shape index: {}]   ;;  %s19514_s3 = inlined_call_operand.vmem [shape: f32[256,128], index: 3, kind: input, shape index: {}]   ;;  %s19515_s4 = inlined_call_operand.vmem [shape: f32[256,128], index: 4, kind: input, shape index: {}]   ;;  %s19516_s5 = inlined_call_operand.hbm [shape: f32[2,512], index: 5, kind: output, shape index: {}]  }
   0x1   :  { %12 = vsyncpa [#allocation3 + $0x1], 0  ;;  %s10736_s18 = smov 0   ;;  %s10738_s19 = smov 0  }
   0x2   :  { %s10740_s20 = smov 0   ;;  %s10742_s21 = smov 0  }
   0x3 LB: > { %s10757_s22 = sadd.s32 4294967295, %s10700_s21   ;;  %s9810_s23 = sadd.s32 4294967294, %s10700_s21   ;;  %s10700_s21 = sphi %s10742_s21, %s22335_s21   ;;  %s10696_s20 = sphi %s10740_s20, %s22334_s20   ;;  %s10692_s19 = sphi %s10738_s19, %s22333_s19   ;;  %s10688_s18 = sphi %s10736_s18, %s22332_s18  }
   0x4   : > { %s10761_s24 = sadd.s32 1, %s10700_s21   ;;  %s145_s25 = sadd.s32 1, %s10696_s20 }
   0x5   : > { %s142_s26 = ssub.s32 %s10700_s21, %s10761_s24  ;;  %p155_p0 = scmp.ne.s32.totalorder %s10696_s20, %s10692_s19 }
   0x6   : > { %p143_p1 = scmp.eq.s32.totalorder %s142_s26, 0  ;;  %p156_p2 = scmp.eq.s32.totalorder %s10757_s22, 1 }
   0x7   : > { %p161_p3 = scmp.ne.s32.totalorder %s10692_s19, %s10688_s18  ;;  %p162_p4 = scmp.eq.s32.totalorder %s9810_s23, 1 }
   0x8   : > { %s10772_s27 = scalar_select %p143_p1, %s10696_s20, %s145_s25  }
   0x9   : > { %p10774_p5 = por %p156_p2, %p155_p0  ;;  %p10778_p6 = por %p162_p4, %p161_p3 }
   0xa   : > { %p9813_p7 = scmp.ge.s32.totalorder %s10700_s21, 1  ;;  %p213_p8 = scmp.lt.s32.totalorder %s10700_s21, 3 }
   0xc   : > { %p214_p9 = pnand %p9813_p7, %p213_p8 }
   0xe   : > { %217 = sbr.rel (%p214_p9) target bundleno = 1700 (0x6a4), region = 40 }
  0x13   : > { %s9815_s30 = sshll.u32 %s10757_s22, 5  ;;  %v1248_v0 = vld [vmem:[%s19514_s3 + $0x78] sm:$0xff]  ;;  %v1247_v1 = vld [vmem:[%s19514_s3 + $0x70] sm:$0xff]  ;;  %v1246_v2 = vld [vmem:[%s19514_s3 + $0x68] sm:$0xff]  ;;  %v10702_v3 = vmov 0   ;;  %v19547_v9 = vmov 0.0  }
  0x14   : > { %10639 = vset.pattern.permute.xlu1 %v10702_v3  ;;  %10638 = vset.pattern.permute.xlu0 %v10702_v3  ;;  %p252_p10 = scmp.lt.s32.totalorder %s9815_s30, 63  ;;  %v10794_v4 = vand.u32 4294901760, %v1248_v0  ;;  %v10796_v5 = vand.u32 4294901760, %v1247_v1  ;;  %v10798_v6 = vand.u32 4294901760, %v1246_v2  ;;  %v1245_v7 = vld [vmem:[%s19514_s3 + $0x60] sm:$0xff]  ;;  %v1244_v8 = vld [vmem:[%s19514_s3 + $0x58] sm:$0xff] }
  0x15   : > { %1842 = vmatprep.subr.mxu1 %v19547_v9  ;;  %v10807_v10 = vand.u32 4294901760, %v1245_v7  ;;  %1265 = vmatprep.subr.mxu0 %v19547_v9  ;;  %v10810_v11 = vand.u32 4294901760, %v1244_v8  ;;  %v1243_v12 = vld [vmem:[%s19514_s3 + $0x50] sm:$0xff]  ;;  %v1242_v17 = vld [vmem:[%s19514_s3 + $0x48] sm:$0xff]  ;;  %v1241_v29 = vld [vmem:[%s19514_s3 + $0x40] sm:$0xff]  ;;  %s10705_s14 = smov [#allocation2]  }
  0x16   : > { %20523 = vst [vmem:[#allocation5_spill] sm:$0xff] %v10794_v4  ;;  %20524 = vst [vmem:[#allocation6_spill] sm:$0xff] %v10796_v5  ;;  %s22337_s30 = smov (!%p252_p10, %s9815_s30), 63  ;;  %v10816_v13 = vsub.f32 %v1248_v0, %v10794_v4  ;;  %v10819_v14 = vsub.f32 %v1247_v1, %v10796_v5  ;;  %v10822_v15 = vsub.f32 %v1246_v2, %v10798_v6  ;;  %1267 = vmatpush1.msra.mxu0 %v10794_v4  ;;  %v1240_v38 = vld [vmem:[%s19514_s3 + $0x38] sm:$0xff]  ;;  %v1239_v41 = vld [vmem:[%s19514_s3 + $0x30] sm:$0xff]  ;;  %s10644_s15 = sshll.u32 %s10705_s14, 4  ;;  %s10645_s15 = int_to_ptr.vmem [resolvable:$false] %s10644_s15 }
  0x17   : > { %v10826_v16 = vsub.f32 %v1245_v7, %v10807_v10  ;;  %1268 = vmatprep.subr.mxu0 %v19547_v9  ;;  %s10832_s26 = sshll.u32 %s22337_s30, 3  ;;  %v10838_v21 = vand.u32 4294901760, %v1243_v12  ;;  %v10847_v22 = vsub.f32 %v1244_v8, %v10810_v11  ;;  %v10860_v28 = vand.u32 4294901760, %v1242_v17  ;;  %v1238_v52 = vld [vmem:[%s19514_s3 + $0x28] sm:$0xff]  ;;  %v1237_v60 = vld [vmem:[%s19514_s3 + $0x20] sm:$0xff]  ;;  %v1236_v63 = vld [vmem:[%s19514_s3 + $0x18] sm:$0xff] }
  0x18   : > { %20525 = vst [vmem:[#allocation7_spill] sm:$0xff] %v10816_v13  ;;  %v19536_v18 = vand.u32 4294901760, %v10816_v13  ;;  %v19535_v19 = vand.u32 4294901760, %v10819_v14  ;;  %v19533_v20 = vand.u32 4294901760, %v10822_v15  ;;  %1270 = vmatpush1.msra.mxu0 %v10796_v5  ;;  %s10844_s8 = scalar_lea.vmem %s19511_s0, %s10832_s26  ;;  %v10876_v37 = vand.u32 4294901760, %v1241_v29  ;;  %s11220_s12 = scalar_lea.vmem %s19512_s1, %s10832_s26 }
  0x19   : > { %20526 = vst [vmem:[#allocation8_spill] sm:$0xff] %v10826_v16  ;;  %20527 = vst [vmem:[#allocation9_spill] sm:$0xff] %v10847_v22  ;;  %1271 = vmatprep.subr.mxu0 %v19547_v9  ;;  %v275_v23 = vld [vmem:[%s10844_s8 + $0x10] sm:$0xff]  ;;  %v273_v24 = vld [vmem:[%s10844_s8] sm:$0xff]  ;;  %v19531_v27 = vand.u32 4294901760, %v10826_v16  ;;  %v10871_v34 = vsub.f32 %v1243_v12, %v10838_v21  ;;  %v19530_v36 = vand.u32 4294901760, %v10847_v22  ;;  %v10885_v40 = vsub.f32 %v1242_v17, %v10860_v28  ;;  %s11355_s6 = scalar_lea.vmem %s19513_s2, %s10832_s26 }
  0x1a   : > { %v1846_v25 = vsub.f32 %v10816_v13, %v19536_v18  ;;  %v1853_v26 = vsub.f32 %v10819_v14, %v19535_v19  ;;  %1273 = vmatpush1.msra.mxu0 %v10798_v6  ;;  %312 = vperm.xlu1 %10639, %v275_v23   ;;  %v276_v30 = vld [vmem:[%s10844_s8 + $0x18] sm:$0xff]  ;;  %v274_v31 = vld [vmem:[%s10844_s8 + $0x8] sm:$0xff]  ;;  %v1860_v33 = vsub.f32 %v10822_v15, %v19533_v20  ;;  %v277_v43 = vld [vmem:[%s10844_s8 + $0x20] sm:$0xff]  ;;  %v10896_v46 = vand.u32 4294901760, %v1240_v38  ;;  %s248_s26 = sand.u32 1, %s10692_s19   ;;  %s10595_s30 = sshll.u32 %s10757_s22, 6 }
  0x1b   : > { %306 = vperm.xlu0 %10638, %v273_v24   ;;  %20528 = vst [vmem:[#allocation10_spill] sm:$0xff] %v10871_v34  ;;  %1274 = vmatprep.subr.mxu0 %v19547_v9  ;;  %v1867_v39 = vsub.f32 %v10826_v16, %v19531_v27  ;;  %20529 = vst [vmem:[#allocation11_spill] sm:$0xff] %v10885_v40  ;;  %v278_v42 = vld [vmem:[%s10844_s8 + $0x28] sm:$0xff]  ;;  %v19529_v45 = vand.u32 4294901760, %v10871_v34  ;;  %v1874_v47 = vsub.f32 %v10847_v22, %v19530_v36  ;;  %v280_v53 = vld [vmem:[%s10844_s8 + $0x38] sm:$0xff]  ;;  %s19449_s7 = sshll.u32 %s248_s26, 2 }
  0x1c   : > { %v1847_v32 = vand.u32 4294901760, %v1846_v25  ;;  %v1854_v35 = vand.u32 4294901760, %v1853_v26  ;;  %1276 = vmatpush1.msra.mxu0 %v10807_v10  ;;  %v1861_v44 = vand.u32 4294901760, %v1860_v33  ;;  %v10902_v48 = vsub.f32 %v1241_v29, %v10876_v37  ;;  %v279_v54 = vld [vmem:[%s10844_s8 + $0x30] sm:$0xff]  ;;  %v282_v0 = vld [vmem:[%s10844_s8 + $0x48] sm:$0xff]  ;;  %v281_v1 = vld [vmem:[%s10844_s8 + $0x40] sm:$0xff] }
  0x1d   : > { %1277 = vmatprep.subr.mxu0 %v19547_v9  ;;  %v1868_v49 = vand.u32 4294901760, %v1867_v39  ;;  %v19527_v50 = vand.u32 4294901760, %v10885_v40  ;;  %v10908_v51 = vand.u32 4294901760, %v1239_v41  ;;  %v1881_v55 = vsub.f32 %v10871_v34, %v19529_v45  ;;  %v1235_v25 = vld [vmem:[%s19514_s3 + $0x10] sm:$0xff]  ;;  %v284_v26 = vld [vmem:[%s10844_s8 + $0x58] sm:$0xff]  ;;  %v298_v45 = vld [vmem:[%s10844_s8 + $0xc8] sm:$0xff] }
  0x1e   : > { %1848 = vmatpush1.msra.mxu1 %v1847_v32  ;;  %315 = vperm.xlu1 %10639, %v276_v30   ;;  %20530 = vst [vmem:[#allocation12_spill] sm:$0xff] %v10902_v48  ;;  %v10919_v56 = vsub.f32 %v1240_v38, %v10896_v46  ;;  %v1875_v57 = vand.u32 4294901760, %v1874_v47  ;;  %v19526_v58 = vand.u32 4294901760, %v10902_v48  ;;  %v10925_v59 = vand.u32 4294901760, %v1238_v52  ;;  %v283_v29 = vld [vmem:[%s10844_s8 + $0x50] sm:$0xff]  ;;  %v1234_v38 = vld [vmem:[%s19514_s3 + $0x8] sm:$0xff] }
  0x1f   : > { %309 = vperm.xlu0 %10638, %v274_v31   ;;  %1849 = vmatprep.subr.mxu1 %v19547_v9  ;;  %v1888_v61 = vsub.f32 %v10885_v40, %v19527_v50  ;;  %v10934_v62 = vsub.f32 %v1239_v41, %v10908_v51  ;;  %v1882_v2 = vand.u32 4294901760, %v1881_v55  ;;  %v10945_v7 = vand.u32 4294901760, %v1237_v60  ;;  %v297_v36 = vld [vmem:[%s10844_s8 + $0xc0] sm:$0xff]  ;;  %s250_s9 = scalar_lea.vmem [#allocation2], %s19449_s7  ;;  %s9713_s13 = scalar_lea.sflag [#allocation3], %s248_s26 }
  0x20   : > { %1279 = vmatpush1.msra.mxu0 %v10810_v11  ;;  %1855 = vmatpush1.msra.mxu1 %v1854_v35  ;;  %20531 = vst [vmem:[#allocation13_spill] sm:$0xff] %v10919_v56  ;;  %v19524_v3 = vand.u32 4294901760, %v10919_v56  ;;  %v1895_v8 = vsub.f32 %v10902_v48, %v19526_v58  ;;  %v10951_v12 = vsub.f32 %v1238_v52, %v10925_v59  ;;  %v10957_v24 = vand.u32 4294901760, %v1236_v63  ;;  %s9727_s10 = sshll.u32 %s250_s9, 4  ;;  %s10646_s16 = scalar_lea.vmem %s10645_s15, 128  ;;  %s9728_s10 = int_to_ptr.vmem [resolvable:$true] %s9727_s10 }
  0x21   : > { %1280 = vmatprep.subr.mxu0 %v19547_v9  ;;  %1856 = vmatprep.subr.mxu1 %v19547_v9  ;;  %20532 = vst [vmem:[#allocation14_spill] sm:$0xff] %v10934_v62  ;;  %20533 = vst [vmem:[#allocation15_spill] sm:$0xff] %v10945_v7  ;;  %v1889_v17 = vand.u32 4294901760, %v1888_v61  ;;  %v19522_v23 = vand.u32 4294901760, %v10934_v62  ;;  %v10968_v31 = vsub.f32 %v1237_v60, %v10945_v7  ;;  %v10974_v35 = vand.u32 4294901760, %v1235_v25  ;;  %v1264_v61 = vld [vmem:[%s19514_s3 + $0xf8] sm:$0xff]  ;;  %p10647_p0 = scmp.lt.s32.totalorder %s9728_s10, %s10645_s15 }
  0x22   : > { %1282 = vmatpush1.msra.mxu0 %v10838_v21  ;;  %321 = vperm.xlu1 %10639, %v278_v42   ;;  %20534 = vst [vmem:[#allocation16_spill] sm:$0xff] %v10951_v12  ;;  %20535 = vst [vmem:[#allocation17_spill] sm:$0xff] %v10957_v24  ;;  %v1902_v30 = vsub.f32 %v10919_v56, %v19524_v3  ;;  %v1896_v32 = vand.u32 4294901760, %v1895_v8  ;;  %v19521_v33 = vand.u32 4294901760, %v10951_v12  ;;  %v1233_v42 = vld [vmem:[%s19514_s3] sm:$0xff]  ;;  %v10994_v52 = vand.u32 4294901760, %v1234_v38 }
  0x23   : > { %318 = vperm.xlu0 %10638, %v277_v43   ;;  %1862 = vmatpush1.msra.mxu1 %v1861_v44  ;;  %20536 = vst [vmem:[#allocation18_spill] sm:$0xff] %v10968_v31  ;;  %20537 = vst [vmem:[#allocation19_spill] sm:$0xff] %v10974_v35  ;;  %v1909_v39 = vsub.f32 %v10934_v62, %v19522_v23  ;;  %v10983_v41 = vsub.f32 %v1236_v63, %v10957_v24  ;;  %v286_v43 = vld [vmem:[%s10844_s8 + $0x68] sm:$0xff]  ;;  %v285_v44 = vld [vmem:[%s10844_s8 + $0x60] sm:$0xff]  ;;  %v11006_v60 = vand.u32 4294901760, %v1233_v42  ;;  %s10640_s22 = scalar_lea.vmem %s9728_s10, 64 }
  0x24   : > { %1283 = vmatprep.subr.mxu0 %v19547_v9  ;;  %1863 = vmatprep.subr.mxu1 %v19547_v9  ;;  %v1903_v47 = vand.u32 4294901760, %v1902_v30  ;;  %20539 = vst [vmem:[#allocation21_spill] sm:$0xff] %v10994_v52  ;;  %v288_v63 = vld [vmem:[%s10844_s8 + $0x78] sm:$0xff]  ;;  %p10641_p11 = scmp.ne.s32.totalorder %s9728_s10, %s10640_s22  ;;  %p10648_p1 = scmp.lt.s32.totalorder %s10646_s16, %s10640_s22 }
  0x25   : > { %1285 = vmatpush1.msra.mxu0 %v10860_v28  ;;  %1869 = vmatpush1.msra.mxu1 %v1868_v49  ;;  %20538 = vst [vmem:[#allocation20_spill] sm:$0xff] %v10983_v41  ;;  %v19520_v49 = vand.u32 4294901760, %v10968_v31  ;;  %v1910_v55 = vand.u32 4294901760, %v1909_v39  ;;  %20540 = vst [vmem:[#allocation22_spill] sm:$0xff] %v11006_v60  ;;  %v11032_v30 = vsub.f32 %v1233_v42, %v11006_v60  ;;  %v289_v39 = vld [vmem:[%s10844_s8 + $0x80] sm:$0xff] }
  0x26   : > { %1286 = vmatprep.subr.mxu0 %v19547_v9  ;;  %327 = vperm.xlu1 %10639, %v280_v53   ;;  %v1916_v53 = vsub.f32 %v10951_v12, %v19521_v33  ;;  %v293_v33 = vld [vmem:[%s10844_s8 + $0xa0] sm:$0xff]  ;;  %p10642_p12 = pnand %p10641_p11, %p10774_p5  ;;  %p10649_p2 = por %p10648_p1, %p10647_p0 }
  0x27   : > { %324 = vperm.xlu0 %10638, %v279_v54   ;;  %1870 = vmatprep.subr.mxu1 %v19547_v9  ;;  %v11000_v54 = vsub.f32 %v1235_v25, %v10974_v35  ;;  %v11023_v25 = vand.u32 4294901760, %v1264_v61  ;;  %20542 = vst [vmem:[#allocation24_spill] sm:$0xff] %v11032_v30 }
  0x28   : > { %1288 = vmatpush1.msra.mxu0 %v10876_v37  ;;  %1876 = vmatpush1.msra.mxu1 %v1875_v57  ;;  %v19518_v57 = vand.u32 4294901760, %v10983_v41  ;;  %v1917_v8 = vand.u32 4294901760, %v1916_v53  ;;  %p10643_p13 = pneg %p10642_p12 }
  0x29   : > { %1289 = vmatprep.subr.mxu0 %v19547_v9  ;;  %1877 = vmatprep.subr.mxu1 %v19547_v9  ;;  %v11049_v53 = vsub.f32 %v1264_v61, %v11023_v25  ;;  %v291_v61 = vld [vmem:[%s10844_s8 + $0x90] sm:$0xff] }
  0x2a   : > { %1291 = vmatpush1.msra.mxu0 %v10896_v46  ;;  %333 = vperm.xlu1 %10639, %v282_v0   ;;  %v287_v0 = vld [vmem:[%s10844_s8 + $0x70] sm:$0xff]  ;;  %p10650_p3 = pnand %p10649_p2, %p10643_p13 }
  0x2b   : > { %330 = vperm.xlu0 %10638, %v281_v1   ;;  %1883 = vmatpush1.msra.mxu1 %v1882_v2  ;;  %v1923_v1 = vsub.f32 %v10968_v31, %v19520_v49  ;;  %v11017_v2 = vsub.f32 %v1234_v38, %v10994_v52  ;;  %v290_v38 = vld [vmem:[%s10844_s8 + $0x88] sm:$0xff]  ;;  %20544 = vst [vmem:[#allocation26_spill] sm:$0xff] %v11049_v53 }
  0x2c   : > { %1292 = vmatprep.subr.mxu0 %v19547_v9  ;;  %1884 = vmatprep.subr.mxu1 %v19547_v9  ;;  %v294_v49 = vld [vmem:[%s10844_s8 + $0xa8] sm:$0xff] }
  0x2d   : > { %1294 = vmatpush1.msra.mxu0 %v10908_v51  ;;  %1890 = vmatpush1.msra.mxu1 %v1889_v17  ;;  %20541 = vst [vmem:[#allocation23_spill] sm:$0xff] %v11017_v2  ;;  %v19517_v17 = vand.u32 4294901760, %v11000_v54 }
  0x2e   : > { %1295 = vmatprep.subr.mxu0 %v19547_v9  ;;  %339 = vperm.xlu1 %10639, %v284_v26   ;;  %v1263_v26 = vld [vmem:[%s19514_s3 + $0xf0] sm:$0xff] }
  0x2f   : > { %336 = vperm.xlu0 %10638, %v283_v29   ;;  %1891 = vmatprep.subr.mxu1 %v19547_v9  ;;  %v1930_v29 = vsub.f32 %v10983_v41, %v19518_v57  ;;  %v11043_v42 = vand.u32 4294901760, %v1263_v26 }
  0x30   : > { %1297 = vmatpush1.msra.mxu0 %v10925_v59  ;;  %1897 = vmatpush1.msra.mxu1 %v1896_v32  ;;  %v1262_v32 = vld [vmem:[%s19514_s3 + $0xe8] sm:$0xff] }
  0x31   : > { %1298 = vmatprep.subr.mxu0 %v19547_v9  ;;  %1898 = vmatprep.subr.mxu1 %v19547_v9  ;;  %20543 = vst [vmem:[#allocation25_spill] sm:$0xff] %v11043_v42 }
  0x32   : > { %1300 = vmatpush1.msra.mxu0 %v10945_v7  ;;  %345 = vperm.xlu1 %10639, %v286_v43   ;;  %v1924_v43 = vand.u32 4294901760, %v1923_v1  ;;  %v1261_v1 = vld [vmem:[%s19514_s3 + $0xe0] sm:$0xff] }
  0x33   : > { %342 = vperm.xlu0 %10638, %v285_v44   ;;  %1904 = vmatpush1.msra.mxu1 %v1903_v47  ;;  %v19519_v44 = vand.u32 4294901760, %v11017_v2  ;;  %v1937_v47 = vsub.f32 %v11000_v54, %v19517_v17 }
  0x34   : > { %1301 = vmatprep.subr.mxu0 %v19547_v9  ;;  %1905 = vmatprep.subr.mxu1 %v19547_v9 }
  0x35   : > { %1303 = vmatpush1.msra.mxu0 %v10957_v24  ;;  %1911 = vmatpush1.msra.mxu1 %v1910_v55  ;;  %v1931_v55 = vand.u32 4294901760, %v1930_v29  ;;  %v1944_v17 = vsub.f32 %v11017_v2, %v19519_v44  ;;  %v11066_v29 = vsub.f32 %v1263_v26, %v11043_v42  ;;  %v1938_v57 = vand.u32 4294901760, %v1937_v47  ;;  %v1259_v47 = vld [vmem:[%s19514_s3 + $0xd0] sm:$0xff] }
  0x36   : > { %1304 = vmatprep.subr.mxu0 %v19547_v9  ;;  %351 = vperm.xlu1 %10639, %v288_v63   ;;  %v19523_v63 = vand.u32 4294901760, %v11032_v30  ;;  %v11104_v3 = vand.u32 4294901760, %v1259_v47 }
  0x37   : > { %348 = vperm.xlu0 %10638, %v287_v0   ;;  %1912 = vmatprep.subr.mxu1 %v19547_v9  ;;  %v11055_v0 = vand.u32 4294901760, %v1262_v32  ;;  %20546 = vst [vmem:[#allocation28_spill] sm:$0xff] %v11066_v29  ;;  %v19528_v23 = vand.u32 4294901760, %v11066_v29 }
  0x38   : > { %1306 = vmatpush1.msra.mxu0 %v10974_v35  ;;  %1918 = vmatpush1.msra.mxu1 %v1917_v8  ;;  %v292_v8 = vld [vmem:[%s10844_s8 + $0x98] sm:$0xff]  ;;  %v1951_v26 = vsub.f32 %v11032_v30, %v19523_v63  ;;  %20551 = vst [vmem:[#allocation33_spill] sm:$0xff] %v11104_v3 }
  0x39   : > { %1307 = vmatprep.subr.mxu0 %v19547_v9  ;;  %1919 = vmatprep.subr.mxu1 %v19547_v9  ;;  %20545 = vst [vmem:[#allocation27_spill] sm:$0xff] %v11055_v0  ;;  %v11081_v44 = vsub.f32 %v1262_v32, %v11055_v0  ;;  %v1965_v58 = vsub.f32 %v11066_v29, %v19528_v23 }
  0x3a   : > { %1309 = vmatpush1.msra.mxu0 %v10994_v52  ;;  %357 = vperm.xlu1 %10639, %v290_v38   ;;  %v19525_v38 = vand.u32 4294901760, %v11049_v53  ;;  %v11130_v23 = vsub.f32 %v1259_v47, %v11104_v3 }
  0x3b   : > { %354 = vperm.xlu0 %10638, %v289_v39   ;;  %1925 = vmatpush1.msra.mxu1 %v1924_v43  ;;  %v11072_v39 = vand.u32 4294901760, %v1261_v1  ;;  %v1260_v43 = vld [vmem:[%s19514_s3 + $0xd8] sm:$0xff]  ;;  %20548 = vst [vmem:[#allocation30_spill] sm:$0xff] %v11081_v44  ;;  %v19532_v63 = vand.u32 4294901760, %v11081_v44 }
  0x3c   : > { %1310 = vmatprep.subr.mxu0 %v19547_v9  ;;  %1926 = vmatprep.subr.mxu1 %v19547_v9  ;;  %v11092_v32 = vand.u32 4294901760, %v1260_v43  ;;  %20554 = vst [vmem:[#allocation36_spill] sm:$0xff] %v11130_v23 }
  0x3d   : > { %1312 = vmatpush1.msra.mxu0 %v11006_v60  ;;  %20547 = vst [vmem:[#allocation29_spill] sm:$0xff] %v11072_v39  ;;  %1932 = vmatpush1.msra.mxu1 %v1931_v55  ;;  %v1945_v55 = vand.u32 4294901760, %v1944_v17  ;;  %v1952_v17 = vand.u32 4294901760, %v1951_v26 }
  0x3e   : > { %1313 = vmatprep.subr.mxu0 %v19547_v9  ;;  %363 = vperm.xlu1 %10639, %v292_v8   ;;  %20549 = vst [vmem:[#allocation31_spill] sm:$0xff] %v11092_v32  ;;  %v1958_v8 = vsub.f32 %v11049_v53, %v19525_v38  ;;  %v296_v38 = vld [vmem:[%s10844_s8 + $0xb8] sm:$0xff]  ;;  %v11115_v26 = vsub.f32 %v1260_v43, %v11092_v32 }
  0x3f   : > { %360 = vperm.xlu0 %10638, %v291_v61   ;;  %1933 = vmatprep.subr.mxu1 %v19547_v9  ;;  %v11098_v61 = vsub.f32 %v1261_v1, %v11072_v39  ;;  %v295_v1 = vld [vmem:[%s10844_s8 + $0xb0] sm:$0xff]  ;;  %v1972_v43 = vsub.f32 %v11081_v44, %v19532_v63  ;;  %v19542_v63 = vand.u32 4294901760, %v11130_v23 }
  0x40   : > { %1315 = vmatpush2.msra.mxu0 %v11023_v25  ;;  %1939 = vmatpush1.msra.mxu1 %v1938_v57  ;;  %v1258_v57 = vld [vmem:[%s19514_s3 + $0xc8] sm:$0xff]  ;;  %20552 = vst [vmem:[#allocation34_spill] sm:$0xff] %v11115_v26  ;;  %v1959_v50 = vand.u32 4294901760, %v1958_v8  ;;  %v1256_v8 = vld [vmem:[%s19514_s3 + $0xb8] sm:$0xff]  ;;  %v19537_v27 = vand.u32 4294901760, %v11115_v26 }
  0x41   : > { %20550 = vst [vmem:[#allocation32_spill] sm:$0xff] %v11098_v61  ;;  %1316 = vmatprep.subr.mxu0 %v19547_v9  ;;  %1940 = vmatprep.subr.mxu1 %v19547_v9  ;;  %v11153_v20 = vand.u32 4294901760, %v1256_v8 }
  0x42   : > { %1318 = vmatpush2.msra.mxu0 %v11043_v42  ;;  %369 = vperm.xlu1 %10639, %v294_v49   ;;  %v19534_v49 = vand.u32 4294901760, %v11098_v61  ;;  %v1986_v19 = vsub.f32 %v11115_v26, %v19537_v27  ;;  %v918_v26 = vld [vmem:[%s11355_s6 + $0x28] sm:$0xff] }
  0x43   : > { %366 = vperm.xlu0 %10638, %v293_v33   ;;  %1946 = vmatpush1.msra.mxu1 %v1945_v55  ;;  %v11121_v33 = vand.u32 4294901760, %v1258_v57  ;;  %v1257_v55 = vld [vmem:[%s19514_s3 + $0xc0] sm:$0xff]  ;;  %20557 = vst [vmem:[#allocation39_spill] sm:$0xff] %v11153_v20  ;;  %v11179_v27 = vsub.f32 %v1256_v8, %v11153_v20 }
  0x44   : > { %1319 = vmatprep.subr.mxu0 %v19547_v9  ;;  %1947 = vmatprep.subr.mxu1 %v19547_v9  ;;  %v11141_v47 = vand.u32 4294901760, %v1257_v55 }
  0x45   : > { %1321 = vmatpush2.msra.mxu0 %v11055_v0  ;;  %20553 = vst [vmem:[#allocation35_spill] sm:$0xff] %v11121_v33  ;;  %1953 = vmatpush1.msra.mxu1 %v1952_v17  ;;  %v1966_v17 = vand.u32 4294901760, %v1965_v58  ;;  %v1973_v58 = vand.u32 4294901760, %v1972_v43  ;;  %20560 = vst [vmem:[#allocation42_spill] sm:$0xff] %v11179_v27 }
  0x46   : > { %1322 = vmatprep.subr.mxu0 %v19547_v9  ;;  %375 = vperm.xlu1 %10639, %v296_v38   ;;  %20555 = vst [vmem:[#allocation37_spill] sm:$0xff] %v11141_v47  ;;  %v1979_v38 = vsub.f32 %v11098_v61, %v19534_v49  ;;  %v300_v49 = vld [vmem:[%s10844_s8 + $0xd8] sm:$0xff]  ;;  %v11164_v43 = vsub.f32 %v1257_v55, %v11141_v47 }
  0x47   : > { %372 = vperm.xlu0 %10638, %v295_v1   ;;  %1954 = vmatprep.subr.mxu1 %v19547_v9  ;;  %v11147_v1 = vsub.f32 %v1258_v57, %v11121_v33  ;;  %v299_v57 = vld [vmem:[%s10844_s8 + $0xd0] sm:$0xff]  ;;  %v1993_v55 = vsub.f32 %v11130_v23, %v19542_v63 }
  0x48   : > { %1324 = vmatpush2.msra.mxu0 %v11072_v39  ;;  %1960 = vmatpush2.msra.mxu1 %v1959_v50  ;;  %v1255_v50 = vld [vmem:[%s19514_s3 + $0xb0] sm:$0xff]  ;;  %20558 = vst [vmem:[#allocation40_spill] sm:$0xff] %v11164_v43  ;;  %v1980_v18 = vand.u32 4294901760, %v1979_v38  ;;  %v1253_v38 = vld [vmem:[%s19514_s3 + $0xa0] sm:$0xff] }
  0x49   : > { %20556 = vst [vmem:[#allocation38_spill] sm:$0xff] %v11147_v1  ;;  %1325 = vmatprep.subr.mxu0 %v19547_v9  ;;  %1961 = vmatprep.subr.mxu1 %v19547_v9 }
  0x4a   : > { %1327 = vmatpush2.msra.mxu0 %v11092_v32  ;;  %381 = vperm.xlu1 %10639, %v298_v45   ;;  %v302_v45 = vld [vmem:[%s10844_s8 + $0xe8] sm:$0xff]  ;;  %v20567_v32 = vmov 0.0  }
  0x4b   : > { %378 = vperm.xlu0 %10638, %v297_v36   ;;  %1967 = vmatpush2.msra.mxu1 %v1966_v17  ;;  %v11170_v36 = vand.u32 4294901760, %v1255_v50  ;;  %v1254_v17 = vld [vmem:[%s19514_s3 + $0xa8] sm:$0xff] }
  0x4c   : > { %1328 = vmatprep.subr.mxu0 %v19547_v9  ;;  %1968 = vmatprep.subr.mxu1 %v19547_v9  ;;  %v11190_v8 = vand.u32 4294901760, %v1254_v17 }
  0x4d   : > { %1330 = vmatpush2.msra.mxu0 %v11104_v3  ;;  %20559 = vst [vmem:[#allocation41_spill] sm:$0xff] %v11170_v36  ;;  %1974 = vmatpush2.msra.mxu1 %v1973_v58  ;;  %v301_v3 = vld [vmem:[%s10844_s8 + $0xe0] sm:$0xff]  ;;  %v1987_v58 = vand.u32 4294901760, %v1986_v19  ;;  %v11196_v63 = vsub.f32 %v1255_v50, %v11170_v36  ;;  %v1994_v19 = vand.u32 4294901760, %v1993_v55  ;;  %v304_v50 = vld [vmem:[%s10844_s8 + $0xf8] sm:$0xff] }
  0x4e   : > { %1331 = vmatprep.subr.mxu0 %v19547_v9  ;;  %387 = vperm.xlu1 %10639, %v300_v49   ;;  %20561 = vst [vmem:[#allocation43_spill] sm:$0xff] %v11190_v8  ;;  %v20562_v49 = vand.u32 4294901760, %v11147_v1  ;;  %v11213_v55 = vsub.f32 %v1254_v17, %v11190_v8  ;;  %v1251_v17 = vld [vmem:[%s19514_s3 + $0x90] sm:$0xff] }
  0x4f   : > { %384 = vperm.xlu0 %10638, %v299_v57   ;;  %1975 = vmatprep.subr.mxu1 %v19547_v9  ;;  %20563 = vst [vmem:[#allocation44_spill] sm:$0xff] %v11196_v63 }
  0x50   : > { %1333 = vmatpush2.msra.mxu0 %v11121_v33  ;;  %1981 = vmatpush2.msra.mxu1 %v1980_v18  ;;  %v2000_v57 = vsub.f32 %v11147_v1, %v20562_v49  ;;  %v11202_v33 = vand.u32 4294901760, %v1253_v38  ;;  %v1252_v18 = vld [vmem:[%s19514_s3 + $0x98] sm:$0xff]  ;;  %v303_v49 = vld [vmem:[%s10844_s8 + $0xf0] sm:$0xff]  ;;  %v20565_v1 = vand.u32 4294901760, %v11164_v43  ;;  %20566 = vst [vmem:[#allocation46_spill] sm:$0xff] %v11213_v55  ;;  %s9725_s8 = scalar_lea.hbm %s19516_s5, %s10595_s30 }
  0x51   : > { %1334 = vmatprep.subr.mxu0 %v19547_v9  ;;  %1982 = vmatprep.subr.mxu1 %v19547_v9 }
  0x52   : > { %1336 = vmatpush2.msra.mxu0 %v11141_v47  ;;  %20564 = vst [vmem:[#allocation45_spill] sm:$0xff] %v11202_v33  ;;  %393 = vperm.xlu1 %10639, %v302_v45   ;;  %v2007_v9 = vsub.f32 %v11164_v43, %v20565_v1  ;;  %v11225_v1 = vand.u32 4294901760, %v1252_v18  ;;  %v11234_v43 = vsub.f32 %v1253_v38, %v11202_v33  ;;  %v594_v45 = vld [vmem:[%s11220_s12 + $0x8] sm:$0xff]  ;;  %v11245_v38 = vand.u32 4294901760, %v1251_v17 }
  0x53   : > { %390 = vperm.xlu0 %10638, %v301_v3   ;;  %1988 = vmatpush2.msra.mxu1 %v1987_v58  ;;  %v2001_v3 = vand.u32 4294901760, %v2000_v57  ;;  %v20569_v58 = vand.u32 4294901760, %v11179_v27  ;;  %v1250_v57 = vld [vmem:[%s19514_s3 + $0x88] sm:$0xff] }
  0x54   : > { %1337 = vmatprep.subr.mxu0 %v20567_v32  ;;  %1989 = vmatprep.subr.mxu1 %v20567_v32  ;;  %20568 = vst [vmem:[#allocation47_spill] sm:$0xff] %v11225_v1  ;;  %20570 = vst [vmem:[#allocation48_spill] sm:$0xff] %v11234_v43  ;;  %v11268_v23 = vsub.f32 %v1251_v17, %v11245_v38  ;;  %v598_v17 = vld [vmem:[%s11220_s12 + $0x28] sm:$0xff] }
  0x55   : > { %1339 = vmatpush2.msra.mxu0 %v11153_v20  ;;  %1995 = vmatpush2.msra.mxu1 %v1994_v19  ;;  %v2014_v47 = vsub.f32 %v11179_v27, %v20569_v58  ;;  %v593_v20 = vld [vmem:[%s11220_s12] sm:$0xff]  ;;  %v2008_v19 = vand.u32 4294901760, %v2007_v9  ;;  %20571 = vst [vmem:[#allocation49_spill] sm:$0xff] %v11245_v38  ;;  %v11251_v58 = vsub.f32 %v1252_v18, %v11225_v1  ;;  %v595_v18 = vld [vmem:[%s11220_s12 + $0x10] sm:$0xff] }
  0x56   : > { %1340 = vmatprep.subr.mxu0 %v20567_v32  ;;  %399 = vperm.xlu1 %10639, %v304_v50   ;;  %v20572_v50 = vand.u32 4294901760, %v11196_v63  ;;  %20576 = vst [vmem:[#allocation52_spill] sm:$0xff] %v11268_v23 }
  0x57   : > { %396 = vperm.xlu0 %10638, %v303_v49   ;;  %1996 = vmatprep.subr.mxu1 %v20567_v32  ;;  %20573 = vst [vmem:[#allocation50_spill] sm:$0xff] %v11251_v58  ;;  %v2015_v9 = vand.u32 4294901760, %v2014_v47 }
  0x58   : > { %1342 = vmatpush2.msra.mxu0 %v11170_v36  ;;  %2002 = vmatpush2.msra.mxu1 %v2001_v3  ;;  %v2021_v49 = vsub.f32 %v11196_v63, %v20572_v50  ;;  %v11257_v36 = vand.u32 4294901760, %v1250_v57  ;;  %v1249_v3 = vld [vmem:[%s19514_s3 + $0x80] sm:$0xff]  ;;  %v596_v50 = vld [vmem:[%s11220_s12 + $0x18] sm:$0xff]  ;;  %v20575_v63 = vand.u32 4294901760, %v11213_v55 }
  0x59   : > { %1343 = vmatprep.subr.mxu0 %v20567_v32  ;;  %2003 = vmatprep.subr.mxu1 %v20567_v32 }
  0x5a   : > { %1345 = vmatpush2.msra.mxu0 %v11190_v8  ;;  %20574 = vst [vmem:[#allocation51_spill] sm:$0xff] %v11257_v36  ;;  %629 = vperm.xlu1 %10639, %v594_v45   ;;  %v2028_v47 = vsub.f32 %v11213_v55, %v20575_v63  ;;  %v2022_v8 = vand.u32 4294901760, %v2021_v49  ;;  %v11280_v63 = vsub.f32 %v1250_v57, %v11257_v36  ;;  %v597_v49 = vld [vmem:[%s11220_s12 + $0x20] sm:$0xff] }
  0x5b   : > { %626 = vperm.xlu0 %10638, %v593_v20   ;;  %2009 = vmatpush2.msra.mxu1 %v2008_v19  ;;  %v11274_v20 = vand.u32 4294901760, %v1249_v3  ;;  %v20578_v19 = vand.u32 4294901760, %v11234_v43 }
  0x5c   : > { %1346 = vmatprep.subr.mxu0 %v20567_v32  ;;  %2010 = vmatprep.subr.mxu1 %v20567_v32  ;;  %20579 = vst [vmem:[#allocation54_spill] sm:$0xff] %v11280_v63  ;;  %v2029_v45 = vand.u32 4294901760, %v2028_v47  ;;  %v599_v47 = vld [vmem:[%s11220_s12 + $0x30] sm:$0xff] }
  0x5d   : > { %1348 = vmatpush2.msra.mxu0 %v11202_v33  ;;  %20577 = vst [vmem:[#allocation53_spill] sm:$0xff] %v11274_v20  ;;  %2016 = vmatpush2.msra.mxu1 %v2015_v9  ;;  %v2035_v27 = vsub.f32 %v11234_v43, %v20578_v19  ;;  %v19570_v9 = vand.u32 4294901760, %v11268_v23  ;;  %v20580_v19 = vand.u32 4294901760, %v11251_v58  ;;  %v11292_v33 = vsub.f32 %v1249_v3, %v11274_v20 }
  0x5e   : > { %1349 = vmatprep.subr.mxu0 %v20567_v32  ;;  %635 = vperm.xlu1 %10639, %v596_v50  }
  0x5f   : > { %632 = vperm.xlu0 %10638, %v595_v18   ;;  %2017 = vmatprep.subr.mxu1 %v20567_v32  ;;  %v2042_v57 = vsub.f32 %v11251_v58, %v20580_v19  ;;  %20581 = vst [vmem:[#allocation55_spill] sm:$0xff] %v11292_v33  ;;  %v2036_v50 = vand.u32 4294901760, %v2035_v27  ;;  %v19568_v18 = vand.u32 4294901760, %v11280_v63  ;;  %v2049_v3 = vsub.f32 %v11268_v23, %v19570_v9 }
  0x60   : > { %1351 = vmatpush2.msra.mxu0 %v11225_v1  ;;  %2023 = vmatpush2.msra.mxu1 %v2022_v8  ;;  %v600_v8 = vld [vmem:[%s11220_s12 + $0x38] sm:$0xff]  ;;  %v19567_v19 = vand.u32 4294901760, %v11292_v33 }
  0x61   : > { %1352 = vmatprep.subr.mxu0 %v20567_v32  ;;  %2024 = vmatprep.subr.mxu1 %v20567_v32  ;;  %v2043_v27 = vand.u32 4294901760, %v2042_v57  ;;  %v2050_v57 = vand.u32 4294901760, %v2049_v3  ;;  %v603_v3 = vld [vmem:[%s11220_s12 + $0x50] sm:$0xff] }
  0x62   : > { %1354 = vmatpush2.msra.mxu0 %v11245_v38  ;;  %641 = vperm.xlu1 %10639, %v598_v17   ;;  %v2056_v17 = vsub.f32 %v11280_v63, %v19568_v18  ;;  %v605_v18 = vld [vmem:[%s11220_s12 + $0x60] sm:$0xff] }
  0x63   : > { %638 = vperm.xlu0 %10638, %v597_v49   ;;  %2030 = vmatpush2.msra.mxu1 %v2029_v45  ;;  %v602_v45 = vld [vmem:[%s11220_s12 + $0x48] sm:$0xff]  ;;  %v601_v49 = vld [vmem:[%s11220_s12 + $0x40] sm:$0xff] }
  0x64   : > { %1355 = vmatprep.subr.mxu0 %v20567_v32  ;;  %2031 = vmatprep.subr.mxu1 %v20567_v32 }
  0x65   : > { %1357 = vmatpush2.msra.mxu0 %v11257_v36  ;;  %2037 = vmatpush2.msra.mxu1 %v2036_v50  ;;  %v2063_v50 = vsub.f32 %v11292_v33, %v19567_v19  ;;  %v606_v19 = vld [vmem:[%s11220_s12 + $0x68] sm:$0xff] }
  0x66   : > { %1358 = vmatprep.subr.mxu0 %v20567_v32  ;;  %647 = vperm.xlu1 %10639, %v600_v8   ;;  %v2057_v8 = vand.u32 4294901760, %v2056_v17  ;;  %v608_v17 = vld [vmem:[%s11220_s12 + $0x78] sm:$0xff] }
  0x67   : > { %644 = vperm.xlu0 %10638, %v599_v47   ;;  %2038 = vmatprep.subr.mxu1 %v20567_v32  ;;  %v604_v47 = vld [vmem:[%s11220_s12 + $0x58] sm:$0xff] }
  0x68   : > { %1360 = vmatpush2.msra.mxu0 %v11274_v20  ;;  %2044 = vmatpush2.msra.mxu1 %v2043_v27  ;;  %v2064_v27 = vand.u32 4294901760, %v2063_v50  ;;  %v612_v50 = vld [vmem:[%s11220_s12 + $0x98] sm:$0xff] }
  0x69   : > { %2291 = vmatprep.subr.mxu0 %v20567_v32  ;;  %2045 = vmatprep.subr.mxu1 %v20567_v32 }
  0x6a   : > { %653 = vperm.xlu1 %10639, %v602_v45   ;;  %2051 = vmatpush2.msra.mxu1 %v2050_v57  ;;  %v607_v45 = vld [vmem:[%s11220_s12 + $0x70] sm:$0xff]  ;;  %v609_v57 = vld [vmem:[%s11220_s12 + $0x80] sm:$0xff] }
  0x6b   : > { %650 = vperm.xlu0 %10638, %v601_v49   ;;  %2052 = vmatprep.subr.mxu1 %v20567_v32  ;;  %v610_v49 = vld [vmem:[%s11220_s12 + $0x88] sm:$0xff] }
  0x6c   : > { %2058 = vmatpush2.msra.mxu1 %v2057_v8  ;;  %v611_v8 = vld [vmem:[%s11220_s12 + $0x90] sm:$0xff] }
  0x6d   : > { %2059 = vmatprep.subr.mxu1 %v20567_v32 }
  0x6e   : > { %659 = vperm.xlu1 %10639, %v604_v47   ;;  %2065 = vmatpush2.msra.mxu1 %v2064_v27  ;;  %v616_v47 = vld [vmem:[%s11220_s12 + $0xb8] sm:$0xff]  ;;  %v618_v27 = vld [vmem:[%s11220_s12 + $0xc8] sm:$0xff] }
  0x6f   : > { %656 = vperm.xlu0 %10638, %v603_v3   ;;  %2708 = vmatprep.subr.mxu1 %v20567_v32  ;;  %v615_v3 = vld [vmem:[%s11220_s12 + $0xb0] sm:$0xff] }
  0x72   : > { %665 = vperm.xlu1 %10639, %v606_v19   ;;  %v614_v19 = vld [vmem:[%s11220_s12 + $0xa8] sm:$0xff] }
  0x73   : > { %662 = vperm.xlu0 %10638, %v605_v18   ;;  %v613_v18 = vld [vmem:[%s11220_s12 + $0xa0] sm:$0xff] }
  0x76   : > { %671 = vperm.xlu1 %10639, %v608_v17   ;;  %v617_v17 = vld [vmem:[%s11220_s12 + $0xc0] sm:$0xff] }
  0x77   : > { %668 = vperm.xlu0 %10638, %v607_v45   ;;  %v19569_v45 = vlaneseq }
  0x7a   : > { %677 = vperm.xlu1 %10639, %v610_v49   ;;  %v620_v49 = vld [vmem:[%s11220_s12 + $0xd8] sm:$0xff] }
  0x7b   : > { %674 = vperm.xlu0 %10638, %v609_v57   ;;  %v619_v57 = vld [vmem:[%s11220_s12 + $0xd0] sm:$0xff] }
  0x7e   : > { %683 = vperm.xlu1 %10639, %v612_v50   ;;  %v11342_v50 = vand.u32 127, %v19569_v45 }
  0x7f   : > { %680 = vperm.xlu0 %10638, %v611_v8   ;;  %v622_v8 = vld [vmem:[%s11220_s12 + $0xe8] sm:$0xff] }
  0x80   : > { %20582 = vst [vmem:[#allocation56_spill] sm:$0xff] %v11342_v50 }
  0x82   : > { %689 = vperm.xlu1 %10639, %v614_v19   ;;  %v621_v19 = vld [vmem:[%s11220_s12 + $0xe0] sm:$0xff] }
  0x83   : > { %686 = vperm.xlu0 %10638, %v613_v18   ;;  %v11347_v18 = vadd.s32 128, %v11342_v50 }
  0x85   : > { %20583 = vst [vmem:[#allocation57_spill] sm:$0xff] %v11347_v18 }
  0x86   : > { %695 = vperm.xlu1 %10639, %v616_v47   ;;  %v624_v47 = vld [vmem:[%s11220_s12 + $0xf8] sm:$0xff] }
  0x87   : > { %692 = vperm.xlu0 %10638, %v615_v3   ;;  %v623_v3 = vld [vmem:[%s11220_s12 + $0xf0] sm:$0xff] }
  0x8a   : > { %701 = vperm.xlu1 %10639, %v618_v27  }
  0x8b   : > { %698 = vperm.xlu0 %10638, %v617_v17  }
  0x8e   : > { %707 = vperm.xlu1 %10639, %v620_v49   ;;  %v19579_v49 = vmov 1.0  }
  0x8f   : > { %704 = vperm.xlu0 %10638, %v619_v57  }
  0x92   : > { %713 = vperm.xlu1 %10639, %v622_v8   ;;  %v914_v8 = vld [vmem:[%s11355_s6 + $0x8] sm:$0xff] }
  0x93   : > { %710 = vperm.xlu0 %10638, %v621_v19   ;;  %v913_v19 = vld [vmem:[%s11355_s6] sm:$0xff] }
  0x95   : > { %v11357_v27 = vpop.permute.xlu1 %312 }
  0x96   : > { %20584 = vst [vmem:[#allocation58_spill] sm:$0xff] %v11357_v27  ;;  %v11359_v17 = vpop.permute.xlu0 %306  ;;  %719 = vperm.xlu1 %10639, %v624_v47   ;;  %vm406_vm2 = vcmp.eq.s32.totalorder %v11347_v18, %v11357_v27  ;;  %vm405_vm3 = vcmp.eq.s32.totalorder %v11342_v50, %v11357_v27 }
  0x97   : > { %20585 = vst [vmem:[#allocation59_spill] sm:$0xff] %v11359_v17  ;;  %716 = vperm.xlu0 %10638, %v623_v3   ;;  %vm402_vm0 = vcmp.eq.s32.totalorder %v11347_v18, %v11359_v17  ;;  %vm401_vm1 = vcmp.eq.s32.totalorder %v11342_v50, %v11359_v17  ;;  %v9826_v47 = vsel %vm406_vm2, 1.0, %v20567_v32  ;;  %v9825_v33 = vsel %vm405_vm3, 1.0, %v20567_v32  ;;  %v915_v17 = vld [vmem:[%s11355_s6 + $0x10] sm:$0xff] }
  0x98   : > { %10013 = vmatprep.mubr.msk.f32.mxu1 %vm402_vm0, %v19579_v49  ;;  %v9821_v57 = vsel %vm401_vm1, 1.0, %v20567_v32  ;;  %v9822_v3 = vsel %vm402_vm0, 1.0, %v20567_v32  ;;  %v11405_v23 = vsub.f32 %v9825_v33, %v9825_v33 }
  0x99   : > { %v11387_v45 = vsub.f32 %v9821_v57, %v9821_v57  ;;  %10014 = vmatmul.mubr.msk.f32.vlgmr.msra.gmra.mxu1 %vm401_vm1, %v19579_v49  ;;  %v11393_v9 = vsub.f32 %v9822_v3, %v9822_v3  ;;  %v11399_v63 = vpop.permute.xlu1 %315  ;;  %v11403_v57 = vsub.f32 %v9826_v47, %v9826_v47  ;;  %v20590_v47 = vmov 1.0  }
  0x9a   : > { %20588 = vst [vmem:[#allocation62_spill] sm:$0xff] %v11399_v63  ;;  %v11401_v20 = vpop.permute.xlu0 %309  ;;  %2710 = vmatpush1.msra.mxu1 %v10794_v4  ;;  %949 = vperm.xlu1 %10639, %v914_v8   ;;  %vm408_vm6 = vcmp.eq.s32.totalorder %v11347_v18, %v11399_v63  ;;  %vm407_vm7 = vcmp.eq.s32.totalorder %v11342_v50, %v11399_v63 }
  0x9b   : > { %20586 = vst [vmem:[#allocation60_spill] sm:$0xff] %v11387_v45  ;;  %20587 = vst [vmem:[#allocation61_spill] sm:$0xff] %v11393_v9  ;;  %946 = vperm.xlu0 %10638, %v913_v19   ;;  %vm404_vm4 = vcmp.eq.s32.totalorder %v11347_v18, %v11401_v20  ;;  %vm403_vm5 = vcmp.eq.s32.totalorder %v11342_v50, %v11401_v20  ;;  %v916_v19 = vld [vmem:[%s11355_s6 + $0x18] sm:$0xff]  ;;  %2711 = vmatprep.subr.mxu1 %v20567_v32  ;;  %v20591_v4 = vand.u32 4294901760, %v11393_v9 }
  0x9c   : > { %20589 = vst [vmem:[#allocation63_spill] sm:$0xff] %v11401_v20  ;;  %v9824_v33 = vsel %vm404_vm4, 1.0, %v20567_v32  ;;  %10015 = vmatprep.mubr.msk.f32.mxu1 %vm404_vm4, %v20590_v47  ;;  %v9823_v8 = vsel %vm403_vm5, 1.0, %v20567_v32  ;;  %v20592_v38 = vand.u32 4294901760, %v11387_v45  ;;  %2713 = vmatpush1.msra.mxu1 %v10796_v5  ;;  %v920_v5 = vld [vmem:[%s11355_s6 + $0x38] sm:$0xff] }
  0x9d   : > { %v11433_v49 = vsub.f32 %v9824_v33, %v9824_v33  ;;  %v11435_v3 = vsub.f32 %v9823_v8, %v9823_v8  ;;  %10016 = vmatmul.mubr.msk.f32.gmra.mxu1 %vm403_vm5, %v20590_v47  ;;  %v1364_v36 = vsub.f32 %v11393_v9, %v20591_v4  ;;  %v9828_v33 = vsel %vm408_vm6, 1.0, %v20567_v32  ;;  %v11465_v43 = vpop.permute.xlu1 %321  ;;  %2714 = vmatprep.subr.mxu1 %v20567_v32 }
  0x9e   : > { %v1370_v1 = vsub.f32 %v11387_v45, %v20592_v38  ;;  %v11447_v58 = vpop.permute.xlu0 %318  ;;  %10017 = vmatprep.mubr.msk.f32.mxu1 %vm406_vm2, %v20590_v47  ;;  %v9827_v4 = vsel %vm407_vm7, 1.0, %v20567_v32  ;;  %v19606_v8 = vand.u32 4294901760, %v11403_v57  ;;  %955 = vperm.xlu1 %10639, %v916_v19   ;;  %v19613_v9 = vand.u32 4294901760, %v11405_v23  ;;  %20594 = vst [vmem:[#allocation65_spill] sm:$0xff] %v11465_v43 }
  0x9f   : > { %20593 = vst [vmem:[#allocation64_spill] sm:$0xff] %v11447_v58  ;;  %952 = vperm.xlu0 %10638, %v915_v17   ;;  %v1365_v38 = vand.u32 4294901760, %v1364_v36  ;;  %v19607_v45 = vand.u32 4294901760, %v11433_v49  ;;  %v11467_v55 = vsub.f32 %v9828_v33, %v9828_v33  ;;  %v19608_v39 = vand.u32 4294901760, %v11435_v3  ;;  %v917_v36 = vld [vmem:[%s11355_s6 + $0x20] sm:$0xff]  ;;  %2716 = vmatpush1.msra.mxu1 %v10798_v6 }
  0xa0   : > { %v1371_v20 = vand.u32 4294901760, %v1370_v1  ;;  %vm410_vm8 = vcmp.eq.s32.totalorder %v11347_v18, %v11447_v58  ;;  %v1394_v17 = vsub.f32 %v11403_v57, %v19606_v8  ;;  %v11485_v19 = vsub.f32 %v9827_v4, %v9827_v4  ;;  %2717 = vmatprep.subr.mxu1 %v20567_v32 }
  0xa1   : > { %1366 = vmatprep.mubr.f32.mxu0 %v1365_v38  ;;  %10018 = vmatmul.mubr.msk.f32.gmra.mxu1 %vm405_vm3, %v20590_v47  ;;  %v1379_v1 = vsub.f32 %v11433_v49, %v19607_v45  ;;  %v9830_v33 = vsel %vm410_vm8, 1.0, %v20567_v32  ;;  %vm19702_vm9 = vcmp.eq.s32.totalorder %v11342_v50, %v11447_v58  ;;  %v1385_v4 = vsub.f32 %v11435_v3, %v19608_v39  ;;  %v11552_v63 = vpop.permute.xlu1 %327 }
  0xa2   : > { %1372 = vmatmul.mubr.f32.vlgmr.msra.gmra.mxu0 %v1371_v20  ;;  %10019 = vmatprep.mubr.msk.f32.mxu1 %vm408_vm6, %v20590_v47  ;;  %v9829_v38 = vsel %vm19702_vm9, 1.0, %v20567_v32  ;;  %v11505_v20 = vsub.f32 %v9830_v33, %v9830_v33  ;;  %v1400_v45 = vsub.f32 %v11405_v23, %v19613_v9  ;;  %vm19677_vm10 = vcmp.eq.s32.totalorder %v11347_v18, %v11465_v43  ;;  %v11512_v39 = vpop.permute.xlu0 %324 }
  0xa3   : > { %2294 = vmatpush1.msra.mxu0 %v10816_v13  ;;  %961 = vperm.xlu1 %10639, %v918_v26   ;;  %v1380_v8 = vand.u32 4294901760, %v1379_v1  ;;  %20595 = vst [vmem:[#allocation66_spill] sm:$0xff] %v11512_v39  ;;  %v1386_v27 = vand.u32 4294901760, %v1385_v4  ;;  %v1395_v13 = vand.u32 4294901760, %v1394_v17  ;;  %v19614_v26 = vand.u32 4294901760, %v11467_v55  ;;  %v919_v1 = vld [vmem:[%s11355_s6 + $0x30] sm:$0xff] }
  0xa4   : > { %958 = vperm.xlu0 %10638, %v917_v36   ;;  %2295 = vmatprep.subr.mxu0 %v20567_v32  ;;  %vm19625_vm11 = vcmp.eq.s32.totalorder %v11342_v50, %v11465_v43  ;;  %v11524_v33 = vsub.f32 %v9829_v38, %v9829_v38  ;;  %v9832_v17 = vsel %vm19677_vm10, 1.0, %v20567_v32  ;;  %vm19622_vm12 = vcmp.eq.s32.totalorder %v11347_v18, %v11512_v39  ;;  %v922_v36 = vld [vmem:[%s11355_s6 + $0x48] sm:$0xff] }
  0xa5   : > { %1381 = vmatprep.mubr.f32.mxu0 %v1380_v8  ;;  %10020 = vmatmul.mubr.msk.f32.gmra.mxu1 %vm407_vm7, %v20590_v47  ;;  %v1409_v8 = vsub.f32 %v11467_v55, %v19614_v26  ;;  %v9831_v4 = vsel %vm19625_vm11, 1.0, %v20567_v32  ;;  %v1401_v38 = vand.u32 4294901760, %v1400_v45  ;;  %v11546_v9 = vsub.f32 %v9832_v17, %v9832_v17  ;;  %20598 = vst [vmem:[#allocation68_spill] sm:$0xff] %v11552_v63 }
  0xa6   : > { %1387 = vmatmul.mubr.f32.gmra.mxu0 %v1386_v27  ;;  %10021 = vmatprep.mubr.msk.f32.mxu1 %vm410_vm8, %v20590_v47  ;;  %v20597_v26 = vand.u32 4294901760, %v11485_v19  ;;  %v921_v27 = vld [vmem:[%s11355_s6 + $0x40] sm:$0xff]  ;;  %vm19632_vm13 = vcmp.eq.s32.totalorder %v11342_v50, %v11512_v39  ;;  %v20599_v17 = vand.u32 4294901760, %v11505_v20  ;;  %vm19629_vm14 = vcmp.eq.s32.totalorder %v11347_v18, %v11552_v63  ;;  %v11593_v58 = vpop.permute.xlu0 %330 }
  0xa7   : > { %2298 = vmatpush1.msra.mxu0 %v10819_v14  ;;  %967 = vperm.xlu1 %10639, %v920_v5   ;;  %20596 = vst [vmem:[#allocation67_spill] sm:$0xff] %v11546_v9  ;;  %v1410_v45 = vand.u32 4294901760, %v1409_v8  ;;  %v9833_v8 = vsel %vm19632_vm13, 1.0, %v20567_v32  ;;  %20602 = vst [vmem:[#allocation70_spill] sm:$0xff] %v11593_v58  ;;  %vm19639_vm15 = vcmp.eq.s32.totalorder %v11342_v50, %v11552_v63 }
  0xa8   : > { %964 = vperm.xlu0 %10638, %v919_v1   ;;  %1396 = vmatprep.mubr.f32.mxu0 %v1395_v13  ;;  %v1415_v5 = vsub.f32 %v11485_v19, %v20597_v26  ;;  %v11567_v26 = vsub.f32 %v9831_v4, %v9831_v4  ;;  %v9834_v1 = vsel %vm19622_vm12, 1.0, %v20567_v32  ;;  %v11607_v4 = vsub.f32 %v9833_v8, %v9833_v8 }
  0xa9   : > { %10022 = vmatmul.mubr.msk.f32.gmra.mxu1 %vm19702_vm9, %v20590_v47  ;;  %2299 = vmatprep.subr.mxu0 %v20567_v32 }
  0xaa   : > { %1402 = vmatmul.mubr.f32.gmra.mxu0 %v1401_v38  ;;  %10023 = vmatprep.mubr.msk.f32.mxu1 %vm19677_vm10, %v20590_v47  ;;  %v1424_v38 = vsub.f32 %v11505_v20, %v20599_v17  ;;  %v1416_v13 = vand.u32 4294901760, %v1415_v5  ;;  %v924_v17 = vld [vmem:[%s11355_s6 + $0x58] sm:$0xff]  ;;  %v20601_v5 = vand.u32 4294901760, %v11524_v33 }
  0xab   : > { %2302 = vmatpush1.msra.mxu0 %v10822_v15  ;;  %973 = vperm.xlu1 %10639, %v922_v36   ;;  %v11586_v36 = vsub.f32 %v9834_v1, %v9834_v1  ;;  %v20603_v1 = vand.u32 4294901760, %v11546_v9 }
  0xac   : > { %970 = vperm.xlu0 %10638, %v921_v27   ;;  %1411 = vmatprep.mubr.f32.mxu0 %v1410_v45  ;;  %v923_v27 = vld [vmem:[%s11355_s6 + $0x50] sm:$0xff]  ;;  %v1430_v45 = vsub.f32 %v11524_v33, %v20601_v5  ;;  %v1425_v5 = vand.u32 4294901760, %v1424_v38  ;;  %v9835_v38 = vsel %vm19639_vm15, 1.0, %v20567_v32 }
  0xad   : > { %2303 = vmatprep.subr.mxu0 %v20567_v32  ;;  %20600 = vst [vmem:[#allocation69_spill] sm:$0xff] %v11586_v36  ;;  %10024 = vmatmul.mubr.msk.f32.gmra.mxu1 %vm19625_vm11, %v20590_v47  ;;  %v1439_v43 = vsub.f32 %v11546_v9, %v20603_v1  ;;  %v925_v1 = vld [vmem:[%s11355_s6 + $0x60] sm:$0xff]  ;;  %v11633_v9 = vpop.permute.xlu1 %333  ;;  %vm19646_vm11 = vcmp.eq.s32.totalorder %v11342_v50, %v11593_v58 }
  0xae   : > { %1417 = vmatmul.mubr.f32.gmra.mxu0 %v1416_v13  ;;  %10025 = vmatprep.mubr.msk.f32.mxu1 %vm19622_vm12, %v20590_v47  ;;  %v9836_v13 = vsel %vm19629_vm14, 1.0, %v20567_v32  ;;  %vm19636_vm12 = vcmp.eq.s32.totalorder %v11347_v18, %v11593_v58  ;;  %20606 = vst [vmem:[#allocation72_spill] sm:$0xff] %v11633_v9  ;;  %v11647_v8 = vsub.f32 %v9835_v38, %v9835_v38 }
  0xaf   : > { %2306 = vmatpush1.msra.mxu0 %v10826_v16  ;;  %979 = vperm.xlu1 %10639, %v924_v17   ;;  %v1431_v16 = vand.u32 4294901760, %v1430_v45  ;;  %v11626_v17 = vsub.f32 %v9836_v13, %v9836_v13  ;;  %v20605_v45 = vand.u32 4294901760, %v11567_v26  ;;  %v20607_v13 = vand.u32 4294901760, %v11586_v36 }
  0xb0   : > { %976 = vperm.xlu0 %10638, %v923_v27   ;;  %1426 = vmatprep.mubr.f32.mxu0 %v1425_v5  ;;  %v926_v27 = vld [vmem:[%s11355_s6 + $0x68] sm:$0xff] }
  0xb1   : > { %2719 = vmatpush1.msra.mxu1 %v10807_v10  ;;  %2307 = vmatprep.subr.mxu0 %v20567_v32  ;;  %20604 = vst [vmem:[#allocation71_spill] sm:$0xff] %v11626_v17  ;;  %v1445_v5 = vsub.f32 %v11567_v26, %v20605_v45  ;;  %v1440_v45 = vand.u32 4294901760, %v1439_v43  ;;  %v1454_v39 = vsub.f32 %v11586_v36, %v20607_v13  ;;  %v9837_v43 = vsel %vm19646_vm11, 1.0, %v20567_v32  ;;  %v927_v13 = vld [vmem:[%s11355_s6 + $0x70] sm:$0xff]  ;;  %v11673_v36 = vpop.permute.xlu0 %336 }
  0xb2   : > { %10026 = vmatmul.mubr.msk.f32.gmra.mxu1 %vm19632_vm13, %v20590_v47  ;;  %1432 = vmatmul.mubr.f32.gmra.mxu0 %v1431_v16  ;;  %v9838_v16 = vsel %vm19636_vm12, 1.0, %v20567_v32  ;;  %20610 = vst [vmem:[#allocation74_spill] sm:$0xff] %v11673_v36  ;;  %vm19653_vm13 = vcmp.eq.s32.totalorder %v11342_v50, %v11633_v9  ;;  %v11687_v38 = vsub.f32 %v9837_v43, %v9837_v43 }
  0xb3   : > { %10027 = vmatprep.mubr.msk.f32.mxu1 %vm19629_vm14, %v20590_v47  ;;  %2310 = vmatpush1.msra.mxu0 %v10847_v22  ;;  %v1446_v22 = vand.u32 4294901760, %v1445_v5  ;;  %vm19643_vm14 = vcmp.eq.s32.totalorder %v11347_v18, %v11633_v9  ;;  %v20609_v5 = vand.u32 4294901760, %v11607_v4 }
  0xb4   : > { %985 = vperm.xlu1 %10639, %v926_v27   ;;  %982 = vperm.xlu0 %10638, %v925_v1   ;;  %v11666_v27 = vsub.f32 %v9838_v16, %v9838_v16  ;;  %v928_v1 = vld [vmem:[%s11355_s6 + $0x78] sm:$0xff]  ;;  %v20611_v16 = vand.u32 4294901760, %v11626_v17 }
  0xb5   : > { %1441 = vmatprep.mubr.f32.mxu0 %v1440_v45  ;;  %2720 = vmatprep.subr.mxu1 %v20567_v32  ;;  %v1460_v45 = vsub.f32 %v11607_v4, %v20609_v5  ;;  %v1455_v5 = vand.u32 4294901760, %v1454_v39  ;;  %v9839_v39 = vsel %vm19653_vm13, 1.0, %v20567_v32 }
  0xb6   : > { %2722 = vmatpush1.msra.mxu1 %v10810_v11  ;;  %2311 = vmatprep.subr.mxu0 %v20567_v32  ;;  %20608 = vst [vmem:[#allocation73_spill] sm:$0xff] %v11666_v27  ;;  %v1469_v63 = vsub.f32 %v11626_v17, %v20611_v16  ;;  %v929_v16 = vld [vmem:[%s11355_s6 + $0x80] sm:$0xff]  ;;  %v11713_v17 = vpop.permute.xlu1 %339  ;;  %v11727_v43 = vsub.f32 %v9839_v39, %v9839_v39 }
  0xb7   : > { %10028 = vmatmul.mubr.msk.f32.gmra.mxu1 %vm19639_vm15, %v20590_v47  ;;  %1447 = vmatmul.mubr.f32.gmra.mxu0 %v1446_v22  ;;  %v9840_v22 = vsel %vm19643_vm14, 1.0, %v20567_v32  ;;  %20614 = vst [vmem:[#allocation76_spill] sm:$0xff] %v11713_v17  ;;  %vm19660_vm15 = vcmp.eq.s32.totalorder %v11342_v50, %v11673_v36 }
  0xb8   : > { %10029 = vmatprep.mubr.msk.f32.mxu1 %vm19636_vm12, %v20590_v47  ;;  %2314 = vmatpush1.msra.mxu0 %v10871_v34  ;;  %v1461_v34 = vand.u32 4294901760, %v1460_v45  ;;  %vm19650_vm12 = vcmp.eq.s32.totalorder %v11347_v18, %v11673_v36  ;;  %v20613_v45 = vand.u32 4294901760, %v11647_v8 }
  0xb9   : > { %991 = vperm.xlu1 %10639, %v928_v1   ;;  %988 = vperm.xlu0 %10638, %v927_v13   ;;  %v11706_v1 = vsub.f32 %v9840_v22, %v9840_v22  ;;  %v930_v13 = vld [vmem:[%s11355_s6 + $0x88] sm:$0xff]  ;;  %v20615_v22 = vand.u32 4294901760, %v11666_v27 }
  0xba   : > { %1456 = vmatprep.mubr.f32.mxu0 %v1455_v5  ;;  %2723 = vmatprep.subr.mxu1 %v20567_v32  ;;  %v1475_v5 = vsub.f32 %v11647_v8, %v20613_v45  ;;  %v1470_v45 = vand.u32 4294901760, %v1469_v63  ;;  %v9841_v63 = vsel %vm19660_vm15, 1.0, %v20567_v32 }
  0xbb   : > { %2725 = vmatpush1.msra.mxu1 %v10838_v21  ;;  %2315 = vmatprep.subr.mxu0 %v20567_v32  ;;  %20612 = vst [vmem:[#allocation75_spill] sm:$0xff] %v11706_v1  ;;  %v1484_v58 = vsub.f32 %v11666_v27, %v20615_v22  ;;  %v931_v22 = vld [vmem:[%s11355_s6 + $0x90] sm:$0xff]  ;;  %v11753_v27 = vpop.permute.xlu0 %342  ;;  %v11767_v39 = vsub.f32 %v9841_v63, %v9841_v63 }
  0xbc   : > { %10030 = vmatmul.mubr.msk.f32.gmra.mxu1 %vm19646_vm11, %v20590_v47  ;;  %1462 = vmatmul.mubr.f32.gmra.mxu0 %v1461_v34  ;;  %v9842_v34 = vsel %vm19650_vm12, 1.0, %v20567_v32  ;;  %20618 = vst [vmem:[#allocation78_spill] sm:$0xff] %v11753_v27  ;;  %vm19667_vm11 = vcmp.eq.s32.totalorder %v11342_v50, %v11713_v17 }
  0xbd   : > { %10031 = vmatprep.mubr.msk.f32.mxu1 %vm19643_vm14, %v20590_v47  ;;  %2318 = vmatpush1.msra.mxu0 %v10885_v40  ;;  %v1476_v40 = vand.u32 4294901760, %v1475_v5  ;;  %vm19657_vm14 = vcmp.eq.s32.totalorder %v11347_v18, %v11713_v17  ;;  %v20617_v5 = vand.u32 4294901760, %v11687_v38 }
  0xbe   : > { %997 = vperm.xlu1 %10639, %v930_v13   ;;  %994 = vperm.xlu0 %10638, %v929_v16   ;;  %v11746_v13 = vsub.f32 %v9842_v34, %v9842_v34  ;;  %v932_v16 = vld [vmem:[%s11355_s6 + $0x98] sm:$0xff]  ;;  %v20619_v34 = vand.u32 4294901760, %v11706_v1 }
  0xbf   : > { %1471 = vmatprep.mubr.f32.mxu0 %v1470_v45  ;;  %2726 = vmatprep.subr.mxu1 %v20567_v32  ;;  %v1490_v45 = vsub.f32 %v11687_v38, %v20617_v5  ;;  %v1485_v5 = vand.u32 4294901760, %v1484_v58  ;;  %v9843_v58 = vsel %vm19667_vm11, 1.0, %v20567_v32 }
  0xc0   : > { %2728 = vmatpush1.msra.mxu1 %v10860_v28  ;;  %2319 = vmatprep.subr.mxu0 %v20567_v32  ;;  %20616 = vst [vmem:[#allocation77_spill] sm:$0xff] %v11746_v13  ;;  %v1499_v9 = vsub.f32 %v11706_v1, %v20619_v34  ;;  %v933_v34 = vld [vmem:[%s11355_s6 + $0xa0] sm:$0xff]  ;;  %v11793_v1 = vpop.permute.xlu1 %345  ;;  %v11807_v63 = vsub.f32 %v9843_v58, %v9843_v58 }
  0xc1   : > { %10032 = vmatmul.mubr.msk.f32.gmra.mxu1 %vm19653_vm13, %v20590_v47  ;;  %1477 = vmatmul.mubr.f32.gmra.mxu0 %v1476_v40  ;;  %v9844_v40 = vsel %vm19657_vm14, 1.0, %v20567_v32  ;;  %20622 = vst [vmem:[#allocation80_spill] sm:$0xff] %v11793_v1  ;;  %vm19676_vm13 = vcmp.eq.s32.totalorder %v11342_v50, %v11753_v27 }
  0xc2   : > { %10033 = vmatprep.mubr.msk.f32.mxu1 %vm19650_vm12, %v20590_v47  ;;  %2322 = vmatpush1.msra.mxu0 %v10902_v48  ;;  %v1491_v48 = vand.u32 4294901760, %v1490_v45  ;;  %vm19664_vm12 = vcmp.eq.s32.totalorder %v11347_v18, %v11753_v27  ;;  %v20621_v45 = vand.u32 4294901760, %v11727_v43  ;;  %20623 = vst [vmem:[#allocation81_spill] sm:$0xff] %v11807_v63 }
  0xc3   : > { %1003 = vperm.xlu1 %10639, %v932_v16   ;;  %1000 = vperm.xlu0 %10638, %v931_v22   ;;  %v11786_v16 = vsub.f32 %v9844_v40, %v9844_v40  ;;  %v934_v22 = vld [vmem:[%s11355_s6 + $0xa8] sm:$0xff]  ;;  %v20624_v40 = vand.u32 4294901760, %v11746_v13 }
  0xc4   : > { %1486 = vmatprep.mubr.f32.mxu0 %v1485_v5  ;;  %2729 = vmatprep.subr.mxu1 %v20567_v32  ;;  %v1505_v5 = vsub.f32 %v11727_v43, %v20621_v45  ;;  %v1500_v45 = vand.u32 4294901760, %v1499_v9  ;;  %v9845_v9 = vsel %vm19676_vm13, 1.0, %v20567_v32 }
  0xc5   : > { %2731 = vmatpush1.msra.mxu1 %v10876_v37  ;;  %2323 = vmatprep.subr.mxu0 %v20567_v32  ;;  %20620 = vst [vmem:[#allocation79_spill] sm:$0xff] %v11786_v16  ;;  %v1514_v36 = vsub.f32 %v11746_v13, %v20624_v40  ;;  %v935_v40 = vld [vmem:[%s11355_s6 + $0xb0] sm:$0xff]  ;;  %v11833_v13 = vpop.permute.xlu0 %348  ;;  %v11847_v58 = vsub.f32 %v9845_v9, %v9845_v9 }
  0xc6   : > { %10034 = vmatmul.mubr.msk.f32.gmra.mxu1 %vm19660_vm15, %v20590_v47  ;;  %1492 = vmatmul.mubr.f32.gmra.mxu0 %v1491_v48  ;;  %v9846_v48 = vsel %vm19664_vm12, 1.0, %v20567_v32  ;;  %20627 = vst [vmem:[#allocation83_spill] sm:$0xff] %v11833_v13  ;;  %vm19686_vm15 = vcmp.eq.s32.totalorder %v11342_v50, %v11793_v1 }
  0xc7   : > { %10035 = vmatprep.mubr.msk.f32.mxu1 %vm19657_vm14, %v20590_v47  ;;  %2326 = vmatpush1.msra.mxu0 %v10919_v56  ;;  %v1506_v56 = vand.u32 4294901760, %v1505_v5  ;;  %vm19672_vm14 = vcmp.eq.s32.totalorder %v11347_v18, %v11793_v1  ;;  %v20626_v5 = vand.u32 4294901760, %v11767_v39  ;;  %20628 = vst [vmem:[#allocation84_spill] sm:$0xff] %v11847_v58 }
  0xc8   : > { %1009 = vperm.xlu1 %10639, %v934_v22   ;;  %1006 = vperm.xlu0 %10638, %v933_v34   ;;  %v11826_v22 = vsub.f32 %v9846_v48, %v9846_v48  ;;  %v936_v34 = vld [vmem:[%s11355_s6 + $0xb8] sm:$0xff]  ;;  %v20629_v48 = vand.u32 4294901760, %v11786_v16 }
  0xc9   : > { %1501 = vmatprep.mubr.f32.mxu0 %v1500_v45  ;;  %2732 = vmatprep.subr.mxu1 %v20567_v32  ;;  %v1520_v45 = vsub.f32 %v11767_v39, %v20626_v5  ;;  %v1515_v5 = vand.u32 4294901760, %v1514_v36  ;;  %v9847_v36 = vsel %vm19686_vm15, 1.0, %v20567_v32  ;;  %v11893_v27 = vpop.permute.xlu0 %354 }
  0xca   : > { %2734 = vmatpush1.msra.mxu1 %v10896_v46  ;;  %2327 = vmatprep.subr.mxu0 %v20567_v32  ;;  %20625 = vst [vmem:[#allocation82_spill] sm:$0xff] %v11826_v22  ;;  %v1529_v17 = vsub.f32 %v11786_v16, %v20629_v48  ;;  %v938_v48 = vld [vmem:[%s11355_s6 + $0xc8] sm:$0xff]  ;;  %20634 = vst [vmem:[#allocation88_spill] sm:$0xff] %v11893_v27  ;;  %v20635_v9 = vand.u32 4294901760, %v11826_v22  ;;  %vm19701_vm10 = vcmp.eq.s32.totalorder %v11347_v18, %v11893_v27 }
  0xcb   : > { %10036 = vmatmul.mubr.msk.f32.gmra.mxu1 %vm19667_vm11, %v20590_v47  ;;  %1507 = vmatmul.mubr.f32.gmra.mxu0 %v1506_v56  ;;  %v9848_v56 = vsel %vm19672_vm14, 1.0, %v20567_v32  ;;  %vm19688_vm11 = vcmp.eq.s32.totalorder %v11342_v50, %v11833_v13 }
  0xcc   : > { %10037 = vmatprep.mubr.msk.f32.mxu1 %vm19664_vm12, %v20590_v47  ;;  %2330 = vmatpush1.msra.mxu0 %v10934_v62  ;;  %v1521_v62 = vand.u32 4294901760, %v1520_v45  ;;  %vm19682_vm12 = vcmp.eq.s32.totalorder %v11347_v18, %v11833_v13  ;;  %v937_v45 = vld [vmem:[%s11355_s6 + $0xc0] sm:$0xff] }
  0xcd   : > { %1015 = vperm.xlu1 %10639, %v936_v34   ;;  %1012 = vperm.xlu0 %10638, %v935_v40   ;;  %v11864_v34 = vpop.permute.xlu1 %351  ;;  %v11868_v40 = vsub.f32 %v9848_v56, %v9848_v56  ;;  %v1530_v56 = vand.u32 4294901760, %v1529_v17 }
  0xce   : > { %1516 = vmatprep.mubr.f32.mxu0 %v1515_v5  ;;  %2735 = vmatprep.subr.mxu1 %v20567_v32  ;;  %20630 = vst [vmem:[#allocation85_spill] sm:$0xff] %v11864_v34  ;;  %v20632_v5 = vand.u32 4294901760, %v11807_v63 }
  0xcf   : > { %2737 = vmatpush1.msra.mxu1 %v10908_v51  ;;  %2331 = vmatprep.subr.mxu0 %v20567_v32  ;;  %20631 = vst [vmem:[#allocation86_spill] sm:$0xff] %v11868_v40 }
  0xd0   : > { %v1535_v16 = vsub.f32 %v11807_v63, %v20632_v5  ;;  %10038 = vmatmul.mubr.msk.f32.gmra.mxu1 %vm19676_vm13, %v20590_v47  ;;  %1522 = vmatmul.mubr.f32.gmra.mxu0 %v1521_v62  ;;  %v11887_v5 = vsub.f32 %v9847_v36, %v9847_v36  ;;  %v9850_v62 = vsel %vm19682_vm12, 1.0, %v20567_v32  ;;  %v1544_v63 = vsub.f32 %v11826_v22, %v20635_v9  ;;  %v940_v9 = vld [vmem:[%s11355_s6 + $0xd8] sm:$0xff] }
  0xd1   : > { %10039 = vmatprep.mubr.msk.f32.mxu1 %vm19672_vm14, %v20590_v47  ;;  %2334 = vmatpush1.msra.mxu0 %v10951_v12  ;;  %vm19694_vm14 = vcmp.eq.s32.totalorder %v11347_v18, %v11864_v34  ;;  %v9849_v36 = vsel %vm19688_vm11, 1.0, %v20567_v32  ;;  %vm19698_vm13 = vcmp.eq.s32.totalorder %v11342_v50, %v11864_v34  ;;  %v11935_v12 = vpop.permute.xlu1 %357 }
  0xd2   : > { %20633 = vst [vmem:[#allocation87_spill] sm:$0xff] %v11887_v5  ;;  %1021 = vperm.xlu1 %10639, %v938_v48   ;;  %1018 = vperm.xlu0 %10638, %v937_v45   ;;  %v1536_v17 = vand.u32 4294901760, %v1535_v16  ;;  %v11908_v48 = vsub.f32 %v9850_v62, %v9850_v62  ;;  %v939_v45 = vld [vmem:[%s11355_s6 + $0xd0] sm:$0xff]  ;;  %v9852_v16 = vsel %vm19694_vm14, 1.0, %v20567_v32  ;;  %20638 = vst [vmem:[#allocation90_spill] sm:$0xff] %v11935_v12  ;;  %v20639_v62 = vand.u32 4294901760, %v11868_v40 }
  0xd3   : > { %1531 = vmatprep.mubr.f32.mxu0 %v1530_v56  ;;  %2738 = vmatprep.subr.mxu1 %v20567_v32  ;;  %v20636_v56 = vand.u32 4294901760, %v11847_v58 }
  0xd4   : > { %2740 = vmatpush1.msra.mxu1 %v10925_v59  ;;  %2335 = vmatprep.subr.mxu0 %v20567_v32  ;;  %v1559_v1 = vsub.f32 %v11868_v40, %v20639_v62  ;;  %v942_v62 = vld [vmem:[%s11355_s6 + $0xe8] sm:$0xff] }
  0xd5   : > { %v1550_v22 = vsub.f32 %v11847_v58, %v20636_v56  ;;  %10040 = vmatmul.mubr.msk.f32.gmra.mxu1 %vm19686_vm15, %v20590_v47  ;;  %1537 = vmatmul.mubr.f32.gmra.mxu0 %v1536_v17  ;;  %v1545_v56 = vand.u32 4294901760, %v1544_v63  ;;  %v11933_v17 = vsub.f32 %v9849_v36, %v9849_v36  ;;  %v9851_v58 = vsel %vm19698_vm13, 1.0, %v20567_v32 }
  0xd6   : > { %10041 = vmatprep.mubr.msk.f32.mxu1 %vm19682_vm12, %v20590_v47  ;;  %2338 = vmatpush1.msra.mxu0 %v10968_v31  ;;  %vm19703_vm12 = vcmp.eq.s32.totalorder %v11342_v50, %v11893_v27  ;;  %v11947_v36 = vsub.f32 %v9852_v16, %v9852_v16  ;;  %v941_v31 = vld [vmem:[%s11355_s6 + $0xe0] sm:$0xff]  ;;  %vm19708_vm15 = vcmp.eq.s32.totalorder %v11347_v18, %v11935_v12 }
  0xd7   : > { %20637 = vst [vmem:[#allocation89_spill] sm:$0xff] %v11933_v17  ;;  %1027 = vperm.xlu1 %10639, %v940_v9   ;;  %1024 = vperm.xlu0 %10638, %v939_v45   ;;  %v1551_v63 = vand.u32 4294901760, %v1550_v22  ;;  %v9854_v9 = vsel %vm19701_vm10, 1.0, %v20567_v32  ;;  %v11965_v22 = vsub.f32 %v9851_v58, %v9851_v58  ;;  %v9853_v16 = vsel %vm19703_vm12, 1.0, %v20567_v32 }
  0xd8   : > { %1546 = vmatprep.mubr.f32.mxu0 %v1545_v56  ;;  %2741 = vmatprep.subr.mxu1 %v20567_v32  ;;  %v20640_v56 = vand.u32 4294901760, %v11887_v5  ;;  %v1560_v58 = vand.u32 4294901760, %v1559_v1  ;;  %v9856_v1 = vsel %vm19708_vm15, 1.0, %v20567_v32 }
  0xd9   : > { %2743 = vmatpush1.msra.mxu1 %v10945_v7  ;;  %2339 = vmatprep.subr.mxu0 %v20567_v32  ;;  %v11974_v7 = vpop.permute.xlu0 %360  ;;  %v12022_v13 = vsub.f32 %v9856_v1, %v9856_v1 }
  0xda   : > { %v1565_v40 = vsub.f32 %v11887_v5, %v20640_v56  ;;  %10042 = vmatmul.mubr.msk.f32.gmra.mxu1 %vm19688_vm11, %v20590_v47  ;;  %1552 = vmatmul.mubr.f32.gmra.mxu0 %v1551_v63  ;;  %20641 = vst [vmem:[#allocation91_spill] sm:$0xff] %v11974_v7  ;;  %v11981_v63 = vsub.f32 %v9854_v9, %v9854_v9  ;;  %v20642_v56 = vand.u32 4294901760, %v11908_v48  ;;  %v943_v9 = vld [vmem:[%s11355_s6 + $0xf0] sm:$0xff] }
  0xdb   : > { %10043 = vmatprep.mubr.msk.f32.mxu1 %vm19694_vm14, %v20590_v47  ;;  %2342 = vmatpush1.msra.mxu0 %v10983_v41  ;;  %vm19709_vm11 = vcmp.eq.s32.totalorder %v11342_v50, %v11935_v12  ;;  %v11990_v41 = vsub.f32 %v9853_v16, %v9853_v16  ;;  %vm19714_vm14 = vcmp.eq.s32.totalorder %v11347_v18, %v11974_v7 }
  0xdc   : > { %1033 = vperm.xlu1 %10639, %v942_v62   ;;  %1030 = vperm.xlu0 %10638, %v941_v31   ;;  %v1574_v45 = vsub.f32 %v11908_v48, %v20642_v56  ;;  %v1566_v5 = vand.u32 4294901760, %v1565_v40  ;;  %v944_v31 = vld [vmem:[%s11355_s6 + $0xf8] sm:$0xff]  ;;  %v20643_v62 = vand.u32 4294901760, %v11933_v17  ;;  %v9855_v40 = vsel %vm19709_vm11, 1.0, %v20567_v32  ;;  %v12010_v56 = vpop.permute.xlu1 %363 }
  0xdd   : > { %1561 = vmatprep.mubr.f32.mxu0 %v1560_v58  ;;  %2744 = vmatprep.subr.mxu1 %v20567_v32  ;;  %20644 = vst [vmem:[#allocation92_spill] sm:$0xff] %v12010_v56  ;;  %v12035_v34 = vpop.permute.xlu0 %366  ;;  %vm19726_vm9 = vcmp.eq.s32.totalorder %v11342_v50, %v12010_v56  ;;  %v20650_v27 = vand.u32 4294901760, %v11990_v41 }
  0xde   : > { %2746 = vmatpush1.msra.mxu1 %v10957_v24  ;;  %2343 = vmatprep.subr.mxu0 %v20567_v32  ;;  %v1580_v58 = vsub.f32 %v11933_v17, %v20643_v62  ;;  %v1575_v16 = vand.u32 4294901760, %v1574_v45  ;;  %v20645_v24 = vand.u32 4294901760, %v11947_v36  ;;  %v9858_v62 = vsel %vm19714_vm14, 1.0, %v20567_v32  ;;  %20646 = vst [vmem:[#allocation93_spill] sm:$0xff] %v12035_v34 }
  0xdf   : > { %10044 = vmatmul.mubr.msk.f32.gmra.mxu1 %vm19698_vm13, %v20590_v47  ;;  %1567 = vmatmul.mubr.f32.gmra.mxu0 %v1566_v5  ;;  %vm19720_vm13 = vcmp.eq.s32.totalorder %v11342_v50, %v11974_v7  ;;  %v12029_v5 = vsub.f32 %v9855_v40, %v9855_v40 }
  0xe0   : > { %10045 = vmatprep.mubr.msk.f32.mxu1 %vm19701_vm10, %v20590_v47  ;;  %2346 = vmatpush1.msra.mxu0 %v11000_v54  ;;  %v1589_v17 = vsub.f32 %v11947_v36, %v20645_v24  ;;  %v1581_v45 = vand.u32 4294901760, %v1580_v58  ;;  %v20647_v24 = vand.u32 4294901760, %v11965_v22  ;;  %vm19718_vm10 = vcmp.eq.s32.totalorder %v11347_v18, %v12010_v56 }
  0xe1   : > { %1039 = vperm.xlu1 %10639, %v944_v31   ;;  %1036 = vperm.xlu0 %10638, %v943_v9   ;;  %v20648_v9 = vand.u32 4294901760, %v11981_v63  ;;  %v9857_v58 = vsel %vm19720_vm13, 1.0, %v20567_v32 }
  0xe2   : > { %1576 = vmatprep.mubr.f32.mxu0 %v1575_v16  ;;  %2747 = vmatprep.subr.mxu1 %v20567_v32  ;;  %v1595_v1 = vsub.f32 %v11965_v22, %v20647_v24  ;;  %v1590_v16 = vand.u32 4294901760, %v1589_v17  ;;  %v12057_v24 = vsub.f32 %v9858_v62, %v9858_v62  ;;  %v12074_v62 = vpop.permute.xlu1 %369  ;;  %v12077_v31 = vsub.f32 %v9857_v58, %v9857_v58 }
  0xe3   : > { %2749 = vmatpush1.msra.mxu1 %v10974_v35  ;;  %2347 = vmatprep.subr.mxu0 %v20567_v32  ;;  %v1604_v40 = vsub.f32 %v11981_v63, %v20648_v9  ;;  %20649 = vst [vmem:[#allocation94_spill] sm:$0xff] %v12074_v62  ;;  %v9859_v35 = vsel %vm19726_vm9, 1.0, %v20567_v32 }
  0xe4   : > { %10046 = vmatmul.mubr.msk.f32.gmra.mxu1 %vm19703_vm12, %v20590_v47  ;;  %1582 = vmatmul.mubr.f32.gmra.mxu0 %v1581_v45  ;;  %v9860_v45 = vsel %vm19718_vm10, 1.0, %v20567_v32  ;;  %vm19723_vm12 = vcmp.eq.s32.totalorder %v11347_v18, %v12035_v34  ;;  %v1596_v9 = vand.u32 4294901760, %v1595_v1  ;;  %v20651_v1 = vand.u32 4294901760, %v12022_v13 }
  0xe5   : > { %10047 = vmatprep.mubr.msk.f32.mxu1 %vm19708_vm15, %v20590_v47  ;;  %2350 = vmatpush1.msra.mxu0 %v11017_v2  ;;  %v1610_v2 = vsub.f32 %v11990_v41, %v20650_v27  ;;  %v1605_v17 = vand.u32 4294901760, %v1604_v40  ;;  %vm19732_vm15 = vcmp.eq.s32.totalorder %v11342_v50, %v12035_v34  ;;  %v12094_v27 = vsub.f32 %v9860_v45, %v9860_v45 }
  0xe6   : > { %1591 = vmatprep.mubr.f32.mxu0 %v1590_v16  ;;  %2750 = vmatprep.subr.mxu1 %v20567_v32  ;;  %v1619_v40 = vsub.f32 %v12022_v13, %v20651_v1  ;;  %v9862_v58 = vsel %vm19723_vm12, 1.0, %v20567_v32  ;;  %v20652_v45 = vand.u32 4294901760, %v12029_v5  ;;  %v12115_v12 = vsub.f32 %v9859_v35, %v9859_v35 }
  0xe7   : > { %2752 = vmatpush1.msra.mxu1 %v10994_v52  ;;  %2351 = vmatprep.subr.mxu0 %v20567_v32  ;;  %v1611_v1 = vand.u32 4294901760, %v1610_v2  ;;  %v9861_v16 = vsel %vm19732_vm15, 1.0, %v20567_v32  ;;  %v12122_v52 = vpop.permute.xlu0 %372  ;;  %v20655_v2 = vand.u32 4294901760, %v12057_v24 }
  0xe8   : > { %10048 = vmatmul.mubr.msk.f32.gmra.mxu1 %vm19709_vm11, %v20590_v47  ;;  %1597 = vmatmul.mubr.f32.gmra.mxu0 %v1596_v9  ;;  %v1625_v9 = vsub.f32 %v12029_v5, %v20652_v45  ;;  %vm19731_vm11 = vcmp.eq.s32.totalorder %v11347_v18, %v12074_v62  ;;  %20653 = vst [vmem:[#allocation95_spill] sm:$0xff] %v12122_v52  ;;  %v1620_v35 = vand.u32 4294901760, %v1619_v40 }
  0xe9   : > { %10049 = vmatprep.mubr.msk.f32.mxu1 %vm19714_vm14, %v20590_v47  ;;  %2354 = vmatpush1.msra.mxu0 %v11032_v30  ;;  %v12126_v45 = vsub.f32 %v9862_v58, %v9862_v58  ;;  %vm19735_vm14 = vcmp.eq.s32.totalorder %v11342_v50, %v12074_v62  ;;  %v9864_v58 = vsel %vm19731_vm11, 1.0, %v20567_v32  ;;  %v12147_v40 = vsub.f32 %v9861_v16, %v9861_v16 }
  0xea   : > { %1606 = vmatprep.mubr.f32.mxu0 %v1605_v17  ;;  %2753 = vmatprep.subr.mxu1 %v20567_v32  ;;  %v1634_v17 = vsub.f32 %v12057_v24, %v20655_v2  ;;  %v20656_v2 = vand.u32 4294901760, %v12077_v31  ;;  %v9863_v30 = vsel %vm19735_vm14, 1.0, %v20567_v32  ;;  %v12164_v16 = vsub.f32 %v9864_v58, %v9864_v58 }
  0xeb   : > { %2755 = vmatpush1.msra.mxu1 %v11006_v60  ;;  %2355 = vmatprep.subr.mxu0 %v20567_v32  ;;  %20654 = vst [vmem:[#allocation96_spill] sm:$0xff] %v12126_v45  ;;  %v12181_v58 = vsub.f32 %v9863_v30, %v9863_v30  ;;  %v12194_v30 = vpop.permute.xlu0 %378  ;;  %v20666_v34 = vand.u32 4294901760, %v12147_v40 }
  0xec   : > { %10050 = vmatmul.mubr.msk.f32.gmra.mxu1 %vm19720_vm13, %v20590_v47  ;;  %1612 = vmatmul.mubr.f32.gmra.mxu0 %v1611_v1  ;;  %v1626_v1 = vand.u32 4294901760, %v1625_v9  ;;  %v1640_v7 = vsub.f32 %v12077_v31, %v20656_v2  ;;  %v12160_v9 = vpop.permute.xlu1 %375  ;;  %v20658_v2 = vand.u32 4294901760, %v12094_v27  ;;  %vm19749_vm13 = vcmp.eq.s32.totalorder %v11342_v50, %v12122_v52  ;;  %20661 = vst [vmem:[#allocation99_spill] sm:$0xff] %v12194_v30 }
  0xed   : > { %10051 = vmatprep.mubr.msk.f32.mxu1 %vm19718_vm10, %v20590_v47  ;;  %2358 = vmatpush2.msra.mxu0 %v11049_v53  ;;  %vm19741_vm10 = vcmp.eq.s32.totalorder %v11347_v18, %v12122_v52  ;;  %20657 = vst [vmem:[#allocation97_spill] sm:$0xff] %v12160_v9  ;;  %20659 = vst [vmem:[#allocation98_spill] sm:$0xff] %v12181_v58  ;;  %v20675_v52 = vld [vmem:[#allocation34_spill] sm:$0xff] }
  0xee   : > { %1621 = vmatprep.mubr.f32.mxu0 %v1620_v35  ;;  %2756 = vmatprep.subr.mxu1 %v20567_v32  ;;  %v1635_v35 = vand.u32 4294901760, %v1634_v17  ;;  %v1649_v60 = vsub.f32 %v12094_v27, %v20658_v2  ;;  %v9866_v17 = vsel %vm19741_vm10, 1.0, %v20567_v32  ;;  %v20660_v2 = vand.u32 4294901760, %v12115_v12 }
  0xef   : > { %2758 = vmatpush2.msra.mxu1 %v11023_v25  ;;  %2359 = vmatprep.subr.mxu0 %v20567_v32  ;;  %v12207_v56 = vsub.f32 %v9866_v17, %v9866_v17  ;;  %v20667_v17 = vand.u32 4294901760, %v12164_v16  ;;  %v12274_v62 = vpop.permute.xlu0 %384 }
  0xf0   : > { %10052 = vmatmul.mubr.msk.f32.gmra.mxu1 %vm19726_vm9, %v20590_v47  ;;  %1627 = vmatmul.mubr.f32.gmra.mxu0 %v1626_v1  ;;  %v1641_v1 = vand.u32 4294901760, %v1640_v7  ;;  %v1655_v53 = vsub.f32 %v12115_v12, %v20660_v2  ;;  %v9865_v7 = vsel %vm19749_vm13, 1.0, %v20567_v32  ;;  %v1650_v2 = vand.u32 4294901760, %v1649_v60  ;;  %20671 = vst [vmem:[#allocation105_spill] sm:$0xff] %v12274_v62 }
  0xf1   : > { %10053 = vmatprep.mubr.msk.f32.mxu1 %vm19723_vm12, %v20590_v47  ;;  %2362 = vmatpush2.msra.mxu0 %v11066_v29  ;;  %vm19746_vm12 = vcmp.eq.s32.totalorder %v11347_v18, %v12160_v9  ;;  %20662 = vst [vmem:[#allocation100_spill] sm:$0xff] %v12207_v56  ;;  %vm19755_vm9 = vcmp.eq.s32.totalorder %v11342_v50, %v12160_v9 }
  0xf2   : > { %1636 = vmatprep.mubr.f32.mxu0 %v1635_v35  ;;  %2759 = vmatprep.subr.mxu1 %v20567_v32  ;;  %v9868_v60 = vsel %vm19746_vm12, 1.0, %v20567_v32  ;;  %v12227_v35 = vsub.f32 %v9865_v7, %v9865_v7 }
  0xf3   : > { %2761 = vmatpush2.msra.mxu1 %v11043_v42  ;;  %2363 = vmatprep.subr.mxu0 %v20567_v32  ;;  %v20663_v42 = vand.u32 4294901760, %v12126_v45  ;;  %v12249_v7 = vsub.f32 %v9868_v60, %v9868_v60 }
  0xf4   : > { %10054 = vmatmul.mubr.msk.f32.gmra.mxu1 %vm19732_vm15, %v20590_v47  ;;  %1642 = vmatmul.mubr.f32.gmra.mxu0 %v1641_v1  ;;  %v12224_v1 = vpop.permute.xlu1 %381  ;;  %20665 = vst [vmem:[#allocation102_spill] sm:$0xff] %v12227_v35  ;;  %vm449_vm15 = vcmp.eq.s32.totalorder %v11342_v50, %v12194_v30 }
  0xf5   : > { %v1664_v29 = vsub.f32 %v12126_v45, %v20663_v42  ;;  %10055 = vmatprep.mubr.msk.f32.mxu1 %vm19731_vm11, %v20590_v47  ;;  %2366 = vmatpush2.msra.mxu0 %v11081_v44  ;;  %20664 = vst [vmem:[#allocation101_spill] sm:$0xff] %v12224_v1  ;;  %v1656_v42 = vand.u32 4294901760, %v1655_v53  ;;  %v1670_v45 = vsub.f32 %v12147_v40, %v20666_v34  ;;  %v9867_v53 = vsel %vm19755_vm9, 1.0, %v20567_v32 }
  0xf6   : > { %1651 = vmatprep.mubr.f32.mxu0 %v1650_v2  ;;  %2762 = vmatprep.subr.mxu1 %v20567_v32  ;;  %vm19752_vm11 = vcmp.eq.s32.totalorder %v11347_v18, %v12194_v30  ;;  %v1679_v2 = vsub.f32 %v12164_v16, %v20667_v17  ;;  %20668 = vst [vmem:[#allocation103_spill] sm:$0xff] %v12249_v7  ;;  %v20669_v17 = vand.u32 4294901760, %v12181_v58 }
  0xf7   : > { %2764 = vmatpush2.msra.mxu1 %v11055_v0  ;;  %2367 = vmatprep.subr.mxu0 %v20567_v32  ;;  %v1665_v34 = vand.u32 4294901760, %v1664_v29  ;;  %v9870_v29 = vsel %vm19752_vm11, 1.0, %v20567_v32  ;;  %v1671_v60 = vand.u32 4294901760, %v1670_v45  ;;  %v9869_v0 = vsel %vm449_vm15, 1.0, %v20567_v32 }
  0xf8   : > { %10056 = vmatmul.mubr.msk.f32.gmra.mxu1 %vm19735_vm14, %v20590_v47  ;;  %1657 = vmatmul.mubr.f32.gmra.mxu0 %v1656_v42  ;;  %v1685_v44 = vsub.f32 %v12181_v58, %v20669_v17  ;;  %vm19760_vm14 = vcmp.eq.s32.totalorder %v11347_v18, %v12224_v1  ;;  %v12267_v42 = vsub.f32 %v9867_v53, %v9867_v53  ;;  %v1680_v58 = vand.u32 4294901760, %v1679_v2 }
  0xf9   : > { %10057 = vmatprep.mubr.msk.f32.mxu1 %vm19741_vm10, %v20590_v47  ;;  %2370 = vmatpush2.msra.mxu0 %v11098_v61  ;;  %v20672_v61 = vld [vmem:[#allocation29_spill] sm:$0xff]  ;;  %vm19767_vm10 = vcmp.eq.s32.totalorder %v11342_v50, %v12224_v1  ;;  %v12284_v45 = vsub.f32 %v9870_v29, %v9870_v29  ;;  %v20674_v53 = vand.u32 4294901760, %v12207_v56  ;;  %v9872_v2 = vsel %vm19760_vm14, 1.0, %v20567_v32 }
  0xfa   : > { %1666 = vmatprep.mubr.f32.mxu0 %v1665_v34  ;;  %2765 = vmatprep.subr.mxu1 %v20567_v32  ;;  %20670 = vst [vmem:[#allocation104_spill] sm:$0xff] %v12267_v42  ;;  %v1686_v29 = vand.u32 4294901760, %v1685_v44  ;;  %v9871_v17 = vsel %vm19767_vm10, 1.0, %v20567_v32  ;;  %v12312_v44 = vpop.permute.xlu1 %387  ;;  %v20696_v1 = vld [vmem:[#allocation37_spill] sm:$0xff] }
  0xfb   : > { %2767 = vmatpush2.msra.mxu1 %v20672_v61  ;;  %2371 = vmatprep.subr.mxu0 %v20567_v32  ;;  %20673 = vst [vmem:[#allocation106_spill] sm:$0xff] %v12284_v45  ;;  %v1694_v34 = vsub.f32 %v12207_v56, %v20674_v53  ;;  %v20677_v53 = vand.u32 4294901760, %v12227_v35  ;;  %20678 = vst [vmem:[#allocation108_spill] sm:$0xff] %v12312_v44  ;;  %v20681_v56 = vand.u32 4294901760, %v12249_v7 }
  0xfc   : > { %10058 = vmatmul.mubr.msk.f32.gmra.mxu1 %vm19749_vm13, %v20590_v47  ;;  %1672 = vmatmul.mubr.f32.gmra.mxu0 %v1671_v60  ;;  %v12299_v60 = vsub.f32 %v9869_v0, %v9869_v0  ;;  %v20679_v0 = vld [vmem:[#allocation31_spill] sm:$0xff]  ;;  %vm19773_vm13 = vcmp.eq.s32.totalorder %v11342_v50, %v12274_v62  ;;  %v12333_v9 = vsub.f32 %v9871_v17, %v9871_v17  ;;  %v12346_v17 = vpop.permute.xlu0 %390 }
  0xfd   : > { %10059 = vmatprep.mubr.msk.f32.mxu1 %vm19746_vm12, %v20590_v47  ;;  %2374 = vmatpush2.msra.mxu0 %v20675_v52  ;;  %v1700_v61 = vsub.f32 %v12227_v35, %v20677_v53  ;;  %vm19770_vm12 = vcmp.eq.s32.totalorder %v11347_v18, %v12274_v62  ;;  %v1695_v53 = vand.u32 4294901760, %v1694_v34  ;;  %v1709_v52 = vsub.f32 %v12249_v7, %v20681_v56 }
  0xfe   : > { %20676 = vst [vmem:[#allocation107_spill] sm:$0xff] %v12299_v60  ;;  %1681 = vmatprep.mubr.f32.mxu0 %v1680_v58  ;;  %2768 = vmatprep.subr.mxu1 %v20567_v32  ;;  %v12316_v58 = vsub.f32 %v9872_v2, %v9872_v2  ;;  %v20682_v2 = vld [vmem:[#allocation36_spill] sm:$0xff]  ;;  %v9874_v34 = vsel %vm19770_vm12, 1.0, %v20567_v32  ;;  %20684 = vst [vmem:[#allocation110_spill] sm:$0xff] %v12346_v17  ;;  %v20689_v30 = vand.u32 4294901760, %v12299_v60 }
  0xff   : > { %2770 = vmatpush2.msra.mxu1 %v20679_v0  ;;  %2375 = vmatprep.subr.mxu0 %v20567_v32  ;;  %v1701_v56 = vand.u32 4294901760, %v1700_v61  ;;  %v9873_v61 = vsel %vm19773_vm13, 1.0, %v20567_v32  ;;  %v12359_v0 = vsub.f32 %v9874_v34, %v9874_v34 }
 0x100   : > { %20680 = vst [vmem:[#allocation109_spill] sm:$0xff] %v12316_v58  ;;  %10060 = vmatmul.mubr.msk.f32.gmra.mxu1 %vm19755_vm9, %v20590_v47  ;;  %1687 = vmatmul.mubr.f32.gmra.mxu0 %v1686_v29  ;;  %v20683_v29 = vand.u32 4294901760, %v12267_v42  ;;  %vm19782_vm9 = vcmp.eq.s32.totalorder %v11342_v50, %v12312_v44  ;;  %v20691_v7 = vand.u32 4294901760, %v12316_v58 }
 0x101   : > { %10061 = vmatprep.mubr.msk.f32.mxu1 %vm19752_vm11, %v20590_v47  ;;  %2378 = vmatpush2.msra.mxu0 %v20682_v2  ;;  %vm19776_vm11 = vcmp.eq.s32.totalorder %v11347_v18, %v12312_v44  ;;  %v20685_v2 = vld [vmem:[#allocation33_spill] sm:$0xff]  ;;  %20686 = vst [vmem:[#allocation111_spill] sm:$0xff] %v12359_v0 }
 0x102   : > { %1696 = vmatprep.mubr.f32.mxu0 %v1695_v53  ;;  %2771 = vmatprep.subr.mxu1 %v20567_v32  ;;  %v1715_v35 = vsub.f32 %v12267_v42, %v20683_v29  ;;  %v1710_v29 = vand.u32 4294901760, %v1709_v52  ;;  %v20688_v53 = vld [vmem:[#allocation38_spill] sm:$0xff]  ;;  %v9876_v52 = vsel %vm19776_vm11, 1.0, %v20567_v32 }
 0x103   : > { %2773 = vmatpush2.msra.mxu1 %v20685_v2  ;;  %2379 = vmatprep.subr.mxu0 %v20567_v32  ;;  %v20687_v2 = vand.u32 4294901760, %v12284_v45  ;;  %v12399_v34 = vsub.f32 %v9876_v52, %v9876_v52 }
 0x104   : > { %10062 = vmatmul.mubr.msk.f32.gmra.mxu1 %vm449_vm15, %v20590_v47  ;;  %1702 = vmatmul.mubr.f32.gmra.mxu0 %v1701_v56  ;;  %v12377_v56 = vsub.f32 %v9873_v61, %v9873_v61  ;;  %v12393_v61 = vpop.permute.xlu1 %393 }
 0x105   : > { %v1724_v42 = vsub.f32 %v12284_v45, %v20687_v2  ;;  %10063 = vmatprep.mubr.msk.f32.mxu1 %vm19760_vm14, %v20590_v47  ;;  %2382 = vmatpush2.msra.mxu0 %v20688_v53  ;;  %v1716_v2 = vand.u32 4294901760, %v1715_v35  ;;  %v1730_v45 = vsub.f32 %v12299_v60, %v20689_v30  ;;  %vm19779_vm14 = vcmp.eq.s32.totalorder %v11347_v18, %v12346_v17  ;;  %v20690_v53 = vld [vmem:[#allocation35_spill] sm:$0xff] }
 0x106   : > { %1711 = vmatprep.mubr.f32.mxu0 %v1710_v29  ;;  %2774 = vmatprep.subr.mxu1 %v20567_v32  ;;  %v1739_v29 = vsub.f32 %v12316_v58, %v20691_v7  ;;  %v9875_v35 = vsel %vm19782_vm9, 1.0, %v20567_v32  ;;  %20692 = vst [vmem:[#allocation112_spill] sm:$0xff] %v12393_v61  ;;  %20693 = vst [vmem:[#allocation113_spill] sm:$0xff] %v12399_v34  ;;  %v20694_v7 = vld [vmem:[#allocation40_spill] sm:$0xff]  ;;  %v20695_v58 = vand.u32 4294901760, %v12333_v9 }
 0x107   : > { %2776 = vmatpush2.msra.mxu1 %v20690_v53  ;;  %2383 = vmatprep.subr.mxu0 %v20567_v32  ;;  %v1725_v30 = vand.u32 4294901760, %v1724_v42  ;;  %v9878_v42 = vsel %vm19779_vm14, 1.0, %v20567_v32  ;;  %v1731_v52 = vand.u32 4294901760, %v1730_v45  ;;  %v20698_v45 = vand.u32 4294901760, %v12359_v0 }
 0x108   : > { %10064 = vmatmul.mubr.msk.f32.gmra.mxu1 %vm19767_vm10, %v20590_v47  ;;  %1717 = vmatmul.mubr.f32.gmra.mxu0 %v1716_v2  ;;  %v1745_v60 = vsub.f32 %v12333_v9, %v20695_v58  ;;  %vm19783_vm10 = vcmp.eq.s32.totalorder %v11342_v50, %v12346_v17  ;;  %v12417_v2 = vsub.f32 %v9875_v35, %v9875_v35  ;;  %v1740_v58 = vand.u32 4294901760, %v1739_v29  ;;  %v20712_v17 = vld [vmem:[#allocation43_spill] sm:$0xff] }
 0x109   : > { %10065 = vmatprep.mubr.msk.f32.mxu1 %vm19770_vm12, %v20590_v47  ;;  %2386 = vmatpush2.msra.mxu0 %v20694_v7  ;;  %vm460_vm12 = vcmp.eq.s32.totalorder %v11347_v18, %v12393_v61  ;;  %v1754_v35 = vsub.f32 %v12359_v0, %v20698_v45  ;;  %v9877_v29 = vsel %vm19783_vm10, 1.0, %v20567_v32  ;;  %v20701_v45 = vand.u32 4294901760, %v12377_v56  ;;  %v20702_v0 = vld [vmem:[#allocation39_spill] sm:$0xff] }
 0x10a   : > { %1726 = vmatprep.mubr.f32.mxu0 %v1725_v30  ;;  %2777 = vmatprep.subr.mxu1 %v20567_v32  ;;  %v12428_v30 = vsub.f32 %v9878_v42, %v9878_v42  ;;  %v20700_v42 = vld [vmem:[#allocation42_spill] sm:$0xff]  ;;  %v9880_v53 = vsel %vm460_vm12, 1.0, %v20567_v32  ;;  %v20708_v7 = vand.u32 4294901760, %v12417_v2 }
 0x10b   : > { %2779 = vmatpush2.msra.mxu1 %v20696_v1  ;;  %2387 = vmatprep.subr.mxu0 %v20567_v32  ;;  %v12438_v1 = vpop.permute.xlu0 %396  ;;  %v1760_v62 = vsub.f32 %v12377_v56, %v20701_v45  ;;  %v20704_v45 = vand.u32 4294901760, %v12399_v34 }
 0x10c   : > { %10066 = vmatmul.mubr.msk.f32.gmra.mxu1 %vm19773_vm13, %v20590_v47  ;;  %1732 = vmatmul.mubr.f32.gmra.mxu0 %v1731_v52  ;;  %20697 = vst [vmem:[#allocation114_spill] sm:$0xff] %v12428_v30  ;;  %20699 = vst [vmem:[#allocation115_spill] sm:$0xff] %v12438_v1  ;;  %v1746_v52 = vand.u32 4294901760, %v1745_v60  ;;  %vm459_vm13 = vcmp.eq.s32.totalorder %v11342_v50, %v12393_v61  ;;  %v12458_v60 = vsub.f32 %v9877_v29, %v9877_v29  ;;  %v20706_v29 = vld [vmem:[#allocation44_spill] sm:$0xff] }
 0x10d   : > { %10067 = vmatprep.mubr.msk.f32.mxu1 %vm19776_vm11, %v20590_v47  ;;  %2390 = vmatpush2.msra.mxu0 %v20700_v42  ;;  %v1769_v42 = vsub.f32 %v12399_v34, %v20704_v45  ;;  %vm462_vm11 = vcmp.eq.s32.totalorder %v11347_v18, %v12438_v1  ;;  %v1761_v45 = vand.u32 4294901760, %v1760_v62  ;;  %v1775_v44 = vsub.f32 %v12417_v2, %v20708_v7  ;;  %v20709_v34 = vld [vmem:[#allocation41_spill] sm:$0xff] }
 0x10e   : > { %1741 = vmatprep.mubr.f32.mxu0 %v1740_v58  ;;  %2780 = vmatprep.subr.mxu1 %v20567_v32  ;;  %20703 = vst [vmem:[#allocation116_spill] sm:$0xff] %v12458_v60  ;;  %v1755_v58 = vand.u32 4294901760, %v1754_v35  ;;  %v9879_v35 = vsel %vm459_vm13, 1.0, %v20567_v32 }
 0x10f   : > { %2782 = vmatpush2.msra.mxu1 %v20702_v0  ;;  %2391 = vmatprep.subr.mxu0 %v20567_v32  ;;  %v12470_v0 = vpop.permute.xlu1 %399  ;;  %v1770_v62 = vand.u32 4294901760, %v1769_v42  ;;  %v12500_v7 = vsub.f32 %v9879_v35, %v9879_v35  ;;  %v20716_v35 = vld [vmem:[#allocation45_spill] sm:$0xff] }
 0x110   : > { %10068 = vmatmul.mubr.msk.f32.gmra.mxu1 %vm19782_vm9, %v20590_v47  ;;  %1747 = vmatmul.mubr.f32.gmra.mxu0 %v1746_v52  ;;  %20705 = vst [vmem:[#allocation117_spill] sm:$0xff] %v12470_v0  ;;  %v12477_v52 = vsub.f32 %v9880_v53, %v9880_v53  ;;  %v9882_v53 = vsel %vm462_vm11, 1.0, %v20567_v32  ;;  %vm464_vm9 = vcmp.eq.s32.totalorder %v11347_v18, %v12470_v0 }
 0x111   : > { %10069 = vmatprep.mubr.msk.f32.mxu1 %vm19779_vm14, %v20590_v47  ;;  %2394 = vmatpush2.msra.mxu0 %v20706_v29  ;;  %vm461_vm14 = vcmp.eq.s32.totalorder %v11342_v50, %v12438_v1  ;;  %v20719_v1 = vld [vmem:[#allocation47_spill] sm:$0xff] }
 0x112   : > { %20707 = vst [vmem:[#allocation118_spill] sm:$0xff] %v12477_v52  ;;  %1756 = vmatprep.mubr.f32.mxu0 %v1755_v58  ;;  %2783 = vmatprep.subr.mxu1 %v20567_v32  ;;  %v20711_v58 = vld [vmem:[#allocation46_spill] sm:$0xff]  ;;  %v9881_v42 = vsel %vm461_vm14, 1.0, %v20567_v32 }
 0x113   : > { %2785 = vmatpush2.msra.mxu1 %v20709_v34  ;;  %2395 = vmatprep.subr.mxu0 %v20567_v32  ;;  %v20710_v34 = vand.u32 4294901760, %v12428_v30 }
 0x114   : > { %10070 = vmatmul.mubr.msk.f32.gmra.mxu1 %vm19783_vm10, %v20590_v47  ;;  %1762 = vmatmul.mubr.f32.gmra.mxu0 %v1761_v45  ;;  %v12518_v45 = vsub.f32 %v9882_v53, %v9882_v53  ;;  %vm463_vm10 = vcmp.eq.s32.totalorder %v11342_v50, %v12470_v0  ;;  %v12535_v53 = vsub.f32 %v9881_v42, %v9881_v42  ;;  %v20727_v50 = vld [vmem:[#allocation53_spill] sm:$0xff] }
 0x115   : > { %v1784_v29 = vsub.f32 %v12428_v30, %v20710_v34  ;;  %10071 = vmatprep.mubr.msk.f32.mxu1 %vm460_vm12, %v20590_v47  ;;  %2398 = vmatpush2.msra.mxu0 %v20711_v58  ;;  %v1776_v34 = vand.u32 4294901760, %v1775_v44  ;;  %v20713_v58 = vand.u32 4294901760, %v12458_v60 }
 0x116   : > { %1771 = vmatprep.mubr.f32.mxu0 %v1770_v62  ;;  %2786 = vmatprep.subr.mxu1 %v20567_v32  ;;  %v9884_v62 = vsel %vm464_vm9, 1.0, %v20567_v32 }
 0x117   : > { %2788 = vmatpush2.msra.mxu1 %v20712_v17  ;;  %2399 = vmatprep.subr.mxu0 %v20567_v32  ;;  %v1790_v30 = vsub.f32 %v12458_v60, %v20713_v58  ;;  %v1785_v44 = vand.u32 4294901760, %v1784_v29  ;;  %v20714_v58 = vld [vmem:[#allocation48_spill] sm:$0xff]  ;;  %v20715_v17 = vand.u32 4294901760, %v12477_v52  ;;  %v9883_v29 = vsel %vm463_vm10, 1.0, %v20567_v32 }
 0x118   : > { %10072 = vmatmul.mubr.msk.f32.gmra.mxu1 %vm459_vm13, %v20590_v47  ;;  %1777 = vmatmul.mubr.f32.gmra.mxu0 %v1776_v34  ;;  %v12551_v42 = vsub.f32 %v9884_v62, %v9884_v62  ;;  %v19798_v34 = vand.u32 4294901760, %v12535_v53 }
 0x119   : > { %10073 = vmatprep.mubr.msk.f32.mxu1 %vm462_vm11, %v20590_v47  ;;  %2402 = vmatpush2.msra.mxu0 %v20714_v58  ;;  %v1799_v60 = vsub.f32 %v12477_v52, %v20715_v17  ;;  %v1791_v61 = vand.u32 4294901760, %v1790_v30  ;;  %v12561_v17 = vsub.f32 %v9883_v29, %v9883_v29  ;;  %v20720_v29 = vand.u32 4294901760, %v12518_v45 }
 0x11a   : > { %1786 = vmatprep.mubr.f32.mxu0 %v1785_v44  ;;  %2789 = vmatprep.subr.mxu1 %v20567_v32  ;;  %v20717_v44 = vand.u32 4294901760, %v12500_v7  ;;  %v19804_v52 = vand.u32 4294901760, %v12551_v42 }
 0x11b   : > { %2791 = vmatpush2.msra.mxu1 %v20716_v35  ;;  %2403 = vmatprep.subr.mxu0 %v20567_v32  ;;  %v1800_v30 = vand.u32 4294901760, %v1799_v60  ;;  %v20718_v35 = vld [vmem:[#allocation50_spill] sm:$0xff]  ;;  %v1814_v58 = vsub.f32 %v12518_v45, %v20720_v29  ;;  %v1820_v60 = vsub.f32 %v12535_v53, %v19798_v34  ;;  %v20724_v34 = vld [vmem:[#allocation61_spill] sm:$0xff]  ;;  %v20726_v0 = vand.u32 4294901760, %v12561_v17 }
 0x11c   : > { %10074 = vmatmul.mubr.msk.f32.gmra.mxu1 %vm461_vm14, %v20590_v47  ;;  %2792 = vmatprep.subr.mxu1 %v20567_v32  ;;  %v1805_v62 = vsub.f32 %v12500_v7, %v20717_v44 }
 0x11d   : > { %1792 = vmatmul.mubr.f32.gmra.mxu0 %v1791_v61  ;;  %10075 = vmatprep.mubr.msk.f32.mxu1 %vm464_vm9, %v20590_v47  ;;  %v20721_v61 = vld [vmem:[#allocation49_spill] sm:$0xff]  ;;  %v1815_v29 = vand.u32 4294901760, %v1814_v58  ;;  %v1821_v18 = vand.u32 4294901760, %v1820_v60  ;;  %v20728_v58 = vld [vmem:[#allocation60_spill] sm:$0xff] }
 0x11e   : > { %2406 = vmatpush2.msra.mxu0 %v20718_v35  ;;  %2794 = vmatpush2.msra.mxu1 %v20719_v1  ;;  %v1806_v44 = vand.u32 4294901760, %v1805_v62  ;;  %v1829_v62 = vsub.f32 %v12551_v42, %v19804_v52  ;;  %v20725_v1 = vand.u32 4294901760, %v20724_v34 }
 0x11f   : > { %1801 = vmatprep.mubr.f32.mxu0 %v1800_v30  ;;  %2795 = vmatprep.subr.mxu1 %v20567_v32  ;;  %v20722_v30 = vld [vmem:[#allocation51_spill] sm:$0xff] }
 0x120   : > { %2797 = vmatpush2.msra.mxu1 %v20721_v61  ;;  %2407 = vmatprep.subr.mxu0 %v20567_v32  ;;  %v20723_v61 = vld [vmem:[#allocation52_spill] sm:$0xff]  ;;  %v1830_v52 = vand.u32 4294901760, %v1829_v62  ;;  %v20737_v62 = vand.u32 4294901760, %v11467_v55 }
 0x121   : > { %10076 = vmatmul.mubr.msk.f32.gmra.mxu1 %vm463_vm10, %v20590_v47  ;;  %2798 = vmatprep.subr.mxu1 %v20567_v32  ;;  %v20729_v47 = vand.u32 4294901760, %v20728_v58 }
 0x122   : > { %1807 = vmatmul.mubr.f32.gmra.mxu0 %v1806_v44  ;;  %2800 = vmatpush2.msra.mxu1 %v20722_v30  ;;  %v1835_v44 = vsub.f32 %v12561_v17, %v20726_v0  ;;  %v20733_v0 = vand.u32 4294901760, %v11435_v3 }
 0x123   : > { %2410 = vmatpush2.msra.mxu0 %v20723_v61  ;;  %2807 = vmatprep.mubr.f32.mxu1 %v20725_v1  ;;  %v20730_v61 = vld [vmem:[#allocation54_spill] sm:$0xff]  ;;  %v20731_v1 = vand.u32 4294901760, %v11433_v49 }
 0x124   : > { %1816 = vmatprep.mubr.f32.mxu0 %v1815_v29  ;;  %2801 = vmatprep.subr.mxu1 %v20567_v32  ;;  %v1836_v60 = vand.u32 4294901760, %v1835_v44  ;;  %v20732_v29 = vld [vmem:[#allocation55_spill] sm:$0xff] }
 0x125   : > { %2803 = vmatpush2.msra.mxu1 %v20727_v50  ;;  %2411 = vmatprep.subr.mxu0 %v20567_v32  ;;  %v20738_v44 = vld [vmem:[#allocation7_spill] sm:$0xff] }
 0x126   : > { %2811 = vmatmul.mubr.f32.vlgmr.msra.gmra.mxu1 %v20729_v47  ;;  %1822 = vmatmul.mubr.f32.gmra.mxu0 %v1821_v18  ;;  %v20734_v18 = vand.u32 4294901760, %v11403_v57  ;;  %v20735_v47 = vld [vmem:[#allocation5_spill] sm:$0xff] }
 0x127   : > { %2414 = vmatpush2.msra.mxu0 %v20730_v61  ;;  %2818 = vmatprep.mubr.f32.mxu1 %v20731_v1  ;;  %v20739_v1 = vand.u32 4294901760, %v20738_v44 }
 0x128   : > { %1831 = vmatprep.mubr.f32.mxu0 %v1830_v52  ;;  %2415 = vmatprep.subr.mxu0 %v20567_v32  ;;  %v20736_v52 = vand.u32 4294901760, %v11405_v23 }
 0x129   : > { %2418 = vmatpush2.msra.mxu0 %v20732_v29  ;;  %3542 = vmatprep.subr.mxu1 %v20567_v32 }
 0x12a   : > { %2822 = vmatmul.mubr.f32.gmra.mxu1 %v20733_v0  ;;  %1837 = vmatmul.mubr.f32.gmra.mxu0 %v1836_v60  ;;  %v20741_v60 = vld [vmem:[#allocation6_spill] sm:$0xff]  ;;  %v20742_v0 = vand.u32 4294901760, %v11485_v19 }
 0x12b   : > { %2829 = vmatprep.mubr.f32.mxu1 %v20734_v18  ;;  %2421 = vmatprep.mubr.f32.mxu0 %v20724_v34  ;;  %v20740_v34 = vand.u32 4294901760, %v10819_v14  ;;  %v20745_v14 = vand.u32 4294901760, %v11524_v33 }
 0x12c   : > { %3157 = vmatprep.subr.mxu0 %v20567_v32  ;;  %3544 = vmatpush1.msra.mxu1 %v20735_v47 }
 0x12d   : > { %3545 = vmatprep.subr.mxu1 %v20567_v32 }
 0x12e   : > { %2833 = vmatmul.mubr.f32.gmra.mxu1 %v20736_v52  ;;  %2424 = vmatmul.mubr.f32.vlgmr.msra.gmra.mxu0 %v20728_v58  ;;  %v20743_v58 = vand.u32 4294901760, %v11505_v20 }
 0x12f   : > { %2840 = vmatprep.mubr.f32.mxu1 %v20737_v62  ;;  %3161 = vmatpush1.msra.mxu0 %v20739_v1 }
 0x130   : > { %2430 = vmatprep.mubr.f32.mxu0 %v11433_v49  ;;  %3162 = vmatprep.subr.mxu0 %v20567_v32  ;;  %v20744_v49 = vand.u32 4294901760, %v10822_v15  ;;  %v20751_v15 = vld [vmem:[#allocation69_spill] sm:$0xff] }
 0x131   : > { %3166 = vmatpush1.msra.mxu0 %v20740_v34  ;;  %3547 = vmatpush1.msra.mxu1 %v20741_v60  ;;  %v20763_v34 = vld [vmem:[#allocation11_spill] sm:$0xff] }
 0x132   : > { %2844 = vmatmul.mubr.f32.gmra.mxu1 %v20742_v0  ;;  %2433 = vmatmul.mubr.f32.gmra.mxu0 %v11435_v3  ;;  %v20746_v3 = vld [vmem:[#allocation67_spill] sm:$0xff]  ;;  %v20764_v60 = vand.u32 4294901760, %v20763_v34  ;;  %v20796_v34 = vld [vmem:[#allocation20_spill] sm:$0xff] }
 0x133   : > { %2851 = vmatprep.mubr.f32.mxu1 %v20743_v58  ;;  %2439 = vmatprep.mubr.f32.mxu0 %v11403_v57  ;;  %v20747_v18 = vand.u32 4294901760, %v20746_v3  ;;  %v20748_v57 = vld [vmem:[#allocation8_spill] sm:$0xff] }
 0x134   : > { %3167 = vmatprep.subr.mxu0 %v20567_v32  ;;  %3548 = vmatprep.subr.mxu1 %v20567_v32  ;;  %v20749_v47 = vand.u32 4294901760, %v20748_v57  ;;  %v20768_v58 = vld [vmem:[#allocation12_spill] sm:$0xff] }
 0x135   : > { %3171 = vmatpush1.msra.mxu0 %v20744_v49  ;;  %3550 = vmatpush1.msra.mxu1 %v10798_v6  ;;  %v20750_v6 = vand.u32 4294901760, %v11567_v26  ;;  %v20769_v49 = vand.u32 4294901760, %v20768_v58  ;;  %v20800_v58 = vand.u32 4294901760, %v11947_v36 }
 0x136   : > { %2855 = vmatmul.mubr.f32.gmra.mxu1 %v20745_v14  ;;  %2442 = vmatmul.mubr.f32.gmra.mxu0 %v11405_v23  ;;  %v20752_v23 = vand.u32 4294901760, %v20751_v15 }
 0x137   : > { %2862 = vmatprep.mubr.f32.mxu1 %v20747_v18  ;;  %2448 = vmatprep.mubr.f32.mxu0 %v11467_v55  ;;  %v20753_v55 = vld [vmem:[#allocation9_spill] sm:$0xff] }
 0x138   : > { %3172 = vmatprep.subr.mxu0 %v20567_v32  ;;  %3551 = vmatprep.subr.mxu1 %v20567_v32  ;;  %v20754_v52 = vand.u32 4294901760, %v20753_v55  ;;  %v20784_v55 = vld [vmem:[#allocation16_spill] sm:$0xff] }
 0x139   : > { %3176 = vmatpush1.msra.mxu0 %v20749_v47  ;;  %3553 = vmatpush1.msra.mxu1 %v10807_v10  ;;  %v20755_v10 = vand.u32 4294901760, %v11607_v4  ;;  %v20778_v47 = vld [vmem:[#allocation14_spill] sm:$0xff] }
 0x13a   : > { %2866 = vmatmul.mubr.f32.gmra.mxu1 %v20750_v6  ;;  %2451 = vmatmul.mubr.f32.gmra.mxu0 %v11485_v19  ;;  %v20756_v19 = vld [vmem:[#allocation71_spill] sm:$0xff]  ;;  %v20779_v6 = vand.u32 4294901760, %v20778_v47 }
 0x13b   : > { %2873 = vmatprep.mubr.f32.mxu1 %v20752_v23  ;;  %2457 = vmatprep.mubr.f32.mxu0 %v11505_v20  ;;  %v20757_v62 = vand.u32 4294901760, %v20756_v19  ;;  %v20758_v20 = vld [vmem:[#allocation10_spill] sm:$0xff] }
 0x13c   : > { %3177 = vmatprep.subr.mxu0 %v20567_v32  ;;  %3554 = vmatprep.subr.mxu1 %v20567_v32  ;;  %v20759_v44 = vand.u32 4294901760, %v20758_v20  ;;  %v20790_v20 = vld [vmem:[#allocation18_spill] sm:$0xff] }
 0x13d   : > { %3181 = vmatpush1.msra.mxu0 %v20754_v52  ;;  %3556 = vmatpush1.msra.mxu1 %v10810_v11  ;;  %v20760_v11 = vand.u32 4294901760, %v11647_v8  ;;  %v20785_v52 = vand.u32 4294901760, %v20784_v55  ;;  %v20808_v55 = vld [vmem:[#allocation23_spill] sm:$0xff] }
 0x13e   : > { %2877 = vmatmul.mubr.f32.gmra.mxu1 %v20755_v10  ;;  %2460 = vmatmul.mubr.f32.gmra.mxu0 %v11524_v33  ;;  %v20761_v33 = vld [vmem:[#allocation73_spill] sm:$0xff] }
 0x13f   : > { %2884 = vmatprep.mubr.f32.mxu1 %v20757_v62  ;;  %2466 = vmatprep.mubr.f32.mxu0 %v20746_v3  ;;  %v20762_v1 = vand.u32 4294901760, %v20761_v33  ;;  %v20773_v3 = vld [vmem:[#allocation13_spill] sm:$0xff] }
 0x140   : > { %3182 = vmatprep.subr.mxu0 %v20567_v32  ;;  %3557 = vmatprep.subr.mxu1 %v20567_v32  ;;  %v20774_v18 = vand.u32 4294901760, %v20773_v3  ;;  %v20802_v3 = vand.u32 4294901760, %v11965_v22 }
 0x141   : > { %3186 = vmatpush1.msra.mxu0 %v20759_v44  ;;  %3559 = vmatpush1.msra.mxu1 %v10838_v21  ;;  %v20765_v21 = vand.u32 4294901760, %v11687_v38  ;;  %v20791_v44 = vand.u32 4294901760, %v20790_v20 }
 0x142   : > { %2888 = vmatmul.mubr.f32.gmra.mxu1 %v20760_v11  ;;  %2469 = vmatmul.mubr.f32.gmra.mxu0 %v11567_v26  ;;  %v20766_v26 = vld [vmem:[#allocation75_spill] sm:$0xff] }
 0x143   : > { %2895 = vmatprep.mubr.f32.mxu1 %v20762_v1  ;;  %2475 = vmatprep.mubr.f32.mxu0 %v20751_v15  ;;  %v20767_v0 = vand.u32 4294901760, %v20766_v26  ;;  %v20792_v11 = vld [vmem:[#allocation87_spill] sm:$0xff] }
 0x144   : > { %3187 = vmatprep.subr.mxu0 %v20567_v32  ;;  %3560 = vmatprep.subr.mxu1 %v20567_v32  ;;  %v20795_v1 = vld [vmem:[#allocation15_spill] sm:$0xff] }
 0x145   : > { %3191 = vmatpush1.msra.mxu0 %v20764_v60  ;;  %3562 = vmatpush1.msra.mxu1 %v10860_v28  ;;  %v20770_v28 = vand.u32 4294901760, %v11727_v43  ;;  %v20797_v60 = vand.u32 4294901760, %v20796_v34  ;;  %v20816_v34 = vand.u32 4294901760, %v12077_v31 }
 0x146   : > { %2899 = vmatmul.mubr.f32.gmra.mxu1 %v20765_v21  ;;  %2478 = vmatmul.mubr.f32.gmra.mxu0 %v11607_v4  ;;  %v20771_v4 = vld [vmem:[#allocation77_spill] sm:$0xff] }
 0x147   : > { %2906 = vmatprep.mubr.f32.mxu1 %v20767_v0  ;;  %2484 = vmatprep.mubr.f32.mxu0 %v20756_v19  ;;  %v20772_v14 = vand.u32 4294901760, %v20771_v4 }
 0x148   : > { %3192 = vmatprep.subr.mxu0 %v20567_v32  ;;  %3563 = vmatprep.subr.mxu1 %v20567_v32 }
 0x149   : > { %3196 = vmatpush1.msra.mxu0 %v20769_v49  ;;  %3565 = vmatpush1.msra.mxu1 %v10876_v37  ;;  %v20775_v37 = vand.u32 4294901760, %v11767_v39 }
 0x14a   : > { %2910 = vmatmul.mubr.f32.gmra.mxu1 %v20770_v28  ;;  %2487 = vmatmul.mubr.f32.gmra.mxu0 %v11647_v8  ;;  %v20776_v8 = vld [vmem:[#allocation79_spill] sm:$0xff]  ;;  %v20801_v28 = vld [vmem:[#allocation17_spill] sm:$0xff] }
 0x14b   : > { %2917 = vmatprep.mubr.f32.mxu1 %v20772_v14  ;;  %2493 = vmatprep.mubr.f32.mxu0 %v20761_v33  ;;  %v20777_v57 = vand.u32 4294901760, %v20776_v8 }
 0x14c   : > { %3197 = vmatprep.subr.mxu0 %v20567_v32  ;;  %3566 = vmatprep.subr.mxu1 %v20567_v32 }
 0x14d   : > { %3201 = vmatpush1.msra.mxu0 %v20774_v18  ;;  %3568 = vmatpush1.msra.mxu1 %v10896_v46  ;;  %v20780_v46 = vld [vmem:[#allocation81_spill] sm:$0xff] }
 0x14e   : > { %2921 = vmatmul.mubr.f32.gmra.mxu1 %v20775_v37  ;;  %2496 = vmatmul.mubr.f32.gmra.mxu0 %v11687_v38  ;;  %v20781_v15 = vand.u32 4294901760, %v20780_v46  ;;  %v20782_v38 = vld [vmem:[#allocation82_spill] sm:$0xff]  ;;  %v20803_v37 = vand.u32 4294901760, %v11981_v63 }
 0x14f   : > { %2928 = vmatprep.mubr.f32.mxu1 %v20777_v57  ;;  %2502 = vmatprep.mubr.f32.mxu0 %v20766_v26  ;;  %v20783_v23 = vand.u32 4294901760, %v20782_v38  ;;  %v20798_v26 = vld [vmem:[#allocation89_spill] sm:$0xff] }
 0x150   : > { %3202 = vmatprep.subr.mxu0 %v20567_v32  ;;  %3569 = vmatprep.subr.mxu1 %v20567_v32  ;;  %v20799_v0 = vand.u32 4294901760, %v20798_v26 }
 0x151   : > { %3206 = vmatpush1.msra.mxu0 %v20779_v6  ;;  %3571 = vmatpush1.msra.mxu1 %v10908_v51  ;;  %v20786_v51 = vld [vmem:[#allocation84_spill] sm:$0xff]  ;;  %v20805_v6 = vld [vmem:[#allocation19_spill] sm:$0xff] }
 0x152   : > { %2932 = vmatmul.mubr.f32.gmra.mxu1 %v20781_v15  ;;  %2505 = vmatmul.mubr.f32.gmra.mxu0 %v11727_v43  ;;  %v20787_v10 = vand.u32 4294901760, %v20786_v51  ;;  %v20788_v43 = vld [vmem:[#allocation86_spill] sm:$0xff] }
 0x153   : > { %2939 = vmatprep.mubr.f32.mxu1 %v20783_v23  ;;  %2511 = vmatprep.mubr.f32.mxu0 %v20771_v4  ;;  %v20789_v19 = vand.u32 4294901760, %v20788_v43 }
 0x154   : > { %3207 = vmatprep.subr.mxu0 %v20567_v32  ;;  %3572 = vmatprep.subr.mxu1 %v20567_v32 }
 0x155   : > { %3211 = vmatpush1.msra.mxu0 %v20785_v52  ;;  %3574 = vmatpush1.msra.mxu1 %v10925_v59  ;;  %v20793_v59 = vand.u32 4294901760, %v20792_v11 }
 0x156   : > { %2943 = vmatmul.mubr.f32.gmra.mxu1 %v20787_v10  ;;  %2514 = vmatmul.mubr.f32.gmra.mxu0 %v11767_v39  ;;  %v20794_v39 = vand.u32 4294901760, %v11908_v48  ;;  %v20810_v10 = vld [vmem:[#allocation21_spill] sm:$0xff] }
 0x157   : > { %2950 = vmatprep.mubr.f32.mxu1 %v20789_v19  ;;  %2520 = vmatprep.mubr.f32.mxu0 %v20776_v8  ;;  %v20804_v8 = vand.u32 4294901760, %v11000_v54  ;;  %v20807_v54 = vand.u32 4294901760, %v12022_v13 }
 0x158   : > { %3212 = vmatprep.subr.mxu0 %v20567_v32  ;;  %3575 = vmatprep.subr.mxu1 %v20567_v32 }
 0x159   : > { %v2070_v62 = vpop.f32.mrf.mxu1  ;;  %3216 = vmatpush1.msra.mxu0 %v20791_v44  ;;  %3577 = vmatpush1.msra.mxu1 %v20795_v1  ;;  %v20812_v44 = vand.u32 4294901760, %v12057_v24 }
 0x15a   : > { %2954 = vmatmul.mubr.f32.gmra.mxu1 %v20793_v59  ;;  %2523 = vmatmul.mubr.f32.gmra.mxu0 %v20780_v46 }
 0x15b   : > { %v2072_v33 = vpop.f32.mrf.mxu1  ;;  %2961 = vmatprep.mubr.f32.mxu1 %v20794_v39  ;;  %2529 = vmatprep.mubr.f32.mxu0 %v20782_v38  ;;  %v20806_v38 = vand.u32 4294901760, %v11990_v41  ;;  %v20815_v39 = vld [vmem:[#allocation22_spill] sm:$0xff] }
 0x15c   : > { %3217 = vmatprep.subr.mxu0 %v20567_v32  ;;  %3578 = vmatprep.subr.mxu1 %v20567_v32 }
 0x15d   : > { %3221 = vmatpush1.msra.mxu0 %v20797_v60  ;;  %v2077_v21 = vpop.f32.mrf.mxu1  ;;  %3580 = vmatpush1.msra.mxu1 %v20801_v28 }
 0x15e   : > { %2965 = vmatmul.mubr.f32.gmra.mxu1 %v20799_v0  ;;  %2532 = vmatmul.mubr.f32.gmra.mxu0 %v20786_v51 }
 0x15f   : > { %2972 = vmatprep.mubr.f32.mxu1 %v20800_v58  ;;  %v2079_v49 = vpop.f32.mrf.mxu1  ;;  %2538 = vmatprep.mubr.f32.mxu0 %v20788_v43 }
 0x160   : > { %3222 = vmatprep.subr.mxu0 %v20567_v32  ;;  %3581 = vmatprep.subr.mxu1 %v20567_v32 }
 0x161   : > { %v2084_v4 = vpop.f32.mrf.mxu1  ;;  %3226 = vmatpush1.msra.mxu0 %v20804_v8  ;;  %3583 = vmatpush1.msra.mxu1 %v20805_v6  ;;  %v20828_v6 = vld [vmem:[#allocation30_spill] sm:$0xff] }
 0x162   : > { %v1373_v14 = vpop.f32.mrf.mxu0  ;;  %2976 = vmatmul.mubr.f32.gmra.mxu1 %v20802_v3  ;;  %2541 = vmatmul.mubr.f32.gmra.mxu0 %v20792_v11  ;;  %v20813_v11 = vld [vmem:[#allocation24_spill] sm:$0xff] }
 0x163   : > { %v12761_v18 = vadd.f32 %v2070_v62, %v1373_v14  ;;  %2983 = vmatprep.mubr.f32.mxu1 %v20803_v37  ;;  %v2086_v57 = vpop.f32.mrf.mxu1  ;;  %2547 = vmatprep.mubr.f32.mxu0 %v11908_v48  ;;  %v20809_v48 = vand.u32 4294901760, %v20808_v55  ;;  %v20811_v62 = vand.u32 4294901760, %v12029_v5  ;;  %v20823_v3 = vld [vmem:[#allocation28_spill] sm:$0xff] }
 0x164   : > { %v1375_v47 = vpop.f32.mrf.mxu0  ;;  %3227 = vmatprep.subr.mxu0 %v20567_v32  ;;  %3584 = vmatprep.subr.mxu1 %v20567_v32  ;;  %v20824_v37 = vand.u32 4294901760, %v20823_v3  ;;  %v20825_v57 = vld [vmem:[#allocation25_spill] sm:$0xff] }
 0x165   : > { %v2091_v46 = vpop.f32.mrf.mxu1  ;;  %3231 = vmatpush1.msra.mxu0 %v20809_v48  ;;  %3586 = vmatpush1.msra.mxu1 %v20810_v10  ;;  %v20827_v47 = vand.u32 4294901760, %v12164_v16  ;;  %v20831_v48 = vld [vmem:[#allocation98_spill] sm:$0xff]  ;;  %v20851_v3 = vld [vmem:[#allocation33_spill] sm:$0xff] }
 0x166   : > { %v1388_v15 = vpop.f32.mrf.mxu0  ;;  %2987 = vmatmul.mubr.f32.gmra.mxu1 %v20806_v38  ;;  %2550 = vmatmul.mubr.f32.gmra.mxu0 %v20798_v26  ;;  %v20818_v26 = vld [vmem:[#allocation26_spill] sm:$0xff] }
 0x167   : > { %v12774_v23 = vadd.f32 %v2077_v21, %v1388_v15  ;;  %2994 = vmatprep.mubr.f32.mxu1 %v20807_v54  ;;  %v2093_v52 = vpop.f32.mrf.mxu1  ;;  %2556 = vmatprep.mubr.f32.mxu0 %v11947_v36  ;;  %v20814_v36 = vand.u32 4294901760, %v20813_v11  ;;  %v20817_v21 = vand.u32 4294901760, %v12094_v27  ;;  %v20830_v54 = vld [vmem:[#allocation27_spill] sm:$0xff] }
 0x168   : > { %v1390_v51 = vpop.f32.mrf.mxu0  ;;  %3232 = vmatprep.subr.mxu0 %v20567_v32  ;;  %3587 = vmatprep.subr.mxu1 %v20567_v32  ;;  %v20832_v52 = vand.u32 4294901760, %v20831_v48 }
 0x169   : > { %v2098_v43 = vpop.f32.mrf.mxu1  ;;  %3236 = vmatpush1.msra.mxu0 %v20814_v36  ;;  %3589 = vmatpush1.msra.mxu1 %v20815_v39  ;;  %v20833_v51 = vld [vmem:[#allocation100_spill] sm:$0xff]  ;;  %v20838_v36 = vld [vmem:[#allocation102_spill] sm:$0xff]  ;;  %v20840_v39 = vld [vmem:[#allocation103_spill] sm:$0xff] }
 0x16a   : > { %v1403_v19 = vpop.f32.mrf.mxu0  ;;  %2998 = vmatmul.mubr.f32.gmra.mxu1 %v20811_v62  ;;  %2559 = vmatmul.mubr.f32.gmra.mxu0 %v11965_v22  ;;  %v20834_v10 = vand.u32 4294901760, %v20833_v51 }
 0x16b   : > { %v12787_v20 = vadd.f32 %v2084_v4, %v1403_v19  ;;  %3005 = vmatprep.mubr.f32.mxu1 %v20812_v44  ;;  %v2100_v59 = vpop.f32.mrf.mxu1  ;;  %2565 = vmatprep.mubr.f32.mxu0 %v11981_v63  ;;  %v20819_v63 = vand.u32 4294901760, %v20818_v26  ;;  %v20821_v4 = vld [vmem:[#allocation96_spill] sm:$0xff]  ;;  %v20837_v44 = vld [vmem:[#allocation29_spill] sm:$0xff] }
 0x16c   : > { %v1405_v33 = vpop.f32.mrf.mxu0  ;;  %3237 = vmatprep.subr.mxu0 %v20567_v32  ;;  %3590 = vmatprep.subr.mxu1 %v20567_v32  ;;  %v20822_v14 = vand.u32 4294901760, %v20821_v4 }
 0x16d   : > { %v2105_v1 = vpop.f32.mrf.mxu1  ;;  %3241 = vmatpush2.msra.mxu0 %v20819_v63  ;;  %3592 = vmatpush2.msra.mxu1 %v11023_v25 }
 0x16e   : > { %v1418_v22 = vpop.f32.mrf.mxu0  ;;  %3009 = vmatmul.mubr.f32.gmra.mxu1 %v20816_v34  ;;  %2568 = vmatmul.mubr.f32.gmra.mxu0 %v11990_v41  ;;  %v20820_v41 = vand.u32 4294901760, %v12115_v12 }
 0x16f   : > { %v12800_v60 = vadd.f32 %v2091_v46, %v1418_v22  ;;  %3016 = vmatprep.mubr.f32.mxu1 %v20817_v21  ;;  %v2107_v0 = vpop.f32.mrf.mxu1  ;;  %2574 = vmatprep.mubr.f32.mxu0 %v12022_v13  ;;  %v20829_v46 = vand.u32 4294901760, %v20828_v6  ;;  %v20842_v22 = vld [vmem:[#allocation34_spill] sm:$0xff]  ;;  %v20844_v21 = vld [vmem:[#allocation31_spill] sm:$0xff] }
 0x170   : > { %v1420_v58 = vpop.f32.mrf.mxu0  ;;  %3242 = vmatprep.subr.mxu0 %v20567_v32  ;;  %3593 = vmatprep.subr.mxu1 %v20567_v32  ;;  %v20843_v34 = vand.u32 4294901760, %v20842_v22  ;;  %v20845_v0 = vld [vmem:[#allocation104_spill] sm:$0xff]  ;;  %v20856_v6 = vld [vmem:[#allocation38_spill] sm:$0xff] }
 0x171   : > { %3246 = vmatpush2.msra.mxu0 %v20824_v37  ;;  %3595 = vmatpush2.msra.mxu1 %v20825_v57  ;;  %v20852_v37 = vld [vmem:[#allocation107_spill] sm:$0xff] }
 0x172   : > { %3020 = vmatmul.mubr.f32.gmra.mxu1 %v20820_v41  ;;  %2577 = vmatmul.mubr.f32.gmra.mxu0 %v12029_v5  ;;  %v2112_v49 = vpop.f32.mrf.mxu1  ;;  %v1433_v28 = vpop.f32.mrf.mxu0  ;;  %v20826_v5 = vand.u32 4294901760, %v12147_v40  ;;  %v20847_v41 = vld [vmem:[#allocation106_spill] sm:$0xff] }
 0x173   : > { %3027 = vmatprep.mubr.f32.mxu1 %v20822_v14  ;;  %v12817_v13 = vadd.f32 %v2098_v43, %v1433_v28  ;;  %2583 = vmatprep.mubr.f32.mxu0 %v12057_v24  ;;  %v20835_v43 = vld [vmem:[#allocation32_spill] sm:$0xff] }
 0x174   : > { %v2114_v25 = vpop.f32.mrf.mxu1  ;;  %v1435_v8 = vpop.f32.mrf.mxu0  ;;  %3247 = vmatprep.subr.mxu0 %v20567_v32  ;;  %3596 = vmatprep.subr.mxu1 %v20567_v32  ;;  %v20849_v28 = vld [vmem:[#allocation36_spill] sm:$0xff] }
 0x175   : > { %3251 = vmatpush2.msra.mxu0 %v20829_v46  ;;  %3598 = vmatpush2.msra.mxu1 %v20830_v54  ;;  %v20853_v25 = vand.u32 4294901760, %v20852_v37  ;;  %v20857_v46 = vand.u32 4294901760, %v20856_v6 }
 0x176   : > { %3031 = vmatmul.mubr.f32.gmra.mxu1 %v20826_v5  ;;  %2586 = vmatmul.mubr.f32.gmra.mxu0 %v12077_v31  ;;  %v20854_v5 = vld [vmem:[#allocation109_spill] sm:$0xff] }
 0x177   : > { %3038 = vmatprep.mubr.f32.mxu1 %v20827_v47  ;;  %v2119_v24 = vpop.f32.mrf.mxu1  ;;  %v1448_v15 = vpop.f32.mrf.mxu0  ;;  %2592 = vmatprep.mubr.f32.mxu0 %v12094_v27  ;;  %v20836_v27 = vand.u32 4294901760, %v20835_v43  ;;  %v20855_v47 = vand.u32 4294901760, %v20854_v5 }
 0x178   : > { %v12832_v38 = vadd.f32 %v2105_v1, %v1448_v15  ;;  %3252 = vmatprep.subr.mxu0 %v20567_v32  ;;  %3599 = vmatprep.subr.mxu1 %v20567_v32  ;;  %v20841_v1 = vand.u32 4294901760, %v20840_v39 }
 0x179   : > { %v2121_v55 = vpop.f32.mrf.mxu1  ;;  %v1450_v31 = vpop.f32.mrf.mxu0  ;;  %3256 = vmatpush2.msra.mxu0 %v20836_v27  ;;  %3601 = vmatpush2.msra.mxu1 %v20837_v44 }
 0x17a   : > { %3042 = vmatmul.mubr.f32.gmra.mxu1 %v20832_v52  ;;  %2595 = vmatmul.mubr.f32.gmra.mxu0 %v12115_v12  ;;  %v20839_v12 = vand.u32 4294901760, %v20838_v36  ;;  %v20858_v55 = vld [vmem:[#allocation35_spill] sm:$0xff]  ;;  %v20859_v31 = vand.u32 4294901760, %v12333_v9 }
 0x17b   : > { %3049 = vmatprep.mubr.f32.mxu1 %v20834_v10  ;;  %2601 = vmatprep.mubr.f32.mxu0 %v20821_v4 }
 0x17c   : > { %v2126_v19 = vpop.f32.mrf.mxu1  ;;  %v1463_v62 = vpop.f32.mrf.mxu0  ;;  %3257 = vmatprep.subr.mxu0 %v20567_v32  ;;  %3602 = vmatprep.subr.mxu1 %v20567_v32 }
 0x17d   : > { %v12847_v11 = vadd.f32 %v2112_v49, %v1463_v62  ;;  %3261 = vmatpush2.msra.mxu0 %v20843_v34  ;;  %3604 = vmatpush2.msra.mxu1 %v20844_v21  ;;  %v20848_v49 = vand.u32 4294901760, %v20847_v41  ;;  %v20864_v62 = vld [vmem:[#allocation37_spill] sm:$0xff]  ;;  %v20870_v21 = vld [vmem:[#allocation39_spill] sm:$0xff] }
 0x17e   : > { %3053 = vmatmul.mubr.f32.gmra.mxu1 %v20839_v12  ;;  %2604 = vmatmul.mubr.f32.gmra.mxu0 %v12147_v40  ;;  %v2128_v59 = vpop.f32.mrf.mxu1  ;;  %v1465_v33 = vpop.f32.mrf.mxu0  ;;  %v20846_v40 = vand.u32 4294901760, %v20845_v0  ;;  %v20865_v12 = vand.u32 4294901760, %v12377_v56 }
 0x17f   : > { %3060 = vmatprep.mubr.f32.mxu1 %v20841_v1  ;;  %2610 = vmatprep.mubr.f32.mxu0 %v12164_v16  ;;  %v20850_v16 = vand.u32 4294901760, %v20849_v28  ;;  %v20866_v59 = vld [vmem:[#allocation113_spill] sm:$0xff]  ;;  %v20874_v28 = vld [vmem:[#allocation44_spill] sm:$0xff] }
 0x180   : > { %3262 = vmatprep.subr.mxu0 %v20567_v32  ;;  %3605 = vmatprep.subr.mxu1 %v20567_v32  ;;  %v20867_v33 = vand.u32 4294901760, %v20866_v59 }
 0x181   : > { %v2133_v26 = vpop.f32.mrf.mxu1  ;;  %v1478_v63 = vpop.f32.mrf.mxu0  ;;  %3266 = vmatpush2.msra.mxu0 %v20850_v16  ;;  %3607 = vmatpush2.msra.mxu1 %v20851_v3  ;;  %v20875_v16 = vand.u32 4294901760, %v20874_v28 }
 0x182   : > { %3064 = vmatmul.mubr.f32.gmra.mxu1 %v20846_v40  ;;  %2613 = vmatmul.mubr.f32.gmra.mxu0 %v20831_v48  ;;  %v12863_v58 = vadd.f32 %v2119_v24, %v1478_v63  ;;  %v20860_v48 = vld [vmem:[#allocation111_spill] sm:$0xff]  ;;  %v20871_v63 = vand.u32 4294901760, %v12417_v2 }
 0x183   : > { %3071 = vmatprep.mubr.f32.mxu1 %v20848_v49  ;;  %v2135_v4 = vpop.f32.mrf.mxu1  ;;  %v1480_v14 = vpop.f32.mrf.mxu0  ;;  %2619 = vmatprep.mubr.f32.mxu0 %v20833_v51  ;;  %v20861_v52 = vand.u32 4294901760, %v20860_v48  ;;  %v20862_v51 = vld [vmem:[#allocation40_spill] sm:$0xff] }
 0x184   : > { %3267 = vmatprep.subr.mxu0 %v20567_v32  ;;  %3608 = vmatprep.subr.mxu1 %v20567_v32  ;;  %v20863_v10 = vand.u32 4294901760, %v20862_v51  ;;  %v20876_v4 = vld [vmem:[#allocation41_spill] sm:$0xff]  ;;  %v20887_v51 = vld [vmem:[#allocation48_spill] sm:$0xff] }
 0x185   : > { %3271 = vmatpush2.msra.mxu0 %v20857_v46  ;;  %3610 = vmatpush2.msra.mxu1 %v20858_v55 }
 0x186   : > { %3075 = vmatmul.mubr.f32.gmra.mxu1 %v20853_v25  ;;  %2622 = vmatmul.mubr.f32.gmra.mxu0 %v20838_v36  ;;  %v2140_v8 = vpop.f32.mrf.mxu1  ;;  %v1493_v57 = vpop.f32.mrf.mxu0 }
 0x187   : > { %3082 = vmatprep.mubr.f32.mxu1 %v20855_v47  ;;  %v12880_v24 = vadd.f32 %v2126_v19, %v1493_v57  ;;  %2628 = vmatprep.mubr.f32.mxu0 %v20840_v39  ;;  %v20868_v39 = vld [vmem:[#allocation42_spill] sm:$0xff] }
 0x188   : > { %v2142_v15 = vpop.f32.mrf.mxu1  ;;  %v1495_v54 = vpop.f32.mrf.mxu0  ;;  %3272 = vmatprep.subr.mxu0 %v20567_v32  ;;  %3611 = vmatprep.subr.mxu1 %v20567_v32  ;;  %v20869_v1 = vand.u32 4294901760, %v20868_v39 }
 0x189   : > { %3276 = vmatpush2.msra.mxu0 %v20863_v10  ;;  %3613 = vmatpush2.msra.mxu1 %v20864_v62  ;;  %v3878_v15 = vld [vmem:[%s19515_s4 + $0x78] sm:$0xff]  ;;  %v20888_v10 = vand.u32 4294901760, %v20887_v51 }
 0x18a   : > { %3086 = vmatmul.mubr.f32.gmra.mxu1 %v20859_v31  ;;  %2631 = vmatmul.mubr.f32.gmra.mxu0 %v20845_v0  ;;  %v20883_v54 = vld [vmem:[#allocation43_spill] sm:$0xff] }
 0x18b   : > { %3093 = vmatprep.mubr.f32.mxu1 %v20861_v52  ;;  %v2147_v43 = vpop.f32.mrf.mxu1  ;;  %v1508_v27 = vpop.f32.mrf.mxu0  ;;  %2637 = vmatprep.mubr.f32.mxu0 %v20847_v41  ;;  %v20872_v41 = vld [vmem:[#allocation114_spill] sm:$0xff]  ;;  %v20886_v52 = vand.u32 4294901760, %v12518_v45 }
 0x18c   : > { %v12895_v19 = vadd.f32 %v2133_v26, %v1508_v27  ;;  %3277 = vmatprep.subr.mxu0 %v20567_v32  ;;  %3614 = vmatprep.subr.mxu1 %v20567_v32  ;;  %v20873_v49 = vand.u32 4294901760, %v20872_v41 }
 0x18d   : > { %v2149_v44 = vpop.f32.mrf.mxu1  ;;  %v1510_v36 = vpop.f32.mrf.mxu0  ;;  %3281 = vmatpush2.msra.mxu0 %v20869_v1  ;;  %3616 = vmatpush2.msra.mxu1 %v20870_v21 }
 0x18e   : > { %3097 = vmatmul.mubr.f32.gmra.mxu1 %v20865_v12  ;;  %2640 = vmatmul.mubr.f32.gmra.mxu0 %v20852_v37  ;;  %v20877_v37 = vld [vmem:[#allocation116_spill] sm:$0xff]  ;;  %v20889_v44 = vld [vmem:[#allocation45_spill] sm:$0xff]  ;;  %v20890_v36 = vand.u32 4294901760, %v12535_v53 }
 0x18f   : > { %3104 = vmatprep.mubr.f32.mxu1 %v20867_v33  ;;  %2646 = vmatprep.mubr.f32.mxu0 %v20854_v5  ;;  %v20881_v5 = vld [vmem:[#allocation46_spill] sm:$0xff] }
 0x190   : > { %v2154_v22 = vpop.f32.mrf.mxu1  ;;  %v1523_v34 = vpop.f32.mrf.mxu0  ;;  %3282 = vmatprep.subr.mxu0 %v20567_v32  ;;  %3617 = vmatprep.subr.mxu1 %v20567_v32  ;;  %v20882_v47 = vand.u32 4294901760, %v20881_v5 }
 0x191   : > { %v12910_v26 = vadd.f32 %v2140_v8, %v1523_v34  ;;  %3286 = vmatpush2.msra.mxu0 %v20875_v16  ;;  %3619 = vmatpush2.msra.mxu1 %v20876_v4  ;;  %v20879_v8 = vld [vmem:[#allocation118_spill] sm:$0xff]  ;;  %v20895_v34 = vld [vmem:[#allocation47_spill] sm:$0xff]  ;;  %v3875_v4 = vld [vmem:[%s19515_s4 + $0x60] sm:$0xff] }
 0x192   : > { %3108 = vmatmul.mubr.f32.gmra.mxu1 %v20871_v63  ;;  %2649 = vmatmul.mubr.f32.gmra.mxu0 %v12333_v9  ;;  %v2156_v0 = vpop.f32.mrf.mxu1  ;;  %v1525_v40 = vpop.f32.mrf.mxu0  ;;  %v20878_v9 = vand.u32 4294901760, %v20877_v37  ;;  %v20880_v57 = vand.u32 4294901760, %v20879_v8  ;;  %v3876_v63 = vld [vmem:[%s19515_s4 + $0x68] sm:$0xff] }
 0x193   : > { %3115 = vmatprep.mubr.f32.mxu1 %v20873_v49  ;;  %2655 = vmatprep.mubr.f32.mxu0 %v20860_v48  ;;  %v12942_v48 = vand.u32 4294901760, %v3878_v15  ;;  %v20898_v49 = vand.u32 4294901760, %v12561_v17  ;;  %v12989_v16 = vand.u32 4294901760, %v3876_v63 }
 0x194   : > { %3287 = vmatprep.subr.mxu0 %v20567_v32  ;;  %3620 = vmatprep.subr.mxu1 %v20567_v32 }
 0x195   : > { %v2161_v14 = vpop.f32.mrf.mxu1  ;;  %v1538_v3 = vpop.f32.mrf.mxu0  ;;  %3291 = vmatpush2.msra.mxu0 %v20882_v47  ;;  %3622 = vmatpush2.msra.mxu1 %v20883_v54  ;;  %20885 = vst [vmem:[#allocation50_spill] sm:$0xff] %v12942_v48  ;;  %v12961_v12 = vsub.f32 %v3878_v15, %v12942_v48  ;;  %20900 = vst [vmem:[#allocation54_spill] sm:$0xff] %v12989_v16  ;;  %v13016_v54 = vsub.f32 %v3876_v63, %v12989_v16 }
 0x196   : > { %3119 = vmatmul.mubr.f32.gmra.mxu1 %v20878_v9  ;;  %2658 = vmatmul.mubr.f32.gmra.mxu0 %v12377_v56  ;;  %v12926_v25 = vadd.f32 %v2147_v43, %v1538_v3  ;;  %v20884_v56 = vand.u32 4294901760, %v12500_v7 }
 0x197   : > { %3126 = vmatprep.mubr.f32.mxu1 %v20880_v57  ;;  %v2163_v6 = vpop.f32.mrf.mxu1  ;;  %v1540_v46 = vpop.f32.mrf.mxu0  ;;  %2664 = vmatprep.mubr.f32.mxu0 %v20866_v59  ;;  %20891 = vst [vmem:[#allocation51_spill] sm:$0xff] %v12961_v12  ;;  %v20892_v59 = vand.u32 4294901760, %v12551_v42  ;;  %v20904_v57 = vld [vmem:[#allocation57_spill] sm:$0xff]  ;;  %20908 = vst [vmem:[#allocation7_spill] sm:$0xff] %v13016_v54 }
 0x198   : > { %3292 = vmatprep.subr.mxu0 %v20567_v32  ;;  %3623 = vmatprep.subr.mxu1 %v20567_v32  ;;  %v13008_v46 = vand.u32 4294901760, %v3875_v4 }
 0x199   : > { %3296 = vmatpush2.msra.mxu0 %v20888_v10  ;;  %3625 = vmatpush2.msra.mxu1 %v20889_v44  ;;  %v13047_v44 = vand.u32 4294901760, %v13016_v54 }
 0x19a   : > { %3130 = vmatmul.mubr.f32.gmra.mxu1 %v20884_v56  ;;  %2667 = vmatmul.mubr.f32.gmra.mxu0 %v12417_v2  ;;  %v2168_v55 = vpop.f32.mrf.mxu1  ;;  %v1553_v31 = vpop.f32.mrf.mxu0  ;;  %v3877_v2 = vld [vmem:[%s19515_s4 + $0x70] sm:$0xff]  ;;  %20906 = vst [vmem:[#allocation55_spill] sm:$0xff] %v13008_v46 }
 0x19b   : > { %3137 = vmatprep.mubr.f32.mxu1 %v20886_v52  ;;  %v12948_v43 = vadd.f32 %v2154_v22, %v1553_v31  ;;  %2673 = vmatprep.mubr.f32.mxu0 %v20872_v41  ;;  %v12966_v1 = vand.u32 4294901760, %v3877_v2  ;;  %v20894_v22 = vand.u32 4294901760, %v20718_v35  ;;  %v20896_v41 = vld [vmem:[#allocation49_spill] sm:$0xff]  ;;  %v12981_v35 = vand.u32 4294901760, %v12961_v12  ;;  %20915 = vst [vmem:[#allocation8_spill] sm:$0xff] %v13047_v44 }
 0x19c   : > { %v2170_v27 = vpop.f32.mrf.mxu1  ;;  %v1555_v62 = vpop.f32.mrf.mxu0  ;;  %3297 = vmatprep.subr.mxu0 %v20567_v32  ;;  %3626 = vmatprep.subr.mxu1 %v20567_v32  ;;  %v20910_v31 = vand.u32 4294901760, %v20730_v61  ;;  %v20914_v61 = vand.u32 4294901760, %v20732_v29 }
 0x19d   : > { %20893 = vst [vmem:[#allocation61_spill] sm:$0xff] %v12966_v1  ;;  %3301 = vmatpush2.msra.mxu0 %v20894_v22  ;;  %3628 = vmatpush2.msra.mxu1 %v20895_v34  ;;  %20897 = vst [vmem:[#allocation53_spill] sm:$0xff] %v12981_v35  ;;  %v12987_v28 = vsub.f32 %v3877_v2, %v12966_v1  ;;  %v13039_v62 = vsub.f32 %v3875_v4, %v13008_v46 }
 0x19e   : > { %3141 = vmatmul.mubr.f32.gmra.mxu1 %v20890_v36  ;;  %2676 = vmatmul.mubr.f32.gmra.mxu0 %v20877_v37  ;;  %v20901_v37 = vld [vmem:[#allocation52_spill] sm:$0xff] }
 0x19f   : > { %3148 = vmatprep.mubr.f32.mxu1 %v20892_v59  ;;  %v2175_v33 = vpop.f32.mrf.mxu1  ;;  %v1568_v39 = vpop.f32.mrf.mxu0  ;;  %2682 = vmatprep.mubr.f32.mxu0 %v20879_v8  ;;  %20899 = vst [vmem:[#allocation60_spill] sm:$0xff] %v12987_v28  ;;  %v20902_v9 = vand.u32 4294901760, %v20901_v37  ;;  %v20903_v8 = vmov 1.0   ;;  %v13013_v15 = vand.u32 4294901760, %v12987_v28  ;;  %20913 = vst [vmem:[#allocation67_spill] sm:$0xff] %v13039_v62  ;;  %v3873_v59 = vld [vmem:[%s19515_s4 + $0x50] sm:$0xff] }
 0x1a0   : > { %v12971_v21 = vadd.f32 %v2161_v14, %v1568_v39  ;;  %3629 = vmatprep.subr.mxu1 %v20567_v32  ;;  %3302 = vmatprep.subr.mxu0 %v20567_v32  ;;  %v13072_v34 = vand.u32 4294901760, %v13039_v62 }
 0x1a1   : > { %v2177_v0 = vpop.f32.mrf.mxu1  ;;  %v1570_v40 = vpop.f32.mrf.mxu0  ;;  %3631 = vmatpush2.msra.mxu1 %v20896_v41  ;;  %3306 = vmatpush2.msra.mxu0 %v20902_v9  ;;  %20907 = vst [vmem:[#allocation5_spill] sm:$0xff] %v13013_v15  ;;  %v4483_v2 = vsub.f32 %v12987_v28, %v13013_v15  ;;  %v13082_v41 = vand.u32 4294901760, %v3873_v59 }
 0x1a2   : > { %3152 = vmatmul.mubr.f32.gmra.mxu1 %v20898_v49  ;;  %3632 = vmatprep.subr.mxu1 %v20567_v32  ;;  %20918 = vst [vmem:[#allocation9_spill] sm:$0xff] %v13072_v34  ;;  %v4490_v0 = vsub.f32 %v13016_v54, %v13047_v44 }
 0x1a3   : > { %2685 = vmatmul.mubr.f32.gmra.mxu0 %v12500_v7  ;;  %3634 = vmatpush2.msra.mxu1 %v20722_v30  ;;  %v4476_v30 = vsub.f32 %v12961_v12, %v12981_v35  ;;  %v13075_v63 = vand.u32 4294901760, %v4483_v2  ;;  %20921 = vst [vmem:[#allocation73_spill] sm:$0xff] %v13082_v41 }
 0x1a4   : > { %v2182_v14 = vpop.f32.mrf.mxu1  ;;  %v1583_v3 = vpop.f32.mrf.mxu0  ;;  %10141 = vmatprep.mubr.msk.f32.mxu1 %vm402_vm0, %v20903_v8  ;;  %2691 = vmatprep.mubr.f32.mxu0 %v12518_v45  ;;  %v20909_v45 = vld [vmem:[#allocation56_spill] sm:$0xff] }
 0x1a5   : > { %v13002_v47 = vadd.f32 %v2168_v55, %v1583_v3  ;;  %3635 = vmatprep.subr.mxu1 %v20567_v32  ;;  %3307 = vmatprep.subr.mxu0 %v20567_v32  ;;  %v13036_v27 = vand.u32 4294901760, %v4476_v30  ;;  %20919 = vst [vmem:[#allocation71_spill] sm:$0xff] %v13075_v63 }
 0x1a6   : > { %v2184_v6 = vpop.f32.mrf.mxu1  ;;  %v1585_v7 = vpop.f32.mrf.mxu0  ;;  %3637 = vmatpush2.msra.mxu1 %v20727_v50  ;;  %v3874_v50 = vld [vmem:[%s19515_s4 + $0x58] sm:$0xff]  ;;  %3311 = vmatpush2.msra.mxu0 %v20910_v31 }
 0x1a7   : > { %10142 = vmatmul.mubr.msk.f32.vlgmr.msra.gmra.mxu1 %vm401_vm1, %v20903_v8  ;;  %2694 = vmatmul.mubr.f32.gmra.mxu0 %v12535_v53  ;;  %20912 = vst [vmem:[#allocation6_spill] sm:$0xff] %v13036_v27  ;;  %v4497_v6 = vsub.f32 %v13039_v62, %v13072_v34  ;;  %v13111_v7 = vand.u32 4294901760, %v4490_v0  ;;  %v3870_v0 = vld [vmem:[%s19515_s4 + $0x38] sm:$0xff] }
 0x1a8   : > { %v2189_v56 = vpop.f32.mrf.mxu1  ;;  %v1598_v55 = vpop.f32.mrf.mxu0  ;;  %10143 = vmatprep.mubr.msk.f32.mxu1 %vm404_vm4, %v20903_v8  ;;  %2700 = vmatprep.mubr.f32.mxu0 %v12551_v42  ;;  %v13049_v42 = vand.u32 4294901760, %v3874_v50 }
 0x1a9   : > { %v13032_v51 = vadd.f32 %v2175_v33, %v1598_v55  ;;  %3312 = vmatprep.subr.mxu0 %v20567_v32  ;;  %4472 = vmatprep.subr.mxu1 %v20567_v32  ;;  %20923 = vst [vmem:[#allocation11_spill] sm:$0xff] %v13111_v7 }
 0x1aa   : > { %v2191_v53 = vpop.f32.mrf.mxu1  ;;  %v1600_v10 = vpop.f32.mrf.mxu0  ;;  %3316 = vmatpush2.msra.mxu0 %v20914_v61  ;;  %20916 = vst [vmem:[#allocation69_spill] sm:$0xff] %v13049_v42  ;;  %4478 = vmatpush1.msra.mxu1 %v13036_v27  ;;  %v13080_v40 = vsub.f32 %v3874_v50, %v13049_v42 }
 0x1ab   : > { %10144 = vmatmul.mubr.msk.f32.gmra.mxu1 %vm403_vm5, %v20903_v8  ;;  %2703 = vmatmul.mubr.f32.gmra.mxu0 %v12561_v17  ;;  %v3871_v53 = vld [vmem:[%s19515_s4 + $0x40] sm:$0xff] }
 0x1ac   : > { %v2196_v36 = vpop.f32.mrf.mxu1  ;;  %v1613_v29 = vpop.f32.mrf.mxu0  ;;  %10145 = vmatprep.mubr.msk.f32.mxu1 %vm406_vm2, %v20903_v8  ;;  %10077 = vmatprep.mubr.msk.f32.mxu0 %vm402_vm0, %v20903_v8  ;;  %20920 = vst [vmem:[#allocation10_spill] sm:$0xff] %v13080_v40  ;;  %v13114_v30 = vand.u32 4294901760, %v13080_v40  ;;  %v20927_v10 = vld [vmem:[#allocation64_spill] sm:$0xff] }
 0x1ad   : > { %v13067_v39 = vadd.f32 %v2182_v14, %v1613_v29  ;;  %3895 = vmatprep.subr.mxu0 %v20567_v32  ;;  %4479 = vmatprep.subr.mxu1 %v20567_v32  ;;  %v3872_v14 = vld [vmem:[%s19515_s4 + $0x48] sm:$0xff]  ;;  %v13144_v29 = vand.u32 4294901760, %v4497_v6  ;;  %vm20932_vm0 = vcmp.eq.s32.totalorder %v20909_v45, %v20927_v10 }
 0x1ae   : > { %v2198_v17 = vpop.f32.mrf.mxu1  ;;  %v1615_v22 = vpop.f32.mrf.mxu0  ;;  %4485 = vmatpush1.msra.mxu1 %v13075_v63  ;;  %20924 = vst [vmem:[#allocation75_spill] sm:$0xff] %v13114_v30  ;;  %v13119_v55 = vand.u32 4294901760, %v3872_v14 }
 0x1af   : > { %10146 = vmatmul.mubr.msk.f32.gmra.mxu1 %vm405_vm3, %v20903_v8  ;;  %10078 = vmatmul.mubr.msk.f32.vlgmr.msra.gmra.mxu0 %vm401_vm1, %v20903_v8  ;;  %20928 = vst [vmem:[#allocation13_spill] sm:$0xff] %v13144_v29  ;;  %v13156_v22 = vand.u32 4294901760, %v3871_v53 }
 0x1b0   : > { %v2203_v49 = vpop.f32.mrf.mxu1  ;;  %v1628_v4 = vpop.f32.mrf.mxu0  ;;  %10147 = vmatprep.mubr.msk.f32.mxu1 %vm408_vm6, %v20903_v8  ;;  %3897 = vmatpush1.msra.mxu0 %v12942_v48  ;;  %20926 = vst [vmem:[#allocation77_spill] sm:$0xff] %v13119_v55 }
 0x1b1   : > { %v13100_v37 = vadd.f32 %v2189_v56, %v1628_v4  ;;  %10079 = vmatprep.mubr.msk.f32.mxu0 %vm404_vm4, %v20903_v8  ;;  %3898 = vmatprep.subr.mxu0 %v20567_v32  ;;  %v13117_v56 = vsub.f32 %v3873_v59, %v13082_v41  ;;  %v4504_v59 = vsub.f32 %v13080_v40, %v13114_v30 }
 0x1b2   : > { %v2205_v9 = vpop.f32.mrf.mxu1  ;;  %v1630_v5 = vpop.f32.mrf.mxu0  ;;  %3900 = vmatpush1.msra.mxu0 %v12966_v1  ;;  %4486 = vmatprep.subr.mxu1 %v20567_v32  ;;  %20931 = vst [vmem:[#allocation81_spill] sm:$0xff] %v13156_v22 }
 0x1b3   : > { %20925 = vst [vmem:[#allocation12_spill] sm:$0xff] %v13117_v56  ;;  %10148 = vmatmul.mubr.msk.f32.gmra.mxu1 %vm407_vm7, %v20903_v8  ;;  %10080 = vmatmul.mubr.msk.f32.gmra.mxu0 %vm403_vm5, %v20903_v8  ;;  %v13151_v17 = vand.u32 4294901760, %v13117_v56  ;;  %vm20947_vm5 = vmmov %vm20932_vm0 }
 0x1b4   : > { %v2210_v50 = vpop.f32.mrf.mxu1  ;;  %v1643_v31 = vpop.f32.mrf.mxu0  ;;  %10149 = vmatprep.mubr.msk.f32.mxu1 %vm410_vm8, %v20903_v8  ;;  %10081 = vmatprep.mubr.msk.f32.mxu0 %vm406_vm2, %v20903_v8 }
 0x1b5   : > { %v13140_v61 = vadd.f32 %v2196_v36, %v1643_v31  ;;  %3901 = vmatprep.subr.mxu0 %v20567_v32  ;;  %4492 = vmatpush1.msra.mxu1 %v13111_v7  ;;  %20929 = vst [vmem:[#allocation79_spill] sm:$0xff] %v13151_v17  ;;  %v13154_v36 = vsub.f32 %v3872_v14, %v13119_v55  ;;  %v20933_v14 = vld [vmem:[#allocation65_spill] sm:$0xff]  ;;  %v13181_v31 = vand.u32 4294901760, %v3870_v0 }
 0x1b6   : > { %v2212_v52 = vpop.f32.mrf.mxu1  ;;  %v1645_v2 = vpop.f32.mrf.mxu0  ;;  %3903 = vmatpush1.msra.mxu0 %v12989_v16  ;;  %vm20934_vm1 = vcmp.eq.s32.totalorder %v20904_v57, %v20933_v14  ;;  %4493 = vmatprep.subr.mxu1 %v20567_v32  ;;  %vm20939_vm2 = vcmp.eq.s32.totalorder %v20909_v45, %v20933_v14 }
 0x1b7   : > { %20930 = vst [vmem:[#allocation14_spill] sm:$0xff] %v13154_v36  ;;  %10150 = vmatmul.mubr.msk.f32.gmra.mxu1 %vm20932_vm0, %v20903_v8  ;;  %10082 = vmatmul.mubr.msk.f32.gmra.mxu0 %vm405_vm3, %v20903_v8  ;;  %20935 = vst [vmem:[#allocation82_spill] sm:$0xff] %v13181_v31  ;;  %v13185_v52 = vand.u32 4294901760, %v4504_v59  ;;  %v4511_v2 = vsub.f32 %v13117_v56, %v13151_v17  ;;  %v13219_v63 = vsub.f32 %v3870_v0, %v13181_v31 }
 0x1b8   : > { %v2217_v4 = vpop.f32.mrf.mxu1  ;;  %v1658_v9 = vpop.f32.mrf.mxu0  ;;  %10151 = vmatprep.mubr.msk.f32.mxu1 %vm20934_vm1, %v20903_v8  ;;  %10083 = vmatprep.mubr.msk.f32.mxu0 %vm408_vm6, %v20903_v8  ;;  %vm20956_vm0 = vmmov %vm20939_vm2 }
 0x1b9   : > { %v13177_v5 = vadd.f32 %v2203_v49, %v1658_v9  ;;  %3904 = vmatprep.subr.mxu0 %v20567_v32  ;;  %4499 = vmatpush1.msra.mxu1 %v13144_v29  ;;  %20936 = vst [vmem:[#allocation16_spill] sm:$0xff] %v13185_v52  ;;  %v13190_v49 = vand.u32 4294901760, %v13154_v36  ;;  %v13193_v9 = vsub.f32 %v3871_v53, %v13156_v22  ;;  %v20940_v53 = vld [vmem:[#allocation66_spill] sm:$0xff]  ;;  %20942 = vst [vmem:[#allocation18_spill] sm:$0xff] %v13219_v63 }
 0x1ba   : > { %v2219_v6 = vpop.f32.mrf.mxu1  ;;  %v1660_v33 = vpop.f32.mrf.mxu0  ;;  %3906 = vmatpush1.msra.mxu0 %v13008_v46  ;;  %vm20941_vm3 = vcmp.eq.s32.totalorder %v20904_v57, %v20940_v53  ;;  %4500 = vmatprep.subr.mxu1 %v20567_v32  ;;  %v13223_v27 = vand.u32 4294901760, %v4511_v2  ;;  %vm20946_vm4 = vcmp.eq.s32.totalorder %v20909_v45, %v20940_v53 }
 0x1bb   : > { %20937 = vst [vmem:[#allocation84_spill] sm:$0xff] %v13190_v49  ;;  %20938 = vst [vmem:[#allocation86_spill] sm:$0xff] %v13193_v9  ;;  %10152 = vmatmul.mubr.msk.f32.gmra.mxu1 %vm20939_vm2, %v20903_v8  ;;  %10084 = vmatmul.mubr.msk.f32.gmra.mxu0 %vm407_vm7, %v20903_v8  ;;  %v3869_v33 = vld [vmem:[%s19515_s4 + $0x30] sm:$0xff]  ;;  %v4518_v17 = vsub.f32 %v13154_v36, %v13190_v49 }
 0x1bc   : > { %v2224_v59 = vpop.f32.mrf.mxu1  ;;  %v1673_v6 = vpop.f32.mrf.mxu0  ;;  %10153 = vmatprep.mubr.msk.f32.mxu1 %vm20941_vm3, %v20903_v8  ;;  %10085 = vmatprep.mubr.msk.f32.mxu0 %vm410_vm8, %v20903_v8  ;;  %20943 = vst [vmem:[#allocation87_spill] sm:$0xff] %v13223_v27  ;;  %vm20950_vm7 = vmmov %vm20934_vm1 }
 0x1bd   : > { %v13214_v29 = vadd.f32 %v2210_v50, %v1673_v6  ;;  %3907 = vmatprep.subr.mxu0 %v20567_v32  ;;  %4506 = vmatpush1.msra.mxu1 %v13185_v52  ;;  %v13228_v50 = vand.u32 4294901760, %v13193_v9  ;;  %v13230_v6 = vand.u32 4294901760, %v3869_v33  ;;  %v13259_v34 = vand.u32 4294901760, %v4518_v17  ;;  %vm20959_vm2 = vmmov %vm20941_vm3 }
 0x1be   : > { %v2226_v3 = vpop.f32.mrf.mxu1  ;;  %v1675_v7 = vpop.f32.mrf.mxu0  ;;  %3909 = vmatpush1.msra.mxu0 %v13049_v42  ;;  %4507 = vmatprep.subr.mxu1 %v20567_v32 }
 0x1bf   : > { %20944 = vst [vmem:[#allocation15_spill] sm:$0xff] %v13228_v50  ;;  %20945 = vst [vmem:[#allocation20_spill] sm:$0xff] %v13230_v6  ;;  %v3868_v7 = vld [vmem:[%s19515_s4 + $0x28] sm:$0xff]  ;;  %10154 = vmatmul.mubr.msk.f32.gmra.mxu1 %vm20946_vm4, %v20903_v8  ;;  %10086 = vmatmul.mubr.msk.f32.gmra.mxu0 %vm20947_vm5, %v20903_v8  ;;  %v20948_v3 = vld [vmem:[#allocation68_spill] sm:$0xff]  ;;  %v4525_v44 = vsub.f32 %v13193_v9, %v13228_v50 }
 0x1c0   : > { %v2231_v0 = vpop.f32.mrf.mxu1  ;;  %v1688_v2 = vpop.f32.mrf.mxu0  ;;  %vm20949_vm6 = vcmp.eq.s32.totalorder %v20904_v57, %v20948_v3  ;;  %10087 = vmatprep.mubr.msk.f32.mxu0 %vm20950_vm7, %v20903_v8  ;;  %3910 = vmatprep.subr.mxu0 %v20567_v32  ;;  %v13255_v30 = vand.u32 4294901760, %v3868_v7  ;;  %20952 = vst [vmem:[#allocation17_spill] sm:$0xff] %v13259_v34  ;;  %vm20955_vm8 = vcmp.eq.s32.totalorder %v20909_v45, %v20948_v3 }
 0x1c1   : > { %10155 = vmatprep.mubr.msk.f32.mxu1 %vm20949_vm6, %v20903_v8  ;;  %v13251_v52 = vadd.f32 %v2217_v4, %v1688_v2  ;;  %3912 = vmatpush1.msra.mxu0 %v13082_v41  ;;  %v13264_v4 = vand.u32 4294901760, %v13219_v63  ;;  %v13267_v2 = vsub.f32 %v3869_v33, %v13230_v6  ;;  %v20957_v33 = vld [vmem:[#allocation70_spill] sm:$0xff]  ;;  %v13297_v35 = vand.u32 4294901760, %v4525_v44 }
 0x1c2   : > { %v2233_v49 = vpop.f32.mrf.mxu1  ;;  %v1690_v10 = vpop.f32.mrf.mxu0  ;;  %20951 = vst [vmem:[#allocation89_spill] sm:$0xff] %v13255_v30  ;;  %4513 = vmatpush1.msra.mxu1 %v13223_v27  ;;  %vm20958_vm1 = vcmp.eq.s32.totalorder %v20904_v57, %v20957_v33  ;;  %3913 = vmatprep.subr.mxu0 %v20567_v32  ;;  %v13293_v15 = vsub.f32 %v3868_v7, %v13255_v30  ;;  %v3866_v7 = vld [vmem:[%s19515_s4 + $0x18] sm:$0xff] }
 0x1c3   : > { %20953 = vst [vmem:[#allocation19_spill] sm:$0xff] %v13264_v4  ;;  %20954 = vst [vmem:[#allocation23_spill] sm:$0xff] %v13267_v2  ;;  %10156 = vmatmul.mubr.msk.f32.gmra.mxu1 %vm20955_vm8, %v20903_v8  ;;  %10088 = vmatmul.mubr.msk.f32.gmra.mxu0 %vm20956_vm0, %v20903_v8  ;;  %v3867_v10 = vld [vmem:[%s19515_s4 + $0x20] sm:$0xff]  ;;  %v4532_v9 = vsub.f32 %v13219_v63, %v13264_v4  ;;  %vm20965_vm3 = vcmp.eq.s32.totalorder %v20909_v45, %v20957_v33 }
 0x1c4   : > { %v2238_v17 = vpop.f32.mrf.mxu1  ;;  %v1703_v49 = vpop.f32.mrf.mxu0  ;;  %10157 = vmatprep.mubr.msk.f32.mxu1 %vm20958_vm1, %v20903_v8  ;;  %10089 = vmatprep.mubr.msk.f32.mxu0 %vm20959_vm2, %v20903_v8  ;;  %20961 = vst [vmem:[#allocation24_spill] sm:$0xff] %v13293_v15  ;;  %20962 = vst [vmem:[#allocation22_spill] sm:$0xff] %v13297_v35  ;;  %v13330_v63 = vand.u32 4294901760, %v13293_v15 }
 0x1c5   : > { %v13288_v27 = vadd.f32 %v2224_v59, %v1703_v49  ;;  %4514 = vmatprep.subr.mxu1 %v20567_v32  ;;  %3915 = vmatpush1.msra.mxu0 %v13119_v55  ;;  %v13302_v59 = vand.u32 4294901760, %v13267_v2  ;;  %v13304_v49 = vand.u32 4294901760, %v3867_v10  ;;  %v13334_v36 = vand.u32 4294901760, %v4532_v9 }
 0x1c6   : > { %v2240_v14 = vpop.f32.mrf.mxu1  ;;  %v1705_v50 = vpop.f32.mrf.mxu0  ;;  %4520 = vmatpush1.msra.mxu1 %v13259_v34  ;;  %3916 = vmatprep.subr.mxu0 %v20567_v32  ;;  %20969 = vst [vmem:[#allocation25_spill] sm:$0xff] %v13330_v63 }
 0x1c7   : > { %20960 = vst [vmem:[#allocation21_spill] sm:$0xff] %v13288_v27  ;;  %20963 = vst [vmem:[#allocation26_spill] sm:$0xff] %v13302_v59  ;;  %10158 = vmatmul.mubr.msk.f32.gmra.mxu1 %vm20965_vm3, %v20903_v8  ;;  %10090 = vmatmul.mubr.msk.f32.gmra.mxu0 %vm20946_vm4, %v20903_v8  ;;  %v20966_v14 = vld [vmem:[#allocation72_spill] sm:$0xff]  ;;  %v4539_v55 = vsub.f32 %v13267_v2, %v13302_v59  ;;  %v4546_v2 = vsub.f32 %v13293_v15, %v13330_v63 }
 0x1c8   : > { %20964 = vst [vmem:[#allocation96_spill] sm:$0xff] %v13304_v49  ;;  %v2245_v44 = vpop.f32.mrf.mxu1  ;;  %v1718_v50 = vpop.f32.mrf.mxu0  ;;  %vm20967_vm5 = vcmp.eq.s32.totalorder %v20904_v57, %v20966_v14  ;;  %10091 = vmatprep.mubr.msk.f32.mxu0 %vm20949_vm6, %v20903_v8  ;;  %4521 = vmatprep.subr.mxu1 %v20567_v32  ;;  %20970 = vst [vmem:[#allocation30_spill] sm:$0xff] %v13334_v36  ;;  %vm20973_vm7 = vcmp.eq.s32.totalorder %v20909_v45, %v20966_v14 }
 0x1c9   : > { %10159 = vmatprep.mubr.msk.f32.mxu1 %vm20967_vm5, %v20903_v8  ;;  %v13325_v34 = vadd.f32 %v2231_v0, %v1718_v50  ;;  %3918 = vmatpush1.msra.mxu0 %v13156_v22  ;;  %v13339_v0 = vsub.f32 %v3867_v10, %v13304_v49  ;;  %v13341_v50 = vand.u32 4294901760, %v3866_v7  ;;  %v20974_v10 = vld [vmem:[#allocation74_spill] sm:$0xff]  ;;  %v13370_v22 = vand.u32 4294901760, %v4539_v55 }
 0x1ca   : > { %v2247_v53 = vpop.f32.mrf.mxu1  ;;  %v1720_v4 = vpop.f32.mrf.mxu0  ;;  %4527 = vmatpush1.msra.mxu1 %v13297_v35  ;;  %vm20975_vm0 = vcmp.eq.s32.totalorder %v20904_v57, %v20974_v10  ;;  %3919 = vmatprep.subr.mxu0 %v20567_v32  ;;  %vm20981_vm2 = vcmp.eq.s32.totalorder %v20909_v45, %v20974_v10  ;;  %v13403_v15 = vand.u32 4294901760, %v4546_v2 }
 0x1cb   : > { %20968 = vst [vmem:[#allocation28_spill] sm:$0xff] %v13325_v34  ;;  %20971 = vst [vmem:[#allocation27_spill] sm:$0xff] %v13339_v0  ;;  %10160 = vmatmul.mubr.msk.f32.gmra.mxu1 %vm20973_vm7, %v20903_v8  ;;  %10092 = vmatmul.mubr.msk.f32.gmra.mxu0 %vm20955_vm8, %v20903_v8  ;;  %v3865_v53 = vld [vmem:[%s19515_s4 + $0x10] sm:$0xff]  ;;  %v13373_v34 = vand.u32 4294901760, %v13339_v0 }
 0x1cc   : > { %20972 = vst [vmem:[#allocation98_spill] sm:$0xff] %v13341_v50  ;;  %v2252_v9 = vpop.f32.mrf.mxu1  ;;  %v1733_v4 = vpop.f32.mrf.mxu0  ;;  %10161 = vmatprep.mubr.msk.f32.mxu1 %vm20975_vm0, %v20903_v8  ;;  %10093 = vmatprep.mubr.msk.f32.mxu0 %vm20958_vm1, %v20903_v8  ;;  %20977 = vst [vmem:[#allocation32_spill] sm:$0xff] %v13370_v22 }
 0x1cd   : > { %v13362_v35 = vadd.f32 %v2238_v17, %v1733_v4  ;;  %4528 = vmatprep.subr.mxu1 %v20567_v32  ;;  %3921 = vmatpush1.msra.mxu0 %v13181_v31  ;;  %20978 = vst [vmem:[#allocation29_spill] sm:$0xff] %v13373_v34  ;;  %v13376_v17 = vsub.f32 %v3866_v7, %v13341_v50  ;;  %v13378_v4 = vand.u32 4294901760, %v3865_v53  ;;  %v20982_v7 = vld [vmem:[#allocation76_spill] sm:$0xff]  ;;  %20985 = vst [vmem:[#allocation31_spill] sm:$0xff] %v13403_v15 }
 0x1ce   : > { %v2254_v3 = vpop.f32.mrf.mxu1  ;;  %v1735_v59 = vpop.f32.mrf.mxu0  ;;  %4534 = vmatpush1.msra.mxu1 %v13334_v36  ;;  %vm20983_vm4 = vcmp.eq.s32.totalorder %v20904_v57, %v20982_v7  ;;  %3922 = vmatprep.subr.mxu0 %v20567_v32  ;;  %v4553_v31 = vsub.f32 %v13339_v0, %v13373_v34  ;;  %vm20989_vm6 = vcmp.eq.s32.totalorder %v20909_v45, %v20982_v7 }
 0x1cf   : > { %20976 = vst [vmem:[#allocation100_spill] sm:$0xff] %v13362_v35  ;;  %20979 = vst [vmem:[#allocation102_spill] sm:$0xff] %v13376_v17  ;;  %10162 = vmatmul.mubr.msk.f32.gmra.mxu1 %vm20981_vm2, %v20903_v8  ;;  %10094 = vmatmul.mubr.msk.f32.gmra.mxu0 %vm20965_vm3, %v20903_v8  ;;  %v3864_v3 = vld [vmem:[%s19515_s4 + $0x8] sm:$0xff]  ;;  %v13410_v35 = vand.u32 4294901760, %v13376_v17 }
 0x1d0   : > { %20980 = vst [vmem:[#allocation103_spill] sm:$0xff] %v13378_v4  ;;  %v2259_v55 = vpop.f32.mrf.mxu1  ;;  %v1748_v59 = vpop.f32.mrf.mxu0  ;;  %10163 = vmatprep.mubr.msk.f32.mxu1 %vm20983_vm4, %v20903_v8  ;;  %10095 = vmatprep.mubr.msk.f32.mxu0 %vm20967_vm5, %v20903_v8 }
 0x1d1   : > { %v13399_v36 = vadd.f32 %v2245_v44, %v1748_v59  ;;  %4535 = vmatprep.subr.mxu1 %v20567_v32  ;;  %3924 = vmatpush1.msra.mxu0 %v13230_v6  ;;  %20986 = vst [vmem:[#allocation104_spill] sm:$0xff] %v13410_v35  ;;  %v13413_v44 = vsub.f32 %v3865_v53, %v13378_v4  ;;  %v13415_v59 = vand.u32 4294901760, %v3864_v3  ;;  %v20990_v53 = vld [vmem:[#allocation78_spill] sm:$0xff]  ;;  %v13444_v6 = vand.u32 4294901760, %v4553_v31 }
 0x1d2   : > { %v2261_v33 = vpop.f32.mrf.mxu1  ;;  %v1750_v63 = vpop.f32.mrf.mxu0  ;;  %4541 = vmatpush1.msra.mxu1 %v13370_v22  ;;  %vm20991_vm8 = vcmp.eq.s32.totalorder %v20904_v57, %v20990_v53  ;;  %3925 = vmatprep.subr.mxu0 %v20567_v32  ;;  %vm20997_vm1 = vcmp.eq.s32.totalorder %v20909_v45, %v20990_v53 }
 0x1d3   : > { %20984 = vst [vmem:[#allocation34_spill] sm:$0xff] %v13399_v36  ;;  %20987 = vst [vmem:[#allocation106_spill] sm:$0xff] %v13413_v44  ;;  %v3863_v63 = vld [vmem:[%s19515_s4] sm:$0xff]  ;;  %10164 = vmatmul.mubr.msk.f32.gmra.mxu1 %vm20989_vm6, %v20903_v8  ;;  %10096 = vmatmul.mubr.msk.f32.gmra.mxu0 %vm20973_vm7, %v20903_v8  ;;  %v4560_v36 = vsub.f32 %v13376_v17, %v13410_v35 }
 0x1d4   : > { %20988 = vst [vmem:[#allocation36_spill] sm:$0xff] %v13415_v59  ;;  %v2266_v2 = vpop.f32.mrf.mxu1  ;;  %v1763_v33 = vpop.f32.mrf.mxu0  ;;  %10165 = vmatprep.mubr.msk.f32.mxu1 %vm20991_vm8, %v20903_v8  ;;  %10097 = vmatprep.mubr.msk.f32.mxu0 %vm20975_vm0, %v20903_v8  ;;  %v13440_v0 = vand.u32 4294901760, %v3863_v63  ;;  %20994 = vst [vmem:[#allocation109_spill] sm:$0xff] %v13444_v6 }
 0x1d5   : > { %v13436_v22 = vadd.f32 %v2252_v9, %v1763_v33  ;;  %4542 = vmatprep.subr.mxu1 %v20567_v32  ;;  %3927 = vmatpush1.msra.mxu0 %v13255_v30  ;;  %v13449_v9 = vand.u32 4294901760, %v13413_v44  ;;  %v13452_v33 = vsub.f32 %v3864_v3, %v13415_v59  ;;  %v20998_v3 = vld [vmem:[#allocation80_spill] sm:$0xff] }
 0x1d6   : > { %v2268_v34 = vpop.f32.mrf.mxu1  ;;  %v1765_v14 = vpop.f32.mrf.mxu0  ;;  %20993 = vst [vmem:[#allocation107_spill] sm:$0xff] %v13440_v0  ;;  %4548 = vmatpush1.msra.mxu1 %v13403_v15  ;;  %vm20999_vm3 = vcmp.eq.s32.totalorder %v20904_v57, %v20998_v3  ;;  %3928 = vmatprep.subr.mxu0 %v20567_v32  ;;  %v13478_v17 = vsub.f32 %v3863_v63, %v13440_v0  ;;  %v21006_v63 = vld [vmem:[#allocation83_spill] sm:$0xff] }
 0x1d7   : > { %20992 = vst [vmem:[#allocation33_spill] sm:$0xff] %v13436_v22  ;;  %20995 = vst [vmem:[#allocation38_spill] sm:$0xff] %v13449_v9  ;;  %v3894_v34 = vld [vmem:[%s19515_s4 + $0xf8] sm:$0xff]  ;;  %10166 = vmatmul.mubr.msk.f32.gmra.mxu1 %vm20997_vm1, %v20903_v8  ;;  %10098 = vmatmul.mubr.msk.f32.gmra.mxu0 %vm20981_vm2, %v20903_v8  ;;  %v13484_v22 = vand.u32 4294901760, %v4560_v36  ;;  %vm21005_vm5 = vcmp.eq.s32.totalorder %v20909_v45, %v20998_v3  ;;  %v3893_v36 = vld [vmem:[%s19515_s4 + $0xf0] sm:$0xff]  ;;  %vm21007_vm7 = vcmp.eq.s32.totalorder %v20904_v57, %v21006_v63 }
 0x1d8   : > { %20996 = vst [vmem:[#allocation35_spill] sm:$0xff] %v13452_v33  ;;  %v2273_v31 = vpop.f32.mrf.mxu1  ;;  %v1778_v14 = vpop.f32.mrf.mxu0  ;;  %10167 = vmatprep.mubr.msk.f32.mxu1 %vm20999_vm3, %v20903_v8  ;;  %10099 = vmatprep.mubr.msk.f32.mxu0 %vm20983_vm4, %v20903_v8  ;;  %21001 = vst [vmem:[#allocation40_spill] sm:$0xff] %v13478_v17  ;;  %v13480_v30 = vand.u32 4294901760, %v3894_v34  ;;  %vm21013_vm0 = vcmp.eq.s32.totalorder %v20909_v45, %v21006_v63 }
 0x1d9   : > { %v13473_v15 = vadd.f32 %v2259_v55, %v1778_v14  ;;  %4549 = vmatprep.subr.mxu1 %v20567_v32  ;;  %3930 = vmatpush1.msra.mxu0 %v13304_v49  ;;  %21003 = vst [vmem:[#allocation113_spill] sm:$0xff] %v13484_v22  ;;  %v4567_v55 = vsub.f32 %v13413_v44, %v13449_v9  ;;  %v13489_v14 = vand.u32 4294901760, %v13452_v33  ;;  %v13515_v9 = vand.u32 4294901760, %v13478_v17 }
 0x1da   : > { %v2275_v35 = vpop.f32.mrf.mxu1  ;;  %v1780_v10 = vpop.f32.mrf.mxu0  ;;  %21002 = vst [vmem:[#allocation37_spill] sm:$0xff] %v13480_v30  ;;  %4555 = vmatpush1.msra.mxu1 %v13444_v6  ;;  %3931 = vmatprep.subr.mxu0 %v20567_v32  ;;  %v13518_v44 = vsub.f32 %v3894_v34, %v13480_v30 }
 0x1db   : > { %21000 = vst [vmem:[#allocation111_spill] sm:$0xff] %v13473_v15  ;;  %21004 = vst [vmem:[#allocation42_spill] sm:$0xff] %v13489_v14  ;;  %10168 = vmatmul.mubr.msk.f32.gmra.mxu1 %vm21005_vm5, %v20903_v8  ;;  %10100 = vmatmul.mubr.msk.f32.gmra.mxu0 %vm20989_vm6, %v20903_v8  ;;  %v13522_v15 = vand.u32 4294901760, %v4567_v55  ;;  %v4581_v53 = vsub.f32 %v13478_v17, %v13515_v9 }
 0x1dc   : > { %v2280_v35 = vpop.f32.mrf.mxu1  ;;  %10169 = vmatprep.mubr.msk.f32.mxu1 %vm21007_vm7, %v20903_v8  ;;  %10101 = vmatprep.mubr.msk.f32.mxu0 %vm20991_vm8, %v20903_v8  ;;  %21009 = vst [vmem:[#allocation114_spill] sm:$0xff] %v13515_v9  ;;  %21010 = vst [vmem:[#allocation44_spill] sm:$0xff] %v13518_v44 }
 0x1dd   : > { %v1793_v10 = vpop.f32.mrf.mxu0  ;;  %4556 = vmatprep.subr.mxu1 %v20567_v32  ;;  %3933 = vmatpush1.msra.mxu0 %v13341_v50  ;;  %21011 = vst [vmem:[#allocation41_spill] sm:$0xff] %v13522_v15 }
 0x1de   : > { %v13511_v7 = vadd.f32 %v2266_v2, %v1793_v10  ;;  %v2282_v6 = vpop.f32.mrf.mxu1  ;;  %4562 = vmatpush1.msra.mxu1 %v13484_v22  ;;  %v4574_v2 = vsub.f32 %v13452_v33, %v13489_v14  ;;  %v13526_v10 = vand.u32 4294901760, %v3893_v36  ;;  %3934 = vmatprep.subr.mxu0 %v20567_v32  ;;  %v13552_v22 = vand.u32 4294901760, %v13518_v44 }
 0x1df   : > { %v1795_v49 = vpop.f32.mrf.mxu0  ;;  %10170 = vmatmul.mubr.msk.f32.gmra.mxu1 %vm21013_vm0, %v20903_v8  ;;  %10102 = vmatmul.mubr.msk.f32.gmra.mxu0 %vm20997_vm1, %v20903_v8  ;;  %v3892_v6 = vld [vmem:[%s19515_s4 + $0xe8] sm:$0xff] }
 0x1e0   : > { %21008 = vst [vmem:[#allocation39_spill] sm:$0xff] %v13511_v7  ;;  %21012 = vst [vmem:[#allocation116_spill] sm:$0xff] %v13526_v10  ;;  %v21014_v49 = vld [vmem:[#allocation85_spill] sm:$0xff]  ;;  %10103 = vmatprep.mubr.msk.f32.mxu0 %vm20999_vm3, %v20903_v8  ;;  %4563 = vmatprep.subr.mxu1 %v20567_v32  ;;  %v13558_v7 = vand.u32 4294901760, %v4574_v2  ;;  %v13561_v50 = vsub.f32 %v3893_v36, %v13526_v10  ;;  %v13563_v27 = vand.u32 4294901760, %v3892_v6  ;;  %v21022_v36 = vld [vmem:[#allocation88_spill] sm:$0xff] }
 0x1e1   : > { %vm21015_vm2 = vcmp.eq.s32.totalorder %v20904_v57, %v21014_v49  ;;  %v2287_v34 = vpop.f32.mrf.mxu1  ;;  %21016 = vst [vmem:[#allocation118_spill] sm:$0xff] %v13552_v22  ;;  %3936 = vmatpush1.msra.mxu0 %v13378_v4  ;;  %4569 = vmatpush1.msra.mxu1 %v13522_v15  ;;  %vm21021_vm4 = vcmp.eq.s32.totalorder %v20909_v45, %v21014_v49 }
 0x1e2   : > { %10171 = vmatprep.mubr.msk.f32.mxu1 %vm21015_vm2, %v20903_v8  ;;  %v1808_v55 = vpop.f32.mrf.mxu0  ;;  %21018 = vst [vmem:[#allocation43_spill] sm:$0xff] %v13558_v7  ;;  %21019 = vst [vmem:[#allocation48_spill] sm:$0xff] %v13561_v50  ;;  %vm21023_vm6 = vcmp.eq.s32.totalorder %v20904_v57, %v21022_v36  ;;  %3937 = vmatprep.subr.mxu0 %v20567_v32  ;;  %v13595_v9 = vand.u32 4294901760, %v13561_v50  ;;  %v13598_v17 = vsub.f32 %v3892_v6, %v13563_v27  ;;  %v21030_v6 = vld [vmem:[#allocation90_spill] sm:$0xff] }
 0x1e3   : > { %v13554_v14 = vadd.f32 %v2273_v31, %v1808_v55  ;;  %v2289_v33 = vpop.f32.mrf.mxu1  ;;  %21020 = vst [vmem:[#allocation45_spill] sm:$0xff] %v13563_v27  ;;  %10172 = vmatmul.mubr.msk.f32.gmra.mxu1 %vm21021_vm4, %v20903_v8  ;;  %10104 = vmatmul.mubr.msk.f32.gmra.mxu0 %vm21005_vm5, %v20903_v8  ;;  %v3891_v31 = vld [vmem:[%s19515_s4 + $0xe0] sm:$0xff]  ;;  %v13586_v55 = vand.u32 4294901760, %v4581_v53  ;;  %v3890_v53 = vld [vmem:[%s19515_s4 + $0xd8] sm:$0xff]  ;;  %vm21029_vm8 = vcmp.eq.s32.totalorder %v20909_v45, %v21022_v36 }
 0x1e4   : > { %v1810_v33 = vpop.f32.mrf.mxu0  ;;  %10173 = vmatprep.mubr.msk.f32.mxu1 %vm21023_vm6, %v20903_v8  ;;  %10105 = vmatprep.mubr.msk.f32.mxu0 %vm21007_vm7, %v20903_v8  ;;  %21026 = vst [vmem:[#allocation52_spill] sm:$0xff] %v13595_v9  ;;  %21027 = vst [vmem:[#allocation59_spill] sm:$0xff] %v13598_v17  ;;  %vm21031_vm1 = vcmp.eq.s32.totalorder %v20904_v57, %v21030_v6  ;;  %vm21037_vm3 = vcmp.eq.s32.totalorder %v20909_v45, %v21030_v6 }
 0x1e5   : > { %21017 = vst [vmem:[#allocation46_spill] sm:$0xff] %v13554_v14  ;;  %4570 = vmatprep.subr.mxu1 %v20567_v32  ;;  %21024 = vst [vmem:[#allocation47_spill] sm:$0xff] %v13586_v55  ;;  %v4588_v33 = vsub.f32 %v13518_v44, %v13552_v22  ;;  %3939 = vmatpush1.msra.mxu0 %v13415_v59  ;;  %v13600_v14 = vand.u32 4294901760, %v3891_v31  ;;  %v4595_v44 = vsub.f32 %v13561_v50, %v13595_v9 }
 0x1e6   : > { %v2812_v2 = vpop.f32.mrf.mxu1  ;;  %v1823_v3 = vpop.f32.mrf.mxu0  ;;  %4576 = vmatpush1.msra.mxu1 %v13558_v7  ;;  %3940 = vmatprep.subr.mxu0 %v20567_v32 }
 0x1e7   : > { %v13590_v15 = vadd.f32 %v2280_v35, %v1823_v3  ;;  %21028 = vst [vmem:[#allocation63_spill] sm:$0xff] %v13600_v14  ;;  %10174 = vmatmul.mubr.msk.f32.gmra.mxu1 %vm21029_vm8, %v20903_v8  ;;  %10106 = vmatmul.mubr.msk.f32.gmra.mxu0 %vm21013_vm0, %v20903_v8  ;;  %v13623_v63 = vand.u32 4294901760, %v4588_v33  ;;  %v13637_v59 = vsub.f32 %v3891_v31, %v13600_v14  ;;  %v3889_v33 = vld [vmem:[%s19515_s4 + $0xd0] sm:$0xff]  ;;  %v21038_v31 = vld [vmem:[#allocation91_spill] sm:$0xff]  ;;  %v13668_v50 = vand.u32 4294901760, %v4595_v44  ;;  %v3888_v44 = vld [vmem:[%s19515_s4 + $0xc8] sm:$0xff] }
 0x1e8   : > { %v2814_v35 = vpop.f32.mrf.mxu1  ;;  %v1825_v3 = vpop.f32.mrf.mxu0  ;;  %10175 = vmatprep.mubr.msk.f32.mxu1 %vm21031_vm1, %v20903_v8  ;;  %10107 = vmatprep.mubr.msk.f32.mxu0 %vm21015_vm2, %v20903_v8  ;;  %vm21039_vm5 = vcmp.eq.s32.totalorder %v20904_v57, %v21038_v31  ;;  %vm21044_vm7 = vcmp.eq.s32.totalorder %v20909_v45, %v21038_v31 }
 0x1e9   : > { %21025 = vst [vmem:[#allocation49_spill] sm:$0xff] %v13590_v15  ;;  %4577 = vmatprep.subr.mxu1 %v20567_v32  ;;  %21032 = vst [vmem:[#allocation58_spill] sm:$0xff] %v13623_v63  ;;  %v13625_v35 = vand.u32 4294901760, %v3890_v53  ;;  %3942 = vmatpush1.msra.mxu0 %v13440_v0  ;;  %v13634_v15 = vand.u32 4294901760, %v13598_v17  ;;  %v13673_v0 = vand.u32 4294901760, %v13637_v59 }
 0x1ea   : > { %v2823_v7 = vpop.f32.mrf.mxu1  ;;  %v1838_v22 = vpop.f32.mrf.mxu0  ;;  %4583 = vmatpush1.msra.mxu1 %v13586_v55  ;;  %21036 = vst [vmem:[#allocation66_spill] sm:$0xff] %v13637_v59  ;;  %3943 = vmatprep.subr.mxu0 %v20567_v32  ;;  %21042 = vst [vmem:[#allocation72_spill] sm:$0xff] %v13668_v50 }
 0x1eb   : > { %21033 = vst [vmem:[#allocation62_spill] sm:$0xff] %v13625_v35  ;;  %v13627_v3 = vadd.f32 %v2287_v34, %v1838_v22  ;;  %21035 = vst [vmem:[#allocation65_spill] sm:$0xff] %v13634_v15  ;;  %10176 = vmatmul.mubr.msk.f32.gmra.mxu1 %vm21037_vm3, %v20903_v8  ;;  %10108 = vmatmul.mubr.msk.f32.gmra.mxu0 %vm21021_vm4, %v20903_v8  ;;  %v13661_v49 = vsub.f32 %v3890_v53, %v13625_v35  ;;  %v21045_v53 = vld [vmem:[#allocation92_spill] sm:$0xff] }
 0x1ec   : > { %v2825_v22 = vpop.f32.mrf.mxu1  ;;  %v1840_v34 = vpop.f32.mrf.mxu0  ;;  %10177 = vmatprep.mubr.msk.f32.mxu1 %vm21039_vm5, %v20903_v8  ;;  %10109 = vmatprep.mubr.msk.f32.mxu0 %vm21023_vm6, %v20903_v8  ;;  %21043 = vst [vmem:[#allocation74_spill] sm:$0xff] %v13673_v0  ;;  %vm21046_vm0 = vcmp.eq.s32.totalorder %v20904_v57, %v21045_v53  ;;  %vm21052_vm2 = vcmp.eq.s32.totalorder %v20909_v45, %v21045_v53 }
 0x1ed   : > { %21034 = vst [vmem:[#allocation64_spill] sm:$0xff] %v13627_v3  ;;  %4584 = vmatprep.subr.mxu1 %v20567_v32  ;;  %21040 = vst [vmem:[#allocation68_spill] sm:$0xff] %v13661_v49  ;;  %v13663_v22 = vand.u32 4294901760, %v3889_v33  ;;  %3945 = vmatpush2.msra.mxu0 %v13480_v30  ;;  %v4602_v3 = vsub.f32 %v13598_v17, %v13634_v15 }
 0x1ee   : > { %v2834_v55 = vpop.f32.mrf.mxu1  ;;  %v2425_v9 = vpop.f32.mrf.mxu0  ;;  %4590 = vmatpush2.msra.mxu1 %v13623_v63  ;;  %3946 = vmatprep.subr.mxu0 %v20567_v32 }
 0x1ef   : > { %21041 = vst [vmem:[#allocation70_spill] sm:$0xff] %v13663_v22  ;;  %v2426_v34 = vadd.f32 %v2425_v9, %v12761_v18  ;;  %10178 = vmatmul.mubr.msk.f32.gmra.mxu1 %vm21044_vm7, %v20903_v8  ;;  %10110 = vmatmul.mubr.msk.f32.gmra.mxu0 %vm21029_vm8, %v20903_v8  ;;  %v13702_v15 = vsub.f32 %v3889_v33, %v13663_v22 }
 0x1f0   : > { %v2836_v18 = vpop.f32.mrf.mxu1  ;;  %v2427_v9 = vpop.f32.mrf.mxu0  ;;  %10179 = vmatprep.mubr.msk.f32.mxu1 %vm21046_vm0, %v20903_v8  ;;  %10111 = vmatprep.mubr.msk.f32.mxu0 %vm21031_vm1, %v20903_v8 }
 0x1f1   : > { %v13694_v63 = vadd.f32 %v2812_v2, %v2426_v34  ;;  %4591 = vmatprep.subr.mxu1 %v20567_v32  ;;  %v13699_v9 = vand.u32 4294901760, %v13661_v49  ;;  %21049 = vst [vmem:[#allocation80_spill] sm:$0xff] %v13702_v15  ;;  %3948 = vmatpush2.msra.mxu0 %v13526_v10  ;;  %v13707_v2 = vand.u32 4294901760, %v4602_v3  ;;  %v4609_v34 = vsub.f32 %v13637_v59, %v13673_v0  ;;  %v3887_v3 = vld [vmem:[%s19515_s4 + $0xc0] sm:$0xff] }
 0x1f2   : > { %v2845_v36 = vpop.f32.mrf.mxu1  ;;  %v2434_v18 = vpop.f32.mrf.mxu0  ;;  %4597 = vmatpush2.msra.mxu1 %v13668_v50  ;;  %3949 = vmatprep.subr.mxu0 %v20567_v32  ;;  %v13739_v0 = vand.u32 4294901760, %v13702_v15 }
 0x1f3   : > { %21047 = vst [vmem:[#allocation76_spill] sm:$0xff] %v13694_v63  ;;  %21048 = vst [vmem:[#allocation78_spill] sm:$0xff] %v13699_v9  ;;  %v2435_v17 = vadd.f32 %v2434_v18, %v12774_v23  ;;  %v13711_v63 = vand.u32 4294901760, %v3888_v44  ;;  %10180 = vmatmul.mubr.msk.f32.gmra.mxu1 %vm21052_vm2, %v20903_v8  ;;  %10112 = vmatmul.mubr.msk.f32.gmra.mxu0 %vm21037_vm3, %v20903_v8  ;;  %v21053_v18 = vld [vmem:[#allocation93_spill] sm:$0xff] }
 0x1f4   : > { %21050 = vst [vmem:[#allocation83_spill] sm:$0xff] %v13707_v2  ;;  %v2847_v23 = vpop.f32.mrf.mxu1  ;;  %v2436_v33 = vpop.f32.mrf.mxu0  ;;  %vm21054_vm4 = vcmp.eq.s32.totalorder %v20904_v57, %v21053_v18  ;;  %10113 = vmatprep.mubr.msk.f32.mxu0 %vm21039_vm5, %v20903_v8  ;;  %4598 = vmatprep.subr.mxu1 %v20567_v32  ;;  %21056 = vst [vmem:[#allocation90_spill] sm:$0xff] %v13739_v0  ;;  %vm21060_vm6 = vcmp.eq.s32.totalorder %v20909_v45, %v21053_v18 }
 0x1f5   : > { %21051 = vst [vmem:[#allocation85_spill] sm:$0xff] %v13711_v63  ;;  %10181 = vmatprep.mubr.msk.f32.mxu1 %vm21054_vm4, %v20903_v8  ;;  %v13732_v50 = vadd.f32 %v2823_v7, %v2435_v17  ;;  %v4616_v33 = vsub.f32 %v13661_v49, %v13699_v9  ;;  %3951 = vmatpush2.msra.mxu0 %v13563_v27  ;;  %v13744_v17 = vand.u32 4294901760, %v4609_v34  ;;  %v3886_v34 = vld [vmem:[%s19515_s4 + $0xb8] sm:$0xff] }
 0x1f6   : > { %v2856_v6 = vpop.f32.mrf.mxu1  ;;  %v2443_v23 = vpop.f32.mrf.mxu0  ;;  %4604 = vmatpush2.msra.mxu1 %v13707_v2  ;;  %v13747_v7 = vsub.f32 %v3888_v44, %v13711_v63  ;;  %v21061_v44 = vld [vmem:[#allocation94_spill] sm:$0xff]  ;;  %3952 = vmatprep.subr.mxu0 %v20567_v32  ;;  %v4623_v9 = vsub.f32 %v13702_v15, %v13739_v0 }
 0x1f7   : > { %21055 = vst [vmem:[#allocation88_spill] sm:$0xff] %v13732_v50  ;;  %v2444_v59 = vadd.f32 %v2443_v23, %v12787_v20  ;;  %21057 = vst [vmem:[#allocation91_spill] sm:$0xff] %v13744_v17  ;;  %v13749_v50 = vand.u32 4294901760, %v3887_v3  ;;  %10182 = vmatmul.mubr.msk.f32.gmra.mxu1 %vm21060_vm6, %v20903_v8  ;;  %10114 = vmatmul.mubr.msk.f32.gmra.mxu0 %vm21044_vm7, %v20903_v8  ;;  %vm21062_vm8 = vcmp.eq.s32.totalorder %v20904_v57, %v21061_v44 }
 0x1f8   : > { %21058 = vst [vmem:[#allocation92_spill] sm:$0xff] %v13747_v7  ;;  %v2858_v20 = vpop.f32.mrf.mxu1  ;;  %v2445_v23 = vpop.f32.mrf.mxu0  ;;  %10183 = vmatprep.mubr.msk.f32.mxu1 %vm21062_vm8, %v20903_v8  ;;  %10115 = vmatprep.mubr.msk.f32.mxu0 %vm21046_vm0, %v20903_v8  ;;  %vm21068_vm1 = vcmp.eq.s32.totalorder %v20909_v45, %v21061_v44  ;;  %v13812_v53 = vand.u32 4294901760, %v4623_v9  ;;  %v3884_v9 = vld [vmem:[%s19515_s4 + $0xa8] sm:$0xff] }
 0x1f9   : > { %21059 = vst [vmem:[#allocation93_spill] sm:$0xff] %v13749_v50  ;;  %v13770_v2 = vadd.f32 %v2834_v55, %v2444_v59  ;;  %4605 = vmatprep.subr.mxu1 %v20567_v32  ;;  %v13774_v23 = vand.u32 4294901760, %v4616_v33  ;;  %3954 = vmatpush2.msra.mxu0 %v13600_v14  ;;  %v13782_v59 = vand.u32 4294901760, %v13747_v7  ;;  %v13785_v55 = vsub.f32 %v3887_v3, %v13749_v50  ;;  %v3885_v33 = vld [vmem:[%s19515_s4 + $0xb0] sm:$0xff]  ;;  %v21069_v3 = vld [vmem:[#allocation95_spill] sm:$0xff] }
 0x1fa   : > { %v2867_v31 = vpop.f32.mrf.mxu1  ;;  %v2452_v20 = vpop.f32.mrf.mxu0  ;;  %4611 = vmatpush2.msra.mxu1 %v13744_v17  ;;  %vm21070_vm3 = vcmp.eq.s32.totalorder %v20904_v57, %v21069_v3  ;;  %3955 = vmatprep.subr.mxu0 %v20567_v32  ;;  %21072 = vst [vmem:[#allocation123_spill] sm:$0xff] %v13812_v53  ;;  %vm21076_vm5 = vcmp.eq.s32.totalorder %v20909_v45, %v21069_v3 }
 0x1fb   : > { %21063 = vst [vmem:[#allocation94_spill] sm:$0xff] %v13770_v2  ;;  %21064 = vst [vmem:[#allocation119_spill] sm:$0xff] %v13774_v23  ;;  %v2453_v49 = vadd.f32 %v2452_v20, %v12800_v60  ;;  %v13787_v2 = vand.u32 4294901760, %v3886_v34  ;;  %10184 = vmatmul.mubr.msk.f32.gmra.mxu1 %vm21068_vm1, %v20903_v8  ;;  %10116 = vmatmul.mubr.msk.f32.gmra.mxu0 %vm21052_vm2, %v20903_v8 }
 0x1fc   : > { %21065 = vst [vmem:[#allocation120_spill] sm:$0xff] %v13782_v59  ;;  %21066 = vst [vmem:[#allocation121_spill] sm:$0xff] %v13785_v55  ;;  %v2869_v60 = vpop.f32.mrf.mxu1  ;;  %v2454_v20 = vpop.f32.mrf.mxu0  ;;  %10185 = vmatprep.mubr.msk.f32.mxu1 %vm21070_vm3, %v20903_v8  ;;  %10117 = vmatprep.mubr.msk.f32.mxu0 %vm21054_vm4, %v20903_v8 }
 0x1fd   : > { %21067 = vst [vmem:[#allocation122_spill] sm:$0xff] %v13787_v2  ;;  %v13808_v17 = vadd.f32 %v2845_v36, %v2453_v49  ;;  %4612 = vmatprep.subr.mxu1 %v20567_v32  ;;  %v13814_v60 = vand.u32 4294901760, %v3885_v33  ;;  %3957 = vmatpush2.msra.mxu0 %v13625_v35  ;;  %v4630_v49 = vsub.f32 %v13747_v7, %v13782_v59  ;;  %v13822_v36 = vand.u32 4294901760, %v13785_v55  ;;  %vm21091_vm4 = vmmov %vm21076_vm5 }
 0x1fe   : > { %v2878_v0 = vpop.f32.mrf.mxu1  ;;  %v2461_v15 = vpop.f32.mrf.mxu0  ;;  %4618 = vmatpush2.msra.mxu1 %v13774_v23  ;;  %3958 = vmatprep.subr.mxu0 %v20567_v32 }
 0x1ff   : > { %21071 = vst [vmem:[#allocation95_spill] sm:$0xff] %v13808_v17  ;;  %21073 = vst [vmem:[#allocation124_spill] sm:$0xff] %v13814_v60  ;;  %v2462_v20 = vadd.f32 %v2461_v15, %v12817_v13  ;;  %v13825_v17 = vsub.f32 %v3886_v34, %v13787_v2  ;;  %10186 = vmatmul.mubr.msk.f32.gmra.mxu1 %vm21076_vm5, %v20903_v8  ;;  %10118 = vmatmul.mubr.msk.f32.gmra.mxu0 %vm21060_vm6, %v20903_v8  ;;  %v21077_v34 = vld [vmem:[#allocation97_spill] sm:$0xff]  ;;  %v13858_v35 = vand.u32 4294901760, %v4630_v49  ;;  %v21084_v49 = vld [vmem:[#allocation99_spill] sm:$0xff] }
 0x200   : > { %21074 = vst [vmem:[#allocation125_spill] sm:$0xff] %v13822_v36  ;;  %v2880_v13 = vpop.f32.mrf.mxu1  ;;  %v2463_v15 = vpop.f32.mrf.mxu0  ;;  %vm21078_vm7 = vcmp.eq.s32.totalorder %v20904_v57, %v21077_v34  ;;  %10119 = vmatprep.mubr.msk.f32.mxu0 %vm21062_vm8, %v20903_v8  ;;  %4619 = vmatprep.subr.mxu1 %v20567_v32  ;;  %v13851_v18 = vsub.f32 %v3885_v33, %v13814_v60  ;;  %v3883_v33 = vld [vmem:[%s19515_s4 + $0xa0] sm:$0xff] }
 0x201   : > { %21075 = vst [vmem:[#allocation126_spill] sm:$0xff] %v13825_v17  ;;  %10187 = vmatprep.mubr.msk.f32.mxu1 %vm21078_vm7, %v20903_v8  ;;  %v13846_v23 = vadd.f32 %v2856_v6, %v2462_v20  ;;  %v13853_v13 = vand.u32 4294901760, %v3884_v9  ;;  %3960 = vmatpush2.msra.mxu0 %v13663_v22  ;;  %21081 = vst [vmem:[#allocation128_spill] sm:$0xff] %v13858_v35  ;;  %v4637_v6 = vsub.f32 %v13785_v55, %v13822_v36 }
 0x202   : > { %v2889_v59 = vpop.f32.mrf.mxu1  ;;  %v2470_v7 = vpop.f32.mrf.mxu0  ;;  %21079 = vst [vmem:[#allocation97_spill] sm:$0xff] %v13851_v18  ;;  %4625 = vmatpush2.msra.mxu1 %v13812_v53  ;;  %v13863_v20 = vand.u32 4294901760, %v13825_v17  ;;  %vm21083_vm0 = vcmp.eq.s32.totalorder %v20909_v45, %v21077_v34  ;;  %vm21085_vm2 = vcmp.eq.s32.totalorder %v20904_v57, %v21084_v49  ;;  %3961 = vmatprep.subr.mxu0 %v20567_v32  ;;  %vm21094_vm6 = vmmov %vm21078_vm7 }
 0x203   : > { %21080 = vst [vmem:[#allocation127_spill] sm:$0xff] %v13853_v13  ;;  %v2471_v15 = vadd.f32 %v2470_v7, %v12832_v38  ;;  %10188 = vmatmul.mubr.msk.f32.gmra.mxu1 %vm21083_vm0, %v20903_v8  ;;  %10120 = vmatmul.mubr.msk.f32.gmra.mxu0 %vm21068_vm1, %v20903_v8  ;;  %v13892_v36 = vsub.f32 %v3884_v9, %v13853_v13  ;;  %vm21101_vm8 = vmmov %vm21083_vm0 }
 0x204   : > { %21082 = vst [vmem:[#allocation129_spill] sm:$0xff] %v13863_v20  ;;  %v2891_v38 = vpop.f32.mrf.mxu1  ;;  %v2472_v7 = vpop.f32.mrf.mxu0  ;;  %10189 = vmatprep.mubr.msk.f32.mxu1 %vm21085_vm2, %v20903_v8  ;;  %10121 = vmatprep.mubr.msk.f32.mxu0 %vm21070_vm3, %v20903_v8  ;;  %vm21104_vm1 = vmmov %vm21085_vm2 }
 0x205   : > { %v13884_v53 = vadd.f32 %v2867_v31, %v2471_v15  ;;  %4626 = vmatprep.subr.mxu1 %v20567_v32  ;;  %v13889_v7 = vand.u32 4294901760, %v13851_v18  ;;  %21088 = vst [vmem:[#allocation131_spill] sm:$0xff] %v13892_v36  ;;  %3963 = vmatpush2.msra.mxu0 %v13711_v63  ;;  %v13897_v31 = vand.u32 4294901760, %v4637_v6  ;;  %v4644_v15 = vsub.f32 %v13825_v17, %v13863_v20  ;;  %v3882_v6 = vld [vmem:[%s19515_s4 + $0x98] sm:$0xff] }
 0x206   : > { %v2900_v44 = vpop.f32.mrf.mxu1  ;;  %v2479_v38 = vpop.f32.mrf.mxu0  ;;  %4632 = vmatpush2.msra.mxu1 %v13858_v35  ;;  %3964 = vmatprep.subr.mxu0 %v20567_v32  ;;  %v13929_v20 = vand.u32 4294901760, %v13892_v36 }
 0x207   : > { %21086 = vst [vmem:[#allocation99_spill] sm:$0xff] %v13884_v53  ;;  %21087 = vst [vmem:[#allocation130_spill] sm:$0xff] %v13889_v7  ;;  %v2480_v55 = vadd.f32 %v2479_v38, %v12847_v11  ;;  %v13901_v53 = vand.u32 4294901760, %v3883_v33  ;;  %10190 = vmatmul.mubr.msk.f32.gmra.mxu1 %vm449_vm15, %v20903_v8  ;;  %10122 = vmatmul.mubr.msk.f32.gmra.mxu0 %vm21091_vm4, %v20903_v8  ;;  %v21092_v38 = vld [vmem:[#allocation101_spill] sm:$0xff] }
 0x208   : > { %21089 = vst [vmem:[#allocation132_spill] sm:$0xff] %v13897_v31  ;;  %v2902_v11 = vpop.f32.mrf.mxu1  ;;  %v2481_v9 = vpop.f32.mrf.mxu0  ;;  %vm21093_vm5 = vcmp.eq.s32.totalorder %v20904_v57, %v21092_v38  ;;  %10123 = vmatprep.mubr.msk.f32.mxu0 %vm21094_vm6, %v20903_v8  ;;  %4633 = vmatprep.subr.mxu1 %v20567_v32  ;;  %21096 = vst [vmem:[#allocation134_spill] sm:$0xff] %v13929_v20  ;;  %vm21100_vm7 = vcmp.eq.s32.totalorder %v20909_v45, %v21092_v38 }
 0x209   : > { %21090 = vst [vmem:[#allocation133_spill] sm:$0xff] %v13901_v53  ;;  %10191 = vmatprep.mubr.msk.f32.mxu1 %vm21093_vm5, %v20903_v8  ;;  %v13922_v35 = vadd.f32 %v2878_v0, %v2480_v55  ;;  %v4651_v9 = vsub.f32 %v13851_v18, %v13889_v7  ;;  %3966 = vmatpush2.msra.mxu0 %v13749_v50  ;;  %v13934_v0 = vand.u32 4294901760, %v4644_v15  ;;  %v3881_v15 = vld [vmem:[%s19515_s4 + $0x90] sm:$0xff]  ;;  %v3880_v18 = vld [vmem:[%s19515_s4 + $0x88] sm:$0xff]  ;;  %vm21113_vm4 = vmmov %vm21093_vm5 }
 0x20a   : > { %v2911_v3 = vpop.f32.mrf.mxu1  ;;  %v2488_v11 = vpop.f32.mrf.mxu0  ;;  %4639 = vmatpush2.msra.mxu1 %v13897_v31  ;;  %v13937_v55 = vsub.f32 %v3883_v33, %v13901_v53  ;;  %v21102_v33 = vld [vmem:[#allocation105_spill] sm:$0xff]  ;;  %3967 = vmatprep.subr.mxu0 %v20567_v32  ;;  %v4658_v7 = vsub.f32 %v13892_v36, %v13929_v20  ;;  %v3879_v20 = vld [vmem:[%s19515_s4 + $0x80] sm:$0xff]  ;;  %vm21119_vm5 = vmmov %vm21100_vm7 }
 0x20b   : > { %21095 = vst [vmem:[#allocation101_spill] sm:$0xff] %v13922_v35  ;;  %v2489_v17 = vadd.f32 %v2488_v11, %v12863_v58  ;;  %21097 = vst [vmem:[#allocation135_spill] sm:$0xff] %v13934_v0  ;;  %v13939_v35 = vand.u32 4294901760, %v3882_v6  ;;  %10192 = vmatmul.mubr.msk.f32.gmra.mxu1 %vm21100_vm7, %v20903_v8  ;;  %10124 = vmatmul.mubr.msk.f32.gmra.mxu0 %vm21101_vm8, %v20903_v8  ;;  %vm21103_vm0 = vcmp.eq.s32.totalorder %v20904_v57, %v21102_v33 }
 0x20c   : > { %21098 = vst [vmem:[#allocation136_spill] sm:$0xff] %v13937_v55  ;;  %v2913_v58 = vpop.f32.mrf.mxu1  ;;  %v2490_v11 = vpop.f32.mrf.mxu0  ;;  %10193 = vmatprep.mubr.msk.f32.mxu1 %vm21103_vm0, %v20903_v8  ;;  %10125 = vmatprep.mubr.msk.f32.mxu0 %vm21104_vm1, %v20903_v8  ;;  %vm21110_vm2 = vcmp.eq.s32.totalorder %v20909_v45, %v21102_v33  ;;  %v14007_v36 = vand.u32 4294901760, %v4658_v7  ;;  %vm21123_vm7 = vmmov %vm21103_vm0 }
 0x20d   : > { %21099 = vst [vmem:[#allocation137_spill] sm:$0xff] %v13939_v35  ;;  %v13960_v31 = vadd.f32 %v2889_v59, %v2489_v17  ;;  %4640 = vmatprep.subr.mxu1 %v20567_v32  ;;  %v13964_v11 = vand.u32 4294901760, %v4651_v9  ;;  %3969 = vmatpush2.msra.mxu0 %v13787_v2  ;;  %v13975_v17 = vand.u32 4294901760, %v13937_v55  ;;  %v13978_v59 = vsub.f32 %v3882_v6, %v13939_v35  ;;  %vm21129_vm0 = vmmov %vm21110_vm2 }
 0x20e   : > { %v2922_v34 = vpop.f32.mrf.mxu1  ;;  %v2497_v58 = vpop.f32.mrf.mxu0  ;;  %4646 = vmatpush2.msra.mxu1 %v13934_v0  ;;  %v13980_v9 = vand.u32 4294901760, %v3881_v15  ;;  %v21111_v0 = vld [vmem:[#allocation108_spill] sm:$0xff]  ;;  %v13998_v6 = vand.u32 4294901760, %v3880_v18  ;;  %3970 = vmatprep.subr.mxu0 %v20567_v32  ;;  %21115 = vst [vmem:[#allocation142_spill] sm:$0xff] %v14007_v36 }
 0x20f   : > { %21105 = vst [vmem:[#allocation105_spill] sm:$0xff] %v13960_v31  ;;  %21106 = vst [vmem:[#allocation138_spill] sm:$0xff] %v13964_v11  ;;  %v2498_v50 = vadd.f32 %v2497_v58, %v12880_v24  ;;  %10194 = vmatmul.mubr.msk.f32.gmra.mxu1 %vm21110_vm2, %v20903_v8  ;;  %10126 = vmatmul.mubr.msk.f32.gmra.mxu0 %vm449_vm15, %v20903_v8  ;;  %vm21112_vm3 = vcmp.eq.s32.totalorder %v20904_v57, %v21111_v0 }
 0x210   : > { %21107 = vst [vmem:[#allocation139_spill] sm:$0xff] %v13975_v17  ;;  %21108 = vst [vmem:[#allocation140_spill] sm:$0xff] %v13978_v59  ;;  %v2924_v24 = vpop.f32.mrf.mxu1  ;;  %v2499_v58 = vpop.f32.mrf.mxu0  ;;  %10195 = vmatprep.mubr.msk.f32.mxu1 %vm21112_vm3, %v20903_v8  ;;  %10127 = vmatprep.mubr.msk.f32.mxu0 %vm21113_vm4, %v20903_v8  ;;  %v4665_v31 = vsub.f32 %v13937_v55, %v13975_v17  ;;  %vm21118_vm15 = vcmp.eq.s32.totalorder %v20909_v45, %v21111_v0 }
 0x211   : > { %21109 = vst [vmem:[#allocation141_spill] sm:$0xff] %v13980_v9  ;;  %21114 = vst [vmem:[#allocation108_spill] sm:$0xff] %v13998_v6  ;;  %v14003_v49 = vadd.f32 %v2900_v44, %v2498_v50  ;;  %4647 = vmatprep.subr.mxu1 %v20567_v32  ;;  %3972 = vmatpush2.msra.mxu0 %v13814_v60  ;;  %v14015_v50 = vand.u32 4294901760, %v13978_v59  ;;  %v14018_v44 = vsub.f32 %v3881_v15, %v13980_v9 }
 0x212   : > { %v2933_v24 = vpop.f32.mrf.mxu1  ;;  %v2506_v58 = vpop.f32.mrf.mxu0  ;;  %4653 = vmatpush2.msra.mxu1 %v13964_v11  ;;  %v21121_v11 = vld [vmem:[#allocation110_spill] sm:$0xff]  ;;  %v14039_v15 = vsub.f32 %v3880_v18, %v13998_v6  ;;  %3973 = vmatprep.subr.mxu0 %v20567_v32  ;;  %v14052_v60 = vand.u32 4294901760, %v4665_v31  ;;  %vm21132_vm1 = vmmov %vm21112_vm3 }
 0x213   : > { %v2507_v2 = vadd.f32 %v2506_v58, %v12895_v19  ;;  %21116 = vst [vmem:[#allocation143_spill] sm:$0xff] %v14015_v50  ;;  %21117 = vst [vmem:[#allocation144_spill] sm:$0xff] %v14018_v44  ;;  %10196 = vmatmul.mubr.msk.f32.gmra.mxu1 %vm21118_vm15, %v20903_v8  ;;  %10128 = vmatmul.mubr.msk.f32.gmra.mxu0 %vm21119_vm5, %v20903_v8  ;;  %v14028_v58 = vand.u32 4294901760, %v3879_v20  ;;  %vm21122_vm6 = vcmp.eq.s32.totalorder %v20904_v57, %v21121_v11 }
 0x214   : > { %v2935_v19 = vpop.f32.mrf.mxu1  ;;  %v2508_v7 = vpop.f32.mrf.mxu0  ;;  %10197 = vmatprep.mubr.msk.f32.mxu1 %vm21122_vm6, %v20903_v8  ;;  %10129 = vmatprep.mubr.msk.f32.mxu0 %vm21123_vm7, %v20903_v8  ;;  %21124 = vst [vmem:[#allocation110_spill] sm:$0xff] %v14039_v15  ;;  %21126 = vst [vmem:[#allocation147_spill] sm:$0xff] %v14052_v60  ;;  %v14057_v18 = vand.u32 4294901760, %v14018_v44  ;;  %vm21128_vm8 = vcmp.eq.s32.totalorder %v20909_v45, %v21121_v11 }
 0x215   : > { %21120 = vst [vmem:[#allocation145_spill] sm:$0xff] %v14028_v58  ;;  %v14041_v17 = vadd.f32 %v2911_v3, %v2507_v2  ;;  %4654 = vmatprep.subr.mxu1 %v20567_v32  ;;  %v14047_v7 = vpop.permute.xlu0 %626  ;;  %3975 = vmatpush2.msra.mxu0 %v13853_v13  ;;  %v4672_v2 = vsub.f32 %v13978_v59, %v14015_v50  ;;  %vm21136_vm3 = vmmov %vm21118_vm15 }
 0x216   : > { %v14043_v38 = vpop.f32.mrf.mxu1  ;;  %v2515_v19 = vpop.f32.mrf.mxu0  ;;  %21125 = vst [vmem:[#allocation146_spill] sm:$0xff] %v14047_v7  ;;  %4660 = vmatpush2.msra.mxu1 %v14007_v36  ;;  %21127 = vst [vmem:[#allocation148_spill] sm:$0xff] %v14057_v18  ;;  %v14068_v31 = vsub.f32 %v3879_v20, %v14028_v58  ;;  %v14079_v36 = vand.u32 4294901760, %v14039_v15  ;;  %3976 = vmatprep.subr.mxu0 %v20567_v32  ;;  %vm722_vm2 = vcmp.eq.s32.totalorder %v20904_v57, %v14047_v7 }
 0x217   : > { %v2516_v55 = vadd.f32 %v2515_v19, %v12910_v26  ;;  %10198 = vmatmul.mubr.msk.f32.gmra.mxu1 %vm21128_vm8, %v20903_v8  ;;  %10130 = vmatmul.mubr.msk.f32.gmra.mxu0 %vm21129_vm0, %v20903_v8  ;;  %vm721_vm4 = vcmp.eq.s32.totalorder %v20909_v45, %v14047_v7  ;;  %vm21139_vm15 = vmmov %vm21122_vm6 }
 0x218   : > { %v2946_v26 = vpop.f32.mrf.mxu1  ;;  %v2517_v3 = vpop.f32.mrf.mxu0  ;;  %21130 = vst [vmem:[#allocation149_spill] sm:$0xff] %v14068_v31  ;;  %10199 = vmatprep.mubr.msk.f32.mxu1 %vm460_vm12, %v20903_v8  ;;  %10131 = vmatprep.mubr.msk.f32.mxu0 %vm21132_vm1, %v20903_v8  ;;  %21133 = vst [vmem:[#allocation112_spill] sm:$0xff] %v14079_v36  ;;  %v14107_v59 = vand.u32 4294901760, %v14068_v31  ;;  %v4686_v0 = vsub.f32 %v14039_v15, %v14079_v36 }
 0x219   : > { %v14081_v33 = vadd.f32 %v2922_v34, %v2516_v55  ;;  %4661 = vmatprep.subr.mxu1 %v20567_v32  ;;  %v14089_v3 = vpop.permute.xlu1 %629  ;;  %3978 = vmatpush2.msra.mxu0 %v13901_v53  ;;  %v14094_v55 = vand.u32 4294901760, %v4672_v2  ;;  %v4679_v34 = vsub.f32 %v14018_v44, %v14057_v18  ;;  %v14131_v44 = vpop.permute.xlu0 %632  ;;  %vm21142_vm7 = vmmov %vm21128_vm8 }
 0x21a   : > { %v14083_v26 = vpop.f32.mrf.mxu1  ;;  %v2524_v20 = vpop.f32.mrf.mxu0  ;;  %21134 = vst [vmem:[#allocation150_spill] sm:$0xff] %v14089_v3  ;;  %4667 = vmatpush2.msra.mxu1 %v14052_v60  ;;  %21137 = vst [vmem:[#allocation152_spill] sm:$0xff] %v14107_v59  ;;  %3979 = vmatprep.subr.mxu0 %v20567_v32  ;;  %vm724_vm5 = vcmp.eq.s32.totalorder %v20904_v57, %v14089_v3  ;;  %vm723_vm6 = vcmp.eq.s32.totalorder %v20909_v45, %v14089_v3  ;;  %v14166_v15 = vand.u32 4294901760, %v4686_v0 }
 0x21b   : > { %v2525_v50 = vadd.f32 %v2524_v20, %v12926_v25  ;;  %21135 = vst [vmem:[#allocation151_spill] sm:$0xff] %v14094_v55  ;;  %10200 = vmatmul.mubr.msk.f32.gmra.mxu1 %vm459_vm13, %v20903_v8  ;;  %10132 = vmatmul.mubr.msk.f32.gmra.mxu0 %vm21136_vm3, %v20903_v8  ;;  %21140 = vst [vmem:[#allocation115_spill] sm:$0xff] %v14131_v44  ;;  %v14136_v36 = vand.u32 4294901760, %v4679_v34  ;;  %v4693_v34 = vsub.f32 %v14068_v31, %v14107_v59 }
 0x21c   : > { %v2957_v25 = vpop.f32.mrf.mxu1  ;;  %v2526_v20 = vpop.f32.mrf.mxu0  ;;  %10201 = vmatprep.mubr.msk.f32.mxu1 %vm462_vm11, %v20903_v8  ;;  %10133 = vmatprep.mubr.msk.f32.mxu0 %vm21139_vm15, %v20903_v8  ;;  %21145 = vst [vmem:[#allocation117_spill] sm:$0xff] %v14166_v15  ;;  %vm725_vm8 = vcmp.eq.s32.totalorder %v20909_v45, %v14131_v44 }
 0x21d   : > { %v9886_v25 = vsel %vm722_vm2, 1.0, %v20567_v32  ;;  %v14125_v20 = vadd.f32 %v2933_v24, %v2525_v50  ;;  %4668 = vmatprep.subr.mxu1 %v20567_v32  ;;  %3981 = vmatpush2.msra.mxu0 %v13939_v35  ;;  %21141 = vst [vmem:[#allocation153_spill] sm:$0xff] %v14136_v36  ;;  %v9885_v24 = vsel %vm721_vm4, 1.0, %v20567_v32  ;;  %v14187_v0 = vpop.permute.xlu1 %635 }
 0x21e   : > { %v14127_v60 = vpop.f32.mrf.mxu1  ;;  %v2533_v18 = vpop.f32.mrf.mxu0  ;;  %4674 = vmatpush2.msra.mxu1 %v14094_v55  ;;  %3982 = vmatprep.subr.mxu0 %v20567_v32  ;;  %21147 = vst [vmem:[#allocation156_spill] sm:$0xff] %v14187_v0  ;;  %vm20015_vm0 = vcmp.eq.s32.totalorder %v20909_v45, %v14187_v0 }
 0x21f   : > { %v2534_v53 = vadd.f32 %v2533_v18, %v12948_v43  ;;  %10202 = vmatmul.mubr.msk.f32.gmra.mxu1 %vm461_vm14, %v20903_v8  ;;  %10134 = vmatmul.mubr.msk.f32.gmra.mxu0 %vm21142_vm7, %v20903_v8  ;;  %v14154_v18 = vsub.f32 %v9886_v25, %v9886_v25 }
 0x220   : > { %v2968_v43 = vpop.f32.mrf.mxu1  ;;  %v2535_v50 = vpop.f32.mrf.mxu0  ;;  %10203 = vmatprep.mubr.msk.f32.mxu1 %vm464_vm9, %v20903_v8  ;;  %10135 = vmatprep.mubr.msk.f32.mxu0 %vm460_vm12, %v20903_v8  ;;  %vm726_vm12 = vcmp.eq.s32.totalorder %v20904_v57, %v14131_v44 }
 0x221   : > { %21143 = vst [vmem:[#allocation154_spill] sm:$0xff] %v14154_v18  ;;  %v14169_v11 = vadd.f32 %v14043_v38, %v2534_v53  ;;  %4675 = vmatprep.subr.mxu1 %v20567_v32  ;;  %v9888_v50 = vsel %vm724_vm5, 1.0, %v20567_v32  ;;  %v9887_v53 = vsel %vm723_vm6, 1.0, %v20567_v32  ;;  %v14185_v38 = vsub.f32 %v9885_v24, %v9885_v24  ;;  %3984 = vmatpush2.msra.mxu0 %v13980_v9  ;;  %v14249_v35 = vpop.permute.xlu1 %641 }
 0x222   : > { %v14172_v25 = vpop.f32.mrf.mxu1  ;;  %v2542_v43 = vpop.f32.mrf.mxu0  ;;  %4681 = vmatpush2.msra.mxu1 %v14136_v36  ;;  %3985 = vmatprep.subr.mxu0 %v20567_v32  ;;  %21154 = vst [vmem:[#allocation162_spill] sm:$0xff] %v14249_v35 }
 0x223   : > { %21146 = vst [vmem:[#allocation155_spill] sm:$0xff] %v14169_v11  ;;  %v2543_v59 = vadd.f32 %v2542_v43, %v12971_v21  ;;  %10204 = vmatmul.mubr.msk.f32.gmra.mxu1 %vm463_vm10, %v20903_v8  ;;  %4682 = vmatprep.subr.mxu1 %v20567_v32  ;;  %v14199_v11 = vand.u32 4294901760, %v4693_v34  ;;  %v14207_v21 = vsub.f32 %v9888_v50, %v9888_v50  ;;  %v9890_v43 = vsel %vm726_vm12, 1.0, %v20567_v32 }
 0x224   : > { %v2979_v24 = vpop.f32.mrf.mxu1  ;;  %v2544_v31 = vpop.f32.mrf.mxu0  ;;  %10136 = vmatmul.mubr.msk.f32.gmra.mxu0 %vm459_vm13, %v20903_v8  ;;  %4688 = vmatpush2.msra.mxu1 %v14166_v15  ;;  %v14216_v34 = vsub.f32 %v9887_v53, %v9887_v53  ;;  %vm728_vm13 = vcmp.eq.s32.totalorder %v20904_v57, %v14187_v0  ;;  %v14244_v15 = vsub.f32 %v9890_v43, %v9890_v43 }
 0x225   : > { %21148 = vst [vmem:[#allocation157_spill] sm:$0xff] %v14199_v11  ;;  %v14214_v31 = vadd.f32 %v14083_v26, %v2543_v59  ;;  %10205 = vmatprep.mubr.msk.f32.mxu1 %vm722_vm2, %v20903_v8  ;;  %10137 = vmatprep.mubr.msk.f32.mxu0 %vm462_vm11, %v20903_v8  ;;  %v9889_v26 = vsel %vm725_vm8, 1.0, %v20567_v32  ;;  %v14237_v53 = vpop.permute.xlu0 %638 }
 0x226   : > { %21150 = vst [vmem:[#allocation159_spill] sm:$0xff] %v14216_v34  ;;  %v14226_v19 = vpop.f32.mrf.mxu1  ;;  %v2551_v50 = vpop.f32.mrf.mxu0  ;;  %21151 = vst [vmem:[#allocation160_spill] sm:$0xff] %v14237_v53  ;;  %4689 = vmatprep.subr.mxu1 %v20567_v32  ;;  %3987 = vmatpush2.msra.mxu0 %v13998_v6  ;;  %vm20007_vm11 = vcmp.eq.s32.totalorder %v20904_v57, %v14237_v53 }
 0x227   : > { %21149 = vst [vmem:[#allocation158_spill] sm:$0xff] %v14214_v31  ;;  %v2552_v24 = vadd.f32 %v2551_v50, %v13002_v47  ;;  %4695 = vmatpush2.msra.mxu1 %v14199_v11  ;;  %21152 = vst [vmem:[#allocation161_spill] sm:$0xff] %v14244_v15  ;;  %v21153_v31 = vand.u32 4294901760, %v14154_v18  ;;  %v9892_v47 = vsel %vm728_vm13, 1.0, %v20567_v32  ;;  %v14271_v50 = vsub.f32 %v9889_v26, %v9889_v26 }
 0x228   : > { %v2990_v59 = vpop.f32.mrf.mxu1  ;;  %v2553_v36 = vpop.f32.mrf.mxu0  ;;  %10206 = vmatmul.mubr.msk.f32.vlgmr.msra.gmra.mxu1 %vm721_vm4, %v20903_v8  ;;  %10138 = vmatmul.mubr.msk.f32.gmra.mxu0 %vm461_vm14, %v20903_v8  ;;  %vm20008_vm14 = vcmp.eq.s32.totalorder %v20909_v45, %v14237_v53 }
 0x229   : > { %v3994_v9 = vsub.f32 %v14154_v18, %v21153_v31  ;;  %v14265_v43 = vadd.f32 %v14127_v60, %v2552_v24  ;;  %v9891_v31 = vsel %vm20015_vm0, 1.0, %v20567_v32  ;;  %21156 = vst [vmem:[#allocation164_spill] sm:$0xff] %v14271_v50  ;;  %10207 = vmatprep.mubr.msk.f32.mxu1 %vm724_vm5, %v20903_v8  ;;  %10139 = vmatprep.mubr.msk.f32.mxu0 %vm464_vm9, %v20903_v8  ;;  %v21157_v59 = vand.u32 4294901760, %v14185_v38 }
 0x22a   : > { %v14281_v2 = vpop.f32.mrf.mxu1  ;;  %v2560_v60 = vpop.f32.mrf.mxu0  ;;  %3988 = vmatprep.subr.mxu0 %v20567_v32  ;;  %5338 = vmatprep.subr.mxu1 %v20567_v32  ;;  %v19993_v36 = vand.u32 4294901760, %v14216_v34  ;;  %v14295_v18 = vsub.f32 %v9892_v47, %v9892_v47  ;;  %vm20014_vm9 = vcmp.eq.s32.totalorder %v20904_v57, %v14249_v35  ;;  %v9893_v55 = vsel %vm20008_vm14, 1.0, %v20567_v32 }
 0x22b   : > { %21155 = vst [vmem:[#allocation163_spill] sm:$0xff] %v14265_v43  ;;  %v4000_v26 = vsub.f32 %v14185_v38, %v21157_v59  ;;  %v2561_v24 = vadd.f32 %v2560_v60, %v13032_v51  ;;  %3990 = vmatpush2.msra.mxu0 %v14028_v58  ;;  %v3995_v7 = vand.u32 4294901760, %v3994_v9  ;;  %5340 = vmatpush1.msra.mxu1 %v12942_v48  ;;  %v21158_v51 = vand.u32 4294901760, %v14207_v21 }
 0x22c   : > { %v3001_v11 = vpop.f32.mrf.mxu1  ;;  %v2562_v43 = vpop.f32.mrf.mxu0  ;;  %10208 = vmatmul.mubr.msk.f32.gmra.mxu1 %vm723_vm6, %v20903_v8  ;;  %10140 = vmatmul.mubr.msk.f32.gmra.mxu0 %vm463_vm10, %v20903_v8  ;;  %vm20048_vm10 = vcmp.eq.s32.totalorder %v20909_v45, %v14249_v35  ;;  %v4015_v3 = vsub.f32 %v14216_v34, %v19993_v36  ;;  %v14353_v36 = vsub.f32 %v9893_v55, %v9893_v55 }
 0x22d   : > { %v4009_v9 = vsub.f32 %v14207_v21, %v21158_v51  ;;  %v9894_v11 = vsel %vm20007_vm11, 1.0, %v20567_v32  ;;  %v14317_v47 = vadd.f32 %v14172_v25, %v2561_v24  ;;  %v14319_v43 = vsub.f32 %v9891_v31, %v9891_v31  ;;  %10209 = vmatprep.mubr.msk.f32.mxu1 %vm726_vm12, %v20903_v8  ;;  %3996 = vmatprep.mubr.f32.mxu0 %v3995_v7  ;;  %v14334_v31 = vpop.permute.xlu0 %644 }
 0x22e   : > { %v14329_v60 = vpop.f32.mrf.mxu1  ;;  %v2569_v51 = vpop.f32.mrf.mxu0  ;;  %v4001_v25 = vand.u32 4294901760, %v4000_v26  ;;  %21160 = vst [vmem:[#allocation166_spill] sm:$0xff] %v14334_v31  ;;  %4921 = vmatprep.subr.mxu0 %v20567_v32  ;;  %5341 = vmatprep.subr.mxu1 %v20567_v32  ;;  %v21161_v26 = vand.u32 4294901760, %v14244_v15  ;;  %vm20022_vm1 = vcmp.eq.s32.totalorder %v20909_v45, %v14334_v31  ;;  %vm20021_vm3 = vcmp.eq.s32.totalorder %v20904_v57, %v14334_v31 }
 0x22f   : > { %21159 = vst [vmem:[#allocation165_spill] sm:$0xff] %v14317_v47  ;;  %v2570_v24 = vadd.f32 %v2569_v51, %v13067_v39  ;;  %v14342_v47 = vsub.f32 %v9894_v11, %v9894_v11  ;;  %5343 = vmatpush1.msra.mxu1 %v12966_v1  ;;  %v9896_v39 = vsel %vm20014_vm9, 1.0, %v20567_v32  ;;  %v4016_v51 = vand.u32 4294901760, %v4015_v3 }
 0x230   : > { %v3012_v7 = vpop.f32.mrf.mxu1  ;;  %v2571_v48 = vpop.f32.mrf.mxu0  ;;  %v4024_v59 = vsub.f32 %v14244_v15, %v21161_v26  ;;  %10210 = vmatmul.mubr.msk.f32.gmra.mxu1 %vm725_vm8, %v20903_v8  ;;  %4002 = vmatmul.mubr.f32.vlgmr.msra.gmra.mxu0 %v4001_v25  ;;  %v14384_v44 = vsub.f32 %v9896_v39, %v9896_v39  ;;  %v9897_v3 = vsel %vm20022_vm1, 1.0, %v20567_v32 }
 0x231   : > { %v4010_v48 = vand.u32 4294901760, %v4009_v9  ;;  %v14360_v11 = vadd.f32 %v14226_v19, %v2570_v24  ;;  %v9895_v7 = vsel %vm20048_vm10, 1.0, %v20567_v32  ;;  %10211 = vmatprep.mubr.msk.f32.mxu1 %vm728_vm13, %v20903_v8  ;;  %4924 = vmatpush1.msra.mxu0 %v12961_v12  ;;  %v21163_v19 = vand.u32 4294901760, %v14271_v50  ;;  %v14380_v24 = vpop.permute.xlu1 %647 }
 0x232   : > { %v14373_v55 = vpop.f32.mrf.mxu1  ;;  %v2578_v9 = vpop.f32.mrf.mxu0  ;;  %21164 = vst [vmem:[#allocation168_spill] sm:$0xff] %v14380_v24  ;;  %4925 = vmatprep.subr.mxu0 %v20567_v32  ;;  %v20006_v12 = vand.u32 4294901760, %v14319_v43  ;;  %5344 = vmatprep.subr.mxu1 %v20567_v32  ;;  %v14393_v34 = vsub.f32 %v9895_v7, %v9895_v7  ;;  %vm20027_vm15 = vcmp.eq.s32.totalorder %v20909_v45, %v14380_v24 }
 0x233   : > { %21162 = vst [vmem:[#allocation167_spill] sm:$0xff] %v14360_v11  ;;  %v4030_v25 = vsub.f32 %v14271_v50, %v21163_v19  ;;  %4011 = vmatprep.mubr.f32.mxu0 %v4010_v48  ;;  %v2579_v26 = vadd.f32 %v2578_v9, %v13100_v37  ;;  %4928 = vmatpush1.msra.mxu0 %v12987_v28  ;;  %v4025_v11 = vand.u32 4294901760, %v4024_v59  ;;  %v21165_v50 = vand.u32 4294901760, %v14295_v18 }
 0x234   : > { %v3023_v1 = vpop.f32.mrf.mxu1  ;;  %v2580_v19 = vpop.f32.mrf.mxu0  ;;  %10212 = vmatmul.mubr.msk.f32.gmra.mxu1 %vm20015_vm0, %v20903_v8  ;;  %4017 = vmatmul.mubr.f32.gmra.mxu0 %v4016_v51  ;;  %vm20026_vm7 = vcmp.eq.s32.totalorder %v20904_v57, %v14380_v24  ;;  %v4045_v7 = vsub.f32 %v14319_v43, %v20006_v12  ;;  %v20016_v9 = vand.u32 4294901760, %v14384_v44  ;;  %v21167_v28 = vand.u32 4294901760, %v14342_v47  ;;  %v21187_v24 = vld [vmem:[#allocation14_spill] sm:$0xff] }
 0x235   : > { %v4039_v15 = vsub.f32 %v14295_v18, %v21165_v50  ;;  %v9898_v1 = vsel %vm20021_vm3, 1.0, %v20567_v32  ;;  %v14404_v37 = vadd.f32 %v14281_v2, %v2579_v26  ;;  %10213 = vmatprep.mubr.msk.f32.mxu1 %vm20007_vm11, %v20903_v8  ;;  %4026 = vmatprep.mubr.f32.mxu0 %v4025_v11  ;;  %v4031_v39 = vand.u32 4294901760, %v4030_v25  ;;  %v14420_v2 = vpop.permute.xlu0 %650  ;;  %v14441_v12 = vpop.permute.xlu1 %653 }
 0x236   : > { %v14416_v50 = vpop.f32.mrf.mxu1  ;;  %v2587_v59 = vpop.f32.mrf.mxu0  ;;  %21166 = vst [vmem:[#allocation169_spill] sm:$0xff] %v14420_v2  ;;  %4929 = vmatprep.subr.mxu0 %v20567_v32  ;;  %5346 = vmatpush1.msra.mxu1 %v12989_v16  ;;  %v20017_v11 = vand.u32 4294901760, %v14353_v36  ;;  %v14431_v48 = vsub.f32 %v9898_v1, %v9898_v1  ;;  %21168 = vst [vmem:[#allocation170_spill] sm:$0xff] %v14441_v12  ;;  %v14454_v1 = vsub.f32 %v9897_v3, %v9897_v3 }
 0x237   : > { %v2588_v51 = vadd.f32 %v2587_v59, %v13140_v61  ;;  %4932 = vmatpush1.msra.mxu0 %v13016_v54  ;;  %v4040_v26 = vand.u32 4294901760, %v4039_v15  ;;  %v4054_v61 = vsub.f32 %v14342_v47, %v21167_v28  ;;  %5347 = vmatprep.subr.mxu1 %v20567_v32  ;;  %v9899_v59 = vsel %vm20027_vm15, 1.0, %v20567_v32 }
 0x238   : > { %v3034_v25 = vpop.f32.mrf.mxu1  ;;  %v2589_v19 = vpop.f32.mrf.mxu0  ;;  %10214 = vmatmul.mubr.msk.f32.gmra.mxu1 %vm20008_vm14, %v20903_v8  ;;  %4032 = vmatmul.mubr.f32.gmra.mxu0 %v4031_v39  ;;  %v9900_v28 = vsel %vm20026_vm7, 1.0, %v20567_v32  ;;  %21169 = vst [vmem:[#allocation171_spill] sm:$0xff] %v14454_v1  ;;  %vm20039_vm11 = vcmp.eq.s32.totalorder %v20909_v45, %v14420_v2  ;;  %vm20038_vm14 = vcmp.eq.s32.totalorder %v20904_v57, %v14420_v2  ;;  %v4046_v3 = vand.u32 4294901760, %v4045_v7 }
 0x239   : > { %v14452_v15 = vadd.f32 %v14329_v60, %v2588_v51  ;;  %10215 = vmatprep.mubr.msk.f32.mxu1 %vm20014_vm9, %v20903_v8  ;;  %4041 = vmatprep.mubr.f32.mxu0 %v4040_v26  ;;  %v4060_v51 = vsub.f32 %v14353_v36, %v20017_v11  ;;  %v4069_v26 = vsub.f32 %v14384_v44, %v20016_v9  ;;  %v4055_v54 = vand.u32 4294901760, %v4054_v61 }
 0x23a   : > { %v14462_v39 = vpop.f32.mrf.mxu1  ;;  %v2596_v25 = vpop.f32.mrf.mxu0  ;;  %4933 = vmatprep.subr.mxu0 %v20567_v32  ;;  %5349 = vmatpush1.msra.mxu1 %v13008_v46  ;;  %v14477_v0 = vsub.f32 %v9900_v28, %v9900_v28  ;;  %v9902_v7 = vsel %vm20038_vm14, 1.0, %v20567_v32  ;;  %vm20047_vm9 = vcmp.eq.s32.totalorder %v20904_v57, %v14441_v12  ;;  %v14494_v61 = vsub.f32 %v9899_v59, %v9899_v59 }
 0x23b   : > { %v2597_v60 = vadd.f32 %v2596_v25, %v13177_v5  ;;  %4936 = vmatpush1.msra.mxu0 %v13039_v62  ;;  %5350 = vmatprep.subr.mxu1 %v20567_v32  ;;  %vm20185_vm0 = vcmp.eq.s32.totalorder %v20909_v45, %v14441_v12  ;;  %v9901_v28 = vsel %vm20039_vm11, 1.0, %v20567_v32  ;;  %v21173_v59 = vand.u32 4294901760, %v14393_v34 }
 0x23c   : > { %v3045_v19 = vpop.f32.mrf.mxu1  ;;  %v2598_v53 = vpop.f32.mrf.mxu0  ;;  %21170 = vst [vmem:[#allocation172_spill] sm:$0xff] %v14477_v0  ;;  %10216 = vmatmul.mubr.msk.f32.gmra.mxu1 %vm20048_vm10, %v20903_v8  ;;  %4047 = vmatmul.mubr.f32.gmra.mxu0 %v4046_v3  ;;  %21172 = vst [vmem:[#allocation174_spill] sm:$0xff] %v14494_v61  ;;  %v4061_v9 = vand.u32 4294901760, %v4060_v51  ;;  %v4070_v11 = vand.u32 4294901760, %v4069_v26  ;;  %v20028_v5 = vand.u32 4294901760, %v14454_v1  ;;  %v14518_v35 = vsub.f32 %v9902_v7, %v9902_v7 }
 0x23d   : > { %v14492_v53 = vadd.f32 %v14373_v55, %v2597_v60  ;;  %10217 = vmatprep.mubr.msk.f32.mxu1 %vm20021_vm3, %v20903_v8  ;;  %4056 = vmatprep.mubr.f32.mxu0 %v4055_v54  ;;  %v4075_v19 = vsub.f32 %v14393_v34, %v21173_v59  ;;  %v14511_v60 = vpop.permute.xlu0 %656  ;;  %v21176_v59 = vand.u32 4294901760, %v14431_v48  ;;  %v14540_v7 = vsub.f32 %v9901_v28, %v9901_v28 }
 0x23e   : > { %v14506_v25 = vpop.f32.mrf.mxu1  ;;  %v2605_v55 = vpop.f32.mrf.mxu0  ;;  %21174 = vst [vmem:[#allocation175_spill] sm:$0xff] %v14511_v60  ;;  %4937 = vmatprep.subr.mxu0 %v20567_v32  ;;  %5352 = vmatpush1.msra.mxu1 %v13049_v42  ;;  %21175 = vst [vmem:[#allocation176_spill] sm:$0xff] %v14518_v35  ;;  %vm20057_vm3 = vcmp.eq.s32.totalorder %v20909_v45, %v14511_v60  ;;  %v4090_v28 = vsub.f32 %v14454_v1, %v20028_v5  ;;  %v21181_v31 = vand.u32 4294901760, %v14477_v0 }
 0x23f   : > { %21171 = vst [vmem:[#allocation173_spill] sm:$0xff] %v14492_v53  ;;  %v2606_v3 = vadd.f32 %v2605_v55, %v13214_v29  ;;  %4940 = vmatpush1.msra.mxu0 %v13080_v40  ;;  %v4084_v53 = vsub.f32 %v14431_v48, %v21176_v59  ;;  %5353 = vmatprep.subr.mxu1 %v20567_v32  ;;  %v9904_v29 = vsel %vm20047_vm9, 1.0, %v20567_v32  ;;  %21178 = vst [vmem:[#allocation178_spill] sm:$0xff] %v14540_v7 }
 0x240   : > { %v3056_v54 = vpop.f32.mrf.mxu1  ;;  %v2607_v62 = vpop.f32.mrf.mxu0  ;;  %10218 = vmatmul.mubr.msk.f32.gmra.mxu1 %vm20022_vm1, %v20903_v8  ;;  %4062 = vmatmul.mubr.f32.gmra.mxu0 %v4061_v9  ;;  %v4076_v59 = vand.u32 4294901760, %v4075_v19  ;;  %vm20055_vm1 = vcmp.eq.s32.totalorder %v20904_v57, %v14511_v60  ;;  %v4091_v5 = vand.u32 4294901760, %v4090_v28  ;;  %v21189_v1 = vand.u32 4294901760, %v14518_v35  ;;  %v21212_v60 = vld [vmem:[#allocation23_spill] sm:$0xff] }
 0x241   : > { %v9903_v62 = vsel %vm20185_vm0, 1.0, %v20567_v32  ;;  %v14538_v26 = vadd.f32 %v14416_v50, %v2606_v3  ;;  %10219 = vmatprep.mubr.msk.f32.mxu1 %vm20026_vm7, %v20903_v8  ;;  %4071 = vmatprep.mubr.f32.mxu0 %v4070_v11  ;;  %v14552_v50 = vpop.permute.xlu1 %659  ;;  %v14560_v11 = vsub.f32 %v9904_v29, %v9904_v29  ;;  %v20040_v3 = vand.u32 4294901760, %v14494_v61 }
 0x242   : > { %v14548_v55 = vpop.f32.mrf.mxu1  ;;  %v2614_v54 = vpop.f32.mrf.mxu0  ;;  %21179 = vst [vmem:[#allocation179_spill] sm:$0xff] %v14552_v50  ;;  %4941 = vmatprep.subr.mxu0 %v20567_v32  ;;  %5355 = vmatpush1.msra.mxu1 %v13082_v41  ;;  %v4085_v51 = vand.u32 4294901760, %v4084_v53  ;;  %vm20065_vm7 = vcmp.eq.s32.totalorder %v20909_v45, %v14552_v50 }
 0x243   : > { %21177 = vst [vmem:[#allocation177_spill] sm:$0xff] %v14538_v26  ;;  %v2615_v9 = vadd.f32 %v2614_v54, %v13251_v52  ;;  %21180 = vst [vmem:[#allocation180_spill] sm:$0xff] %v14560_v11  ;;  %4944 = vmatpush1.msra.mxu0 %v13117_v56  ;;  %v4099_v26 = vsub.f32 %v14477_v0, %v21181_v31  ;;  %5356 = vmatprep.subr.mxu1 %v20567_v32  ;;  %v9905_v31 = vsel %vm20057_vm3, 1.0, %v20567_v32  ;;  %v21186_v52 = vld [vmem:[#allocation77_spill] sm:$0xff] }
 0x244   : > { %v3067_v19 = vpop.f32.mrf.mxu1  ;;  %v2616_v40 = vpop.f32.mrf.mxu0  ;;  %v14569_v54 = vsub.f32 %v9903_v62, %v9903_v62  ;;  %10220 = vmatmul.mubr.msk.f32.gmra.mxu1 %vm20027_vm15, %v20903_v8  ;;  %4077 = vmatmul.mubr.f32.gmra.mxu0 %v4076_v59  ;;  %vm20064_vm15 = vcmp.eq.s32.totalorder %v20904_v57, %v14552_v50  ;;  %v14613_v28 = vsub.f32 %v9905_v31, %v9905_v31  ;;  %v21195_v56 = vld [vmem:[#allocation81_spill] sm:$0xff]  ;;  %v21219_v50 = vld [vmem:[#allocation24_spill] sm:$0xff] }
 0x245   : > { %v9906_v40 = vsel %vm20055_vm1, 1.0, %v20567_v32  ;;  %v14580_v53 = vadd.f32 %v14462_v39, %v2615_v9  ;;  %10221 = vmatprep.mubr.msk.f32.mxu1 %vm20038_vm14, %v20903_v8  ;;  %4086 = vmatprep.mubr.f32.mxu0 %v4085_v51  ;;  %v14597_v59 = vpop.permute.xlu0 %662  ;;  %v21185_v9 = vld [vmem:[#allocation21_spill] sm:$0xff]  ;;  %v4105_v51 = vsub.f32 %v14494_v61, %v20040_v3 }
 0x246   : > { %21182 = vst [vmem:[#allocation181_spill] sm:$0xff] %v14569_v54  ;;  %v14592_v29 = vpop.f32.mrf.mxu1  ;;  %v2623_v62 = vpop.f32.mrf.mxu0  ;;  %21184 = vst [vmem:[#allocation183_spill] sm:$0xff] %v14597_v59  ;;  %4945 = vmatprep.subr.mxu0 %v20567_v32  ;;  %5358 = vmatpush1.msra.mxu1 %v21186_v52  ;;  %v14607_v0 = vsub.f32 %v9906_v40, %v9906_v40  ;;  %vm20076_vm14 = vcmp.eq.s32.totalorder %v20909_v45, %v14597_v59  ;;  %v20056_v2 = vand.u32 4294901760, %v14569_v54 }
 0x247   : > { %21183 = vst [vmem:[#allocation182_spill] sm:$0xff] %v14580_v53  ;;  %v2624_v19 = vadd.f32 %v2623_v62, %v21185_v9  ;;  %4948 = vmatpush1.msra.mxu0 %v21187_v24  ;;  %v4100_v53 = vand.u32 4294901760, %v4099_v26  ;;  %v4114_v62 = vsub.f32 %v14518_v35, %v21189_v1  ;;  %5359 = vmatprep.subr.mxu1 %v20567_v32  ;;  %21190 = vst [vmem:[#allocation184_spill] sm:$0xff] %v14613_v28  ;;  %v14615_v9 = vpop.permute.xlu1 %665 }
 0x248   : > { %v3078_v39 = vpop.f32.mrf.mxu1  ;;  %v2625_v41 = vpop.f32.mrf.mxu0  ;;  %21188 = vst [vmem:[#allocation21_spill] sm:$0xff] %v14607_v0  ;;  %21191 = vst [vmem:[#allocation185_spill] sm:$0xff] %v14615_v9  ;;  %10222 = vmatmul.mubr.msk.f32.gmra.mxu1 %vm20039_vm11, %v20903_v8  ;;  %4092 = vmatmul.mubr.f32.gmra.mxu0 %v4091_v5  ;;  %v9907_v1 = vsel %vm20065_vm7, 1.0, %v20567_v32  ;;  %vm20075_vm11 = vcmp.eq.s32.totalorder %v20904_v57, %v14597_v59  ;;  %v4106_v3 = vand.u32 4294901760, %v4105_v51  ;;  %v21196_v24 = vand.u32 4294901760, %v14560_v11 }
 0x249   : > { %v9908_v41 = vsel %vm20064_vm15, 1.0, %v20567_v32  ;;  %v14626_v26 = vadd.f32 %v14506_v25, %v2624_v19  ;;  %10223 = vmatprep.mubr.msk.f32.mxu1 %vm20047_vm9, %v20903_v8  ;;  %4101 = vmatprep.mubr.f32.mxu0 %v4100_v53  ;;  %v21193_v25 = vand.u32 4294901760, %v14540_v7  ;;  %v21194_v39 = vld [vmem:[#allocation28_spill] sm:$0xff]  ;;  %vm20081_vm9 = vcmp.eq.s32.totalorder %v20904_v57, %v14615_v9 }
 0x24a   : > { %v14638_v5 = vpop.f32.mrf.mxu1  ;;  %v2632_v40 = vpop.f32.mrf.mxu0  ;;  %4949 = vmatprep.subr.mxu0 %v20567_v32  ;;  %5361 = vmatpush1.msra.mxu1 %v21195_v56  ;;  %v4129_v53 = vsub.f32 %v14560_v11, %v21196_v24  ;;  %v14653_v35 = vsub.f32 %v9908_v41, %v9908_v41  ;;  %v9910_v24 = vsel %vm20075_vm11, 1.0, %v20567_v32  ;;  %vm20082_vm10 = vcmp.eq.s32.totalorder %v20909_v45, %v14615_v9  ;;  %v21233_v9 = vld [vmem:[#allocation102_spill] sm:$0xff] }
 0x24b   : > { %21192 = vst [vmem:[#allocation186_spill] sm:$0xff] %v14626_v26  ;;  %v4120_v31 = vsub.f32 %v14540_v7, %v21193_v25  ;;  %v2633_v19 = vadd.f32 %v2632_v40, %v21194_v39  ;;  %v21197_v26 = vld [vmem:[#allocation86_spill] sm:$0xff]  ;;  %v4115_v25 = vand.u32 4294901760, %v4114_v62  ;;  %5362 = vmatprep.subr.mxu1 %v20567_v32  ;;  %v14684_v41 = vpop.permute.xlu0 %668  ;;  %v20066_v12 = vand.u32 4294901760, %v14613_v28 }
 0x24c   : > { %4952 = vmatpush1.msra.mxu0 %v21197_v26  ;;  %v3089_v52 = vpop.f32.mrf.mxu1  ;;  %v2634_v7 = vpop.f32.mrf.mxu0  ;;  %21198 = vst [vmem:[#allocation28_spill] sm:$0xff] %v14653_v35  ;;  %10224 = vmatmul.mubr.msk.f32.gmra.mxu1 %vm20185_vm0, %v20903_v8  ;;  %21201 = vst [vmem:[#allocation189_spill] sm:$0xff] %v14684_v41  ;;  %v21203_v40 = vld [vmem:[#allocation82_spill] sm:$0xff]  ;;  %v4135_v26 = vsub.f32 %v14569_v54, %v20056_v2  ;;  %v21206_v11 = vand.u32 4294901760, %v14607_v0 }
 0x24d   : > { %4107 = vmatmul.mubr.f32.gmra.mxu0 %v4106_v3  ;;  %v14668_v7 = vadd.f32 %v14548_v55, %v2633_v19  ;;  %v14670_v52 = vsub.f32 %v9907_v1, %v9907_v1  ;;  %v9909_v3 = vsel %vm20076_vm14, 1.0, %v20567_v32  ;;  %10225 = vmatprep.mubr.msk.f32.mxu1 %vm20055_vm1, %v20903_v8  ;;  %v4121_v62 = vand.u32 4294901760, %v4120_v31  ;;  %v21202_v1 = vld [vmem:[#allocation100_spill] sm:$0xff] }
 0x24e   : > { %4116 = vmatprep.mubr.f32.mxu0 %v4115_v25  ;;  %v14682_v51 = vpop.f32.mrf.mxu1  ;;  %v2641_v55 = vpop.f32.mrf.mxu0  ;;  %4953 = vmatprep.subr.mxu0 %v20567_v32  ;;  %v4130_v19 = vand.u32 4294901760, %v4129_v53  ;;  %v21204_v25 = vld [vmem:[#allocation18_spill] sm:$0xff]  ;;  %v14694_v31 = vsub.f32 %v9910_v24, %v9910_v24  ;;  %v4144_v61 = vsub.f32 %v14607_v0, %v21206_v11  ;;  %v9912_v53 = vsel %vm20081_vm9, 1.0, %v20567_v32 }
 0x24f   : > { %21199 = vst [vmem:[#allocation187_spill] sm:$0xff] %v14668_v7  ;;  %21200 = vst [vmem:[#allocation188_spill] sm:$0xff] %v14670_v52  ;;  %v2642_v39 = vadd.f32 %v2641_v55, %v21202_v1  ;;  %5364 = vmatpush1.msra.mxu1 %v21203_v40  ;;  %4956 = vmatpush1.msra.mxu0 %v21204_v25  ;;  %v14716_v24 = vsub.f32 %v9909_v3, %v9909_v3  ;;  %v21209_v3 = vld [vmem:[#allocation34_spill] sm:$0xff]  ;;  %v21210_v55 = vld [vmem:[#allocation20_spill] sm:$0xff]  ;;  %v21213_v0 = vand.u32 4294901760, %v14653_v35 }
 0x250   : > { %v3100_v7 = vpop.f32.mrf.mxu1  ;;  %v2643_v56 = vpop.f32.mrf.mxu0  ;;  %21205 = vst [vmem:[#allocation100_spill] sm:$0xff] %v14694_v31  ;;  %5365 = vmatprep.subr.mxu1 %v20567_v32  ;;  %10226 = vmatmul.mubr.msk.f32.gmra.mxu1 %vm20057_vm3, %v20903_v8  ;;  %vm20089_vm1 = vcmp.eq.s32.totalorder %v20909_v45, %v14684_v41  ;;  %vm20090_vm3 = vcmp.eq.s32.totalorder %v20904_v57, %v14684_v41 }
 0x251   : > { %v9911_v56 = vsel %vm20082_vm10, 1.0, %v20567_v32  ;;  %4122 = vmatmul.mubr.f32.gmra.mxu0 %v4121_v62  ;;  %v14714_v11 = vadd.f32 %v14592_v29, %v2642_v39  ;;  %10227 = vmatprep.mubr.msk.f32.mxu1 %vm20064_vm15, %v20903_v8  ;;  %v14729_v29 = vpop.permute.xlu1 %671  ;;  %v4136_v39 = vand.u32 4294901760, %v4135_v26  ;;  %v14737_v25 = vsub.f32 %v9912_v53, %v9912_v53  ;;  %v21218_v26 = vld [vmem:[#allocation89_spill] sm:$0xff] }
 0x252   : > { %4131 = vmatprep.mubr.f32.mxu0 %v4130_v19  ;;  %v14724_v7 = vpop.f32.mrf.mxu1  ;;  %v2650_v1 = vpop.f32.mrf.mxu0  ;;  %21208 = vst [vmem:[#allocation191_spill] sm:$0xff] %v14729_v29  ;;  %4957 = vmatprep.subr.mxu0 %v20567_v32  ;;  %v4150_v19 = vsub.f32 %v14613_v28, %v20066_v12  ;;  %v4159_v54 = vsub.f32 %v14653_v35, %v21213_v0  ;;  %v9913_v0 = vsel %vm20089_vm1, 1.0, %v20567_v32  ;;  %v21220_v35 = vand.u32 4294901760, %v14694_v31 }
 0x253   : > { %21207 = vst [vmem:[#allocation190_spill] sm:$0xff] %v14714_v11  ;;  %v2651_v62 = vadd.f32 %v2650_v1, %v21209_v3  ;;  %5367 = vmatpush1.msra.mxu1 %v21210_v55  ;;  %21211 = vst [vmem:[#allocation34_spill] sm:$0xff] %v14737_v25  ;;  %4960 = vmatpush1.msra.mxu0 %v21212_v60  ;;  %v4145_v11 = vand.u32 4294901760, %v4144_v61  ;;  %v14745_v1 = vsub.f32 %v9911_v56, %v9911_v56  ;;  %v14775_v3 = vpop.permute.xlu0 %674 }
 0x254   : > { %v3111_v2 = vpop.f32.mrf.mxu1  ;;  %v2652_v40 = vpop.f32.mrf.mxu0  ;;  %5368 = vmatprep.subr.mxu1 %v20567_v32  ;;  %10228 = vmatmul.mubr.msk.f32.gmra.mxu1 %vm20065_vm7, %v20903_v8  ;;  %vm20096_vm15 = vcmp.eq.s32.totalorder %v20909_v45, %v14729_v29  ;;  %vm20095_vm7 = vcmp.eq.s32.totalorder %v20904_v57, %v14729_v29  ;;  %21216 = vst [vmem:[#allocation193_spill] sm:$0xff] %v14775_v3  ;;  %v4151_v12 = vand.u32 4294901760, %v4150_v19  ;;  %v20083_v60 = vand.u32 4294901760, %v14737_v25 }
 0x255   : > { %4137 = vmatmul.mubr.f32.gmra.mxu0 %v4136_v39  ;;  %v9914_v2 = vsel %vm20090_vm3, 1.0, %v20567_v32  ;;  %v14756_v61 = vadd.f32 %v14638_v5, %v2651_v62  ;;  %10229 = vmatprep.mubr.msk.f32.mxu1 %vm20075_vm11, %v20903_v8  ;;  %v21215_v5 = vand.u32 4294901760, %v14670_v52  ;;  %v21217_v62 = vld [vmem:[#allocation33_spill] sm:$0xff]  ;;  %v4174_v28 = vsub.f32 %v14694_v31, %v21220_v35 }
 0x256   : > { %4146 = vmatprep.mubr.f32.mxu0 %v4145_v11  ;;  %v14768_v40 = vpop.f32.mrf.mxu1  ;;  %v2659_v53 = vpop.f32.mrf.mxu0  ;;  %4961 = vmatprep.subr.mxu0 %v20567_v32  ;;  %v20084_v11 = vand.u32 4294901760, %v14716_v24  ;;  %v14783_v55 = vsub.f32 %v9914_v2, %v9914_v2  ;;  %v9915_v19 = vsel %vm20096_vm15, 1.0, %v20567_v32  ;;  %vm20106_vm11 = vcmp.eq.s32.totalorder %v20909_v45, %v14775_v3 }
 0x257   : > { %21214 = vst [vmem:[#allocation192_spill] sm:$0xff] %v14756_v61  ;;  %v4165_v56 = vsub.f32 %v14670_v52, %v21215_v5  ;;  %v2660_v39 = vadd.f32 %v2659_v53, %v21217_v62  ;;  %5370 = vmatpush1.msra.mxu1 %v21218_v26  ;;  %4964 = vmatpush1.msra.mxu0 %v21219_v50  ;;  %v4160_v5 = vand.u32 4294901760, %v4159_v54  ;;  %v9916_v54 = vsel %vm20095_vm7, 1.0, %v20567_v32  ;;  %v21225_v62 = vld [vmem:[#allocation96_spill] sm:$0xff]  ;;  %v21226_v50 = vld [vmem:[#allocation27_spill] sm:$0xff] }
 0x258   : > { %v3122_v61 = vpop.f32.mrf.mxu1  ;;  %v2661_v52 = vpop.f32.mrf.mxu0  ;;  %5371 = vmatprep.subr.mxu1 %v20567_v32  ;;  %10230 = vmatmul.mubr.msk.f32.gmra.mxu1 %vm20076_vm14, %v20903_v8  ;;  %vm20105_vm14 = vcmp.eq.s32.totalorder %v20904_v57, %v14775_v3  ;;  %v14829_v31 = vsub.f32 %v9916_v54, %v9916_v54 }
 0x259   : > { %4152 = vmatmul.mubr.f32.gmra.mxu0 %v4151_v12  ;;  %v14802_v35 = vadd.f32 %v14682_v51, %v2660_v39  ;;  %v14804_v52 = vsub.f32 %v9913_v0, %v9913_v0  ;;  %10231 = vmatprep.mubr.msk.f32.mxu1 %vm20081_vm9, %v20903_v8  ;;  %v4166_v61 = vand.u32 4294901760, %v4165_v56  ;;  %v14816_v51 = vpop.permute.xlu1 %677  ;;  %v21224_v0 = vld [vmem:[#allocation111_spill] sm:$0xff]  ;;  %v4180_v39 = vsub.f32 %v14716_v24, %v20084_v11 }
 0x25a   : > { %4161 = vmatprep.mubr.f32.mxu0 %v4160_v5  ;;  %v14812_v12 = vpop.f32.mrf.mxu1  ;;  %v2668_v2 = vpop.f32.mrf.mxu0  ;;  %21223 = vst [vmem:[#allocation195_spill] sm:$0xff] %v14816_v51  ;;  %4965 = vmatprep.subr.mxu0 %v20567_v32  ;;  %v4189_v5 = vsub.f32 %v14737_v25, %v20083_v60  ;;  %v20091_v56 = vand.u32 4294901760, %v14745_v1  ;;  %21227 = vst [vmem:[#allocation111_spill] sm:$0xff] %v14829_v31  ;;  %vm20115_vm9 = vcmp.eq.s32.totalorder %v20909_v45, %v14816_v51  ;;  %v21231_v60 = vld [vmem:[#allocation98_spill] sm:$0xff] }
 0x25b   : > { %21221 = vst [vmem:[#allocation33_spill] sm:$0xff] %v14802_v35  ;;  %21222 = vst [vmem:[#allocation194_spill] sm:$0xff] %v14804_v52  ;;  %v2669_v53 = vadd.f32 %v2668_v2, %v21224_v0  ;;  %5373 = vmatpush1.msra.mxu1 %v21225_v62  ;;  %4968 = vmatpush1.msra.mxu0 %v21226_v50  ;;  %v4175_v35 = vand.u32 4294901760, %v4174_v28  ;;  %v9918_v0 = vsel %vm20105_vm14, 1.0, %v20567_v32  ;;  %v21232_v2 = vld [vmem:[#allocation39_spill] sm:$0xff]  ;;  %v21235_v25 = vand.u32 4294901760, %v14783_v55 }
 0x25c   : > { %v3133_v59 = vpop.f32.mrf.mxu1  ;;  %v2670_v26 = vpop.f32.mrf.mxu0  ;;  %5374 = vmatprep.subr.mxu1 %v20567_v32  ;;  %10232 = vmatmul.mubr.msk.f32.gmra.mxu1 %vm20082_vm10, %v20903_v8  ;;  %v14844_v28 = vsub.f32 %v9915_v19, %v9915_v19  ;;  %vm20114_vm10 = vcmp.eq.s32.totalorder %v20904_v57, %v14816_v51  ;;  %v4195_v11 = vsub.f32 %v14745_v1, %v20091_v56  ;;  %v21240_v41 = vand.u32 4294901760, %v14829_v31  ;;  %v21259_v51 = vld [vmem:[#allocation44_spill] sm:$0xff] }
 0x25d   : > { %4167 = vmatmul.mubr.f32.gmra.mxu0 %v4166_v61  ;;  %v14842_v59 = vadd.f32 %v14724_v7, %v2669_v53  ;;  %v9917_v26 = vsel %vm20106_vm11, 1.0, %v20567_v32  ;;  %10233 = vmatprep.mubr.msk.f32.mxu1 %vm20090_vm3, %v20903_v8  ;;  %v14860_v7 = vpop.permute.xlu0 %680  ;;  %v4181_v61 = vand.u32 4294901760, %v4180_v39  ;;  %v4190_v53 = vand.u32 4294901760, %v4189_v5 }
 0x25e   : > { %21229 = vst [vmem:[#allocation197_spill] sm:$0xff] %v14844_v28  ;;  %4176 = vmatprep.mubr.f32.mxu0 %v4175_v35  ;;  %v14856_v54 = vpop.f32.mrf.mxu1  ;;  %21230 = vst [vmem:[#allocation198_spill] sm:$0xff] %v14860_v7  ;;  %4969 = vmatprep.subr.mxu0 %v20567_v32  ;;  %v2677_v19 = vpop.f32.mrf.mxu0  ;;  %v20094_v35 = vand.u32 4294901760, %v14804_v52  ;;  %v14870_v62 = vsub.f32 %v9918_v0, %v9918_v0  ;;  %v4204_v39 = vsub.f32 %v14783_v55, %v21235_v25 }
 0x25f   : > { %21228 = vst [vmem:[#allocation196_spill] sm:$0xff] %v14842_v59  ;;  %5376 = vmatpush1.msra.mxu1 %v21231_v60  ;;  %v2678_v50 = vadd.f32 %v2677_v19, %v21232_v2  ;;  %4972 = vmatpush1.msra.mxu0 %v21233_v9  ;;  %v9920_v0 = vsel %vm20114_vm10, 1.0, %v20567_v32  ;;  %v9919_v25 = vsel %vm20115_vm9, 1.0, %v20567_v32  ;;  %vm20124_vm3 = vcmp.eq.s32.totalorder %v20909_v45, %v14860_v7 }
 0x260   : > { %v3144_v59 = vpop.f32.mrf.mxu1  ;;  %21234 = vst [vmem:[#allocation39_spill] sm:$0xff] %v14870_v62  ;;  %5377 = vmatprep.subr.mxu1 %v20567_v32  ;;  %10234 = vmatmul.mubr.msk.f32.gmra.mxu1 %vm20089_vm1, %v20903_v8  ;;  %v2679_v2 = vpop.f32.mrf.mxu0  ;;  %vm20123_vm1 = vcmp.eq.s32.totalorder %v20904_v57, %v14860_v7  ;;  %v4205_v5 = vand.u32 4294901760, %v4204_v39  ;;  %v14913_v9 = vsub.f32 %v9920_v0, %v9920_v0  ;;  %v21266_v7 = vld [vmem:[#allocation48_spill] sm:$0xff] }
 0x261   : > { %4182 = vmatmul.mubr.f32.gmra.mxu0 %v4181_v61  ;;  %v14889_v59 = vsub.f32 %v9917_v26, %v9917_v26  ;;  %10235 = vmatprep.mubr.msk.f32.mxu1 %vm20095_vm7, %v20903_v8  ;;  %v14898_v19 = vadd.f32 %v14768_v40, %v2678_v50  ;;  %v14900_v61 = vpop.permute.xlu1 %683  ;;  %v4196_v26 = vand.u32 4294901760, %v4195_v11  ;;  %v21238_v40 = vld [vmem:[#allocation106_spill] sm:$0xff]  ;;  %v9922_v39 = vsel %vm20123_vm1, 1.0, %v20567_v32 }
 0x262   : > { %4191 = vmatprep.mubr.f32.mxu0 %v4190_v53  ;;  %21237 = vst [vmem:[#allocation200_spill] sm:$0xff] %v14900_v61  ;;  %v14904_v2 = vpop.f32.mrf.mxu1  ;;  %4973 = vmatprep.subr.mxu0 %v20567_v32  ;;  %v4210_v53 = vsub.f32 %v14804_v52, %v20094_v35  ;;  %21239 = vst [vmem:[#allocation201_spill] sm:$0xff] %v14913_v9  ;;  %v21241_v35 = vld [vmem:[#allocation46_spill] sm:$0xff]  ;;  %v14929_v0 = vsub.f32 %v9919_v25, %v9919_v25  ;;  %v14943_v25 = vpop.permute.xlu0 %686 }
 0x263   : > { %21236 = vst [vmem:[#allocation199_spill] sm:$0xff] %v14898_v19  ;;  %5379 = vmatpush1.msra.mxu1 %v13378_v4  ;;  %v2686_v50 = vpop.f32.mrf.mxu0  ;;  %4976 = vmatpush1.msra.mxu0 %v21238_v40  ;;  %v4219_v19 = vsub.f32 %v14829_v31, %v21240_v41  ;;  %vm20131_vm7 = vcmp.eq.s32.totalorder %v20909_v45, %v14900_v61  ;;  %v9921_v41 = vsel %vm20124_vm3, 1.0, %v20567_v32  ;;  %21242 = vst [vmem:[#allocation46_spill] sm:$0xff] %v14943_v25  ;;  %v21246_v31 = vld [vmem:[#allocation35_spill] sm:$0xff] }
 0x264   : > { %5380 = vmatprep.subr.mxu1 %v20567_v32  ;;  %10236 = vmatmul.mubr.msk.f32.gmra.mxu1 %vm20096_vm15, %v20903_v8  ;;  %v2687_v56 = vadd.f32 %v2686_v50, %v21241_v35  ;;  %v3155_v40 = vpop.f32.mrf.mxu1  ;;  %vm20130_vm15 = vcmp.eq.s32.totalorder %v20904_v57, %v14900_v61  ;;  %v21243_v50 = vld [vmem:[#allocation36_spill] sm:$0xff]  ;;  %v20113_v29 = vand.u32 4294901760, %v14889_v59  ;;  %v14957_v60 = vsub.f32 %v9922_v39, %v9922_v39  ;;  %v21273_v61 = vld [vmem:[#allocation59_spill] sm:$0xff] }
 0x265   : > { %4197 = vmatmul.mubr.f32.gmra.mxu0 %v4196_v26  ;;  %10237 = vmatprep.mubr.msk.f32.mxu1 %vm20105_vm14, %v20903_v8  ;;  %v2688_v35 = vpop.f32.mrf.mxu0  ;;  %v4211_v26 = vand.u32 4294901760, %v4210_v53  ;;  %v21244_v40 = vand.u32 4294901760, %v14844_v28  ;;  %v4220_v52 = vand.u32 4294901760, %v4219_v19  ;;  %v21248_v53 = vand.u32 4294901760, %v14870_v62 }
 0x266   : > { %4206 = vmatprep.mubr.f32.mxu0 %v4205_v5  ;;  %4977 = vmatprep.subr.mxu0 %v20567_v32  ;;  %v14952_v4 = vadd.f32 %v14812_v12, %v2687_v56  ;;  %21247 = vst [vmem:[#allocation203_spill] sm:$0xff] %v14957_v60  ;;  %v21249_v12 = vld [vmem:[#allocation49_spill] sm:$0xff]  ;;  %v9924_v19 = vsel %vm20130_vm15, 1.0, %v20567_v32  ;;  %v9923_v39 = vsel %vm20131_vm7, 1.0, %v20567_v32  ;;  %vm20140_vm14 = vcmp.eq.s32.totalorder %v20909_v45, %v14943_v25 }
 0x267   : > { %5382 = vmatpush1.msra.mxu1 %v21243_v50  ;;  %v4225_v11 = vsub.f32 %v14844_v28, %v21244_v40  ;;  %v14954_v5 = vpop.f32.mrf.mxu1  ;;  %v2695_v35 = vpop.f32.mrf.mxu0  ;;  %4980 = vmatpush1.msra.mxu0 %v21246_v31  ;;  %v4234_v50 = vsub.f32 %v14870_v62, %v21248_v53  ;;  %v14977_v53 = vsub.f32 %v9921_v41, %v9921_v41  ;;  %v21251_v40 = vld [vmem:[#allocation107_spill] sm:$0xff]  ;;  %v20122_v3 = vand.u32 4294901760, %v14929_v0  ;;  %v21253_v62 = vld [vmem:[#allocation40_spill] sm:$0xff] }
 0x268   : > { %21245 = vst [vmem:[#allocation202_spill] sm:$0xff] %v14952_v4  ;;  %5383 = vmatprep.subr.mxu1 %v20567_v32  ;;  %10238 = vmatmul.mubr.msk.f32.gmra.mxu1 %vm20106_vm11, %v20903_v8  ;;  %v2696_v56 = vadd.f32 %v2695_v35, %v21249_v12  ;;  %vm20139_vm11 = vcmp.eq.s32.totalorder %v20904_v57, %v14943_v25  ;;  %v14987_v12 = vpop.permute.xlu1 %689  ;;  %v21279_v25 = vld [vmem:[#allocation66_spill] sm:$0xff] }
 0x269   : > { %4212 = vmatmul.mubr.f32.gmra.mxu0 %v4211_v26  ;;  %10239 = vmatprep.mubr.msk.f32.mxu1 %vm20114_vm10, %v20903_v8  ;;  %v3644_v26 = vpop.f32.mrf.mxu1  ;;  %v2697_v35 = vpop.f32.mrf.mxu0  ;;  %21250 = vst [vmem:[#allocation49_spill] sm:$0xff] %v14987_v12  ;;  %v4226_v41 = vand.u32 4294901760, %v4225_v11  ;;  %v4240_v31 = vsub.f32 %v14889_v59, %v20113_v29  ;;  %v4235_v4 = vand.u32 4294901760, %v4234_v50  ;;  %v15001_v28 = vsub.f32 %v9924_v19, %v9924_v19 }
 0x26a   : > { %4221 = vmatprep.mubr.f32.mxu0 %v4220_v52  ;;  %4981 = vmatprep.subr.mxu0 %v20567_v32  ;;  %v14996_v26 = vadd.f32 %v14856_v54, %v2696_v56  ;;  %v21255_v11 = vand.u32 4294901760, %v14913_v9  ;;  %v21256_v54 = vld [vmem:[#allocation64_spill] sm:$0xff]  ;;  %v9926_v50 = vsel %vm20139_vm11, 1.0, %v20567_v32  ;;  %v15017_v19 = vsub.f32 %v9923_v39, %v9923_v39  ;;  %v15031_v39 = vpop.permute.xlu0 %692 }
 0x26b   : > { %5385 = vmatpush1.msra.mxu1 %v21251_v40  ;;  %v14998_v52 = vpop.f32.mrf.mxu1  ;;  %v2704_v35 = vpop.f32.mrf.mxu0  ;;  %4984 = vmatpush1.msra.mxu0 %v21253_v62  ;;  %21254 = vst [vmem:[#allocation205_spill] sm:$0xff] %v15001_v28  ;;  %vm20149_vm10 = vcmp.eq.s32.totalorder %v20909_v45, %v14987_v12  ;;  %21257 = vst [vmem:[#allocation64_spill] sm:$0xff] %v15031_v39  ;;  %v4255_v29 = vsub.f32 %v14929_v0, %v20122_v3  ;;  %v20129_v62 = vand.u32 4294901760, %v14977_v53 }
 0x26c   : > { %21252 = vst [vmem:[#allocation204_spill] sm:$0xff] %v14996_v26  ;;  %v4249_v40 = vsub.f32 %v14913_v9, %v21255_v11  ;;  %5386 = vmatprep.subr.mxu1 %v20567_v32  ;;  %10240 = vmatmul.mubr.msk.f32.gmra.mxu1 %vm20115_vm9, %v20903_v8  ;;  %v2705_v56 = vadd.f32 %v2704_v35, %v21256_v54  ;;  %v9925_v11 = vsel %vm20140_vm14, 1.0, %v20567_v32  ;;  %v4241_v54 = vand.u32 4294901760, %v4240_v31 }
 0x26d   : > { %4227 = vmatmul.mubr.f32.gmra.mxu0 %v4226_v41  ;;  %10241 = vmatprep.mubr.msk.f32.mxu1 %vm20123_vm1, %v20903_v8  ;;  %v3651_v41 = vpop.f32.mrf.mxu1  ;;  %v2706_v35 = vpop.f32.mrf.mxu0  ;;  %vm20148_vm9 = vcmp.eq.s32.totalorder %v20904_v57, %v14987_v12  ;;  %v15045_v26 = vsub.f32 %v9926_v50, %v9926_v50  ;;  %v21261_v31 = vand.u32 4294901760, %v14957_v60  ;;  %v9927_v50 = vsel %vm20149_vm10, 1.0, %v20567_v32 }
 0x26e   : > { %4236 = vmatprep.mubr.f32.mxu0 %v4235_v4  ;;  %4985 = vmatprep.subr.mxu0 %v20567_v32  ;;  %v15040_v41 = vadd.f32 %v14904_v2, %v2705_v56  ;;  %v4250_v9 = vand.u32 4294901760, %v4249_v40  ;;  %v21262_v2 = vld [vmem:[#allocation76_spill] sm:$0xff]  ;;  %v9928_v40 = vsel %vm20148_vm9, 1.0, %v20567_v32  ;;  %vm20160_vm1 = vcmp.eq.s32.totalorder %v20909_v45, %v15031_v39 }
 0x26f   : > { %5388 = vmatpush2.msra.mxu1 %v13480_v30  ;;  %v15042_v4 = vpop.f32.mrf.mxu1  ;;  %v3321_v35 = vpop.f32.mrf.mxu0  ;;  %4988 = vmatpush2.msra.mxu0 %v21259_v51  ;;  %21260 = vst [vmem:[#allocation207_spill] sm:$0xff] %v15045_v26  ;;  %v4264_v30 = vsub.f32 %v14957_v60, %v21261_v31  ;;  %v15065_v31 = vsub.f32 %v9925_v11, %v9925_v11  ;;  %v4256_v11 = vand.u32 4294901760, %v4255_v29 }
 0x270   : > { %21258 = vst [vmem:[#allocation206_spill] sm:$0xff] %v15040_v41  ;;  %5389 = vmatprep.subr.mxu1 %v20567_v32  ;;  %10242 = vmatmul.mubr.msk.f32.gmra.mxu1 %vm20124_vm3, %v20903_v8  ;;  %v3322_v56 = vadd.f32 %v3321_v35, %v21262_v2  ;;  %vm20159_vm3 = vcmp.eq.s32.totalorder %v20904_v57, %v15031_v39  ;;  %v15075_v2 = vpop.permute.xlu1 %695 }
 0x271   : > { %4242 = vmatmul.mubr.f32.gmra.mxu0 %v4241_v54  ;;  %21263 = vst [vmem:[#allocation76_spill] sm:$0xff] %v15065_v31  ;;  %10243 = vmatprep.mubr.msk.f32.mxu1 %vm20130_vm15, %v20903_v8  ;;  %v3658_v54 = vpop.f32.mrf.mxu1  ;;  %v3323_v35 = vpop.f32.mrf.mxu0  ;;  %21264 = vst [vmem:[#allocation208_spill] sm:$0xff] %v15075_v2  ;;  %v4270_v51 = vsub.f32 %v14977_v53, %v20129_v62  ;;  %v4265_v60 = vand.u32 4294901760, %v4264_v30  ;;  %v15089_v41 = vsub.f32 %v9928_v40, %v9928_v40  ;;  %v21269_v62 = vld [vmem:[#allocation88_spill] sm:$0xff] }
 0x272   : > { %4251 = vmatprep.mubr.f32.mxu0 %v4250_v9  ;;  %v15078_v3 = vadd.f32 %v14954_v5, %v3322_v56  ;;  %4989 = vmatprep.subr.mxu0 %v20567_v32  ;;  %v21268_v5 = vand.u32 4294901760, %v15001_v28  ;;  %v9930_v30 = vsel %vm20159_vm3, 1.0, %v20567_v32  ;;  %v15105_v40 = vsub.f32 %v9927_v50, %v9927_v50  ;;  %v15119_v50 = vpop.permute.xlu0 %698 }
 0x273   : > { %5391 = vmatpush2.msra.mxu1 %v13526_v10  ;;  %v15086_v54 = vpop.f32.mrf.mxu1  ;;  %v3328_v35 = vpop.f32.mrf.mxu0  ;;  %4992 = vmatpush2.msra.mxu0 %v21266_v7  ;;  %21267 = vst [vmem:[#allocation210_spill] sm:$0xff] %v15089_v41  ;;  %vm20166_vm15 = vcmp.eq.s32.totalorder %v20909_v45, %v15075_v2  ;;  %21270 = vst [vmem:[#allocation88_spill] sm:$0xff] %v15119_v50  ;;  %v4271_v56 = vand.u32 4294901760, %v4270_v51 }
 0x274   : > { %21265 = vst [vmem:[#allocation209_spill] sm:$0xff] %v15078_v3  ;;  %v4279_v29 = vsub.f32 %v15001_v28, %v21268_v5  ;;  %5392 = vmatprep.subr.mxu1 %v20567_v32  ;;  %10244 = vmatmul.mubr.msk.f32.gmra.mxu1 %vm20131_vm7, %v20903_v8  ;;  %v3329_v9 = vadd.f32 %v3328_v35, %v21269_v62  ;;  %v9929_v5 = vsel %vm20160_vm1, 1.0, %v20567_v32  ;;  %v21272_v3 = vand.u32 4294901760, %v15017_v19 }
 0x275   : > { %4257 = vmatmul.mubr.f32.gmra.mxu0 %v4256_v11  ;;  %10245 = vmatprep.mubr.msk.f32.mxu1 %vm20139_vm11, %v20903_v8  ;;  %v3665_v62 = vpop.f32.mrf.mxu1  ;;  %v3330_v11 = vpop.f32.mrf.mxu0  ;;  %vm20165_vm7 = vcmp.eq.s32.totalorder %v20904_v57, %v15075_v2  ;;  %v15133_v28 = vsub.f32 %v9930_v30, %v9930_v30  ;;  %v9931_v30 = vsel %vm20166_vm15, 1.0, %v20567_v32  ;;  %vm20174_vm11 = vcmp.eq.s32.totalorder %v20909_v45, %v15119_v50  ;;  %v21301_v2 = vld [vmem:[#allocation92_spill] sm:$0xff] }
 0x276   : > { %4266 = vmatprep.mubr.f32.mxu0 %v4265_v60  ;;  %v15122_v35 = vadd.f32 %v14998_v52, %v3329_v9  ;;  %4993 = vmatprep.subr.mxu0 %v20567_v32  ;;  %v4285_v7 = vsub.f32 %v15017_v19, %v21272_v3  ;;  %v4280_v10 = vand.u32 4294901760, %v4279_v29  ;;  %v21274_v52 = vand.u32 4294901760, %v15045_v26  ;;  %v21275_v3 = vld [vmem:[#allocation94_spill] sm:$0xff] }
 0x277   : > { %5394 = vmatpush2.msra.mxu1 %v13563_v27  ;;  %v15130_v62 = vpop.f32.mrf.mxu1  ;;  %v3335_v11 = vpop.f32.mrf.mxu0  ;;  %4996 = vmatpush2.msra.mxu0 %v21273_v61  ;;  %v9932_v29 = vsel %vm20165_vm7, 1.0, %v20567_v32 }
 0x278   : > { %21271 = vst [vmem:[#allocation211_spill] sm:$0xff] %v15122_v35  ;;  %v4294_v51 = vsub.f32 %v15045_v26, %v21274_v52  ;;  %5395 = vmatprep.subr.mxu1 %v20567_v32  ;;  %10246 = vmatmul.mubr.msk.f32.gmra.mxu1 %vm20140_vm14, %v20903_v8  ;;  %v3336_v60 = vadd.f32 %v3335_v11, %v21275_v3  ;;  %v15163_v3 = vpop.permute.xlu1 %701  ;;  %v21278_v35 = vand.u32 4294901760, %v15065_v31 }
 0x279   : > { %4272 = vmatmul.mubr.f32.gmra.mxu0 %v4271_v56  ;;  %v15153_v52 = vsub.f32 %v9929_v5, %v9929_v5  ;;  %10247 = vmatprep.mubr.msk.f32.mxu1 %vm20148_vm9, %v20903_v8  ;;  %v3672_v56 = vpop.f32.mrf.mxu1  ;;  %v3337_v11 = vpop.f32.mrf.mxu0  ;;  %vm20175_vm14 = vcmp.eq.s32.totalorder %v20904_v57, %v15119_v50  ;;  %21276 = vst [vmem:[#allocation94_spill] sm:$0xff] %v15163_v3  ;;  %v4286_v5 = vand.u32 4294901760, %v4285_v7  ;;  %v21308_v50 = vld [vmem:[#allocation121_spill] sm:$0xff] }
 0x27a   : > { %4281 = vmatprep.mubr.f32.mxu0 %v4280_v10  ;;  %v15166_v9 = vadd.f32 %v15042_v4, %v3336_v60  ;;  %4997 = vmatprep.subr.mxu0 %v20567_v32  ;;  %v4300_v61 = vsub.f32 %v15065_v31, %v21278_v35  ;;  %v4295_v27 = vand.u32 4294901760, %v4294_v51  ;;  %v15177_v26 = vsub.f32 %v9932_v29, %v9932_v29  ;;  %v21282_v35 = vld [vmem:[#allocation95_spill] sm:$0xff] }
 0x27b   : > { %5397 = vmatpush2.msra.mxu1 %v13600_v14  ;;  %v15174_v56 = vpop.f32.mrf.mxu1  ;;  %v3342_v11 = vpop.f32.mrf.mxu0  ;;  %5000 = vmatpush2.msra.mxu0 %v21279_v25  ;;  %v21281_v4 = vand.u32 4294901760, %v15089_v41  ;;  %v9934_v51 = vsel %vm20175_vm14, 1.0, %v20567_v32  ;;  %v15193_v29 = vsub.f32 %v9931_v30, %v9931_v30  ;;  %vm20201_vm9 = vcmp.eq.s32.totalorder %v20909_v45, %v15163_v3  ;;  %v21287_v14 = vld [vmem:[#allocation68_spill] sm:$0xff] }
 0x27c   : > { %21277 = vst [vmem:[#allocation212_spill] sm:$0xff] %v15166_v9  ;;  %21280 = vst [vmem:[#allocation213_spill] sm:$0xff] %v15177_v26  ;;  %5398 = vmatprep.subr.mxu1 %v20567_v32  ;;  %10248 = vmatmul.mubr.msk.f32.gmra.mxu1 %vm20149_vm10, %v20903_v8  ;;  %v3343_v10 = vadd.f32 %v3342_v11, %v21282_v35  ;;  %vm20184_vm10 = vcmp.eq.s32.totalorder %v20904_v57, %v15163_v3  ;;  %v15207_v30 = vpop.permute.xlu0 %704  ;;  %v4301_v60 = vand.u32 4294901760, %v4300_v61  ;;  %v21285_v9 = vld [vmem:[#allocation62_spill] sm:$0xff] }
 0x27d   : > { %v4309_v7 = vsub.f32 %v15089_v41, %v21281_v4  ;;  %4287 = vmatmul.mubr.f32.gmra.mxu0 %v4286_v5  ;;  %v9933_v4 = vsel %vm20174_vm11, 1.0, %v20567_v32  ;;  %10249 = vmatprep.mubr.msk.f32.mxu1 %vm20159_vm3, %v20903_v8  ;;  %v3679_v5 = vpop.f32.mrf.mxu1  ;;  %v3344_v11 = vpop.f32.mrf.mxu0  ;;  %21283 = vst [vmem:[#allocation95_spill] sm:$0xff] %v15207_v30  ;;  %v21286_v25 = vand.u32 4294901760, %v15105_v40  ;;  %v15221_v31 = vsub.f32 %v9934_v51, %v9934_v51 }
 0x27e   : > { %4296 = vmatprep.mubr.f32.mxu0 %v4295_v27  ;;  %v15210_v35 = vadd.f32 %v15086_v54, %v3343_v10  ;;  %5001 = vmatprep.subr.mxu0 %v20567_v32  ;;  %v20164_v27 = vand.u32 4294901760, %v15153_v52  ;;  %v21289_v54 = vand.u32 4294901760, %v15133_v28  ;;  %v9935_v51 = vsel %vm20201_vm9, 1.0, %v20567_v32 }
 0x27f   : > { %5400 = vmatpush2.msra.mxu1 %v21285_v9  ;;  %v4315_v12 = vsub.f32 %v15105_v40, %v21286_v25  ;;  %v15218_v5 = vpop.f32.mrf.mxu1  ;;  %v3349_v11 = vpop.f32.mrf.mxu0  ;;  %5004 = vmatpush2.msra.mxu0 %v21287_v14  ;;  %v4310_v41 = vand.u32 4294901760, %v4309_v7  ;;  %21288 = vst [vmem:[#allocation215_spill] sm:$0xff] %v15221_v31  ;;  %v9936_v7 = vsel %vm20184_vm10, 1.0, %v20567_v32  ;;  %vm20200_vm3 = vcmp.eq.s32.totalorder %v20909_v45, %v15207_v30  ;;  %v21293_v14 = vld [vmem:[#allocation80_spill] sm:$0xff] }
 0x280   : > { %21284 = vst [vmem:[#allocation214_spill] sm:$0xff] %v15210_v35  ;;  %v4324_v61 = vsub.f32 %v15133_v28, %v21289_v54  ;;  %5401 = vmatprep.subr.mxu1 %v20567_v32  ;;  %10250 = vmatmul.mubr.msk.f32.gmra.mxu1 %vm20160_vm1, %v20903_v8  ;;  %v3350_v25 = vadd.f32 %v3349_v11, %v13846_v23  ;;  %v15251_v11 = vpop.permute.xlu1 %707 }
 0x281   : > { %4302 = vmatmul.mubr.f32.gmra.mxu0 %v4301_v60  ;;  %v15241_v54 = vsub.f32 %v9933_v4, %v9933_v4  ;;  %10251 = vmatprep.mubr.msk.f32.mxu1 %vm20165_vm7, %v20903_v8  ;;  %v3686_v23 = vpop.f32.mrf.mxu1  ;;  %v3351_v60 = vpop.f32.mrf.mxu0  ;;  %vm20194_vm1 = vcmp.eq.s32.totalorder %v20904_v57, %v15207_v30  ;;  %21291 = vst [vmem:[#allocation217_spill] sm:$0xff] %v15251_v11  ;;  %v4316_v4 = vand.u32 4294901760, %v4315_v12 }
 0x282   : > { %4311 = vmatprep.mubr.f32.mxu0 %v4310_v41  ;;  %v15254_v10 = vadd.f32 %v15130_v62, %v3350_v25  ;;  %5005 = vmatprep.subr.mxu0 %v20567_v32  ;;  %v4330_v35 = vsub.f32 %v15153_v52, %v20164_v27  ;;  %v4325_v39 = vand.u32 4294901760, %v4324_v61  ;;  %v15265_v9 = vsub.f32 %v9936_v7, %v9936_v7  ;;  %v21296_v27 = vld [vmem:[#allocation99_spill] sm:$0xff] }
 0x283   : > { %21290 = vst [vmem:[#allocation216_spill] sm:$0xff] %v15241_v54  ;;  %5403 = vmatpush2.msra.mxu1 %v13663_v22  ;;  %v15262_v23 = vpop.f32.mrf.mxu1  ;;  %v3356_v60 = vpop.f32.mrf.mxu0  ;;  %5008 = vmatpush2.msra.mxu0 %v21293_v14  ;;  %v21295_v62 = vand.u32 4294901760, %v15177_v26  ;;  %v9938_v61 = vsel %vm20194_vm1, 1.0, %v20567_v32  ;;  %v15281_v7 = vsub.f32 %v9935_v51, %v9935_v51  ;;  %vm775_vm7 = vcmp.eq.s32.totalorder %v20909_v45, %v15251_v11 }
 0x284   : > { %21292 = vst [vmem:[#allocation218_spill] sm:$0xff] %v15254_v10  ;;  %21294 = vst [vmem:[#allocation219_spill] sm:$0xff] %v15265_v9  ;;  %5404 = vmatprep.subr.mxu1 %v20567_v32  ;;  %10252 = vmatmul.mubr.msk.f32.gmra.mxu1 %vm20166_vm15, %v20903_v8  ;;  %v3357_v41 = vadd.f32 %v3356_v60, %v21296_v27  ;;  %vm20198_vm15 = vcmp.eq.s32.totalorder %v20904_v57, %v15251_v11  ;;  %v15295_v51 = vpop.permute.xlu0 %710  ;;  %v4331_v25 = vand.u32 4294901760, %v4330_v35  ;;  %v21327_v11 = vld [vmem:[#allocation131_spill] sm:$0xff] }
 0x285   : > { %v4339_v12 = vsub.f32 %v15177_v26, %v21295_v62  ;;  %4317 = vmatmul.mubr.f32.gmra.mxu0 %v4316_v4  ;;  %21297 = vst [vmem:[#allocation99_spill] sm:$0xff] %v15281_v7  ;;  %v9937_v62 = vsel %vm20200_vm3, 1.0, %v20567_v32  ;;  %10253 = vmatprep.mubr.msk.f32.mxu1 %vm20175_vm14, %v20903_v8  ;;  %v3693_v27 = vpop.f32.mrf.mxu1  ;;  %v3358_v4 = vpop.f32.mrf.mxu0  ;;  %21298 = vst [vmem:[#allocation220_spill] sm:$0xff] %v15295_v51  ;;  %v21300_v14 = vand.u32 4294901760, %v15193_v29 }
 0x286   : > { %4326 = vmatprep.mubr.f32.mxu0 %v4325_v39  ;;  %v15298_v60 = vadd.f32 %v15174_v56, %v3357_v41  ;;  %5009 = vmatprep.subr.mxu0 %v20567_v32  ;;  %v15309_v26 = vsub.f32 %v9938_v61, %v9938_v61  ;;  %v21302_v56 = vand.u32 4294901760, %v15221_v31  ;;  %v9939_v61 = vsel %vm775_vm7, 1.0, %v20567_v32 }
 0x287   : > { %5406 = vmatpush2.msra.mxu1 %v13711_v63  ;;  %v4345_v10 = vsub.f32 %v15193_v29, %v21300_v14  ;;  %v15306_v27 = vpop.f32.mrf.mxu1  ;;  %v3363_v4 = vpop.f32.mrf.mxu0  ;;  %5012 = vmatpush2.msra.mxu0 %v21301_v2  ;;  %v4340_v22 = vand.u32 4294901760, %v4339_v12  ;;  %v21303_v14 = vld [vmem:[#allocation101_spill] sm:$0xff]  ;;  %v9940_v12 = vsel %vm20198_vm15, 1.0, %v20567_v32  ;;  %vm777_vm14 = vcmp.eq.s32.totalorder %v20909_v45, %v15295_v51 }
 0x288   : > { %21299 = vst [vmem:[#allocation221_spill] sm:$0xff] %v15298_v60  ;;  %v4354_v35 = vsub.f32 %v15221_v31, %v21302_v56  ;;  %5407 = vmatprep.subr.mxu1 %v20567_v32  ;;  %10254 = vmatmul.mubr.msk.f32.gmra.mxu1 %vm20174_vm11, %v20903_v8  ;;  %v3364_v39 = vadd.f32 %v3363_v4, %v21303_v14  ;;  %v15338_v14 = vpop.permute.xlu1 %713  ;;  %v21306_v60 = vld [vmem:[#allocation93_spill] sm:$0xff] }
 0x289   : > { %4332 = vmatmul.mubr.f32.gmra.mxu0 %v4331_v25  ;;  %v15329_v56 = vsub.f32 %v9937_v62, %v9937_v62  ;;  %10255 = vmatprep.mubr.msk.f32.mxu1 %vm20184_vm10, %v20903_v8  ;;  %v3700_v41 = vpop.f32.mrf.mxu1  ;;  %v3365_v25 = vpop.f32.mrf.mxu0  ;;  %vm778_vm11 = vcmp.eq.s32.totalorder %v20904_v57, %v15295_v51  ;;  %21304 = vst [vmem:[#allocation101_spill] sm:$0xff] %v15338_v14  ;;  %v4346_v2 = vand.u32 4294901760, %v4345_v10 }
 0x28a   : > { %4341 = vmatprep.mubr.f32.mxu0 %v4340_v22  ;;  %v15343_v62 = vadd.f32 %v15218_v5, %v3364_v39  ;;  %5013 = vmatprep.subr.mxu0 %v20567_v32  ;;  %v21307_v22 = vand.u32 4294901760, %v15241_v54  ;;  %v4355_v63 = vand.u32 4294901760, %v4354_v35  ;;  %v15353_v31 = vsub.f32 %v9940_v12, %v9940_v12 }
 0x28b   : > { %5409 = vmatpush2.msra.mxu1 %v21306_v60  ;;  %v15350_v25 = vpop.f32.mrf.mxu1  ;;  %v3370_v4 = vpop.f32.mrf.mxu0  ;;  %5016 = vmatpush2.msra.mxu0 %v21308_v50  ;;  %v21310_v5 = vand.u32 4294901760, %v15265_v9  ;;  %v9942_v35 = vsel %vm778_vm11, 1.0, %v20567_v32  ;;  %vm779_vm10 = vcmp.eq.s32.totalorder %v20909_v45, %v15338_v14  ;;  %vm780_vm0 = vcmp.eq.s32.totalorder %v20904_v57, %v15338_v14 }
 0x28c   : > { %21305 = vst [vmem:[#allocation222_spill] sm:$0xff] %v15343_v62  ;;  %v4360_v41 = vsub.f32 %v15241_v54, %v21307_v22  ;;  %21309 = vst [vmem:[#allocation223_spill] sm:$0xff] %v15353_v31  ;;  %5410 = vmatprep.subr.mxu1 %v20567_v32  ;;  %v15360_v62 = vsub.f32 %v9939_v61, %v9939_v61  ;;  %10256 = vmatmul.mubr.msk.f32.gmra.mxu1 %vm20201_vm9, %v20903_v8  ;;  %v21311_v22 = vld [vmem:[#allocation105_spill] sm:$0xff]  ;;  %v21318_v54 = vand.u32 4294901760, %v15309_v26 }
 0x28d   : > { %v4369_v39 = vsub.f32 %v15265_v9, %v21310_v5  ;;  %v3371_v50 = vadd.f32 %v3370_v4, %v21311_v22  ;;  %4347 = vmatmul.mubr.f32.gmra.mxu0 %v4346_v2  ;;  %10257 = vmatprep.mubr.msk.f32.mxu1 %vm20194_vm1, %v20903_v8  ;;  %v3707_v12 = vpop.f32.mrf.mxu1  ;;  %v3372_v61 = vpop.f32.mrf.mxu0  ;;  %v21312_v2 = vand.u32 4294901760, %v15281_v7  ;;  %v9941_v5 = vsel %vm777_vm14, 1.0, %v20567_v32 }
 0x28e   : > { %4356 = vmatprep.mubr.f32.mxu0 %v4355_v63  ;;  %v15386_v22 = vpop.permute.xlu0 %716  ;;  %5017 = vmatprep.subr.mxu0 %v20567_v32  ;;  %v4361_v3 = vand.u32 4294901760, %v4360_v41  ;;  %v21315_v12 = vld [vmem:[#allocation122_spill] sm:$0xff]  ;;  %v15397_v9 = vsub.f32 %v9942_v35, %v9942_v35  ;;  %v9944_v41 = vsel %vm780_vm0, 1.0, %v20567_v32  ;;  %v15417_v35 = vsub.f32 %v9941_v5, %v9941_v5  ;;  %v21321_v5 = vld [vmem:[#allocation124_spill] sm:$0xff] }
 0x28f   : > { %v4375_v4 = vsub.f32 %v15281_v7, %v21312_v2  ;;  %21313 = vst [vmem:[#allocation105_spill] sm:$0xff] %v15386_v22  ;;  %v15389_v10 = vadd.f32 %v15262_v23, %v3371_v50  ;;  %5412 = vmatpush2.msra.mxu1 %v21315_v12  ;;  %v15394_v61 = vpop.f32.mrf.mxu1  ;;  %v3377_v2 = vpop.f32.mrf.mxu0  ;;  %v21316_v7 = vld [vmem:[#allocation126_spill] sm:$0xff]  ;;  %v4370_v60 = vand.u32 4294901760, %v4369_v39  ;;  %v4384_v50 = vsub.f32 %v15309_v26, %v21318_v54 }
 0x290   : > { %5020 = vmatpush2.msra.mxu0 %v21316_v7  ;;  %21317 = vst [vmem:[#allocation225_spill] sm:$0xff] %v15397_v9  ;;  %5413 = vmatprep.subr.mxu1 %v20567_v32  ;;  %v3378_v39 = vadd.f32 %v3377_v2, %v14003_v49  ;;  %v9943_v54 = vsel %vm779_vm10, 1.0, %v20567_v32  ;;  %vm781_vm1 = vcmp.eq.s32.totalorder %v20909_v45, %v15386_v22  ;;  %v21322_v7 = vand.u32 4294901760, %v15329_v56 }
 0x291   : > { %21314 = vst [vmem:[#allocation224_spill] sm:$0xff] %v15389_v10  ;;  %10258 = vmatmul.mubr.msk.f32.gmra.mxu1 %vm20200_vm3, %v20903_v8  ;;  %4362 = vmatmul.mubr.f32.gmra.mxu0 %v4361_v3  ;;  %v3714_v23 = vpop.f32.mrf.mxu1  ;;  %v3379_v63 = vpop.f32.mrf.mxu0  ;;  %v4376_v49 = vand.u32 4294901760, %v4375_v4  ;;  %v15448_v30 = vsub.f32 %v9943_v54, %v9943_v54 }
 0x292   : > { %10259 = vmatprep.mubr.msk.f32.mxu1 %vm20198_vm15, %v20903_v8  ;;  %4371 = vmatprep.mubr.f32.mxu0 %v4370_v60  ;;  %v15425_v3 = vpop.permute.xlu1 %719  ;;  %v15428_v2 = vadd.f32 %v15306_v27, %v3378_v39  ;;  %v4390_v10 = vsub.f32 %v15329_v56, %v21322_v7  ;;  %vm782_vm15 = vcmp.eq.s32.totalorder %v20904_v57, %v15386_v22  ;;  %v21323_v27 = vld [vmem:[#allocation97_spill] sm:$0xff]  ;;  %v4385_v23 = vand.u32 4294901760, %v4384_v50 }
 0x293   : > { %21319 = vst [vmem:[#allocation226_spill] sm:$0xff] %v15425_v3  ;;  %5021 = vmatprep.subr.mxu0 %v20567_v32  ;;  %5415 = vmatpush2.msra.mxu1 %v21321_v5  ;;  %v15438_v60 = vsub.f32 %v9944_v41, %v9944_v41  ;;  %v15440_v4 = vpop.f32.mrf.mxu1  ;;  %v3384_v63 = vpop.f32.mrf.mxu0  ;;  %v21324_v39 = vand.u32 4294901760, %v15353_v31  ;;  %vm783_vm3 = vcmp.eq.s32.totalorder %v20909_v45, %v15425_v3  ;;  %v9945_v50 = vsel %vm781_vm1, 1.0, %v20567_v32 }
 0x294   : > { %21320 = vst [vmem:[#allocation227_spill] sm:$0xff] %v15428_v2  ;;  %5024 = vmatpush2.msra.mxu0 %v21323_v27  ;;  %5416 = vmatprep.subr.mxu1 %v20567_v32  ;;  %v3385_v41 = vadd.f32 %v3384_v63, %v14041_v17  ;;  %vm784_vm9 = vcmp.eq.s32.totalorder %v20904_v57, %v15425_v3  ;;  %v21326_v7 = vand.u32 4294901760, %v15360_v62 }
 0x295   : > { %v4399_v2 = vsub.f32 %v15353_v31, %v21324_v39  ;;  %10260 = vmatmul.mubr.msk.f32.gmra.mxu1 %vm775_vm7, %v20903_v8  ;;  %4377 = vmatmul.mubr.f32.gmra.mxu0 %v4376_v49  ;;  %v3721_v54 = vpop.f32.mrf.mxu1  ;;  %v3386_v17 = vpop.f32.mrf.mxu0  ;;  %v9946_v49 = vsel %vm782_vm15, 1.0, %v20567_v32  ;;  %v4391_v39 = vand.u32 4294901760, %v4390_v10  ;;  %v21328_v31 = vand.u32 4294901760, %v15397_v9 }
 0x296   : > { %10261 = vmatprep.mubr.msk.f32.mxu1 %vm778_vm11, %v20903_v8  ;;  %4386 = vmatprep.mubr.f32.mxu0 %v4385_v23  ;;  %v15472_v63 = vadd.f32 %v15350_v25, %v3385_v41  ;;  %v4405_v27 = vsub.f32 %v15360_v62, %v21326_v7  ;;  %v15491_v41 = vsub.f32 %v9946_v49, %v9946_v49  ;;  %v21330_v23 = vld [vmem:[#allocation133_spill] sm:$0xff] }
 0x297   : > { %5025 = vmatprep.subr.mxu0 %v20567_v32  ;;  %5418 = vmatpush2.msra.mxu1 %v13853_v13  ;;  %v3726_v54 = vpop.f32.mrf.mxu1  ;;  %v3391_v17 = vpop.f32.mrf.mxu0  ;;  %v4400_v5 = vand.u32 4294901760, %v4399_v2  ;;  %v4414_v25 = vsub.f32 %v15397_v9, %v21328_v31  ;;  %v9947_v2 = vsel %vm783_vm3, 1.0, %v20567_v32  ;;  %v9948_v31 = vsel %vm784_vm9, 1.0, %v20567_v32  ;;  %v21332_v9 = vld [vmem:[#allocation136_spill] sm:$0xff] }
 0x298   : > { %21325 = vst [vmem:[#allocation228_spill] sm:$0xff] %v15472_v63  ;;  %5028 = vmatpush2.msra.mxu0 %v21327_v11  ;;  %5419 = vmatprep.subr.mxu1 %v20567_v32  ;;  %v3392_v7 = vadd.f32 %v3391_v17, %v14081_v33  ;;  %v15501_v10 = vsub.f32 %v9945_v50, %v9945_v50  ;;  %v4406_v17 = vand.u32 4294901760, %v4405_v27  ;;  %v21331_v11 = vand.u32 4294901760, %v15417_v35 }
 0x299   : > { %10262 = vmatmul.mubr.msk.f32.gmra.mxu1 %vm777_vm14, %v20903_v8  ;;  %4392 = vmatmul.mubr.f32.gmra.mxu0 %v4391_v39  ;;  %v3728_v33 = vpop.f32.mrf.mxu1  ;;  %v3393_v49 = vpop.f32.mrf.mxu0  ;;  %v15521_v27 = vsub.f32 %v9948_v31, %v9948_v31 }
 0x29a   : > { %10263 = vmatprep.mubr.msk.f32.mxu1 %vm780_vm0, %v20903_v8  ;;  %4401 = vmatprep.mubr.f32.mxu0 %v4400_v5  ;;  %v15508_v39 = vadd.f32 %v15394_v61, %v3392_v7  ;;  %v4420_v50 = vsub.f32 %v15417_v35, %v21331_v11  ;;  %v4415_v5 = vand.u32 4294901760, %v4414_v25  ;;  %v21333_v61 = vand.u32 4294901760, %v15438_v60 }
 0x29b   : > { %5029 = vmatprep.subr.mxu0 %v20567_v32  ;;  %5421 = vmatpush2.msra.mxu1 %v21330_v23  ;;  %v3733_v51 = vpop.f32.mrf.mxu1  ;;  %v3398_v13 = vpop.f32.mrf.mxu0  ;;  %v15529_v49 = vsub.f32 %v9947_v2, %v9947_v2 }
 0x29c   : > { %21329 = vst [vmem:[#allocation229_spill] sm:$0xff] %v15508_v39  ;;  %5032 = vmatpush2.msra.mxu0 %v21332_v9  ;;  %5422 = vmatprep.subr.mxu1 %v20567_v32  ;;  %v4429_v7 = vsub.f32 %v15438_v60, %v21333_v61  ;;  %v3399_v11 = vadd.f32 %v3398_v13, %v14125_v20  ;;  %v4421_v63 = vand.u32 4294901760, %v4420_v50  ;;  %v21335_v13 = vld [vmem:[#allocation137_spill] sm:$0xff]  ;;  %v21336_v20 = vand.u32 4294901760, %v15448_v30  ;;  %v21337_v39 = vld [vmem:[#allocation140_spill] sm:$0xff] }
 0x29d   : > { %10264 = vmatmul.mubr.msk.f32.gmra.mxu1 %vm779_vm10, %v20903_v8  ;;  %4407 = vmatmul.mubr.f32.gmra.mxu0 %v4406_v17  ;;  %v3735_v25 = vpop.f32.mrf.mxu1  ;;  %v3400_v31 = vpop.f32.mrf.mxu0 }
 0x29e   : > { %10265 = vmatprep.mubr.msk.f32.mxu1 %vm782_vm15, %v20903_v8  ;;  %4416 = vmatprep.mubr.f32.mxu0 %v4415_v5  ;;  %v15536_v61 = vadd.f32 %v15440_v4, %v3399_v11  ;;  %v4435_v2 = vsub.f32 %v15448_v30, %v21336_v20  ;;  %v4430_v5 = vand.u32 4294901760, %v4429_v7  ;;  %v21338_v4 = vld [vmem:[#allocation155_spill] sm:$0xff]  ;;  %v21339_v11 = vand.u32 4294901760, %v15491_v41 }
 0x29f   : > { %5033 = vmatprep.subr.mxu0 %v20567_v32  ;;  %5424 = vmatpush2.msra.mxu1 %v21335_v13  ;;  %v3740_v33 = vpop.f32.mrf.mxu1  ;;  %v3405_v9 = vpop.f32.mrf.mxu0 }
 0x2a0   : > { %21334 = vst [vmem:[#allocation230_spill] sm:$0xff] %v15536_v61  ;;  %5036 = vmatpush2.msra.mxu0 %v21337_v39  ;;  %5425 = vmatprep.subr.mxu1 %v20567_v32  ;;  %v3406_v50 = vadd.f32 %v3405_v9, %v21338_v4  ;;  %v4444_v25 = vsub.f32 %v15491_v41, %v21339_v11  ;;  %v21341_v39 = vld [vmem:[#allocation141_spill] sm:$0xff]  ;;  %v4436_v9 = vand.u32 4294901760, %v4435_v2 }
 0x2a1   : > { %10266 = vmatmul.mubr.msk.f32.gmra.mxu1 %vm781_vm1, %v20903_v8  ;;  %4422 = vmatmul.mubr.f32.gmra.mxu0 %v4421_v63  ;;  %v3742_v7 = vpop.f32.mrf.mxu1  ;;  %v3407_v20 = vpop.f32.mrf.mxu0  ;;  %v21342_v63 = vand.u32 4294901760, %v15501_v10 }
 0x2a2   : > { %10267 = vmatprep.mubr.msk.f32.mxu1 %vm784_vm9, %v20903_v8  ;;  %4431 = vmatprep.mubr.f32.mxu0 %v4430_v5  ;;  %v15559_v17 = vadd.f32 %v3726_v54, %v3406_v50  ;;  %v21343_v7 = vld [vmem:[#allocation144_spill] sm:$0xff]  ;;  %v21344_v54 = vld [vmem:[#allocation158_spill] sm:$0xff]  ;;  %v4445_v2 = vand.u32 4294901760, %v4444_v25  ;;  %v21345_v50 = vand.u32 4294901760, %v15521_v27 }
 0x2a3   : > { %5427 = vmatpush2.msra.mxu1 %v21341_v39  ;;  %5037 = vmatprep.subr.mxu0 %v20567_v32  ;;  %v4450_v4 = vsub.f32 %v15501_v10, %v21342_v63  ;;  %v3747_v31 = vpop.f32.mrf.mxu1  ;;  %v3412_v61 = vpop.f32.mrf.mxu0  ;;  %v21346_v63 = vld [vmem:[#allocation154_spill] sm:$0xff] }
 0x2a4   : > { %21340 = vst [vmem:[#allocation155_spill] sm:$0xff] %v15559_v17  ;;  %5428 = vmatprep.subr.mxu1 %v20567_v32  ;;  %5040 = vmatpush2.msra.mxu0 %v21343_v7  ;;  %v3413_v5 = vadd.f32 %v3412_v61, %v21344_v54  ;;  %v4459_v20 = vsub.f32 %v15521_v27, %v21345_v50  ;;  %v21347_v11 = vand.u32 4294901760, %v21346_v63  ;;  %v21349_v61 = vand.u32 4294901760, %v15529_v49 }
 0x2a5   : > { %10268 = vmatmul.mubr.msk.f32.gmra.mxu1 %vm783_vm3, %v20903_v8  ;;  %4437 = vmatmul.mubr.f32.gmra.mxu0 %v4436_v9  ;;  %v3749_v17 = vpop.f32.mrf.mxu1  ;;  %v3414_v7 = vpop.f32.mrf.mxu0  ;;  %v4451_v3 = vand.u32 4294901760, %v4450_v4  ;;  %v21353_v4 = vand.u32 4294901760, %v14207_v21 }
 0x2a6   : > { %5430 = vmatpush2.msra.mxu1 %v13998_v6  ;;  %5437 = vmatprep.mubr.f32.mxu1 %v21347_v11  ;;  %v15580_v22 = vadd.f32 %v3733_v51, %v3413_v5  ;;  %v4465_v25 = vsub.f32 %v15529_v49, %v21349_v61  ;;  %v21350_v11 = vand.u32 4294901760, %v14185_v38  ;;  %v21351_v17 = vld [vmem:[#allocation163_spill] sm:$0xff]  ;;  %v4460_v7 = vand.u32 4294901760, %v4459_v20  ;;  %v21352_v5 = vld [vmem:[#allocation110_spill] sm:$0xff] }
 0x2a7   : > { %4446 = vmatprep.mubr.f32.mxu0 %v4445_v2  ;;  %5431 = vmatprep.subr.mxu1 %v20567_v32  ;;  %v3754_v9 = vpop.f32.mrf.mxu1  ;;  %v3419_v54 = vpop.f32.mrf.mxu0 }
 0x2a8   : > { %21348 = vst [vmem:[#allocation158_spill] sm:$0xff] %v15580_v22  ;;  %5433 = vmatpush2.msra.mxu1 %v14028_v58  ;;  %5041 = vmatprep.subr.mxu0 %v20567_v32  ;;  %v3420_v51 = vadd.f32 %v3419_v54, %v21351_v17  ;;  %v4466_v22 = vand.u32 4294901760, %v4465_v25  ;;  %v21358_v54 = vld [vmem:[#allocation165_spill] sm:$0xff] }
 0x2a9   : > { %5441 = vmatmul.mubr.f32.vlgmr.msra.gmra.mxu1 %v21350_v11  ;;  %4452 = vmatmul.mubr.f32.gmra.mxu0 %v4451_v3  ;;  %v3756_v2 = vpop.f32.mrf.mxu1  ;;  %v3421_v50 = vpop.f32.mrf.mxu0  ;;  %v21355_v11 = vld [vmem:[#allocation149_spill] sm:$0xff]  ;;  %v21356_v3 = vld [vmem:[#allocation159_spill] sm:$0xff] }
 0x2aa   : > { %5044 = vmatpush2.msra.mxu0 %v21352_v5  ;;  %5448 = vmatprep.mubr.f32.mxu1 %v21353_v4  ;;  %v15594_v61 = vadd.f32 %v3740_v33, %v3420_v51  ;;  %v21357_v20 = vand.u32 4294901760, %v21356_v3  ;;  %v21359_v4 = vld [vmem:[#allocation161_spill] sm:$0xff] }
 0x2ab   : > { %4461 = vmatprep.mubr.f32.mxu0 %v4460_v7  ;;  %5045 = vmatprep.subr.mxu0 %v20567_v32  ;;  %v3761_v14 = vpop.f32.mrf.mxu1  ;;  %v3426_v45 = vpop.f32.mrf.mxu0  ;;  %v21360_v2 = vand.u32 4294901760, %v21359_v4  ;;  %v21362_v7 = vld [vmem:[#allocation50_spill] sm:$0xff]  ;;  %v21505_v5 = vld [vmem:[#allocation85_spill] sm:$0xff] }
 0x2ac   : > { %21354 = vst [vmem:[#allocation154_spill] sm:$0xff] %v15594_v61  ;;  %5048 = vmatpush2.msra.mxu0 %v21355_v11  ;;  %6172 = vmatprep.subr.mxu1 %v20567_v32  ;;  %v3427_v17 = vadd.f32 %v3426_v45, %v21358_v54  ;;  %v21506_v61 = vld [vmem:[#allocation216_spill] sm:$0xff] }
 0x2ad   : > { %5452 = vmatmul.mubr.f32.gmra.mxu1 %v21357_v20  ;;  %4467 = vmatmul.mubr.f32.gmra.mxu0 %v4466_v22  ;;  %v3763_v33 = vpop.f32.mrf.mxu1  ;;  %v3428_v51 = vpop.f32.mrf.mxu0  ;;  %v21363_v20 = vld [vmem:[#allocation164_spill] sm:$0xff]  ;;  %v21365_v22 = vld [vmem:[#allocation167_spill] sm:$0xff] }
 0x2ae   : > { %5459 = vmatprep.mubr.f32.mxu1 %v21360_v2  ;;  %5051 = vmatprep.mubr.f32.mxu0 %v21346_v63  ;;  %v15605_v25 = vadd.f32 %v3747_v31, %v3427_v17  ;;  %v21364_v45 = vand.u32 4294901760, %v21363_v20  ;;  %v21366_v63 = vand.u32 4294901760, %v14295_v18  ;;  %v21367_v31 = vld [vmem:[#allocation53_spill] sm:$0xff] }
 0x2af   : > { %5787 = vmatprep.subr.mxu0 %v20567_v32  ;;  %6174 = vmatpush1.msra.mxu1 %v21362_v7  ;;  %v3768_v50 = vpop.f32.mrf.mxu1  ;;  %v3433_v11 = vpop.f32.mrf.mxu0 }
 0x2b0   : > { %21361 = vst [vmem:[#allocation163_spill] sm:$0xff] %v15605_v25  ;;  %6175 = vmatprep.subr.mxu1 %v20567_v32  ;;  %v3434_v54 = vadd.f32 %v3433_v11, %v21365_v22  ;;  %v21370_v11 = vld [vmem:[#allocation61_spill] sm:$0xff] }
 0x2b1   : > { %5463 = vmatmul.mubr.f32.gmra.mxu1 %v21364_v45  ;;  %5054 = vmatmul.mubr.f32.vlgmr.msra.gmra.mxu0 %v14185_v38  ;;  %v3770_v17 = vpop.f32.mrf.mxu1  ;;  %v3435_v2 = vpop.f32.mrf.mxu0  ;;  %v21369_v45 = vld [vmem:[#allocation5_spill] sm:$0xff]  ;;  %v21371_v38 = vand.u32 4294901760, %v14319_v43 }
 0x2b2   : > { %5470 = vmatprep.mubr.f32.mxu1 %v21366_v63  ;;  %5791 = vmatpush1.msra.mxu0 %v21367_v31  ;;  %v15617_v33 = vadd.f32 %v3754_v9, %v3434_v54  ;;  %v21372_v9 = vand.u32 4294901760, %v14342_v47  ;;  %v21499_v31 = vld [vmem:[#allocation70_spill] sm:$0xff] }
 0x2b3   : > { %5060 = vmatprep.mubr.f32.mxu0 %v14207_v21  ;;  %5792 = vmatprep.subr.mxu0 %v20567_v32  ;;  %v3775_v51 = vpop.f32.mrf.mxu1  ;;  %v3440_v25 = vpop.f32.mrf.mxu0 }
 0x2b4   : > { %21368 = vst [vmem:[#allocation159_spill] sm:$0xff] %v15617_v33  ;;  %5796 = vmatpush1.msra.mxu0 %v21369_v45  ;;  %6177 = vmatpush1.msra.mxu1 %v21370_v11  ;;  %v3441_v22 = vadd.f32 %v3440_v25, %v14404_v37  ;;  %v21375_v37 = vand.u32 4294901760, %v14353_v36  ;;  %v21485_v45 = vld [vmem:[#allocation76_spill] sm:$0xff]  ;;  %v21490_v33 = vld [vmem:[#allocation63_spill] sm:$0xff] }
 0x2b5   : > { %5474 = vmatmul.mubr.f32.gmra.mxu1 %v21371_v38  ;;  %5063 = vmatmul.mubr.f32.gmra.mxu0 %v21356_v3  ;;  %v3777_v54 = vpop.f32.mrf.mxu1  ;;  %v3442_v21 = vpop.f32.mrf.mxu0  ;;  %v21374_v38 = vld [vmem:[#allocation8_spill] sm:$0xff] }
 0x2b6   : > { %5481 = vmatprep.mubr.f32.mxu1 %v21372_v9  ;;  %5069 = vmatprep.mubr.f32.mxu0 %v21359_v4  ;;  %v15630_v63 = vadd.f32 %v3761_v14, %v3441_v22  ;;  %v21376_v14 = vand.u32 4294901760, %v14384_v44  ;;  %v21378_v21 = vld [vmem:[#allocation9_spill] sm:$0xff] }
 0x2b7   : > { %5797 = vmatprep.subr.mxu0 %v20567_v32  ;;  %6178 = vmatprep.subr.mxu1 %v20567_v32  ;;  %v3782_v17 = vpop.f32.mrf.mxu1  ;;  %v3447_v2 = vpop.f32.mrf.mxu0 }
 0x2b8   : > { %21373 = vst [vmem:[#allocation165_spill] sm:$0xff] %v15630_v63  ;;  %5801 = vmatpush1.msra.mxu0 %v21374_v38  ;;  %6180 = vmatpush1.msra.mxu1 %v12989_v16  ;;  %v3448_v3 = vadd.f32 %v3447_v2, %v14452_v15  ;;  %v21379_v15 = vand.u32 4294901760, %v14393_v34 }
 0x2b9   : > { %5485 = vmatmul.mubr.f32.gmra.mxu1 %v21375_v37  ;;  %5072 = vmatmul.mubr.f32.gmra.mxu0 %v21363_v20  ;;  %v3784_v4 = vpop.f32.mrf.mxu1  ;;  %v3449_v25 = vpop.f32.mrf.mxu0  ;;  %v21380_v20 = vld [vmem:[#allocation173_spill] sm:$0xff] }
 0x2ba   : > { %5492 = vmatprep.mubr.f32.mxu1 %v21376_v14  ;;  %5078 = vmatprep.mubr.f32.mxu0 %v14295_v18  ;;  %v15643_v22 = vadd.f32 %v3768_v50, %v3448_v3  ;;  %v21381_v18 = vand.u32 4294901760, %v14431_v48  ;;  %v21383_v25 = vld [vmem:[#allocation75_spill] sm:$0xff] }
 0x2bb   : > { %5802 = vmatprep.subr.mxu0 %v20567_v32  ;;  %6181 = vmatprep.subr.mxu1 %v20567_v32  ;;  %v3789_v9 = vpop.f32.mrf.mxu1  ;;  %v3454_v54 = vpop.f32.mrf.mxu0 }
 0x2bc   : > { %21377 = vst [vmem:[#allocation161_spill] sm:$0xff] %v15643_v22  ;;  %5806 = vmatpush1.msra.mxu0 %v21378_v21  ;;  %6183 = vmatpush1.msra.mxu1 %v13008_v46  ;;  %v3455_v2 = vadd.f32 %v3454_v54, %v21380_v20 }
 0x2bd   : > { %5496 = vmatmul.mubr.f32.gmra.mxu1 %v21379_v15  ;;  %5081 = vmatmul.mubr.f32.gmra.mxu0 %v14319_v43  ;;  %v3791_v50 = vpop.f32.mrf.mxu1  ;;  %v3456_v37 = vpop.f32.mrf.mxu0  ;;  %v21384_v43 = vld [vmem:[#allocation171_spill] sm:$0xff]  ;;  %v21386_v15 = vld [vmem:[#allocation177_spill] sm:$0xff] }
 0x2be   : > { %5503 = vmatprep.mubr.f32.mxu1 %v21381_v18  ;;  %5087 = vmatprep.mubr.f32.mxu0 %v14342_v47  ;;  %v15656_v3 = vadd.f32 %v3775_v51, %v3455_v2  ;;  %v21385_v54 = vand.u32 4294901760, %v21384_v43  ;;  %v21387_v47 = vld [vmem:[#allocation172_spill] sm:$0xff] }
 0x2bf   : > { %5807 = vmatprep.subr.mxu0 %v20567_v32  ;;  %6184 = vmatprep.subr.mxu1 %v20567_v32  ;;  %v3796_v14 = vpop.f32.mrf.mxu1  ;;  %v3461_v4 = vpop.f32.mrf.mxu0  ;;  %v21388_v51 = vand.u32 4294901760, %v21387_v47 }
 0x2c0   : > { %21382 = vst [vmem:[#allocation164_spill] sm:$0xff] %v15656_v3  ;;  %5811 = vmatpush1.msra.mxu0 %v21383_v25  ;;  %6186 = vmatpush1.msra.mxu1 %v13049_v42  ;;  %v3462_v20 = vadd.f32 %v3461_v4, %v21386_v15  ;;  %v21391_v4 = vld [vmem:[#allocation73_spill] sm:$0xff] }
 0x2c1   : > { %5507 = vmatmul.mubr.f32.gmra.mxu1 %v21385_v54  ;;  %5090 = vmatmul.mubr.f32.gmra.mxu0 %v14353_v36  ;;  %v3798_v2 = vpop.f32.mrf.mxu1  ;;  %v3463_v18 = vpop.f32.mrf.mxu0  ;;  %v21390_v54 = vld [vmem:[#allocation79_spill] sm:$0xff]  ;;  %v21392_v36 = vld [vmem:[#allocation174_spill] sm:$0xff] }
 0x2c2   : > { %5514 = vmatprep.mubr.f32.mxu1 %v21388_v51  ;;  %5096 = vmatprep.mubr.f32.mxu0 %v14384_v44  ;;  %v15669_v50 = vadd.f32 %v3782_v17, %v3462_v20  ;;  %v21393_v15 = vand.u32 4294901760, %v21392_v36  ;;  %v21394_v51 = vld [vmem:[#allocation182_spill] sm:$0xff]  ;;  %v21395_v44 = vld [vmem:[#allocation176_spill] sm:$0xff] }
 0x2c3   : > { %5812 = vmatprep.subr.mxu0 %v20567_v32  ;;  %6187 = vmatprep.subr.mxu1 %v20567_v32  ;;  %v3803_v37 = vpop.f32.mrf.mxu1  ;;  %v3468_v25 = vpop.f32.mrf.mxu0  ;;  %v21396_v17 = vand.u32 4294901760, %v21395_v44 }
 0x2c4   : > { %21389 = vst [vmem:[#allocation167_spill] sm:$0xff] %v15669_v50  ;;  %5816 = vmatpush1.msra.mxu0 %v21390_v54  ;;  %6189 = vmatpush1.msra.mxu1 %v21391_v4  ;;  %v3469_v2 = vadd.f32 %v3468_v25, %v21394_v51  ;;  %v21399_v25 = vld [vmem:[#allocation77_spill] sm:$0xff] }
 0x2c5   : > { %5518 = vmatmul.mubr.f32.gmra.mxu1 %v21393_v15  ;;  %5099 = vmatmul.mubr.f32.gmra.mxu0 %v14393_v34  ;;  %v3805_v20 = vpop.f32.mrf.mxu1  ;;  %v3470_v18 = vpop.f32.mrf.mxu0  ;;  %v21398_v15 = vld [vmem:[#allocation84_spill] sm:$0xff]  ;;  %v21400_v34 = vld [vmem:[#allocation178_spill] sm:$0xff] }
 0x2c6   : > { %5525 = vmatprep.mubr.f32.mxu1 %v21396_v17  ;;  %5105 = vmatprep.mubr.f32.mxu0 %v14431_v48  ;;  %v15682_v50 = vadd.f32 %v3789_v9, %v3469_v2  ;;  %v21401_v51 = vand.u32 4294901760, %v21400_v34  ;;  %v21402_v17 = vld [vmem:[#allocation186_spill] sm:$0xff]  ;;  %v21403_v48 = vld [vmem:[#allocation180_spill] sm:$0xff] }
 0x2c7   : > { %5817 = vmatprep.subr.mxu0 %v20567_v32  ;;  %6190 = vmatprep.subr.mxu1 %v20567_v32  ;;  %v3810_v54 = vpop.f32.mrf.mxu1  ;;  %v3475_v3 = vpop.f32.mrf.mxu0  ;;  %v21404_v9 = vand.u32 4294901760, %v21403_v48 }
 0x2c8   : > { %21397 = vst [vmem:[#allocation173_spill] sm:$0xff] %v15682_v50  ;;  %5821 = vmatpush1.msra.mxu0 %v21398_v15  ;;  %6192 = vmatpush1.msra.mxu1 %v21399_v25  ;;  %v3476_v20 = vadd.f32 %v3475_v3, %v21402_v17  ;;  %v21407_v3 = vld [vmem:[#allocation81_spill] sm:$0xff] }
 0x2c9   : > { %5529 = vmatmul.mubr.f32.gmra.mxu1 %v21401_v51  ;;  %5108 = vmatmul.mubr.f32.gmra.mxu0 %v21384_v43  ;;  %v3812_v2 = vpop.f32.mrf.mxu1  ;;  %v3477_v18 = vpop.f32.mrf.mxu0  ;;  %v21406_v51 = vld [vmem:[#allocation15_spill] sm:$0xff]  ;;  %v21408_v43 = vld [vmem:[#allocation181_spill] sm:$0xff] }
 0x2ca   : > { %5536 = vmatprep.mubr.f32.mxu1 %v21404_v9  ;;  %5114 = vmatprep.mubr.f32.mxu0 %v21387_v47  ;;  %v15695_v50 = vadd.f32 %v3796_v14, %v3476_v20  ;;  %v21409_v17 = vand.u32 4294901760, %v21408_v43  ;;  %v21410_v9 = vld [vmem:[#allocation187_spill] sm:$0xff]  ;;  %v21411_v47 = vld [vmem:[#allocation21_spill] sm:$0xff] }
 0x2cb   : > { %5822 = vmatprep.subr.mxu0 %v20567_v32  ;;  %6193 = vmatprep.subr.mxu1 %v20567_v32  ;;  %v3817_v15 = vpop.f32.mrf.mxu1  ;;  %v3482_v21 = vpop.f32.mrf.mxu0  ;;  %v21412_v14 = vand.u32 4294901760, %v21411_v47 }
 0x2cc   : > { %21405 = vst [vmem:[#allocation171_spill] sm:$0xff] %v15695_v50  ;;  %5826 = vmatpush1.msra.mxu0 %v21406_v51  ;;  %6195 = vmatpush1.msra.mxu1 %v21407_v3  ;;  %v3483_v2 = vadd.f32 %v3482_v21, %v21410_v9  ;;  %v21415_v21 = vld [vmem:[#allocation82_spill] sm:$0xff] }
 0x2cd   : > { %5540 = vmatmul.mubr.f32.gmra.mxu1 %v21409_v17  ;;  %5117 = vmatmul.mubr.f32.gmra.mxu0 %v21392_v36  ;;  %v3819_v20 = vpop.f32.mrf.mxu1  ;;  %v3484_v18 = vpop.f32.mrf.mxu0  ;;  %v21414_v17 = vld [vmem:[#allocation19_spill] sm:$0xff]  ;;  %v21416_v36 = vld [vmem:[#allocation184_spill] sm:$0xff] }
 0x2ce   : > { %5547 = vmatprep.mubr.f32.mxu1 %v21412_v14  ;;  %5123 = vmatprep.mubr.f32.mxu0 %v21395_v44  ;;  %v15708_v50 = vadd.f32 %v3803_v37, %v3483_v2  ;;  %v21417_v9 = vand.u32 4294901760, %v21416_v36  ;;  %v21418_v14 = vld [vmem:[#allocation190_spill] sm:$0xff]  ;;  %v21419_v44 = vld [vmem:[#allocation28_spill] sm:$0xff] }
 0x2cf   : > { %5827 = vmatprep.subr.mxu0 %v20567_v32  ;;  %6196 = vmatprep.subr.mxu1 %v20567_v32  ;;  %v3824_v51 = vpop.f32.mrf.mxu1  ;;  %v3489_v22 = vpop.f32.mrf.mxu0  ;;  %v21420_v37 = vand.u32 4294901760, %v21419_v44 }
 0x2d0   : > { %21413 = vst [vmem:[#allocation177_spill] sm:$0xff] %v15708_v50  ;;  %5831 = vmatpush1.msra.mxu0 %v21414_v17  ;;  %6198 = vmatpush1.msra.mxu1 %v21415_v21  ;;  %v3490_v20 = vadd.f32 %v3489_v22, %v21418_v14  ;;  %v21423_v22 = vld [vmem:[#allocation20_spill] sm:$0xff] }
 0x2d1   : > { %5551 = vmatmul.mubr.f32.gmra.mxu1 %v21417_v9  ;;  %5126 = vmatmul.mubr.f32.gmra.mxu0 %v21400_v34  ;;  %v3826_v2 = vpop.f32.mrf.mxu1  ;;  %v3491_v18 = vpop.f32.mrf.mxu0  ;;  %v21422_v9 = vld [vmem:[#allocation26_spill] sm:$0xff]  ;;  %v21424_v34 = vld [vmem:[#allocation188_spill] sm:$0xff] }
 0x2d2   : > { %5558 = vmatprep.mubr.f32.mxu1 %v21420_v37  ;;  %5132 = vmatprep.mubr.f32.mxu0 %v21403_v48  ;;  %v15721_v50 = vadd.f32 %v3810_v54, %v3490_v20  ;;  %v21425_v14 = vand.u32 4294901760, %v21424_v34  ;;  %v21426_v37 = vld [vmem:[#allocation192_spill] sm:$0xff] }
 0x2d3   : > { %5832 = vmatprep.subr.mxu0 %v20567_v32  ;;  %6199 = vmatprep.subr.mxu1 %v20567_v32  ;;  %v3831_v17 = vpop.f32.mrf.mxu1  ;;  %v3496_v38 = vpop.f32.mrf.mxu0  ;;  %v21427_v48 = vld [vmem:[#allocation100_spill] sm:$0xff] }
 0x2d4   : > { %21421 = vst [vmem:[#allocation172_spill] sm:$0xff] %v15721_v50  ;;  %5836 = vmatpush1.msra.mxu0 %v21422_v9  ;;  %6201 = vmatpush1.msra.mxu1 %v21423_v22  ;;  %v3497_v2 = vadd.f32 %v3496_v38, %v21426_v37  ;;  %v21428_v54 = vand.u32 4294901760, %v21427_v48  ;;  %v21431_v38 = vld [vmem:[#allocation89_spill] sm:$0xff] }
 0x2d5   : > { %5562 = vmatmul.mubr.f32.gmra.mxu1 %v21425_v14  ;;  %5135 = vmatmul.mubr.f32.gmra.mxu0 %v21408_v43  ;;  %v3833_v20 = vpop.f32.mrf.mxu1  ;;  %v3498_v18 = vpop.f32.mrf.mxu0  ;;  %v21430_v14 = vld [vmem:[#allocation25_spill] sm:$0xff]  ;;  %v21432_v43 = vand.u32 4294901760, %v14716_v24 }
 0x2d6   : > { %5569 = vmatprep.mubr.f32.mxu1 %v21428_v54  ;;  %5141 = vmatprep.mubr.f32.mxu0 %v21411_v47  ;;  %v15734_v50 = vadd.f32 %v3817_v15, %v3497_v2  ;;  %v21433_v37 = vld [vmem:[#allocation33_spill] sm:$0xff]  ;;  %v21434_v47 = vld [vmem:[#allocation34_spill] sm:$0xff] }
 0x2d7   : > { %5837 = vmatprep.subr.mxu0 %v20567_v32  ;;  %6202 = vmatprep.subr.mxu1 %v20567_v32  ;;  %v3838_v9 = vpop.f32.mrf.mxu1  ;;  %v3503_v63 = vpop.f32.mrf.mxu0  ;;  %v21435_v15 = vand.u32 4294901760, %v21434_v47 }
 0x2d8   : > { %21429 = vst [vmem:[#allocation174_spill] sm:$0xff] %v15734_v50  ;;  %5841 = vmatpush1.msra.mxu0 %v21430_v14  ;;  %6204 = vmatpush1.msra.mxu1 %v21431_v38  ;;  %v3504_v54 = vadd.f32 %v3503_v63, %v21433_v37  ;;  %v21438_v63 = vld [vmem:[#allocation96_spill] sm:$0xff] }
 0x2d9   : > { %5573 = vmatmul.mubr.f32.gmra.mxu1 %v21432_v43  ;;  %5144 = vmatmul.mubr.f32.gmra.mxu0 %v21416_v36  ;;  %v3840_v2 = vpop.f32.mrf.mxu1  ;;  %v3505_v20 = vpop.f32.mrf.mxu0  ;;  %v21437_v43 = vld [vmem:[#allocation29_spill] sm:$0xff]  ;;  %v21439_v36 = vand.u32 4294901760, %v14745_v1  ;;  %v21440_v37 = vld [vmem:[#allocation196_spill] sm:$0xff] }
 0x2da   : > { %5580 = vmatprep.mubr.f32.mxu1 %v21435_v15  ;;  %5150 = vmatprep.mubr.f32.mxu0 %v21419_v44  ;;  %v15747_v18 = vadd.f32 %v3824_v51, %v3504_v54  ;;  %v21441_v51 = vand.u32 4294901760, %v14783_v55 }
 0x2db   : > { %5842 = vmatprep.subr.mxu0 %v20567_v32  ;;  %6205 = vmatprep.subr.mxu1 %v20567_v32  ;;  %v3845_v14 = vpop.f32.mrf.mxu1  ;;  %v3510_v50 = vpop.f32.mrf.mxu0 }
 0x2dc   : > { %21436 = vst [vmem:[#allocation182_spill] sm:$0xff] %v15747_v18  ;;  %5846 = vmatpush1.msra.mxu0 %v21437_v43  ;;  %6207 = vmatpush1.msra.mxu1 %v21438_v63  ;;  %v3511_v15 = vadd.f32 %v3510_v50, %v21440_v37  ;;  %v21444_v50 = vld [vmem:[#allocation98_spill] sm:$0xff] }
 0x2dd   : > { %5584 = vmatmul.mubr.f32.gmra.mxu1 %v21439_v36  ;;  %5153 = vmatmul.mubr.f32.gmra.mxu0 %v21424_v34  ;;  %v3847_v44 = vpop.f32.mrf.mxu1  ;;  %v3512_v54 = vpop.f32.mrf.mxu0  ;;  %v21443_v36 = vld [vmem:[#allocation104_spill] sm:$0xff]  ;;  %v21445_v34 = vld [vmem:[#allocation194_spill] sm:$0xff] }
 0x2de   : > { %5591 = vmatprep.mubr.f32.mxu1 %v21441_v51  ;;  %5159 = vmatprep.mubr.f32.mxu0 %v21427_v48  ;;  %v15760_v2 = vadd.f32 %v3831_v17, %v3511_v15  ;;  %v21446_v37 = vand.u32 4294901760, %v21445_v34  ;;  %v21447_v51 = vld [vmem:[#allocation199_spill] sm:$0xff]  ;;  %v21451_v18 = vld [vmem:[#allocation38_spill] sm:$0xff] }
 0x2df   : > { %5847 = vmatprep.subr.mxu0 %v20567_v32  ;;  %6208 = vmatprep.subr.mxu1 %v20567_v32  ;;  %v3852_v20 = vpop.f32.mrf.mxu1  ;;  %v3517_v43 = vpop.f32.mrf.mxu0  ;;  %v21448_v48 = vld [vmem:[#allocation111_spill] sm:$0xff] }
 0x2e0   : > { %21442 = vst [vmem:[#allocation176_spill] sm:$0xff] %v15760_v2  ;;  %5851 = vmatpush1.msra.mxu0 %v21443_v36  ;;  %6210 = vmatpush1.msra.mxu1 %v21444_v50  ;;  %v3518_v44 = vadd.f32 %v3517_v43, %v21447_v51  ;;  %v21449_v17 = vand.u32 4294901760, %v21448_v48  ;;  %v21453_v43 = vld [vmem:[#allocation197_spill] sm:$0xff] }
 0x2e1   : > { %5595 = vmatmul.mubr.f32.gmra.mxu1 %v21446_v37  ;;  %5162 = vmatmul.mubr.f32.gmra.mxu0 %v14716_v24  ;;  %v3854_v15 = vpop.f32.mrf.mxu1  ;;  %v3519_v54 = vpop.f32.mrf.mxu0  ;;  %v21452_v37 = vld [vmem:[#allocation103_spill] sm:$0xff]  ;;  %v21454_v24 = vand.u32 4294901760, %v21453_v43 }
 0x2e2   : > { %5602 = vmatprep.mubr.f32.mxu1 %v21449_v17  ;;  %5168 = vmatprep.mubr.f32.mxu0 %v21434_v47  ;;  %v15773_v2 = vadd.f32 %v3838_v9, %v3518_v44  ;;  %v21455_v17 = vld [vmem:[#allocation202_spill] sm:$0xff]  ;;  %v21456_v15 = vld [vmem:[#allocation39_spill] sm:$0xff] }
 0x2e3   : > { %5852 = vmatprep.subr.mxu0 %v20567_v32  ;;  %6211 = vmatprep.subr.mxu1 %v20567_v32  ;;  %v3859_v36 = vpop.f32.mrf.mxu1  ;;  %v21457_v9 = vand.u32 4294901760, %v21456_v15 }
 0x2e4   : > { %21450 = vst [vmem:[#allocation178_spill] sm:$0xff] %v15773_v2  ;;  %5856 = vmatpush1.msra.mxu0 %v21451_v18  ;;  %6213 = vmatpush1.msra.mxu1 %v21452_v37  ;;  %v3524_v51 = vpop.f32.mrf.mxu0  ;;  %v21459_v2 = vld [vmem:[#allocation42_spill] sm:$0xff] }
 0x2e5   : > { %5606 = vmatmul.mubr.f32.gmra.mxu1 %v21454_v24  ;;  %5171 = vmatmul.mubr.f32.gmra.mxu0 %v14745_v1  ;;  %v3525_v47 = vadd.f32 %v3524_v51, %v21455_v17  ;;  %v3861_v44 = vpop.f32.mrf.mxu1  ;;  %v21460_v24 = vld [vmem:[#allocation36_spill] sm:$0xff]  ;;  %v21461_v51 = vand.u32 4294901760, %v14889_v59 }
 0x2e6   : > { %5613 = vmatprep.mubr.f32.mxu1 %v21457_v9  ;;  %5177 = vmatprep.mubr.f32.mxu0 %v14783_v55  ;;  %v3526_v54 = vpop.f32.mrf.mxu0  ;;  %v21462_v9 = vld [vmem:[#allocation204_spill] sm:$0xff]  ;;  %v21463_v44 = vld [vmem:[#allocation201_spill] sm:$0xff] }
 0x2e7   : > { %5857 = vmatprep.subr.mxu0 %v20567_v32  ;;  %6214 = vmatprep.subr.mxu1 %v20567_v32  ;;  %v15788_v18 = vadd.f32 %v3845_v14, %v3525_v47  ;;  %v21464_v54 = vand.u32 4294901760, %v21463_v44 }
 0x2e8   : > { %5861 = vmatpush1.msra.mxu0 %v21459_v2  ;;  %6216 = vmatpush1.msra.mxu1 %v21460_v24  ;;  %v4700_v1 = vpop.f32.mrf.mxu1  ;;  %v3531_v17 = vpop.f32.mrf.mxu0 }
 0x2e9   : > { %21458 = vst [vmem:[#allocation186_spill] sm:$0xff] %v15788_v18  ;;  %5617 = vmatmul.mubr.f32.gmra.mxu1 %v21461_v51  ;;  %5180 = vmatmul.mubr.f32.gmra.mxu0 %v21445_v34  ;;  %v3532_v55 = vadd.f32 %v3531_v17, %v21462_v9  ;;  %v21466_v18 = vld [vmem:[#allocation114_spill] sm:$0xff]  ;;  %v21467_v51 = vld [vmem:[#allocation107_spill] sm:$0xff]  ;;  %v21468_v17 = vand.u32 4294901760, %v14929_v0 }
 0x2ea   : > { %5624 = vmatprep.mubr.f32.mxu1 %v21464_v54  ;;  %5186 = vmatprep.mubr.f32.mxu0 %v21448_v48  ;;  %v4702_v14 = vpop.f32.mrf.mxu1  ;;  %v3533_v47 = vpop.f32.mrf.mxu0  ;;  %v21469_v48 = vld [vmem:[#allocation206_spill] sm:$0xff] }
 0x2eb   : > { %5862 = vmatprep.subr.mxu0 %v20567_v32  ;;  %6217 = vmatprep.subr.mxu1 %v20567_v32  ;;  %v15801_v2 = vadd.f32 %v3852_v20, %v3532_v55  ;;  %v21470_v14 = vld [vmem:[#allocation203_spill] sm:$0xff] }
 0x2ec   : > { %5866 = vmatpush1.msra.mxu0 %v21466_v18  ;;  %6219 = vmatpush1.msra.mxu1 %v21467_v51  ;;  %v4707_v34 = vpop.f32.mrf.mxu1  ;;  %v3538_v9 = vpop.f32.mrf.mxu0  ;;  %v21471_v47 = vand.u32 4294901760, %v21470_v14 }
 0x2ed   : > { %21465 = vst [vmem:[#allocation180_spill] sm:$0xff] %v15801_v2  ;;  %5628 = vmatmul.mubr.f32.gmra.mxu1 %v21468_v17  ;;  %5189 = vmatmul.mubr.f32.gmra.mxu0 %v21453_v43  ;;  %v3539_v54 = vadd.f32 %v3538_v9, %v21469_v48  ;;  %v21473_v2 = vld [vmem:[#allocation118_spill] sm:$0xff]  ;;  %v21474_v17 = vld [vmem:[#allocation37_spill] sm:$0xff]  ;;  %v21475_v9 = vand.u32 4294901760, %v14977_v53 }
 0x2ee   : > { %5635 = vmatprep.mubr.f32.mxu1 %v21471_v47  ;;  %5195 = vmatprep.mubr.f32.mxu0 %v21456_v15  ;;  %v4709_v20 = vpop.f32.mrf.mxu1  ;;  %v3540_v55 = vpop.f32.mrf.mxu0  ;;  %v21476_v47 = vld [vmem:[#allocation205_spill] sm:$0xff] }
 0x2ef   : > { %5867 = vmatprep.subr.mxu0 %v20567_v32  ;;  %6220 = vmatprep.subr.mxu1 %v20567_v32  ;;  %v15814_v18 = vadd.f32 %v3859_v36, %v3539_v54  ;;  %v21477_v20 = vand.u32 4294901760, %v21476_v47  ;;  %v21478_v55 = vld [vmem:[#allocation52_spill] sm:$0xff] }
 0x2f0   : > { %5871 = vmatpush2.msra.mxu0 %v21473_v2  ;;  %6222 = vmatpush2.msra.mxu1 %v21474_v17  ;;  %v4714_v43 = vpop.f32.mrf.mxu1  ;;  %v4003_v48 = vpop.f32.mrf.mxu0  ;;  %v21479_v2 = vld [vmem:[#allocation116_spill] sm:$0xff] }
 0x2f1   : > { %21472 = vst [vmem:[#allocation181_spill] sm:$0xff] %v15814_v18  ;;  %5639 = vmatmul.mubr.f32.gmra.mxu1 %v21475_v9  ;;  %5198 = vmatmul.mubr.f32.gmra.mxu0 %v14889_v59  ;;  %v15821_v15 = vadd.f32 %v4700_v1, %v4003_v48  ;;  %v21480_v59 = vand.u32 4294901760, %v15017_v19  ;;  %v21484_v18 = vld [vmem:[#allocation45_spill] sm:$0xff] }
 0x2f2   : > { %5646 = vmatprep.mubr.f32.mxu1 %v21477_v20  ;;  %5204 = vmatprep.mubr.f32.mxu0 %v21463_v44  ;;  %v4716_v36 = vpop.f32.mrf.mxu1  ;;  %v4005_v54 = vpop.f32.mrf.mxu0  ;;  %v21481_v44 = vld [vmem:[#allocation207_spill] sm:$0xff] }
 0x2f3   : > { %5872 = vmatprep.subr.mxu0 %v20567_v32  ;;  %6223 = vmatprep.subr.mxu1 %v20567_v32  ;;  %v21482_v20 = vand.u32 4294901760, %v21481_v44 }
 0x2f4   : > { %5876 = vmatpush2.msra.mxu0 %v21478_v55  ;;  %6225 = vmatpush2.msra.mxu1 %v21479_v2  ;;  %v4721_v9 = vpop.f32.mrf.mxu1  ;;  %v4018_v1 = vpop.f32.mrf.mxu0  ;;  %v21483_v55 = vld [vmem:[#allocation65_spill] sm:$0xff] }
 0x2f5   : > { %5650 = vmatmul.mubr.f32.gmra.mxu1 %v21480_v59  ;;  %5207 = vmatmul.mubr.f32.gmra.mxu0 %v14929_v0  ;;  %v15833_v48 = vadd.f32 %v4707_v34, %v4018_v1  ;;  %v21486_v0 = vand.u32 4294901760, %v21485_v45 }
 0x2f6   : > { %5657 = vmatprep.mubr.f32.mxu1 %v21482_v20  ;;  %5213 = vmatprep.mubr.f32.mxu0 %v21470_v14  ;;  %v4723_v36 = vpop.f32.mrf.mxu1  ;;  %v4020_v54 = vpop.f32.mrf.mxu0  ;;  %v21487_v14 = vld [vmem:[#allocation210_spill] sm:$0xff] }
 0x2f7   : > { %5877 = vmatprep.subr.mxu0 %v20567_v32  ;;  %6226 = vmatprep.subr.mxu1 %v20567_v32  ;;  %v21488_v20 = vand.u32 4294901760, %v21487_v14 }
 0x2f8   : > { %5881 = vmatpush2.msra.mxu0 %v21483_v55  ;;  %6228 = vmatpush2.msra.mxu1 %v21484_v18  ;;  %v4728_v59 = vpop.f32.mrf.mxu1  ;;  %v4033_v34 = vpop.f32.mrf.mxu0  ;;  %v21489_v55 = vld [vmem:[#allocation74_spill] sm:$0xff] }
 0x2f9   : > { %5661 = vmatmul.mubr.f32.gmra.mxu1 %v21486_v0  ;;  %5216 = vmatmul.mubr.f32.gmra.mxu0 %v14977_v53  ;;  %v15845_v1 = vadd.f32 %v4714_v43, %v4033_v34  ;;  %v21491_v53 = vand.u32 4294901760, %v15105_v40 }
 0x2fa   : > { %5668 = vmatprep.mubr.f32.mxu1 %v21488_v20  ;;  %5222 = vmatprep.mubr.f32.mxu0 %v21476_v47  ;;  %v4730_v36 = vpop.f32.mrf.mxu1  ;;  %v4035_v54 = vpop.f32.mrf.mxu0  ;;  %v21492_v47 = vand.u32 4294901760, %v15133_v28 }
 0x2fb   : > { %5882 = vmatprep.subr.mxu0 %v20567_v32  ;;  %6229 = vmatprep.subr.mxu1 %v20567_v32  ;;  %v21493_v54 = vld [vmem:[#allocation78_spill] sm:$0xff] }
 0x2fc   : > { %5886 = vmatpush2.msra.mxu0 %v21489_v55  ;;  %6231 = vmatpush2.msra.mxu1 %v21490_v33  ;;  %v4735_v0 = vpop.f32.mrf.mxu1  ;;  %v4048_v43 = vpop.f32.mrf.mxu0  ;;  %v21494_v55 = vld [vmem:[#allocation62_spill] sm:$0xff] }
 0x2fd   : > { %5672 = vmatmul.mubr.f32.gmra.mxu1 %v21491_v53  ;;  %5225 = vmatmul.mubr.f32.gmra.mxu0 %v15017_v19  ;;  %v15857_v34 = vadd.f32 %v4721_v9, %v4048_v43  ;;  %v21495_v19 = vand.u32 4294901760, %v15153_v52 }
 0x2fe   : > { %5679 = vmatprep.mubr.f32.mxu1 %v21492_v47  ;;  %5231 = vmatprep.mubr.f32.mxu0 %v21481_v44  ;;  %v4737_v20 = vpop.f32.mrf.mxu1  ;;  %v4050_v36 = vpop.f32.mrf.mxu0  ;;  %v21496_v44 = vld [vmem:[#allocation213_spill] sm:$0xff] }
 0x2ff   : > { %5887 = vmatprep.subr.mxu0 %v20567_v32  ;;  %6232 = vmatprep.subr.mxu1 %v20567_v32  ;;  %v21497_v47 = vand.u32 4294901760, %v21496_v44 }
 0x300   : > { %5891 = vmatpush2.msra.mxu0 %v21493_v54  ;;  %6234 = vmatpush2.msra.mxu1 %v21494_v55  ;;  %v4742_v53 = vpop.f32.mrf.mxu1  ;;  %v4063_v9 = vpop.f32.mrf.mxu0  ;;  %v21498_v54 = vld [vmem:[#allocation90_spill] sm:$0xff] }
 0x301   : > { %5683 = vmatmul.mubr.f32.gmra.mxu1 %v21495_v19  ;;  %5234 = vmatmul.mubr.f32.gmra.mxu0 %v21485_v45  ;;  %v15869_v43 = vadd.f32 %v4728_v59, %v4063_v9  ;;  %v21500_v45 = vand.u32 4294901760, %v15193_v29 }
 0x302   : > { %5690 = vmatprep.mubr.f32.mxu1 %v21497_v47  ;;  %5240 = vmatprep.mubr.f32.mxu0 %v21487_v14  ;;  %v4744_v20 = vpop.f32.mrf.mxu1  ;;  %v4065_v36 = vpop.f32.mrf.mxu0  ;;  %v21502_v14 = vld [vmem:[#allocation215_spill] sm:$0xff] }
 0x303   : > { %5892 = vmatprep.subr.mxu0 %v20567_v32  ;;  %6235 = vmatprep.subr.mxu1 %v20567_v32  ;;  %v21503_v47 = vand.u32 4294901760, %v21502_v14 }
 0x304   : > { %5896 = vmatpush2.msra.mxu0 %v21498_v54  ;;  %6237 = vmatpush2.msra.mxu1 %v21499_v31  ;;  %v4749_v19 = vpop.f32.mrf.mxu1  ;;  %v4078_v59 = vpop.f32.mrf.mxu0  ;;  %v21504_v54 = vld [vmem:[#allocation120_spill] sm:$0xff] }
 0x305   : > { %5694 = vmatmul.mubr.f32.gmra.mxu1 %v21500_v45  ;;  %5243 = vmatmul.mubr.f32.gmra.mxu0 %v15105_v40  ;;  %v15881_v9 = vadd.f32 %v4735_v0, %v4078_v59  ;;  %v21507_v40 = vand.u32 4294901760, %v21506_v61 }
 0x306   : > { %5701 = vmatprep.mubr.f32.mxu1 %v21503_v47  ;;  %5249 = vmatprep.mubr.f32.mxu0 %v15133_v28  ;;  %v4751_v20 = vpop.f32.mrf.mxu1  ;;  %v4080_v36 = vpop.f32.mrf.mxu0  ;;  %v21508_v28 = vld [vmem:[#allocation219_spill] sm:$0xff] }
 0x307   : > { %21501 = vst [vmem:[#allocation187_spill] sm:$0xff] %v15881_v9  ;;  %5897 = vmatprep.subr.mxu0 %v20567_v32  ;;  %6238 = vmatprep.subr.mxu1 %v20567_v32  ;;  %v21509_v47 = vand.u32 4294901760, %v21508_v28  ;;  %v21512_v9 = vld [vmem:[#allocation99_spill] sm:$0xff] }
 0x308   : > { %5901 = vmatpush2.msra.mxu0 %v21504_v54  ;;  %6240 = vmatpush2.msra.mxu1 %v21505_v5  ;;  %v4756_v45 = vpop.f32.mrf.mxu1  ;;  %v4093_v0 = vpop.f32.mrf.mxu0  ;;  %v21510_v54 = vld [vmem:[#allocation125_spill] sm:$0xff] }
 0x309   : > { %5705 = vmatmul.mubr.f32.gmra.mxu1 %v21507_v40  ;;  %5252 = vmatmul.mubr.f32.gmra.mxu0 %v15153_v52  ;;  %v15893_v59 = vadd.f32 %v4742_v53, %v4093_v0  ;;  %v21511_v5 = vld [vmem:[#allocation93_spill] sm:$0xff]  ;;  %v21513_v52 = vand.u32 4294901760, %v21512_v9 }
 0x30a   : > { %5712 = vmatprep.mubr.f32.mxu1 %v21509_v47  ;;  %5258 = vmatprep.mubr.f32.mxu0 %v21496_v44  ;;  %v4758_v20 = vpop.f32.mrf.mxu1  ;;  %v4095_v36 = vpop.f32.mrf.mxu0  ;;  %v21514_v44 = vand.u32 4294901760, %v15309_v26 }
 0x30b   : > { %5902 = vmatprep.subr.mxu0 %v20567_v32  ;;  %6241 = vmatprep.subr.mxu1 %v20567_v32  ;;  %v21515_v36 = vld [vmem:[#allocation129_spill] sm:$0xff] }
 0x30c   : > { %5906 = vmatpush2.msra.mxu0 %v21510_v54  ;;  %6243 = vmatpush2.msra.mxu1 %v21511_v5  ;;  %v4763_v40 = vpop.f32.mrf.mxu1  ;;  %v21520_v54 = vld [vmem:[#allocation124_spill] sm:$0xff] }
 0x30d   : > { %5716 = vmatmul.mubr.f32.gmra.mxu1 %v21513_v52  ;;  %v4108_v53 = vpop.f32.mrf.mxu0  ;;  %5261 = vmatmul.mubr.f32.gmra.mxu0 %v15193_v29  ;;  %v21516_v29 = vand.u32 4294901760, %v15329_v56 }
 0x30e   : > { %v15905_v0 = vadd.f32 %v4749_v19, %v4108_v53  ;;  %5723 = vmatprep.mubr.f32.mxu1 %v21514_v44  ;;  %5267 = vmatprep.mubr.f32.mxu0 %v21502_v14  ;;  %v4765_v47 = vpop.f32.mrf.mxu1  ;;  %v21517_v14 = vld [vmem:[#allocation223_spill] sm:$0xff] }
 0x30f   : > { %v4110_v20 = vpop.f32.mrf.mxu0  ;;  %5907 = vmatprep.subr.mxu0 %v20567_v32  ;;  %6244 = vmatprep.subr.mxu1 %v20567_v32  ;;  %v21518_v44 = vand.u32 4294901760, %v21517_v14 }
 0x310   : > { %5911 = vmatpush2.msra.mxu0 %v21515_v36  ;;  %6246 = vmatpush2.msra.mxu1 %v21315_v12  ;;  %v4770_v52 = vpop.f32.mrf.mxu1  ;;  %v21519_v36 = vld [vmem:[#allocation130_spill] sm:$0xff] }
 0x311   : > { %5727 = vmatmul.mubr.f32.gmra.mxu1 %v21516_v29  ;;  %v4123_v19 = vpop.f32.mrf.mxu0  ;;  %5270 = vmatmul.mubr.f32.gmra.mxu0 %v21506_v61  ;;  %v21521_v61 = vand.u32 4294901760, %v15360_v62 }
 0x312   : > { %v15917_v53 = vadd.f32 %v4756_v45, %v4123_v19  ;;  %5734 = vmatprep.mubr.f32.mxu1 %v21518_v44  ;;  %5276 = vmatprep.mubr.f32.mxu0 %v21508_v28  ;;  %v4772_v47 = vpop.f32.mrf.mxu1  ;;  %v21522_v28 = vld [vmem:[#allocation225_spill] sm:$0xff] }
 0x313   : > { %v4125_v20 = vpop.f32.mrf.mxu0  ;;  %5912 = vmatprep.subr.mxu0 %v20567_v32  ;;  %6247 = vmatprep.subr.mxu1 %v20567_v32  ;;  %v21523_v44 = vand.u32 4294901760, %v21522_v28 }
 0x314   : > { %5916 = vmatpush2.msra.mxu0 %v21519_v36  ;;  %6249 = vmatpush2.msra.mxu1 %v21520_v54  ;;  %v4777_v29 = vpop.f32.mrf.mxu1  ;;  %v21524_v36 = vld [vmem:[#allocation134_spill] sm:$0xff]  ;;  %v21525_v54 = vld [vmem:[#allocation127_spill] sm:$0xff] }
 0x315   : > { %5738 = vmatmul.mubr.f32.gmra.mxu1 %v21521_v61  ;;  %v4138_v45 = vpop.f32.mrf.mxu0  ;;  %5279 = vmatmul.mubr.f32.gmra.mxu0 %v21512_v9  ;;  %v21526_v9 = vand.u32 4294901760, %v15417_v35 }
 0x316   : > { %v15929_v19 = vadd.f32 %v4763_v40, %v4138_v45  ;;  %5745 = vmatprep.mubr.f32.mxu1 %v21523_v44  ;;  %5285 = vmatprep.mubr.f32.mxu0 %v15309_v26  ;;  %v4779_v47 = vpop.f32.mrf.mxu1  ;;  %v21527_v26 = vand.u32 4294901760, %v15438_v60 }
 0x317   : > { %v4140_v20 = vpop.f32.mrf.mxu0  ;;  %5917 = vmatprep.subr.mxu0 %v20567_v32  ;;  %6250 = vmatprep.subr.mxu1 %v20567_v32 }
 0x318   : > { %5921 = vmatpush2.msra.mxu0 %v21524_v36  ;;  %6252 = vmatpush2.msra.mxu1 %v21525_v54  ;;  %v4784_v61 = vpop.f32.mrf.mxu1  ;;  %v21528_v20 = vld [vmem:[#allocation139_spill] sm:$0xff] }
 0x319   : > { %5749 = vmatmul.mubr.f32.gmra.mxu1 %v21526_v9  ;;  %v4153_v40 = vpop.f32.mrf.mxu0  ;;  %5288 = vmatmul.mubr.f32.gmra.mxu0 %v15329_v56  ;;  %v21529_v56 = vand.u32 4294901760, %v15448_v30 }
 0x31a   : > { %v15941_v45 = vadd.f32 %v4770_v52, %v4153_v40  ;;  %5756 = vmatprep.mubr.f32.mxu1 %v21527_v26  ;;  %5294 = vmatprep.mubr.f32.mxu0 %v21517_v14  ;;  %v4786_v44 = vpop.f32.mrf.mxu1  ;;  %v21530_v14 = vand.u32 4294901760, %v15491_v41 }
 0x31b   : > { %v4155_v47 = vpop.f32.mrf.mxu0  ;;  %5922 = vmatprep.subr.mxu0 %v20567_v32  ;;  %6253 = vmatprep.subr.mxu1 %v20567_v32 }
 0x31c   : > { %5926 = vmatpush2.msra.mxu0 %v21528_v20  ;;  %6255 = vmatpush2.msra.mxu1 %v21330_v23  ;;  %v4791_v9 = vpop.f32.mrf.mxu1  ;;  %v21531_v47 = vld [vmem:[#allocation143_spill] sm:$0xff] }
 0x31d   : > { %5760 = vmatmul.mubr.f32.gmra.mxu1 %v21529_v56  ;;  %v4168_v52 = vpop.f32.mrf.mxu0  ;;  %5297 = vmatmul.mubr.f32.gmra.mxu0 %v15360_v62  ;;  %v21532_v62 = vand.u32 4294901760, %v15501_v10 }
 0x31e   : > { %v15953_v40 = vadd.f32 %v4777_v29, %v4168_v52  ;;  %5767 = vmatprep.mubr.f32.mxu1 %v21530_v14  ;;  %5303 = vmatprep.mubr.f32.mxu0 %v21522_v28  ;;  %v4793_v26 = vpop.f32.mrf.mxu1  ;;  %v21533_v28 = vand.u32 4294901760, %v15521_v27 }
 0x31f   : > { %v4170_v44 = vpop.f32.mrf.mxu0  ;;  %5927 = vmatprep.subr.mxu0 %v20567_v32  ;;  %6256 = vmatprep.subr.mxu1 %v20567_v32 }
 0x320   : > { %5931 = vmatpush2.msra.mxu0 %v21531_v47  ;;  %6258 = vmatpush2.msra.mxu1 %v21335_v13  ;;  %v4798_v56 = vpop.f32.mrf.mxu1  ;;  %v21534_v44 = vld [vmem:[#allocation148_spill] sm:$0xff] }
 0x321   : > { %5771 = vmatmul.mubr.f32.gmra.mxu1 %v21532_v62  ;;  %v4183_v29 = vpop.f32.mrf.mxu0  ;;  %5306 = vmatmul.mubr.f32.gmra.mxu0 %v15417_v35  ;;  %v21535_v35 = vand.u32 4294901760, %v15529_v49  ;;  %v21540_v47 = vld [vmem:[#allocation152_spill] sm:$0xff] }
 0x322   : > { %v15965_v52 = vadd.f32 %v4784_v61, %v4183_v29  ;;  %5778 = vmatprep.mubr.f32.mxu1 %v21533_v28  ;;  %5312 = vmatprep.mubr.f32.mxu0 %v15438_v60  ;;  %v4800_v14 = vpop.f32.mrf.mxu1 }
 0x323   : > { %6259 = vmatprep.subr.mxu1 %v20567_v32  ;;  %v4185_v26 = vpop.f32.mrf.mxu0  ;;  %5932 = vmatprep.subr.mxu0 %v20567_v32 }
 0x324   : > { %6261 = vmatpush2.msra.mxu1 %v21341_v39  ;;  %5936 = vmatpush2.msra.mxu0 %v21534_v44  ;;  %v4805_v62 = vpop.f32.mrf.mxu1 }
 0x325   : > { %5782 = vmatmul.mubr.f32.gmra.mxu1 %v21535_v35  ;;  %6262 = vmatprep.subr.mxu1 %v20567_v32  ;;  %v4198_v61 = vpop.f32.mrf.mxu0  ;;  %v21538_v35 = vld [vmem:[#allocation56_spill] sm:$0xff] }
 0x326   : > { %v15977_v29 = vadd.f32 %v4791_v9, %v4198_v61  ;;  %5315 = vmatmul.mubr.f32.gmra.mxu0 %v15448_v30  ;;  %6264 = vmatpush2.msra.mxu1 %v13998_v6  ;;  %v4807_v28 = vpop.f32.mrf.mxu1  ;;  %v21537_v30 = vld [vmem:[#allocation112_spill] sm:$0xff] }
 0x327   : > { %10333 = vmatprep.mubr.msk.f32.mxu1 %vm722_vm2, %v20903_v8  ;;  %5321 = vmatprep.mubr.f32.mxu0 %v15491_v41  ;;  %v4200_v14 = vpop.f32.mrf.mxu0 }
 0x328   : > { %6265 = vmatprep.subr.mxu1 %v20567_v32  ;;  %5937 = vmatprep.subr.mxu0 %v20567_v32  ;;  %v4812_v9 = vpop.f32.mrf.mxu1 }
 0x329   : > { %6267 = vmatpush2.msra.mxu1 %v14028_v58  ;;  %v4213_v26 = vpop.f32.mrf.mxu0  ;;  %5941 = vmatpush2.msra.mxu0 %v21537_v30 }
 0x32a   : > { %10334 = vmatmul.mubr.msk.f32.vlgmr.msra.gmra.mxu1 %vm721_vm4, %v20903_v8  ;;  %v15994_v61 = vadd.f32 %v4798_v56, %v4213_v26  ;;  %5324 = vmatmul.mubr.f32.gmra.mxu0 %v15501_v10  ;;  %v4814_v28 = vpop.f32.mrf.mxu1  ;;  %v21541_v56 = vld [vmem:[#allocation6_spill] sm:$0xff] }
 0x32b   : > { %10335 = vmatprep.mubr.msk.f32.mxu1 %vm724_vm5, %v20903_v8  ;;  %5330 = vmatprep.mubr.f32.mxu0 %v15521_v27  ;;  %v4215_v14 = vpop.f32.mrf.mxu0 }
 0x32c   : > { %5942 = vmatprep.subr.mxu0 %v20567_v32  ;;  %7070 = vmatprep.subr.mxu1 %v20567_v32  ;;  %v4819_v30 = vpop.f32.mrf.mxu1  ;;  %v21543_v14 = vld [vmem:[#allocation71_spill] sm:$0xff] }
 0x32d   : > { %v4228_v44 = vpop.f32.mrf.mxu0  ;;  %5946 = vmatpush2.msra.mxu0 %v21540_v47  ;;  %7076 = vmatpush1.msra.mxu1 %v21541_v56  ;;  %v21544_v56 = vld [vmem:[#allocation156_spill] sm:$0xff] }
 0x32e   : > { %10336 = vmatmul.mubr.msk.f32.gmra.mxu1 %vm723_vm6, %v20903_v8  ;;  %v16010_v10 = vadd.f32 %v4805_v62, %v4228_v44  ;;  %5333 = vmatmul.mubr.f32.gmra.mxu0 %v15529_v49  ;;  %v4821_v26 = vpop.f32.mrf.mxu1 }
 0x32f   : > { %10337 = vmatprep.mubr.msk.f32.mxu1 %vm726_vm12, %v20903_v8  ;;  %10269 = vmatprep.mubr.msk.f32.mxu0 %vm722_vm2, %v20903_v8  ;;  %v4230_v28 = vpop.f32.mrf.mxu0  ;;  %vm21545_vm2 = vcmp.eq.s32.totalorder %v21538_v35, %v21544_v56 }
 0x330   : > { %6493 = vmatprep.subr.mxu0 %v20567_v32  ;;  %7077 = vmatprep.subr.mxu1 %v20567_v32  ;;  %v4826_v44 = vpop.f32.mrf.mxu1 }
 0x331   : > { %v4243_v62 = vpop.f32.mrf.mxu0  ;;  %7083 = vmatpush1.msra.mxu1 %v21543_v14  ;;  %v21546_v14 = vld [vmem:[#allocation160_spill] sm:$0xff] }
 0x332   : > { %10338 = vmatmul.mubr.msk.f32.gmra.mxu1 %vm725_vm8, %v20903_v8  ;;  %v16028_v49 = vadd.f32 %v4812_v9, %v4243_v62  ;;  %10270 = vmatmul.mubr.msk.f32.vlgmr.msra.gmra.mxu0 %vm721_vm4, %v20903_v8  ;;  %v4828_v26 = vpop.f32.mrf.mxu1  ;;  %vm21547_vm4 = vcmp.eq.s32.totalorder %v20904_v57, %v21546_v14 }
 0x333   : > { %10339 = vmatprep.mubr.msk.f32.mxu1 %vm728_vm13, %v20903_v8  ;;  %6495 = vmatpush1.msra.mxu0 %v21362_v7  ;;  %v4245_v28 = vpop.f32.mrf.mxu0 }
 0x334   : > { %10271 = vmatprep.mubr.msk.f32.mxu0 %vm724_vm5, %v20903_v8  ;;  %6496 = vmatprep.subr.mxu0 %v20567_v32  ;;  %v4833_v9 = vpop.f32.mrf.mxu1  ;;  %vm21549_vm5 = vcmp.eq.s32.totalorder %v21538_v35, %v21546_v14 }
 0x335   : > { %v4258_v62 = vpop.f32.mrf.mxu0  ;;  %6498 = vmatpush1.msra.mxu0 %v21370_v11  ;;  %7084 = vmatprep.subr.mxu1 %v20567_v32 }
 0x336   : > { %10340 = vmatmul.mubr.msk.f32.gmra.mxu1 %vm21545_vm2, %v20903_v8  ;;  %v16050_v60 = vadd.f32 %v4819_v30, %v4258_v62  ;;  %10272 = vmatmul.mubr.msk.f32.gmra.mxu0 %vm723_vm6, %v20903_v8  ;;  %v4835_v26 = vpop.f32.mrf.mxu1  ;;  %v21548_v30 = vld [vmem:[#allocation11_spill] sm:$0xff] }
 0x337   : > { %10341 = vmatprep.mubr.msk.f32.mxu1 %vm21547_vm4, %v20903_v8  ;;  %10273 = vmatprep.mubr.msk.f32.mxu0 %vm726_vm12, %v20903_v8  ;;  %v4260_v28 = vpop.f32.mrf.mxu0  ;;  %v21550_v26 = vld [vmem:[#allocation162_spill] sm:$0xff] }
 0x338   : > { %6499 = vmatprep.subr.mxu0 %v20567_v32  ;;  %7090 = vmatpush1.msra.mxu1 %v21548_v30  ;;  %v4840_v62 = vpop.f32.mrf.mxu1  ;;  %vm21551_vm6 = vcmp.eq.s32.totalorder %v20904_v57, %v21550_v26  ;;  %vm21553_vm12 = vcmp.eq.s32.totalorder %v21538_v35, %v21550_v26 }
 0x339   : > { %v4273_v47 = vpop.f32.mrf.mxu0  ;;  %6501 = vmatpush1.msra.mxu0 %v12989_v16  ;;  %7091 = vmatprep.subr.mxu1 %v20567_v32 }
 0x33a   : > { %10342 = vmatmul.mubr.msk.f32.gmra.mxu1 %vm21549_vm5, %v20903_v8  ;;  %v16072_v41 = vadd.f32 %v4826_v44, %v4273_v47  ;;  %10274 = vmatmul.mubr.msk.f32.gmra.mxu0 %vm725_vm8, %v20903_v8  ;;  %v4842_v28 = vpop.f32.mrf.mxu1  ;;  %v21552_v47 = vld [vmem:[#allocation13_spill] sm:$0xff]  ;;  %vm21554_vm8 = vmmov %vm21545_vm2 }
 0x33b   : > { %10343 = vmatprep.mubr.msk.f32.mxu1 %vm21551_vm6, %v20903_v8  ;;  %10275 = vmatprep.mubr.msk.f32.mxu0 %vm728_vm13, %v20903_v8  ;;  %v4275_v30 = vpop.f32.mrf.mxu0  ;;  %v21555_v28 = vld [vmem:[#allocation166_spill] sm:$0xff]  ;;  %vm21557_vm2 = vmmov %vm21547_vm4 }
 0x33c   : > { %6502 = vmatprep.subr.mxu0 %v20567_v32  ;;  %7097 = vmatpush1.msra.mxu1 %v21552_v47  ;;  %v4847_v44 = vpop.f32.mrf.mxu1  ;;  %vm21556_vm13 = vcmp.eq.s32.totalorder %v20904_v57, %v21555_v28  ;;  %vm21559_vm4 = vcmp.eq.s32.totalorder %v21538_v35, %v21555_v28 }
 0x33d   : > { %v4288_v20 = vpop.f32.mrf.mxu0  ;;  %6504 = vmatpush1.msra.mxu0 %v13008_v46  ;;  %7098 = vmatprep.subr.mxu1 %v20567_v32 }
 0x33e   : > { %10344 = vmatmul.mubr.msk.f32.gmra.mxu1 %vm21553_vm12, %v20903_v8  ;;  %v16094_v27 = vadd.f32 %v4833_v9, %v4288_v20  ;;  %10276 = vmatmul.mubr.msk.f32.gmra.mxu0 %vm21554_vm8, %v20903_v8  ;;  %v4849_v30 = vpop.f32.mrf.mxu1  ;;  %v21558_v20 = vld [vmem:[#allocation16_spill] sm:$0xff]  ;;  %vm21563_vm12 = vcmp.eq.s32.totalorder %v20904_v57, %v21550_v26 }
 0x33f   : > { %10345 = vmatprep.mubr.msk.f32.mxu1 %vm21556_vm13, %v20903_v8  ;;  %10277 = vmatprep.mubr.msk.f32.mxu0 %vm21557_vm2, %v20903_v8  ;;  %v4290_v47 = vpop.f32.mrf.mxu0  ;;  %v21561_v30 = vld [vmem:[#allocation168_spill] sm:$0xff]  ;;  %vm21567_vm13 = vcmp.eq.s32.totalorder %v21538_v35, %v21550_v26 }
 0x340   : > { %6505 = vmatprep.subr.mxu0 %v20567_v32  ;;  %7104 = vmatpush1.msra.mxu1 %v21558_v20  ;;  %v4854_v9 = vpop.f32.mrf.mxu1  ;;  %vm21562_vm6 = vcmp.eq.s32.totalorder %v20904_v57, %v21561_v30  ;;  %vm21565_vm8 = vcmp.eq.s32.totalorder %v21538_v35, %v21561_v30 }
 0x341   : > { %v4303_v36 = vpop.f32.mrf.mxu0  ;;  %6507 = vmatpush1.msra.mxu0 %v13049_v42  ;;  %7105 = vmatprep.subr.mxu1 %v20567_v32 }
 0x342   : > { %10346 = vmatmul.mubr.msk.f32.gmra.mxu1 %vm21559_vm4, %v20903_v8  ;;  %v16116_v56 = vadd.f32 %v4840_v62, %v4303_v36  ;;  %10278 = vmatmul.mubr.msk.f32.gmra.mxu0 %vm21549_vm5, %v20903_v8  ;;  %v4856_v47 = vpop.f32.mrf.mxu1  ;;  %v21564_v36 = vld [vmem:[#allocation87_spill] sm:$0xff]  ;;  %vm21570_vm4 = vcmp.eq.s32.totalorder %v20904_v57, %v21555_v28 }
 0x343   : > { %10347 = vmatprep.mubr.msk.f32.mxu1 %vm21562_vm6, %v20903_v8  ;;  %10279 = vmatprep.mubr.msk.f32.mxu0 %vm21563_vm12, %v20903_v8  ;;  %v4305_v20 = vpop.f32.mrf.mxu0  ;;  %v21568_v47 = vld [vmem:[#allocation169_spill] sm:$0xff]  ;;  %vm21574_vm6 = vcmp.eq.s32.totalorder %v21538_v35, %v21555_v28 }
 0x344   : > { %21560 = vst [vmem:[#allocation21_spill] sm:$0xff] %v16116_v56  ;;  %6508 = vmatprep.subr.mxu0 %v20567_v32  ;;  %7111 = vmatpush1.msra.mxu1 %v21564_v36  ;;  %v4861_v62 = vpop.f32.mrf.mxu1  ;;  %vm21569_vm2 = vcmp.eq.s32.totalorder %v20904_v57, %v21568_v47  ;;  %vm21572_vm5 = vcmp.eq.s32.totalorder %v21538_v35, %v21568_v47 }
 0x345   : > { %v4318_v56 = vpop.f32.mrf.mxu0  ;;  %6510 = vmatpush1.msra.mxu0 %v21391_v4  ;;  %7112 = vmatprep.subr.mxu1 %v20567_v32 }
 0x346   : > { %10348 = vmatmul.mubr.msk.f32.gmra.mxu1 %vm21565_vm8, %v20903_v8  ;;  %v16138_v14 = vadd.f32 %v4847_v44, %v4318_v56  ;;  %10280 = vmatmul.mubr.msk.f32.gmra.mxu0 %vm21567_vm13, %v20903_v8  ;;  %v4863_v20 = vpop.f32.mrf.mxu1  ;;  %v21571_v44 = vld [vmem:[#allocation17_spill] sm:$0xff]  ;;  %vm21577_vm8 = vcmp.eq.s32.totalorder %v20904_v57, %v21561_v30 }
 0x347   : > { %10349 = vmatprep.mubr.msk.f32.mxu1 %vm21569_vm2, %v20903_v8  ;;  %10281 = vmatprep.mubr.msk.f32.mxu0 %vm21570_vm4, %v20903_v8  ;;  %v4320_v36 = vpop.f32.mrf.mxu0  ;;  %v21575_v20 = vld [vmem:[#allocation170_spill] sm:$0xff]  ;;  %vm21581_vm2 = vcmp.eq.s32.totalorder %v21538_v35, %v21561_v30 }
 0x348   : > { %21566 = vst [vmem:[#allocation184_spill] sm:$0xff] %v16138_v14  ;;  %6511 = vmatprep.subr.mxu0 %v20567_v32  ;;  %7118 = vmatpush1.msra.mxu1 %v21571_v44  ;;  %v4868_v56 = vpop.f32.mrf.mxu1  ;;  %vm21576_vm12 = vcmp.eq.s32.totalorder %v20904_v57, %v21575_v20  ;;  %vm21579_vm13 = vcmp.eq.s32.totalorder %v21538_v35, %v21575_v20 }
 0x349   : > { %v4333_v14 = vpop.f32.mrf.mxu0  ;;  %6513 = vmatpush1.msra.mxu0 %v21399_v25  ;;  %7119 = vmatprep.subr.mxu1 %v20567_v32 }
 0x34a   : > { %10350 = vmatmul.mubr.msk.f32.gmra.mxu1 %vm21572_vm5, %v20903_v8  ;;  %v16160_v26 = vadd.f32 %v4854_v9, %v4333_v14  ;;  %10282 = vmatmul.mubr.msk.f32.gmra.mxu0 %vm21574_vm6, %v20903_v8  ;;  %v4870_v36 = vpop.f32.mrf.mxu1  ;;  %v21578_v9 = vld [vmem:[#allocation22_spill] sm:$0xff]  ;;  %vm21584_vm5 = vcmp.eq.s32.totalorder %v20904_v57, %v21568_v47 }
 0x34b   : > { %10351 = vmatprep.mubr.msk.f32.mxu1 %vm21576_vm12, %v20903_v8  ;;  %10283 = vmatprep.mubr.msk.f32.mxu0 %vm21577_vm8, %v20903_v8  ;;  %v4335_v44 = vpop.f32.mrf.mxu0  ;;  %v21582_v36 = vld [vmem:[#allocation175_spill] sm:$0xff]  ;;  %vm21588_vm12 = vcmp.eq.s32.totalorder %v21538_v35, %v21568_v47 }
 0x34c   : > { %21573 = vst [vmem:[#allocation190_spill] sm:$0xff] %v16160_v26  ;;  %6514 = vmatprep.subr.mxu0 %v20567_v32  ;;  %7125 = vmatpush1.msra.mxu1 %v21578_v9  ;;  %v4875_v14 = vpop.f32.mrf.mxu1  ;;  %vm21583_vm4 = vcmp.eq.s32.totalorder %v20904_v57, %v21582_v36  ;;  %vm21586_vm6 = vcmp.eq.s32.totalorder %v21538_v35, %v21582_v36 }
 0x34d   : > { %v4348_v26 = vpop.f32.mrf.mxu0  ;;  %6516 = vmatpush1.msra.mxu0 %v21407_v3  ;;  %7126 = vmatprep.subr.mxu1 %v20567_v32 }
 0x34e   : > { %10352 = vmatmul.mubr.msk.f32.gmra.mxu1 %vm21579_vm13, %v20903_v8  ;;  %v16182_v28 = vadd.f32 %v4861_v62, %v4348_v26  ;;  %10284 = vmatmul.mubr.msk.f32.gmra.mxu0 %vm21581_vm2, %v20903_v8  ;;  %v4877_v44 = vpop.f32.mrf.mxu1  ;;  %v21585_v62 = vld [vmem:[#allocation30_spill] sm:$0xff]  ;;  %vm21591_vm13 = vcmp.eq.s32.totalorder %v20904_v57, %v21575_v20 }
 0x34f   : > { %10353 = vmatprep.mubr.msk.f32.mxu1 %vm21583_vm4, %v20903_v8  ;;  %10285 = vmatprep.mubr.msk.f32.mxu0 %vm21584_vm5, %v20903_v8  ;;  %v4350_v9 = vpop.f32.mrf.mxu0  ;;  %v21589_v44 = vld [vmem:[#allocation179_spill] sm:$0xff]  ;;  %vm21595_vm4 = vcmp.eq.s32.totalorder %v21538_v35, %v21575_v20 }
 0x350   : > { %21580 = vst [vmem:[#allocation28_spill] sm:$0xff] %v16182_v28  ;;  %6517 = vmatprep.subr.mxu0 %v20567_v32  ;;  %7132 = vmatpush1.msra.mxu1 %v21585_v62  ;;  %vm21590_vm8 = vcmp.eq.s32.totalorder %v20904_v57, %v21589_v44  ;;  %vm21593_vm2 = vcmp.eq.s32.totalorder %v21538_v35, %v21589_v44 }
 0x351   : > { %v4882_v26 = vpop.f32.mrf.mxu1  ;;  %v4363_v28 = vpop.f32.mrf.mxu0  ;;  %6519 = vmatpush1.msra.mxu0 %v21415_v21  ;;  %7133 = vmatprep.subr.mxu1 %v20567_v32 }
 0x352   : > { %10354 = vmatmul.mubr.msk.f32.gmra.mxu1 %vm21586_vm6, %v20903_v8  ;;  %v16204_v30 = vadd.f32 %v4868_v56, %v4363_v28  ;;  %10286 = vmatmul.mubr.msk.f32.gmra.mxu0 %vm21588_vm12, %v20903_v8  ;;  %v21592_v56 = vld [vmem:[#allocation32_spill] sm:$0xff]  ;;  %vm21598_vm6 = vcmp.eq.s32.totalorder %v20904_v57, %v21582_v36 }
 0x353   : > { %10355 = vmatprep.mubr.msk.f32.mxu1 %vm21590_vm8, %v20903_v8  ;;  %v4884_v9 = vpop.f32.mrf.mxu1  ;;  %10287 = vmatprep.mubr.msk.f32.mxu0 %vm21591_vm13, %v20903_v8  ;;  %v4365_v62 = vpop.f32.mrf.mxu0  ;;  %vm21602_vm8 = vcmp.eq.s32.totalorder %v21538_v35, %v21582_v36 }
 0x354   : > { %21587 = vst [vmem:[#allocation188_spill] sm:$0xff] %v16204_v30  ;;  %6520 = vmatprep.subr.mxu0 %v20567_v32  ;;  %7139 = vmatpush1.msra.mxu1 %v21592_v56  ;;  %v21596_v9 = vld [vmem:[#allocation183_spill] sm:$0xff] }
 0x355   : > { %v4889_v28 = vpop.f32.mrf.mxu1  ;;  %v4378_v30 = vpop.f32.mrf.mxu0  ;;  %6522 = vmatpush1.msra.mxu0 %v21423_v22  ;;  %7140 = vmatprep.subr.mxu1 %v20567_v32  ;;  %vm21597_vm5 = vcmp.eq.s32.totalorder %v20904_v57, %v21596_v9  ;;  %vm21600_vm12 = vcmp.eq.s32.totalorder %v21538_v35, %v21596_v9 }
 0x356   : > { %10356 = vmatmul.mubr.msk.f32.gmra.mxu1 %vm21593_vm2, %v20903_v8  ;;  %v16226_v47 = vadd.f32 %v4875_v14, %v4378_v30  ;;  %10288 = vmatmul.mubr.msk.f32.gmra.mxu0 %vm21595_vm4, %v20903_v8  ;;  %v21599_v14 = vld [vmem:[#allocation31_spill] sm:$0xff]  ;;  %vm21605_vm2 = vcmp.eq.s32.totalorder %v20904_v57, %v21589_v44 }
 0x357   : > { %10357 = vmatprep.mubr.msk.f32.mxu1 %vm21597_vm5, %v20903_v8  ;;  %v4891_v62 = vpop.f32.mrf.mxu1  ;;  %10289 = vmatprep.mubr.msk.f32.mxu0 %vm21598_vm6, %v20903_v8  ;;  %v4380_v56 = vpop.f32.mrf.mxu0  ;;  %vm21609_vm5 = vcmp.eq.s32.totalorder %v21538_v35, %v21589_v44 }
 0x358   : > { %21594 = vst [vmem:[#allocation192_spill] sm:$0xff] %v16226_v47  ;;  %6523 = vmatprep.subr.mxu0 %v20567_v32  ;;  %7146 = vmatpush1.msra.mxu1 %v21599_v14  ;;  %v21603_v62 = vld [vmem:[#allocation185_spill] sm:$0xff] }
 0x359   : > { %v4896_v30 = vpop.f32.mrf.mxu1  ;;  %v4393_v47 = vpop.f32.mrf.mxu0  ;;  %6525 = vmatpush1.msra.mxu0 %v21431_v38  ;;  %7147 = vmatprep.subr.mxu1 %v20567_v32  ;;  %vm21604_vm13 = vcmp.eq.s32.totalorder %v20904_v57, %v21603_v62  ;;  %vm21607_vm4 = vcmp.eq.s32.totalorder %v21538_v35, %v21603_v62 }
 0x35a   : > { %10358 = vmatmul.mubr.msk.f32.gmra.mxu1 %vm21600_vm12, %v20903_v8  ;;  %v16248_v20 = vadd.f32 %v4882_v26, %v4393_v47  ;;  %10290 = vmatmul.mubr.msk.f32.gmra.mxu0 %vm21602_vm8, %v20903_v8  ;;  %v21606_v26 = vld [vmem:[#allocation109_spill] sm:$0xff]  ;;  %vm21612_vm12 = vcmp.eq.s32.totalorder %v20904_v57, %v21596_v9 }
 0x35b   : > { %10359 = vmatprep.mubr.msk.f32.mxu1 %vm21604_vm13, %v20903_v8  ;;  %v4898_v56 = vpop.f32.mrf.mxu1  ;;  %10291 = vmatprep.mubr.msk.f32.mxu0 %vm21605_vm2, %v20903_v8  ;;  %v4395_v14 = vpop.f32.mrf.mxu0  ;;  %vm21616_vm13 = vcmp.eq.s32.totalorder %v21538_v35, %v21596_v9 }
 0x35c   : > { %21601 = vst [vmem:[#allocation100_spill] sm:$0xff] %v16248_v20  ;;  %6526 = vmatprep.subr.mxu0 %v20567_v32  ;;  %7153 = vmatpush1.msra.mxu1 %v21606_v26  ;;  %v21610_v56 = vld [vmem:[#allocation189_spill] sm:$0xff] }
 0x35d   : > { %v4903_v47 = vpop.f32.mrf.mxu1  ;;  %v4408_v20 = vpop.f32.mrf.mxu0  ;;  %6528 = vmatpush1.msra.mxu0 %v21438_v63  ;;  %7154 = vmatprep.subr.mxu1 %v20567_v32  ;;  %vm21611_vm6 = vcmp.eq.s32.totalorder %v20904_v57, %v21610_v56  ;;  %vm21614_vm8 = vcmp.eq.s32.totalorder %v21538_v35, %v21610_v56 }
 0x35e   : > { %10360 = vmatmul.mubr.msk.f32.gmra.mxu1 %vm21607_vm4, %v20903_v8  ;;  %v16270_v36 = vadd.f32 %v4889_v28, %v4408_v20  ;;  %10292 = vmatmul.mubr.msk.f32.gmra.mxu0 %vm21609_vm5, %v20903_v8  ;;  %v21613_v28 = vld [vmem:[#allocation113_spill] sm:$0xff]  ;;  %vm21619_vm4 = vcmp.eq.s32.totalorder %v20904_v57, %v21603_v62 }
 0x35f   : > { %10361 = vmatprep.mubr.msk.f32.mxu1 %vm21611_vm6, %v20903_v8  ;;  %v4905_v14 = vpop.f32.mrf.mxu1  ;;  %10293 = vmatprep.mubr.msk.f32.mxu0 %vm21612_vm12, %v20903_v8  ;;  %v4410_v26 = vpop.f32.mrf.mxu0  ;;  %vm21623_vm6 = vcmp.eq.s32.totalorder %v21538_v35, %v21603_v62 }
 0x360   : > { %21608 = vst [vmem:[#allocation33_spill] sm:$0xff] %v16270_v36  ;;  %6529 = vmatprep.subr.mxu0 %v20567_v32  ;;  %7160 = vmatpush1.msra.mxu1 %v21613_v28  ;;  %v21617_v14 = vld [vmem:[#allocation191_spill] sm:$0xff] }
 0x361   : > { %v4910_v20 = vpop.f32.mrf.mxu1  ;;  %v4423_v36 = vpop.f32.mrf.mxu0  ;;  %6531 = vmatpush1.msra.mxu0 %v21444_v50  ;;  %7161 = vmatprep.subr.mxu1 %v20567_v32  ;;  %vm21618_vm2 = vcmp.eq.s32.totalorder %v20904_v57, %v21617_v14  ;;  %vm21621_vm5 = vcmp.eq.s32.totalorder %v21538_v35, %v21617_v14 }
 0x362   : > { %10362 = vmatmul.mubr.msk.f32.gmra.mxu1 %vm21614_vm8, %v20903_v8  ;;  %v16292_v44 = vadd.f32 %v4896_v30, %v4423_v36  ;;  %10294 = vmatmul.mubr.msk.f32.gmra.mxu0 %vm21616_vm13, %v20903_v8  ;;  %v21620_v30 = vld [vmem:[#allocation41_spill] sm:$0xff]  ;;  %vm21626_vm8 = vcmp.eq.s32.totalorder %v20904_v57, %v21610_v56 }
 0x363   : > { %10363 = vmatprep.mubr.msk.f32.mxu1 %vm21618_vm2, %v20903_v8  ;;  %v4912_v26 = vpop.f32.mrf.mxu1  ;;  %10295 = vmatprep.mubr.msk.f32.mxu0 %vm21619_vm4, %v20903_v8  ;;  %v4425_v28 = vpop.f32.mrf.mxu0  ;;  %vm21630_vm2 = vcmp.eq.s32.totalorder %v21538_v35, %v21610_v56 }
 0x364   : > { %21615 = vst [vmem:[#allocation34_spill] sm:$0xff] %v16292_v44  ;;  %6532 = vmatprep.subr.mxu0 %v20567_v32  ;;  %7167 = vmatpush1.msra.mxu1 %v21620_v30  ;;  %v21624_v26 = vld [vmem:[#allocation193_spill] sm:$0xff] }
 0x365   : > { %v4917_v36 = vpop.f32.mrf.mxu1  ;;  %v4438_v44 = vpop.f32.mrf.mxu0  ;;  %6534 = vmatpush1.msra.mxu0 %v21452_v37  ;;  %7168 = vmatprep.subr.mxu1 %v20567_v32  ;;  %vm21625_vm12 = vcmp.eq.s32.totalorder %v20904_v57, %v21624_v26  ;;  %vm21628_vm13 = vcmp.eq.s32.totalorder %v21538_v35, %v21624_v26 }
 0x366   : > { %10364 = vmatmul.mubr.msk.f32.gmra.mxu1 %vm21621_vm5, %v20903_v8  ;;  %v16314_v9 = vadd.f32 %v4903_v47, %v4438_v44  ;;  %10296 = vmatmul.mubr.msk.f32.gmra.mxu0 %vm21623_vm6, %v20903_v8  ;;  %v21627_v47 = vld [vmem:[#allocation43_spill] sm:$0xff]  ;;  %vm21633_vm5 = vcmp.eq.s32.totalorder %v20904_v57, %v21617_v14 }
 0x367   : > { %10365 = vmatprep.mubr.msk.f32.mxu1 %vm21625_vm12, %v20903_v8  ;;  %v4919_v28 = vpop.f32.mrf.mxu1  ;;  %10297 = vmatprep.mubr.msk.f32.mxu0 %vm21626_vm8, %v20903_v8  ;;  %v4440_v30 = vpop.f32.mrf.mxu0  ;;  %vm21637_vm12 = vcmp.eq.s32.totalorder %v21538_v35, %v21617_v14 }
 0x368   : > { %21622 = vst [vmem:[#allocation196_spill] sm:$0xff] %v16314_v9  ;;  %6535 = vmatprep.subr.mxu0 %v20567_v32  ;;  %7174 = vmatpush1.msra.mxu1 %v21627_v47  ;;  %v21631_v28 = vld [vmem:[#allocation195_spill] sm:$0xff] }
 0x369   : > { %v5442_v44 = vpop.f32.mrf.mxu1  ;;  %v4453_v9 = vpop.f32.mrf.mxu0  ;;  %6537 = vmatpush1.msra.mxu0 %v21460_v24  ;;  %7175 = vmatprep.subr.mxu1 %v20567_v32  ;;  %vm21632_vm4 = vcmp.eq.s32.totalorder %v20904_v57, %v21631_v28  ;;  %vm21635_vm6 = vcmp.eq.s32.totalorder %v21538_v35, %v21631_v28 }
 0x36a   : > { %10366 = vmatmul.mubr.msk.f32.gmra.mxu1 %vm21628_vm13, %v20903_v8  ;;  %v16336_v62 = vadd.f32 %v4910_v20, %v4453_v9  ;;  %10298 = vmatmul.mubr.msk.f32.gmra.mxu0 %vm21630_vm2, %v20903_v8  ;;  %v21634_v20 = vld [vmem:[#allocation47_spill] sm:$0xff]  ;;  %vm21640_vm13 = vcmp.eq.s32.totalorder %v20904_v57, %v21624_v26 }
 0x36b   : > { %10367 = vmatprep.mubr.msk.f32.mxu1 %vm21632_vm4, %v20903_v8  ;;  %v5444_v30 = vpop.f32.mrf.mxu1  ;;  %10299 = vmatprep.mubr.msk.f32.mxu0 %vm21633_vm5, %v20903_v8  ;;  %v4455_v47 = vpop.f32.mrf.mxu0  ;;  %vm21643_vm4 = vcmp.eq.s32.totalorder %v21538_v35, %v21624_v26 }
 0x36c   : > { %21629 = vst [vmem:[#allocation194_spill] sm:$0xff] %v16336_v62  ;;  %6538 = vmatprep.subr.mxu0 %v20567_v32  ;;  %7181 = vmatpush1.msra.mxu1 %v21634_v20  ;;  %v21638_v30 = vld [vmem:[#allocation198_spill] sm:$0xff] }
 0x36d   : > { %v5453_v9 = vpop.f32.mrf.mxu1  ;;  %v4468_v62 = vpop.f32.mrf.mxu0  ;;  %6540 = vmatpush1.msra.mxu0 %v21467_v51  ;;  %7182 = vmatprep.subr.mxu1 %v20567_v32  ;;  %vm21639_vm8 = vcmp.eq.s32.totalorder %v20904_v57, %v21638_v30  ;;  %vm21642_vm2 = vcmp.eq.s32.totalorder %v21538_v35, %v21638_v30 }
 0x36e   : > { %10368 = vmatmul.mubr.msk.f32.gmra.mxu1 %vm21635_vm6, %v20903_v8  ;;  %v16358_v56 = vadd.f32 %v4917_v36, %v4468_v62  ;;  %10300 = vmatmul.mubr.msk.f32.gmra.mxu0 %vm21637_vm12, %v20903_v8  ;;  %v21641_v36 = vld [vmem:[#allocation58_spill] sm:$0xff]  ;;  %vm21646_vm6 = vcmp.eq.s32.totalorder %v20904_v57, %v21631_v28 }
 0x36f   : > { %10369 = vmatprep.mubr.msk.f32.mxu1 %vm21639_vm8, %v20903_v8  ;;  %v5455_v47 = vpop.f32.mrf.mxu1  ;;  %10301 = vmatprep.mubr.msk.f32.mxu0 %vm21640_vm13, %v20903_v8  ;;  %v4470_v20 = vpop.f32.mrf.mxu0  ;;  %vm21649_vm8 = vcmp.eq.s32.totalorder %v21538_v35, %v21631_v28 }
 0x370   : > { %21636 = vst [vmem:[#allocation199_spill] sm:$0xff] %v16358_v56  ;;  %6541 = vmatprep.subr.mxu0 %v20567_v32  ;;  %7188 = vmatpush2.msra.mxu1 %v21641_v36  ;;  %v21644_v47 = vld [vmem:[#allocation200_spill] sm:$0xff] }
 0x371   : > { %v5464_v62 = vpop.f32.mrf.mxu1  ;;  %v5055_v56 = vpop.f32.mrf.mxu0  ;;  %6543 = vmatpush2.msra.mxu0 %v21474_v17  ;;  %7189 = vmatprep.subr.mxu1 %v20567_v32  ;;  %vm21645_vm5 = vcmp.eq.s32.totalorder %v20904_v57, %v21644_v47  ;;  %vm21648_vm12 = vcmp.eq.s32.totalorder %v21538_v35, %v21644_v47 }
 0x372   : > { %10370 = vmatmul.mubr.msk.f32.gmra.mxu1 %vm21642_vm2, %v20903_v8  ;;  %v5056_v14 = vadd.f32 %v5055_v56, %v15821_v15  ;;  %10302 = vmatmul.mubr.msk.f32.gmra.mxu0 %vm21643_vm4, %v20903_v8  ;;  %v21647_v15 = vld [vmem:[#allocation72_spill] sm:$0xff]  ;;  %vm21652_vm2 = vcmp.eq.s32.totalorder %v20904_v57, %v21638_v30 }
 0x373   : > { %10371 = vmatprep.mubr.msk.f32.mxu1 %vm21645_vm5, %v20903_v8  ;;  %v5466_v20 = vpop.f32.mrf.mxu1  ;;  %10303 = vmatprep.mubr.msk.f32.mxu0 %vm21646_vm6, %v20903_v8  ;;  %v5057_v36 = vpop.f32.mrf.mxu0  ;;  %vm21655_vm5 = vcmp.eq.s32.totalorder %v21538_v35, %v21638_v30 }
 0x374   : > { %6544 = vmatprep.subr.mxu0 %v20567_v32  ;;  %7195 = vmatpush2.msra.mxu1 %v21647_v15  ;;  %v16395_v56 = vadd.f32 %v5442_v44, %v5056_v14  ;;  %v21650_v44 = vld [vmem:[#allocation46_spill] sm:$0xff] }
 0x375   : > { %v5475_v26 = vpop.f32.mrf.mxu1  ;;  %v5064_v17 = vpop.f32.mrf.mxu0  ;;  %6546 = vmatpush2.msra.mxu0 %v21479_v2  ;;  %7196 = vmatprep.subr.mxu1 %v20567_v32  ;;  %vm21651_vm13 = vcmp.eq.s32.totalorder %v20904_v57, %v21650_v44  ;;  %vm21654_vm4 = vcmp.eq.s32.totalorder %v21538_v35, %v21650_v44 }
 0x376   : > { %10372 = vmatmul.mubr.msk.f32.gmra.mxu1 %vm21648_vm12, %v20903_v8  ;;  %v5065_v20 = vadd.f32 %v5064_v17, %v15833_v48  ;;  %10304 = vmatmul.mubr.msk.f32.gmra.mxu0 %vm21649_vm8, %v20903_v8  ;;  %v21653_v17 = vld [vmem:[#allocation83_spill] sm:$0xff]  ;;  %vm21658_vm12 = vcmp.eq.s32.totalorder %v20904_v57, %v21644_v47 }
 0x377   : > { %10373 = vmatprep.mubr.msk.f32.mxu1 %vm21651_vm13, %v20903_v8  ;;  %v5477_v14 = vpop.f32.mrf.mxu1  ;;  %10305 = vmatprep.mubr.msk.f32.mxu0 %vm21652_vm2, %v20903_v8  ;;  %v5066_v36 = vpop.f32.mrf.mxu0  ;;  %vm21661_vm13 = vcmp.eq.s32.totalorder %v21538_v35, %v21644_v47 }
 0x378   : > { %6547 = vmatprep.subr.mxu0 %v20567_v32  ;;  %7202 = vmatpush2.msra.mxu1 %v21653_v17  ;;  %v16418_v48 = vadd.f32 %v5453_v9, %v5065_v20  ;;  %v21656_v9 = vld [vmem:[#allocation49_spill] sm:$0xff] }
 0x379   : > { %v5486_v28 = vpop.f32.mrf.mxu1  ;;  %v5073_v15 = vpop.f32.mrf.mxu0  ;;  %6549 = vmatpush2.msra.mxu0 %v21484_v18  ;;  %7203 = vmatprep.subr.mxu1 %v20567_v32  ;;  %vm21657_vm6 = vcmp.eq.s32.totalorder %v20904_v57, %v21656_v9  ;;  %vm21660_vm8 = vcmp.eq.s32.totalorder %v21538_v35, %v21656_v9 }
 0x37a   : > { %10374 = vmatmul.mubr.msk.f32.gmra.mxu1 %vm21654_vm4, %v20903_v8  ;;  %v5074_v14 = vadd.f32 %v5073_v15, %v15845_v1  ;;  %10306 = vmatmul.mubr.msk.f32.gmra.mxu0 %vm21655_vm5, %v20903_v8  ;;  %v21659_v1 = vld [vmem:[#allocation91_spill] sm:$0xff]  ;;  %vm21664_vm4 = vcmp.eq.s32.totalorder %v20904_v57, %v21650_v44 }
 0x37b   : > { %10375 = vmatprep.mubr.msk.f32.mxu1 %vm21657_vm6, %v20903_v8  ;;  %v5488_v20 = vpop.f32.mrf.mxu1  ;;  %10307 = vmatprep.mubr.msk.f32.mxu0 %vm21658_vm12, %v20903_v8  ;;  %v5075_v36 = vpop.f32.mrf.mxu0  ;;  %vm21667_vm6 = vcmp.eq.s32.totalorder %v21538_v35, %v21650_v44 }
 0x37c   : > { %6550 = vmatprep.subr.mxu0 %v20567_v32  ;;  %7209 = vmatpush2.msra.mxu1 %v21659_v1  ;;  %v16441_v17 = vadd.f32 %v5464_v62, %v5074_v14  ;;  %v21662_v62 = vld [vmem:[#allocation64_spill] sm:$0xff] }
 0x37d   : > { %v5497_v30 = vpop.f32.mrf.mxu1  ;;  %v5082_v15 = vpop.f32.mrf.mxu0  ;;  %6552 = vmatpush2.msra.mxu0 %v21490_v33  ;;  %7210 = vmatprep.subr.mxu1 %v20567_v32  ;;  %vm21663_vm2 = vcmp.eq.s32.totalorder %v20904_v57, %v21662_v62  ;;  %vm21666_vm5 = vcmp.eq.s32.totalorder %v21538_v35, %v21662_v62 }
 0x37e   : > { %10376 = vmatmul.mubr.msk.f32.gmra.mxu1 %vm21660_vm8, %v20903_v8  ;;  %v5083_v20 = vadd.f32 %v5082_v15, %v15857_v34  ;;  %10308 = vmatmul.mubr.msk.f32.gmra.mxu0 %vm21661_vm13, %v20903_v8  ;;  %v21665_v34 = vld [vmem:[#allocation119_spill] sm:$0xff]  ;;  %vm21670_vm8 = vcmp.eq.s32.totalorder %v20904_v57, %v21656_v9 }
 0x37f   : > { %10377 = vmatprep.mubr.msk.f32.mxu1 %vm21663_vm2, %v20903_v8  ;;  %v5499_v14 = vpop.f32.mrf.mxu1  ;;  %10309 = vmatprep.mubr.msk.f32.mxu0 %vm21664_vm4, %v20903_v8  ;;  %v5084_v36 = vpop.f32.mrf.mxu0  ;;  %vm21674_vm2 = vcmp.eq.s32.totalorder %v21538_v35, %v21656_v9 }
 0x380   : > { %6553 = vmatprep.subr.mxu0 %v20567_v32  ;;  %7216 = vmatpush2.msra.mxu1 %v21665_v34  ;;  %v16464_v1 = vadd.f32 %v5475_v26, %v5083_v20  ;;  %v21668_v26 = vld [vmem:[#allocation208_spill] sm:$0xff] }
 0x381   : > { %v5508_v47 = vpop.f32.mrf.mxu1  ;;  %v5091_v15 = vpop.f32.mrf.mxu0  ;;  %6555 = vmatpush2.msra.mxu0 %v21494_v55  ;;  %7217 = vmatprep.subr.mxu1 %v20567_v32  ;;  %vm21669_vm12 = vcmp.eq.s32.totalorder %v20904_v57, %v21668_v26  ;;  %vm21672_vm13 = vcmp.eq.s32.totalorder %v21538_v35, %v21668_v26 }
 0x382   : > { %10378 = vmatmul.mubr.msk.f32.gmra.mxu1 %vm21666_vm5, %v20903_v8  ;;  %v5092_v14 = vadd.f32 %v5091_v15, %v15869_v43  ;;  %10310 = vmatmul.mubr.msk.f32.gmra.mxu0 %vm21667_vm6, %v20903_v8  ;;  %v21671_v43 = vld [vmem:[#allocation123_spill] sm:$0xff]  ;;  %vm21677_vm5 = vcmp.eq.s32.totalorder %v20904_v57, %v21662_v62 }
 0x383   : > { %10379 = vmatprep.mubr.msk.f32.mxu1 %vm21669_vm12, %v20903_v8  ;;  %v5510_v20 = vpop.f32.mrf.mxu1  ;;  %10311 = vmatprep.mubr.msk.f32.mxu0 %vm21670_vm8, %v20903_v8  ;;  %v5093_v36 = vpop.f32.mrf.mxu0  ;;  %vm21681_vm12 = vcmp.eq.s32.totalorder %v21538_v35, %v21662_v62 }
 0x384   : > { %6556 = vmatprep.subr.mxu0 %v20567_v32  ;;  %7223 = vmatpush2.msra.mxu1 %v21671_v43  ;;  %v16487_v34 = vadd.f32 %v5486_v28, %v5092_v14  ;;  %v21673_v20 = vld [vmem:[#allocation187_spill] sm:$0xff]  ;;  %v21675_v28 = vld [vmem:[#allocation88_spill] sm:$0xff] }
 0x385   : > { %v5519_v44 = vpop.f32.mrf.mxu1  ;;  %v5100_v15 = vpop.f32.mrf.mxu0  ;;  %6558 = vmatpush2.msra.mxu0 %v21499_v31  ;;  %7224 = vmatprep.subr.mxu1 %v20567_v32  ;;  %vm21676_vm4 = vcmp.eq.s32.totalorder %v20904_v57, %v21675_v28  ;;  %v21678_v43 = vld [vmem:[#allocation128_spill] sm:$0xff]  ;;  %v21679_v31 = vld [vmem:[#allocation85_spill] sm:$0xff]  ;;  %vm21680_vm6 = vcmp.eq.s32.totalorder %v21538_v35, %v21675_v28 }
 0x386   : > { %10380 = vmatmul.mubr.msk.f32.gmra.mxu1 %vm21672_vm13, %v20903_v8  ;;  %v5101_v55 = vadd.f32 %v5100_v15, %v21673_v20  ;;  %10312 = vmatmul.mubr.msk.f32.gmra.mxu0 %vm21674_vm2, %v20903_v8  ;;  %vm21684_vm13 = vcmp.eq.s32.totalorder %v20904_v57, %v21668_v26 }
 0x387   : > { %10381 = vmatprep.mubr.msk.f32.mxu1 %vm21676_vm4, %v20903_v8  ;;  %v5521_v14 = vpop.f32.mrf.mxu1  ;;  %10313 = vmatprep.mubr.msk.f32.mxu0 %vm21677_vm5, %v20903_v8  ;;  %v5102_v36 = vpop.f32.mrf.mxu0  ;;  %vm21688_vm4 = vcmp.eq.s32.totalorder %v21538_v35, %v21668_v26 }
 0x388   : > { %6559 = vmatprep.subr.mxu0 %v20567_v32  ;;  %7230 = vmatpush2.msra.mxu1 %v21678_v43  ;;  %v16510_v15 = vadd.f32 %v5497_v30, %v5101_v55  ;;  %v21682_v55 = vld [vmem:[#allocation94_spill] sm:$0xff] }
 0x389   : > { %v5530_v9 = vpop.f32.mrf.mxu1  ;;  %v5109_v20 = vpop.f32.mrf.mxu0  ;;  %6561 = vmatpush2.msra.mxu0 %v21679_v31  ;;  %7231 = vmatprep.subr.mxu1 %v20567_v32  ;;  %vm21683_vm8 = vcmp.eq.s32.totalorder %v20904_v57, %v21682_v55  ;;  %vm21687_vm2 = vcmp.eq.s32.totalorder %v21538_v35, %v21682_v55 }
 0x38a   : > { %10382 = vmatmul.mubr.msk.f32.gmra.mxu1 %vm21680_vm6, %v20903_v8  ;;  %v5110_v14 = vadd.f32 %v5109_v20, %v15893_v59  ;;  %10314 = vmatmul.mubr.msk.f32.gmra.mxu0 %vm21681_vm12, %v20903_v8  ;;  %v21685_v59 = vld [vmem:[#allocation132_spill] sm:$0xff]  ;;  %vm21691_vm6 = vcmp.eq.s32.totalorder %v20904_v57, %v21675_v28 }
 0x38b   : > { %10383 = vmatprep.mubr.msk.f32.mxu1 %vm21683_vm8, %v20903_v8  ;;  %v5532_v30 = vpop.f32.mrf.mxu1  ;;  %10315 = vmatprep.mubr.msk.f32.mxu0 %vm21684_vm13, %v20903_v8  ;;  %v5111_v36 = vpop.f32.mrf.mxu0  ;;  %vm21695_vm8 = vcmp.eq.s32.totalorder %v21538_v35, %v21675_v28 }
 0x38c   : > { %6562 = vmatprep.subr.mxu0 %v20567_v32  ;;  %7237 = vmatpush2.msra.mxu1 %v21685_v59  ;;  %v16533_v43 = vadd.f32 %v5508_v47, %v5110_v14  ;;  %v21689_v47 = vld [vmem:[#allocation95_spill] sm:$0xff] }
 0x38d   : > { %v5541_v62 = vpop.f32.mrf.mxu1  ;;  %v5118_v20 = vpop.f32.mrf.mxu0  ;;  %6564 = vmatpush2.msra.mxu0 %v21511_v5  ;;  %7238 = vmatprep.subr.mxu1 %v20567_v32  ;;  %vm21690_vm5 = vcmp.eq.s32.totalorder %v20904_v57, %v21689_v47  ;;  %vm21694_vm12 = vcmp.eq.s32.totalorder %v21538_v35, %v21689_v47  ;;  %v21711_v47 = vld [vmem:[#allocation147_spill] sm:$0xff]  ;;  %v21725_v5 = vld [vmem:[#allocation117_spill] sm:$0xff] }
 0x38e   : > { %21686 = vst [vmem:[#allocation111_spill] sm:$0xff] %v16533_v43  ;;  %10384 = vmatmul.mubr.msk.f32.gmra.mxu1 %vm21687_vm2, %v20903_v8  ;;  %v5119_v30 = vadd.f32 %v5118_v20, %v15905_v0  ;;  %10316 = vmatmul.mubr.msk.f32.gmra.mxu0 %vm21688_vm4, %v20903_v8  ;;  %v21692_v0 = vld [vmem:[#allocation135_spill] sm:$0xff]  ;;  %vm21698_vm2 = vcmp.eq.s32.totalorder %v20904_v57, %v21682_v55 }
 0x38f   : > { %10385 = vmatprep.mubr.msk.f32.mxu1 %vm21690_vm5, %v20903_v8  ;;  %v5543_v14 = vpop.f32.mrf.mxu1  ;;  %10317 = vmatprep.mubr.msk.f32.mxu0 %vm21691_vm6, %v20903_v8  ;;  %v5120_v36 = vpop.f32.mrf.mxu0  ;;  %vm21702_vm4 = vcmp.eq.s32.totalorder %v21538_v35, %v21682_v55  ;;  %vm21707_vm6 = vmmov %vm21694_vm12 }
 0x390   : > { %6565 = vmatprep.subr.mxu0 %v20567_v32  ;;  %7244 = vmatpush2.msra.mxu1 %v21692_v0  ;;  %v16556_v59 = vadd.f32 %v5519_v44, %v5119_v30  ;;  %v21696_v44 = vld [vmem:[#allocation217_spill] sm:$0xff] }
 0x391   : > { %v5552_v26 = vpop.f32.mrf.mxu1  ;;  %v5127_v20 = vpop.f32.mrf.mxu0  ;;  %6567 = vmatpush2.msra.mxu0 %v21315_v12  ;;  %7245 = vmatprep.subr.mxu1 %v20567_v32  ;;  %vm21697_vm13 = vcmp.eq.s32.totalorder %v20904_v57, %v21696_v44  ;;  %v21701_v12 = vld [vmem:[#allocation124_spill] sm:$0xff] }
 0x392   : > { %21693 = vst [vmem:[#allocation197_spill] sm:$0xff] %v16556_v59  ;;  %10386 = vmatmul.mubr.msk.f32.gmra.mxu1 %vm21694_vm12, %v20903_v8  ;;  %v5128_v14 = vadd.f32 %v5127_v20, %v15917_v53  ;;  %10318 = vmatmul.mubr.msk.f32.gmra.mxu0 %vm21695_vm8, %v20903_v8  ;;  %v21699_v53 = vld [vmem:[#allocation138_spill] sm:$0xff]  ;;  %vm21709_vm8 = vmmov %vm21697_vm13 }
 0x393   : > { %10387 = vmatprep.mubr.msk.f32.mxu1 %vm21697_vm13, %v20903_v8  ;;  %v5554_v30 = vpop.f32.mrf.mxu1  ;;  %10319 = vmatprep.mubr.msk.f32.mxu0 %vm21698_vm2, %v20903_v8  ;;  %v5129_v36 = vpop.f32.mrf.mxu0 }
 0x394   : > { %6568 = vmatprep.subr.mxu0 %v20567_v32  ;;  %7251 = vmatpush2.msra.mxu1 %v21699_v53  ;;  %v16579_v0 = vadd.f32 %v5530_v9, %v5128_v14  ;;  %v16600_v53 = vpop.permute.xlu0 %946 }
 0x395   : > { %v5563_v28 = vpop.f32.mrf.mxu1  ;;  %v5136_v20 = vpop.f32.mrf.mxu0  ;;  %6570 = vmatpush2.msra.mxu0 %v21701_v12  ;;  %7252 = vmatprep.subr.mxu1 %v20567_v32  ;;  %21704 = vst [vmem:[#allocation39_spill] sm:$0xff] %v16600_v53  ;;  %vm1042_vm12 = vcmp.eq.s32.totalorder %v20904_v57, %v16600_v53  ;;  %vm1041_vm13 = vcmp.eq.s32.totalorder %v21538_v35, %v16600_v53 }
 0x396   : > { %21700 = vst [vmem:[#allocation202_spill] sm:$0xff] %v16579_v0  ;;  %10388 = vmatmul.mubr.msk.f32.gmra.mxu1 %vm775_vm7, %v20903_v8  ;;  %v5137_v30 = vadd.f32 %v5136_v20, %v15929_v19  ;;  %10320 = vmatmul.mubr.msk.f32.gmra.mxu0 %vm21702_vm4, %v20903_v8  ;;  %v21705_v19 = vld [vmem:[#allocation142_spill] sm:$0xff]  ;;  %v9949_v44 = vsel %vm1041_vm13, 1.0, %v20567_v32 }
 0x397   : > { %10389 = vmatprep.mubr.msk.f32.mxu1 %vm778_vm11, %v20903_v8  ;;  %v5565_v14 = vpop.f32.mrf.mxu1  ;;  %10321 = vmatprep.mubr.msk.f32.mxu0 %vm21690_vm5, %v20903_v8  ;;  %v5138_v36 = vpop.f32.mrf.mxu0 }
 0x398   : > { %6571 = vmatprep.subr.mxu0 %v20567_v32  ;;  %7258 = vmatpush2.msra.mxu1 %v21705_v19  ;;  %v16604_v55 = vadd.f32 %v5541_v62, %v5137_v30 }
 0x399   : > { %v16606_v20 = vpop.f32.mrf.mxu1  ;;  %v5145_v12 = vpop.f32.mrf.mxu0  ;;  %6573 = vmatpush2.msra.mxu0 %v21525_v54  ;;  %7259 = vmatprep.subr.mxu1 %v20567_v32 }
 0x39a   : > { %21706 = vst [vmem:[#allocation204_spill] sm:$0xff] %v16604_v55  ;;  %10390 = vmatmul.mubr.msk.f32.gmra.mxu1 %vm777_vm14, %v20903_v8  ;;  %v5146_v14 = vadd.f32 %v5145_v12, %v15941_v45  ;;  %10322 = vmatmul.mubr.msk.f32.gmra.mxu0 %vm21707_vm6, %v20903_v8  ;;  %v16629_v45 = vpop.permute.xlu1 %949 }
 0x39b   : > { %10391 = vmatprep.mubr.msk.f32.mxu1 %vm780_vm0, %v20903_v8  ;;  %v5576_v30 = vpop.f32.mrf.mxu1  ;;  %10323 = vmatprep.mubr.msk.f32.mxu0 %vm21709_vm8, %v20903_v8  ;;  %v5147_v12 = vpop.f32.mrf.mxu0  ;;  %21710 = vst [vmem:[#allocation201_spill] sm:$0xff] %v16629_v45  ;;  %vm1044_vm2 = vcmp.eq.s32.totalorder %v20904_v57, %v16629_v45 }
 0x39c   : > { %6574 = vmatprep.subr.mxu0 %v20567_v32  ;;  %7265 = vmatpush2.msra.mxu1 %v21711_v47  ;;  %v16639_v30 = vadd.f32 %v5552_v26, %v5146_v14  ;;  %v9950_v12 = vsel %vm1042_vm12, 1.0, %v20567_v32  ;;  %v9952_v55 = vsel %vm1044_vm2, 1.0, %v20567_v32 }
 0x39d   : > { %v16635_v36 = vpop.f32.mrf.mxu1  ;;  %v5154_v19 = vpop.f32.mrf.mxu0  ;;  %6576 = vmatpush2.msra.mxu0 %v21330_v23  ;;  %7266 = vmatprep.subr.mxu1 %v20567_v32  ;;  %v21715_v23 = vld [vmem:[#allocation151_spill] sm:$0xff]  ;;  %v16672_v54 = vsub.f32 %v9950_v12, %v9950_v12 }
 0x39e   : > { %21712 = vst [vmem:[#allocation206_spill] sm:$0xff] %v16639_v30  ;;  %10392 = vmatmul.mubr.msk.f32.gmra.mxu1 %vm779_vm10, %v20903_v8  ;;  %v5155_v47 = vadd.f32 %v5154_v19, %v15953_v40  ;;  %10324 = vmatmul.mubr.msk.f32.gmra.mxu0 %vm775_vm7, %v20903_v8  ;;  %v16668_v19 = vpop.permute.xlu0 %952 }
 0x39f   : > { %10393 = vmatprep.mubr.msk.f32.mxu1 %vm782_vm15, %v20903_v8  ;;  %v5587_v14 = vpop.f32.mrf.mxu1  ;;  %10325 = vmatprep.mubr.msk.f32.mxu0 %vm778_vm11, %v20903_v8  ;;  %v5156_v40 = vpop.f32.mrf.mxu0  ;;  %21714 = vst [vmem:[#allocation203_spill] sm:$0xff] %v16668_v19  ;;  %21716 = vst [vmem:[#allocation205_spill] sm:$0xff] %v16672_v54  ;;  %vm1043_vm11 = vcmp.eq.s32.totalorder %v21538_v35, %v16629_v45  ;;  %vm1046_vm7 = vcmp.eq.s32.totalorder %v20904_v57, %v16668_v19 }
 0x3a0   : > { %6577 = vmatprep.subr.mxu0 %v20567_v32  ;;  %7272 = vmatpush2.msra.mxu1 %v21715_v23  ;;  %v16678_v40 = vadd.f32 %v5563_v28, %v5155_v47  ;;  %v16686_v23 = vpop.permute.xlu1 %955  ;;  %v16697_v28 = vsub.f32 %v9949_v44, %v9949_v44  ;;  %v9951_v9 = vsel %vm1043_vm11, 1.0, %v20567_v32  ;;  %v16715_v44 = vsub.f32 %v9952_v55, %v9952_v55 }
 0x3a1   : > { %v16674_v14 = vpop.f32.mrf.mxu1  ;;  %v5163_v30 = vpop.f32.mrf.mxu0  ;;  %6579 = vmatpush2.msra.mxu0 %v21335_v13  ;;  %7273 = vmatprep.subr.mxu1 %v20567_v32  ;;  %21718 = vst [vmem:[#allocation207_spill] sm:$0xff] %v16686_v23  ;;  %v9954_v55 = vsel %vm1046_vm7, 1.0, %v20567_v32  ;;  %vm20272_vm4 = vcmp.eq.s32.totalorder %v21538_v35, %v16686_v23 }
 0x3a2   : > { %21717 = vst [vmem:[#allocation116_spill] sm:$0xff] %v16678_v40  ;;  %10394 = vmatmul.mubr.msk.f32.gmra.mxu1 %vm781_vm1, %v20903_v8  ;;  %v5164_v12 = vadd.f32 %v5163_v30, %v15965_v52  ;;  %10326 = vmatmul.mubr.msk.f32.gmra.mxu0 %vm777_vm14, %v20903_v8  ;;  %21719 = vst [vmem:[#allocation45_spill] sm:$0xff] %v16697_v28  ;;  %v21721_v30 = vld [vmem:[#allocation153_spill] sm:$0xff]  ;;  %vm20280_vm14 = vcmp.eq.s32.totalorder %v20904_v57, %v16686_v23 }
 0x3a3   : > { %10395 = vmatprep.mubr.msk.f32.mxu1 %vm784_vm9, %v20903_v8  ;;  %v5598_v13 = vpop.f32.mrf.mxu1  ;;  %10327 = vmatprep.mubr.msk.f32.mxu0 %vm780_vm0, %v20903_v8  ;;  %v5165_v52 = vpop.f32.mrf.mxu0  ;;  %21722 = vst [vmem:[#allocation76_spill] sm:$0xff] %v16715_v44  ;;  %vm1045_vm0 = vcmp.eq.s32.totalorder %v21538_v35, %v16668_v19 }
 0x3a4   : > { %7279 = vmatpush2.msra.mxu1 %v21721_v30  ;;  %6580 = vmatprep.subr.mxu0 %v20567_v32  ;;  %v16730_v30 = vpop.permute.xlu0 %958  ;;  %v16742_v52 = vadd.f32 %v16606_v20, %v5164_v12  ;;  %v9956_v20 = vsel %vm20280_vm14, 1.0, %v20567_v32  ;;  %v16758_v62 = vpop.permute.xlu1 %961 }
 0x3a5   : > { %v16719_v13 = vpop.f32.mrf.mxu1  ;;  %7280 = vmatprep.subr.mxu1 %v20567_v32  ;;  %v5172_v40 = vpop.f32.mrf.mxu0  ;;  %6582 = vmatpush2.msra.mxu0 %v21341_v39  ;;  %21723 = vst [vmem:[#allocation210_spill] sm:$0xff] %v16730_v30  ;;  %21727 = vst [vmem:[#allocation216_spill] sm:$0xff] %v16758_v62  ;;  %v16797_v53 = vsub.f32 %v9956_v20, %v9956_v20 }
 0x3a6   : > { %10396 = vmatmul.mubr.msk.f32.gmra.mxu1 %vm783_vm3, %v20903_v8  ;;  %v5173_v0 = vadd.f32 %v5172_v40, %v15977_v29  ;;  %10328 = vmatmul.mubr.msk.f32.gmra.mxu0 %vm779_vm10, %v20903_v8  ;;  %21724 = vst [vmem:[#allocation213_spill] sm:$0xff] %v16742_v52  ;;  %v16750_v29 = vsub.f32 %v9951_v9, %v9951_v9  ;;  %v21730_v9 = vand.u32 4294901760, %v16672_v54  ;;  %v21731_v52 = vand.u32 4294901760, %v16697_v28 }
 0x3a7   : > { %7286 = vmatpush2.msra.mxu1 %v21725_v5  ;;  %10397 = vmatprep.mubr.msk.f32.mxu1 %vm1042_vm12, %v20903_v8  ;;  %v5609_v59 = vpop.f32.mrf.mxu1  ;;  %v5174_v31 = vpop.f32.mrf.mxu0  ;;  %v9953_v5 = vsel %vm1045_vm0, 1.0, %v20567_v32  ;;  %vm20279_vm10 = vcmp.eq.s32.totalorder %v20904_v57, %v16730_v30  ;;  %21732 = vst [vmem:[#allocation99_spill] sm:$0xff] %v16797_v53 }
 0x3a8   : > { %21726 = vst [vmem:[#allocation215_spill] sm:$0xff] %v16750_v29  ;;  %10329 = vmatprep.mubr.msk.f32.mxu0 %vm782_vm15, %v20903_v8  ;;  %7287 = vmatprep.subr.mxu1 %v20567_v32  ;;  %v16769_v31 = vsub.f32 %v9954_v55, %v9954_v55  ;;  %v21729_v59 = vld [vmem:[#allocation157_spill] sm:$0xff]  ;;  %v6592_v39 = vsub.f32 %v16672_v54, %v21730_v9  ;;  %v9955_v54 = vsel %vm20272_vm4, 1.0, %v20567_v32  ;;  %v21737_v45 = vand.u32 4294901760, %v16750_v29 }
 0x3a9   : > { %7293 = vmatpush2.msra.mxu1 %v21729_v59  ;;  %v16772_v40 = vpop.f32.mrf.mxu1  ;;  %6583 = vmatprep.subr.mxu0 %v20567_v32  ;;  %v5181_v12 = vpop.f32.mrf.mxu0  ;;  %v6598_v9 = vsub.f32 %v16697_v28, %v21731_v52  ;;  %v16815_v20 = vadd.f32 %v16635_v36, %v5173_v0  ;;  %vm20349_vm15 = vcmp.eq.s32.totalorder %v21538_v35, %v16730_v30 }
 0x3aa   : > { %21728 = vst [vmem:[#allocation219_spill] sm:$0xff] %v16769_v31  ;;  %10398 = vmatmul.mubr.msk.f32.vlgmr.msra.gmra.mxu1 %vm1041_vm13, %v20903_v8  ;;  %v5182_v55 = vadd.f32 %v5181_v12, %v15994_v61  ;;  %10330 = vmatmul.mubr.msk.f32.gmra.mxu0 %vm781_vm1, %v20903_v8  ;;  %v16804_v12 = vsub.f32 %v9953_v5, %v9953_v5  ;;  %v9958_v5 = vsel %vm20279_vm10, 1.0, %v20567_v32  ;;  %v6593_v59 = vand.u32 4294901760, %v6592_v39  ;;  %v16828_v0 = vpop.permute.xlu0 %964 }
 0x3ab   : > { %6585 = vmatpush2.msra.mxu0 %v13998_v6  ;;  %10399 = vmatprep.mubr.msk.f32.mxu1 %vm1044_vm2, %v20903_v8  ;;  %v5620_v61 = vpop.f32.mrf.mxu1  ;;  %v5183_v26 = vpop.f32.mrf.mxu0  ;;  %vm20285_vm1 = vcmp.eq.s32.totalorder %v20904_v57, %v16758_v62  ;;  %21733 = vst [vmem:[#allocation223_spill] sm:$0xff] %v16815_v20  ;;  %21734 = vst [vmem:[#allocation225_spill] sm:$0xff] %v16828_v0  ;;  %v21735_v39 = vand.u32 4294901760, %v16715_v44  ;;  %v16842_v52 = vsub.f32 %v9955_v54, %v9955_v54 }
 0x3ac   : > { %10331 = vmatprep.mubr.msk.f32.mxu0 %vm784_vm9, %v20903_v8  ;;  %6586 = vmatprep.subr.mxu0 %v20567_v32  ;;  %vm20296_vm9 = vcmp.eq.s32.totalorder %v21538_v35, %v16758_v62  ;;  %v9957_v54 = vsel %vm20349_vm15, 1.0, %v20567_v32  ;;  %v16878_v20 = vadd.f32 %v16674_v14, %v5182_v55  ;;  %vm20297_vm6 = vcmp.eq.s32.totalorder %v21538_v35, %v16828_v0 }
 0x3ad   : > { %v16823_v61 = vpop.f32.mrf.mxu1  ;;  %v5190_v26 = vpop.f32.mrf.mxu0  ;;  %6588 = vmatpush2.msra.mxu0 %v14028_v58  ;;  %7936 = vmatprep.subr.mxu1 %v20567_v32  ;;  %v6607_v28 = vsub.f32 %v16715_v44, %v21735_v39  ;;  %v6599_v58 = vand.u32 4294901760, %v6598_v9  ;;  %v16858_v9 = vsub.f32 %v9958_v5, %v9958_v5  ;;  %v6613_v44 = vsub.f32 %v16750_v29, %v21737_v45 }
 0x3ae   : > { %10400 = vmatmul.mubr.msk.f32.gmra.mxu1 %vm1043_vm11, %v20903_v8  ;;  %v5191_v36 = vadd.f32 %v5190_v26, %v16010_v10  ;;  %10332 = vmatmul.mubr.msk.f32.gmra.mxu0 %vm783_vm3, %v20903_v8  ;;  %v9960_v10 = vsel %vm20285_vm1, 1.0, %v20567_v32  ;;  %v16860_v39 = vpop.permute.xlu1 %967  ;;  %vm20295_vm3 = vcmp.eq.s32.totalorder %v20904_v57, %v16828_v0  ;;  %v21738_v5 = vand.u32 4294901760, %v16769_v31  ;;  %21739 = vst [vmem:[#allocation56_spill] sm:$0xff] %v16878_v20  ;;  %v16906_v55 = vpop.permute.xlu0 %970 }
 0x3af   : > { %10401 = vmatprep.mubr.msk.f32.mxu1 %vm1046_vm7, %v20903_v8  ;;  %v5631_v47 = vpop.f32.mrf.mxu1  ;;  %6594 = vmatprep.mubr.f32.mxu0 %v6593_v59  ;;  %v5192_v26 = vpop.f32.mrf.mxu0  ;;  %21736 = vst [vmem:[#allocation146_spill] sm:$0xff] %v16860_v39  ;;  %v16880_v45 = vsub.f32 %v9960_v10, %v9960_v10  ;;  %v6608_v29 = vand.u32 4294901760, %v6607_v28  ;;  %vm20301_vm5 = vcmp.eq.s32.totalorder %v20904_v57, %v16860_v39  ;;  %v9962_v28 = vsel %vm20295_vm3, 1.0, %v20567_v32 }
 0x3b0   : > { %7519 = vmatprep.subr.mxu0 %v20567_v32  ;;  %7938 = vmatpush1.msra.mxu1 %v21362_v7  ;;  %v6622_v6 = vsub.f32 %v16769_v31, %v21738_v5  ;;  %v9959_v5 = vsel %vm20296_vm9, 1.0, %v20567_v32  ;;  %v16891_v7 = vsub.f32 %v9957_v54, %v9957_v54  ;;  %21743 = vst [vmem:[#allocation115_spill] sm:$0xff] %v16906_v55  ;;  %v6614_v10 = vand.u32 4294901760, %v6613_v44 }
 0x3b1   : > { %v16870_v47 = vpop.f32.mrf.mxu1  ;;  %v5199_v26 = vpop.f32.mrf.mxu0  ;;  %7939 = vmatprep.subr.mxu1 %v20567_v32  ;;  %21740 = vst [vmem:[#allocation150_spill] sm:$0xff] %v16880_v45  ;;  %v21744_v54 = vand.u32 4294901760, %v16804_v12  ;;  %v20278_v19 = vand.u32 4294901760, %v16842_v52  ;;  %v21746_v20 = vand.u32 4294901760, %v16797_v53  ;;  %v16922_v43 = vadd.f32 %v16719_v13, %v5191_v36 }
 0x3b2   : > { %10402 = vmatmul.mubr.msk.f32.gmra.mxu1 %vm1045_vm0, %v20903_v8  ;;  %v5200_v59 = vadd.f32 %v5199_v26, %v16028_v49  ;;  %6600 = vmatmul.mubr.f32.vlgmr.msra.gmra.mxu0 %v6599_v58  ;;  %21741 = vst [vmem:[#allocation6_spill] sm:$0xff] %v16891_v7  ;;  %v21742_v58 = vld [vmem:[#allocation51_spill] sm:$0xff]  ;;  %v6623_v31 = vand.u32 4294901760, %v6622_v6  ;;  %vm20318_vm8 = vcmp.eq.s32.totalorder %v21538_v35, %v16860_v39  ;;  %v9961_v13 = vsel %vm20297_vm6, 1.0, %v20567_v32 }
 0x3b3   : > { %10403 = vmatprep.mubr.msk.f32.mxu1 %vm20280_vm14, %v20903_v8  ;;  %7522 = vmatpush1.msra.mxu0 %v21742_v58  ;;  %v5642_v49 = vpop.f32.mrf.mxu1  ;;  %v5201_v14 = vpop.f32.mrf.mxu0  ;;  %v6628_v26 = vsub.f32 %v16804_v12, %v21744_v54  ;;  %v16924_v54 = vsub.f32 %v9959_v5, %v9959_v5  ;;  %v16941_v36 = vsub.f32 %v9962_v28, %v9962_v28  ;;  %v21750_v23 = vand.u32 4294901760, %v16858_v9 }
 0x3b4   : > { %6609 = vmatprep.mubr.f32.mxu0 %v6608_v29  ;;  %7523 = vmatprep.subr.mxu0 %v20567_v32  ;;  %v21745_v14 = vld [vmem:[#allocation60_spill] sm:$0xff]  ;;  %v6637_v29 = vsub.f32 %v16797_v53, %v21746_v20  ;;  %v9964_v20 = vsel %vm20301_vm5, 1.0, %v20567_v32  ;;  %v6643_v28 = vsub.f32 %v16842_v52, %v20278_v19  ;;  %v16966_v53 = vadd.f32 %v16772_v40, %v5200_v59 }
 0x3b5   : > { %v16913_v58 = vpop.f32.mrf.mxu1  ;;  %v5208_v49 = vpop.f32.mrf.mxu0  ;;  %7526 = vmatpush1.msra.mxu0 %v21745_v14  ;;  %7941 = vmatpush1.msra.mxu1 %v21370_v11  ;;  %21747 = vst [vmem:[#allocation71_spill] sm:$0xff] %v16941_v36  ;;  %v20284_v14 = vand.u32 4294901760, %v16891_v7  ;;  %v20286_v11 = vand.u32 4294901760, %v16880_v45  ;;  %v16968_v19 = vsub.f32 %v9964_v20, %v9964_v20  ;;  %vm20317_vm14 = vcmp.eq.s32.totalorder %v21538_v35, %v16906_v55 }
 0x3b6   : > { %10404 = vmatmul.mubr.msk.f32.gmra.mxu1 %vm20272_vm4, %v20903_v8  ;;  %v5209_v6 = vadd.f32 %v5208_v49, %v16050_v60  ;;  %6615 = vmatmul.mubr.f32.gmra.mxu0 %v6614_v10  ;;  %v16947_v10 = vpop.permute.xlu1 %973  ;;  %vm20311_vm4 = vcmp.eq.s32.totalorder %v20904_v57, %v16906_v55  ;;  %v6629_v49 = vand.u32 4294901760, %v6628_v26  ;;  %v6652_v26 = vsub.f32 %v16858_v9, %v21750_v23 }
 0x3b7   : > { %10405 = vmatprep.mubr.msk.f32.mxu1 %vm20279_vm10, %v20903_v8  ;;  %v5653_v60 = vpop.f32.mrf.mxu1  ;;  %6624 = vmatprep.mubr.f32.mxu0 %v6623_v31  ;;  %v5210_v5 = vpop.f32.mrf.mxu0  ;;  %21748 = vst [vmem:[#allocation156_spill] sm:$0xff] %v16947_v10  ;;  %21751 = vst [vmem:[#allocation160_spill] sm:$0xff] %v16968_v19  ;;  %v9963_v23 = vsel %vm20318_vm8, 1.0, %v20567_v32  ;;  %vm20312_vm10 = vcmp.eq.s32.totalorder %v20904_v57, %v16947_v10  ;;  %v9966_v59 = vsel %vm20311_vm4, 1.0, %v20567_v32  ;;  %v6644_v20 = vand.u32 4294901760, %v6643_v28 }
 0x3b8   : > { %7527 = vmatprep.subr.mxu0 %v20567_v32  ;;  %7942 = vmatprep.subr.mxu1 %v20567_v32  ;;  %v21749_v60 = vld [vmem:[#allocation7_spill] sm:$0xff]  ;;  %v6638_v5 = vand.u32 4294901760, %v6637_v29  ;;  %v6667_v28 = vsub.f32 %v16880_v45, %v20286_v11 }
 0x3b9   : > { %v16957_v44 = vpop.f32.mrf.mxu1  ;;  %v5217_v31 = vpop.f32.mrf.mxu0  ;;  %7530 = vmatpush1.msra.mxu0 %v21749_v60  ;;  %7944 = vmatpush1.msra.mxu1 %v12989_v16  ;;  %v16979_v60 = vsub.f32 %v9961_v13, %v9961_v13  ;;  %v6658_v13 = vsub.f32 %v16891_v7, %v20284_v14  ;;  %v17008_v16 = vadd.f32 %v16823_v61, %v5209_v6  ;;  %v9965_v61 = vsel %vm20317_vm14, 1.0, %v20567_v32 }
 0x3ba   : > { %10406 = vmatmul.mubr.msk.f32.gmra.mxu1 %vm20349_vm15, %v20903_v8  ;;  %v5218_v29 = vadd.f32 %v5217_v31, %v16072_v41  ;;  %6630 = vmatmul.mubr.f32.gmra.mxu0 %v6629_v49  ;;  %v20294_v49 = vand.u32 4294901760, %v16924_v54  ;;  %v17065_v62 = vsub.f32 %v9965_v61, %v9965_v61 }
 0x3bb   : > { %21752 = vst [vmem:[#allocation11_spill] sm:$0xff] %v16979_v60  ;;  %10407 = vmatprep.mubr.msk.f32.mxu1 %vm20285_vm1, %v20903_v8  ;;  %v5664_v41 = vpop.f32.mrf.mxu1  ;;  %6639 = vmatprep.mubr.f32.mxu0 %v6638_v5  ;;  %v5219_v40 = vpop.f32.mrf.mxu0  ;;  %vm20340_vm1 = vcmp.eq.s32.totalorder %v21538_v35, %v16947_v10  ;;  %v6659_v11 = vand.u32 4294901760, %v6658_v13 }
 0x3bc   : > { %7531 = vmatprep.subr.mxu0 %v20567_v32  ;;  %7945 = vmatprep.subr.mxu1 %v20567_v32  ;;  %v21753_v41 = vld [vmem:[#allocation67_spill] sm:$0xff]  ;;  %v6653_v40 = vand.u32 4294901760, %v6652_v26  ;;  %v17015_v26 = vsub.f32 %v9963_v23, %v9963_v23  ;;  %v17031_v23 = vsub.f32 %v9966_v59, %v9966_v59  ;;  %v6673_v30 = vsub.f32 %v16924_v54, %v20294_v49  ;;  %v21758_v59 = vld [vmem:[#allocation10_spill] sm:$0xff] }
 0x3bd   : > { %v16999_v31 = vpop.f32.mrf.mxu1  ;;  %v5226_v5 = vpop.f32.mrf.mxu0  ;;  %7534 = vmatpush1.msra.mxu0 %v21753_v41  ;;  %7947 = vmatpush1.msra.mxu1 %v13008_v46  ;;  %v9968_v41 = vsel %vm20312_vm10, 1.0, %v20567_v32  ;;  %v21759_v46 = vand.u32 4294901760, %v16941_v36  ;;  %v17052_v7 = vadd.f32 %v16870_v47, %v5218_v29  ;;  %21762 = vst [vmem:[#allocation87_spill] sm:$0xff] %v17065_v62 }
 0x3be   : > { %10408 = vmatmul.mubr.msk.f32.gmra.mxu1 %vm20296_vm9, %v20903_v8  ;;  %v5227_v14 = vadd.f32 %v5226_v5, %v16094_v27  ;;  %6645 = vmatmul.mubr.f32.gmra.mxu0 %v6644_v20  ;;  %21754 = vst [vmem:[#allocation162_spill] sm:$0xff] %v17015_v26  ;;  %21755 = vst [vmem:[#allocation13_spill] sm:$0xff] %v17031_v23  ;;  %v17033_v20 = vpop.permute.xlu1 %979  ;;  %v17035_v5 = vpop.permute.xlu0 %976  ;;  %v17054_v49 = vsub.f32 %v9968_v41, %v9968_v41  ;;  %v6674_v29 = vand.u32 4294901760, %v6673_v30 }
 0x3bf   : > { %10409 = vmatprep.mubr.msk.f32.mxu1 %vm20295_vm3, %v20903_v8  ;;  %v5675_v27 = vpop.f32.mrf.mxu1  ;;  %6654 = vmatprep.mubr.f32.mxu0 %v6653_v40  ;;  %v5228_v6 = vpop.f32.mrf.mxu0  ;;  %21756 = vst [vmem:[#allocation166_spill] sm:$0xff] %v17033_v20  ;;  %21757 = vst [vmem:[#allocation16_spill] sm:$0xff] %v17035_v5  ;;  %v6682_v13 = vsub.f32 %v16941_v36, %v21759_v46  ;;  %v9967_v46 = vsel %vm20340_vm1, 1.0, %v20567_v32  ;;  %vm20339_vm3 = vcmp.eq.s32.totalorder %v20904_v57, %v17033_v20 }
 0x3c0   : > { %7535 = vmatprep.subr.mxu0 %v20567_v32  ;;  %7948 = vmatprep.subr.mxu1 %v20567_v32  ;;  %v6668_v6 = vand.u32 4294901760, %v6667_v28  ;;  %21760 = vst [vmem:[#allocation168_spill] sm:$0xff] %v17054_v49  ;;  %vm20328_vm9 = vcmp.eq.s32.totalorder %v20904_v57, %v17035_v5  ;;  %v21763_v41 = vand.u32 4294901760, %v16979_v60 }
 0x3c1   : > { %v17043_v27 = vpop.f32.mrf.mxu1  ;;  %v5235_v40 = vpop.f32.mrf.mxu0  ;;  %7538 = vmatpush1.msra.mxu0 %v21758_v59  ;;  %7950 = vmatpush1.msra.mxu1 %v13049_v42  ;;  %v21761_v59 = vld [vmem:[#allocation21_spill] sm:$0xff]  ;;  %v17092_v42 = vadd.f32 %v16913_v58, %v5227_v14  ;;  %v9972_v58 = vsel %vm20339_vm3, 1.0, %v20567_v32 }
 0x3c2   : > { %10410 = vmatmul.mubr.msk.f32.gmra.mxu1 %vm20297_vm6, %v20903_v8  ;;  %v5236_v28 = vadd.f32 %v5235_v40, %v21761_v59  ;;  %6660 = vmatmul.mubr.f32.gmra.mxu0 %v6659_v11  ;;  %vm20329_vm6 = vcmp.eq.s32.totalorder %v21538_v35, %v17035_v5  ;;  %v6688_v61 = vsub.f32 %v16979_v60, %v21763_v41  ;;  %v9970_v41 = vsel %vm20328_vm9, 1.0, %v20567_v32 }
 0x3c3   : > { %10411 = vmatprep.mubr.msk.f32.mxu1 %vm20301_vm5, %v20903_v8  ;;  %v5686_v47 = vpop.f32.mrf.mxu1  ;;  %6669 = vmatprep.mubr.f32.mxu0 %v6668_v6  ;;  %v5237_v11 = vpop.f32.mrf.mxu0  ;;  %v6683_v6 = vand.u32 4294901760, %v6682_v13  ;;  %v21766_v13 = vld [vmem:[#allocation184_spill] sm:$0xff]  ;;  %v17103_v40 = vsub.f32 %v9967_v46, %v9967_v46  ;;  %vm20341_vm5 = vcmp.eq.s32.totalorder %v21538_v35, %v17033_v20 }
 0x3c4   : > { %7539 = vmatprep.subr.mxu0 %v20567_v32  ;;  %7951 = vmatprep.subr.mxu1 %v20567_v32  ;;  %v21764_v47 = vld [vmem:[#allocation12_spill] sm:$0xff]  ;;  %v21765_v11 = vand.u32 4294901760, %v16968_v19  ;;  %v17119_v46 = vpop.permute.xlu0 %982 }
 0x3c5   : > { %v17083_v59 = vpop.f32.mrf.mxu1  ;;  %v5244_v45 = vpop.f32.mrf.mxu0  ;;  %7542 = vmatpush1.msra.mxu0 %v21764_v47  ;;  %7953 = vmatpush1.msra.mxu1 %v21391_v4  ;;  %21767 = vst [vmem:[#allocation169_spill] sm:$0xff] %v17103_v40  ;;  %21768 = vst [vmem:[#allocation17_spill] sm:$0xff] %v17119_v46  ;;  %v21771_v4 = vld [vmem:[#allocation14_spill] sm:$0xff] }
 0x3c6   : > { %v6697_v30 = vsub.f32 %v16968_v19, %v21765_v11  ;;  %10412 = vmatmul.mubr.msk.f32.gmra.mxu1 %vm20318_vm8, %v20903_v8  ;;  %v5245_v47 = vadd.f32 %v5244_v45, %v21766_v13  ;;  %6675 = vmatmul.mubr.f32.gmra.mxu0 %v6674_v29  ;;  %v9969_v45 = vsel %vm20329_vm6, 1.0, %v20567_v32  ;;  %v6689_v29 = vand.u32 4294901760, %v6688_v61 }
 0x3c7   : > { %10413 = vmatprep.mubr.msk.f32.mxu1 %vm20311_vm4, %v20903_v8  ;;  %v5697_v14 = vpop.f32.mrf.mxu1  ;;  %6684 = vmatprep.mubr.f32.mxu0 %v6683_v6  ;;  %v5246_v11 = vpop.f32.mrf.mxu0  ;;  %v21769_v13 = vand.u32 4294901760, %v17015_v26  ;;  %v17127_v6 = vsub.f32 %v9970_v41, %v9970_v41  ;;  %v21772_v61 = vand.u32 4294901760, %v17031_v23  ;;  %v21773_v41 = vld [vmem:[#allocation190_spill] sm:$0xff]  ;;  %vm20348_vm4 = vcmp.eq.s32.totalorder %v20904_v57, %v17119_v46 }
 0x3c8   : > { %7543 = vmatprep.subr.mxu0 %v20567_v32  ;;  %7954 = vmatprep.subr.mxu1 %v20567_v32  ;;  %v20316_v14 = vand.u32 4294901760, %v17065_v62  ;;  %v6698_v19 = vand.u32 4294901760, %v6697_v30  ;;  %v9971_v30 = vsel %vm20341_vm5, 1.0, %v20567_v32  ;;  %v17183_v36 = vpop.permute.xlu0 %988 }
 0x3c9   : > { %v6703_v0 = vsub.f32 %v17015_v26, %v21769_v13  ;;  %21770 = vst [vmem:[#allocation170_spill] sm:$0xff] %v17127_v6  ;;  %v17129_v11 = vpop.f32.mrf.mxu1  ;;  %v5253_v39 = vpop.f32.mrf.mxu0  ;;  %7546 = vmatpush1.msra.mxu0 %v21771_v4  ;;  %7956 = vmatpush1.msra.mxu1 %v21399_v25  ;;  %v6712_v60 = vsub.f32 %v17031_v23, %v21772_v61  ;;  %21778 = vst [vmem:[#allocation30_spill] sm:$0xff] %v17183_v36 }
 0x3ca   : > { %10414 = vmatmul.mubr.msk.f32.gmra.mxu1 %vm20317_vm14, %v20903_v8  ;;  %v17142_v13 = vadd.f32 %v5253_v39, %v21773_v41  ;;  %6690 = vmatmul.mubr.f32.gmra.mxu0 %v6689_v29  ;;  %v17145_v4 = vadd.f32 %v16957_v44, %v5236_v28  ;;  %v17151_v61 = vsub.f32 %v9972_v58, %v9972_v58  ;;  %v17161_v28 = vpop.permute.xlu1 %985 }
 0x3cb   : > { %10415 = vmatprep.mubr.msk.f32.mxu1 %vm20312_vm10, %v20903_v8  ;;  %v5708_v39 = vpop.f32.mrf.mxu1  ;;  %6699 = vmatprep.mubr.f32.mxu0 %v6698_v19  ;;  %v5255_v29 = vpop.f32.mrf.mxu0  ;;  %v17159_v44 = vsub.f32 %v9969_v45, %v9969_v45  ;;  %21775 = vst [vmem:[#allocation175_spill] sm:$0xff] %v17161_v28  ;;  %v6704_v41 = vand.u32 4294901760, %v6703_v0  ;;  %v6718_v58 = vsub.f32 %v17065_v62, %v20316_v14  ;;  %v21777_v0 = vand.u32 4294901760, %v17054_v49 }
 0x3cc   : > { %21774 = vst [vmem:[#allocation22_spill] sm:$0xff] %v17151_v61  ;;  %7547 = vmatprep.subr.mxu0 %v20567_v32  ;;  %7957 = vmatprep.subr.mxu1 %v20567_v32  ;;  %vm20370_vm10 = vcmp.eq.s32.totalorder %v21538_v35, %v17119_v46  ;;  %v21776_v39 = vld [vmem:[#allocation86_spill] sm:$0xff]  ;;  %v6713_v29 = vand.u32 4294901760, %v6712_v60  ;;  %v9974_v14 = vsel %vm20348_vm4, 1.0, %v20567_v32  ;;  %v21779_v60 = vld [vmem:[#allocation28_spill] sm:$0xff]  ;;  %v17195_v25 = vsub.f32 %v9971_v30, %v9971_v30 }
 0x3cd   : > { %v17171_v19 = vpop.f32.mrf.mxu1  ;;  %v5262_v45 = vpop.f32.mrf.mxu0  ;;  %7550 = vmatpush1.msra.mxu0 %v21776_v39  ;;  %7959 = vmatpush1.msra.mxu1 %v21407_v3  ;;  %v6727_v55 = vsub.f32 %v17054_v49, %v21777_v0  ;;  %v17193_v0 = vadd.f32 %v16999_v31, %v5245_v47  ;;  %vm20369_vm14 = vcmp.eq.s32.totalorder %v21538_v35, %v17161_v28  ;;  %v9973_v31 = vsel %vm20370_vm10, 1.0, %v20567_v32 }
 0x3ce   : > { %10416 = vmatmul.mubr.msk.f32.gmra.mxu1 %vm20340_vm1, %v20903_v8  ;;  %v17190_v39 = vadd.f32 %v5262_v45, %v21779_v60  ;;  %6705 = vmatmul.mubr.f32.gmra.mxu0 %v6704_v41  ;;  %21780 = vst [vmem:[#allocation179_spill] sm:$0xff] %v17195_v25  ;;  %vm20360_vm8 = vcmp.eq.s32.totalorder %v20904_v57, %v17161_v28  ;;  %v6719_v47 = vand.u32 4294901760, %v6718_v58  ;;  %v21781_v30 = vand.u32 4294901760, %v17103_v40 }
 0x3cf   : > { %10417 = vmatprep.mubr.msk.f32.mxu1 %vm20328_vm9, %v20903_v8  ;;  %v5719_v10 = vpop.f32.mrf.mxu1  ;;  %6714 = vmatprep.mubr.f32.mxu0 %v6713_v29  ;;  %v5264_v45 = vpop.f32.mrf.mxu0  ;;  %v17215_v3 = vsub.f32 %v9974_v14, %v9974_v14  ;;  %v6728_v49 = vand.u32 4294901760, %v6727_v55  ;;  %v21784_v58 = vand.u32 4294901760, %v17127_v6  ;;  %v9976_v14 = vsel %vm20360_vm8, 1.0, %v20567_v32  ;;  %v21786_v55 = vld [vmem:[#allocation188_spill] sm:$0xff] }
 0x3d0   : > { %7551 = vmatprep.subr.mxu0 %v20567_v32  ;;  %7960 = vmatprep.subr.mxu1 %v20567_v32  ;;  %v6733_v41 = vsub.f32 %v17103_v40, %v21781_v30  ;;  %v21783_v45 = vld [vmem:[#allocation18_spill] sm:$0xff]  ;;  %v17229_v30 = vpop.permute.xlu1 %991  ;;  %v17242_v23 = vsub.f32 %v9973_v31, %v9973_v31  ;;  %vm20364_vm9 = vcmp.eq.s32.totalorder %v20904_v57, %v17183_v36  ;;  %v17256_v31 = vpop.permute.xlu0 %994  ;;  %v21790_v5 = vand.u32 4294901760, %v17159_v44 }
 0x3d1   : > { %21782 = vst [vmem:[#allocation32_spill] sm:$0xff] %v17215_v3  ;;  %v17217_v10 = vpop.f32.mrf.mxu1  ;;  %v5271_v29 = vpop.f32.mrf.mxu0  ;;  %7554 = vmatpush1.msra.mxu0 %v21783_v45  ;;  %7962 = vmatpush1.msra.mxu1 %v21415_v21  ;;  %v6742_v62 = vsub.f32 %v17127_v6, %v21784_v58  ;;  %21785 = vst [vmem:[#allocation183_spill] sm:$0xff] %v17229_v30  ;;  %v9975_v58 = vsel %vm20369_vm14, 1.0, %v20567_v32  ;;  %v21792_v21 = vld [vmem:[#allocation23_spill] sm:$0xff]  ;;  %vm20376_vm1 = vcmp.eq.s32.totalorder %v20904_v57, %v17229_v30 }
 0x3d2   : > { %10418 = vmatmul.mubr.msk.f32.gmra.mxu1 %vm20329_vm6, %v20903_v8  ;;  %v17236_v45 = vadd.f32 %v5271_v29, %v21786_v55  ;;  %6720 = vmatmul.mubr.f32.gmra.mxu0 %v6719_v47  ;;  %21787 = vst [vmem:[#allocation31_spill] sm:$0xff] %v17242_v23  ;;  %v17252_v47 = vadd.f32 %v17043_v27, %v17142_v13  ;;  %21789 = vst [vmem:[#allocation109_spill] sm:$0xff] %v17256_v31  ;;  %v6734_v55 = vand.u32 4294901760, %v6733_v41 }
 0x3d3   : > { %10419 = vmatprep.mubr.msk.f32.mxu1 %vm20339_vm3, %v20903_v8  ;;  %v5730_v60 = vpop.f32.mrf.mxu1  ;;  %6729 = vmatprep.mubr.f32.mxu0 %v6728_v49  ;;  %v5273_v29 = vpop.f32.mrf.mxu0  ;;  %vm20493_vm6 = vcmp.eq.s32.totalorder %v21538_v35, %v17183_v36  ;;  %v20347_v49 = vand.u32 4294901760, %v17195_v25  ;;  %v6743_v6 = vand.u32 4294901760, %v6742_v62  ;;  %v21793_v41 = vand.u32 4294901760, %v17151_v61 }
 0x3d4   : > { %21788 = vst [vmem:[#allocation185_spill] sm:$0xff] %v17252_v47  ;;  %7555 = vmatprep.subr.mxu0 %v20567_v32  ;;  %7963 = vmatprep.subr.mxu1 %v20567_v32  ;;  %v6748_v60 = vsub.f32 %v17159_v44, %v21790_v5  ;;  %v17264_v29 = vsub.f32 %v9976_v14, %v9976_v14  ;;  %v9978_v5 = vsel %vm20364_vm9, 1.0, %v20567_v32  ;;  %v9977_v14 = vsel %vm20493_vm6, 1.0, %v20567_v32  ;;  %v21798_v47 = vld [vmem:[#allocation24_spill] sm:$0xff] }
 0x3d5   : > { %v17266_v27 = vpop.f32.mrf.mxu1  ;;  %v5280_v13 = vpop.f32.mrf.mxu0  ;;  %7558 = vmatpush1.msra.mxu0 %v21792_v21  ;;  %7965 = vmatpush1.msra.mxu1 %v21423_v22  ;;  %v6757_v40 = vsub.f32 %v17151_v61, %v21793_v41  ;;  %v17274_v26 = vsub.f32 %v9975_v58, %v9975_v58  ;;  %v21795_v21 = vld [vmem:[#allocation192_spill] sm:$0xff]  ;;  %vm20390_vm3 = vcmp.eq.s32.totalorder %v21538_v35, %v17229_v30 }
 0x3d6   : > { %21791 = vst [vmem:[#allocation189_spill] sm:$0xff] %v17264_v29  ;;  %10420 = vmatmul.mubr.msk.f32.gmra.mxu1 %vm20341_vm5, %v20903_v8  ;;  %v17285_v62 = vadd.f32 %v5280_v13, %v21795_v21  ;;  %6735 = vmatmul.mubr.f32.gmra.mxu0 %v6734_v55  ;;  %v17301_v55 = vadd.f32 %v17083_v59, %v17190_v39  ;;  %v17303_v41 = vpop.permute.xlu1 %997  ;;  %v6749_v21 = vand.u32 4294901760, %v6748_v60  ;;  %v21799_v60 = vand.u32 4294901760, %v17215_v3 }
 0x3d7   : > { %21794 = vst [vmem:[#allocation113_spill] sm:$0xff] %v17274_v26  ;;  %10421 = vmatprep.mubr.msk.f32.mxu1 %vm20348_vm4, %v20903_v8  ;;  %v5741_v58 = vpop.f32.mrf.mxu1  ;;  %6744 = vmatprep.mubr.f32.mxu0 %v6743_v6  ;;  %v5282_v13 = vpop.f32.mrf.mxu0  ;;  %21796 = vst [vmem:[#allocation191_spill] sm:$0xff] %v17303_v41  ;;  %vm20384_vm5 = vcmp.eq.s32.totalorder %v20904_v57, %v17256_v31  ;;  %v20357_v6 = vand.u32 4294901760, %v17242_v23  ;;  %v6758_v20 = vand.u32 4294901760, %v6757_v40  ;;  %v21800_v40 = vld [vmem:[#allocation100_spill] sm:$0xff]  ;;  %v21810_v46 = vand.u32 4294901760, %v17274_v26 }
 0x3d8   : > { %7559 = vmatprep.subr.mxu0 %v20567_v32  ;;  %7966 = vmatprep.subr.mxu1 %v20567_v32  ;;  %v6763_v58 = vsub.f32 %v17195_v25, %v20347_v49  ;;  %v17313_v13 = vsub.f32 %v9978_v5, %v9978_v5  ;;  %v6772_v22 = vsub.f32 %v17215_v3, %v21799_v60  ;;  %v9979_v5 = vsel %vm20390_vm3, 1.0, %v20567_v32 }
 0x3d9   : > { %v17315_v59 = vpop.f32.mrf.mxu1  ;;  %v5289_v39 = vpop.f32.mrf.mxu0  ;;  %7562 = vmatpush1.msra.mxu0 %v21798_v47  ;;  %7968 = vmatpush1.msra.mxu1 %v21431_v38  ;;  %v9980_v49 = vsel %vm20376_vm1, 1.0, %v20567_v32  ;;  %v17338_v60 = vsub.f32 %v9977_v14, %v9977_v14  ;;  %vm20389_vm4 = vcmp.eq.s32.totalorder %v20904_v57, %v17303_v41  ;;  %vm20387_vm15 = vcmp.eq.s32.totalorder %v21538_v35, %v17256_v31 }
 0x3da   : > { %21797 = vst [vmem:[#allocation41_spill] sm:$0xff] %v17313_v13  ;;  %10422 = vmatmul.mubr.msk.f32.gmra.mxu1 %vm20370_vm10, %v20903_v8  ;;  %v17336_v47 = vadd.f32 %v5289_v39, %v21800_v40  ;;  %6750 = vmatmul.mubr.f32.gmra.mxu0 %v6749_v21  ;;  %v9982_v61 = vsel %vm20384_vm5, 1.0, %v20567_v32  ;;  %v6764_v21 = vand.u32 4294901760, %v6763_v58  ;;  %v6778_v40 = vsub.f32 %v17242_v23, %v20357_v6 }
 0x3db   : > { %21801 = vst [vmem:[#allocation193_spill] sm:$0xff] %v17338_v60  ;;  %10423 = vmatprep.mubr.msk.f32.mxu1 %vm20360_vm8, %v20903_v8  ;;  %v5752_v39 = vpop.f32.mrf.mxu1  ;;  %6759 = vmatprep.mubr.f32.mxu0 %v6758_v20  ;;  %v5291_v14 = vpop.f32.mrf.mxu0  ;;  %v17360_v38 = vadd.f32 %v17129_v11, %v17236_v45  ;;  %v17362_v3 = vsub.f32 %v9980_v49, %v9980_v49  ;;  %v6773_v58 = vand.u32 4294901760, %v6772_v22  ;;  %v21804_v25 = vand.u32 4294901760, %v17264_v29  ;;  %v21807_v45 = vld [vmem:[#allocation33_spill] sm:$0xff] }
 0x3dc   : > { %7563 = vmatprep.subr.mxu0 %v20567_v32  ;;  %7969 = vmatprep.subr.mxu1 %v20567_v32  ;;  %v21803_v14 = vld [vmem:[#allocation27_spill] sm:$0xff]  ;;  %v17372_v23 = vsub.f32 %v9979_v5, %v9979_v5  ;;  %v17374_v11 = vpop.permute.xlu0 %1000  ;;  %vm20492_vm8 = vcmp.eq.s32.totalorder %v21538_v35, %v17303_v41  ;;  %v9981_v22 = vsel %vm20387_vm15, 1.0, %v20567_v32  ;;  %v17393_v5 = vsub.f32 %v9982_v61, %v9982_v61 }
 0x3dd   : > { %21802 = vst [vmem:[#allocation43_spill] sm:$0xff] %v17362_v3  ;;  %v17364_v39 = vpop.f32.mrf.mxu1  ;;  %v5298_v20 = vpop.f32.mrf.mxu0  ;;  %7566 = vmatpush1.msra.mxu0 %v21803_v14  ;;  %7971 = vmatpush1.msra.mxu1 %v21438_v63  ;;  %v6787_v6 = vsub.f32 %v17264_v29, %v21804_v25  ;;  %21806 = vst [vmem:[#allocation47_spill] sm:$0xff] %v17374_v11  ;;  %v9984_v25 = vsel %vm20389_vm4, 1.0, %v20567_v32  ;;  %v6793_v61 = vsub.f32 %v17274_v26, %v21810_v46 }
 0x3de   : > { %21805 = vst [vmem:[#allocation195_spill] sm:$0xff] %v17372_v23  ;;  %10424 = vmatmul.mubr.msk.f32.gmra.mxu1 %vm20369_vm14, %v20903_v8  ;;  %v17381_v49 = vadd.f32 %v5298_v20, %v21807_v45  ;;  %6765 = vmatmul.mubr.f32.gmra.mxu0 %v6764_v21  ;;  %21808 = vst [vmem:[#allocation198_spill] sm:$0xff] %v17393_v5  ;;  %v17399_v14 = vpop.permute.xlu1 %1003  ;;  %v6779_v45 = vand.u32 4294901760, %v6778_v40  ;;  %v17409_v63 = vadd.f32 %v17171_v19, %v17285_v62  ;;  %v21814_v19 = vld [vmem:[#allocation34_spill] sm:$0xff] }
 0x3df   : > { %10425 = vmatprep.mubr.msk.f32.mxu1 %vm20364_vm9, %v20903_v8  ;;  %v5763_v21 = vpop.f32.mrf.mxu1  ;;  %6774 = vmatprep.mubr.f32.mxu0 %v6773_v58  ;;  %v5300_v20 = vpop.f32.mrf.mxu0  ;;  %21809 = vst [vmem:[#allocation58_spill] sm:$0xff] %v17399_v14  ;;  %vm20491_vm9 = vcmp.eq.s32.totalorder %v20904_v57, %v17374_v11  ;;  %v6788_v40 = vand.u32 4294901760, %v6787_v6  ;;  %v21812_v29 = vand.u32 4294901760, %v17313_v13  ;;  %v17421_v26 = vsub.f32 %v9984_v25, %v9984_v25 }
 0x3e0   : > { %7567 = vmatprep.subr.mxu0 %v20567_v32  ;;  %7972 = vmatprep.subr.mxu1 %v20567_v32  ;;  %v21811_v20 = vld [vmem:[#allocation102_spill] sm:$0xff]  ;;  %v9983_v6 = vsel %vm20492_vm8, 1.0, %v20567_v32  ;;  %vm20408_vm14 = vcmp.eq.s32.totalorder %v20904_v57, %v17399_v14  ;;  %vm20402_vm10 = vcmp.eq.s32.totalorder %v21538_v35, %v17374_v11  ;;  %v21837_v11 = vld [vmem:[#allocation48_spill] sm:$0xff] }
 0x3e1   : > { %v17413_v58 = vpop.f32.mrf.mxu1  ;;  %v5307_v21 = vpop.f32.mrf.mxu0  ;;  %7570 = vmatpush1.msra.mxu0 %v21811_v20  ;;  %7974 = vmatpush1.msra.mxu1 %v21444_v50  ;;  %v6802_v46 = vsub.f32 %v17313_v13, %v21812_v29  ;;  %21813 = vst [vmem:[#allocation200_spill] sm:$0xff] %v17421_v26  ;;  %v17434_v20 = vsub.f32 %v9981_v22, %v9981_v22  ;;  %v9986_v22 = vsel %vm20491_vm9, 1.0, %v20567_v32 }
 0x3e2   : > { %10426 = vmatmul.mubr.msk.f32.gmra.mxu1 %vm20493_vm6, %v20903_v8  ;;  %v17428_v62 = vadd.f32 %v5307_v21, %v21814_v19  ;;  %6780 = vmatmul.mubr.f32.gmra.mxu0 %v6779_v45  ;;  %v6794_v45 = vand.u32 4294901760, %v6793_v61  ;;  %v21816_v21 = vand.u32 4294901760, %v17338_v60  ;;  %v17464_v13 = vadd.f32 %v17217_v10, %v17336_v47  ;;  %v21819_v47 = vld [vmem:[#allocation196_spill] sm:$0xff]  ;;  %v17491_v61 = vpop.permute.xlu0 %1006 }
 0x3e3   : > { %21815 = vst [vmem:[#allocation72_spill] sm:$0xff] %v17434_v20  ;;  %10427 = vmatprep.mubr.msk.f32.mxu1 %vm20376_vm1, %v20903_v8  ;;  %v5774_v29 = vpop.f32.mrf.mxu1  ;;  %6789 = vmatprep.mubr.f32.mxu0 %v6788_v40  ;;  %v5309_v25 = vpop.f32.mrf.mxu0  ;;  %v21817_v40 = vld [vmem:[#allocation106_spill] sm:$0xff]  ;;  %vm20409_vm1 = vcmp.eq.s32.totalorder %v21538_v35, %v17399_v14  ;;  %v9985_v10 = vsel %vm20402_vm10, 1.0, %v20567_v32  ;;  %21821 = vst [vmem:[#allocation83_spill] sm:$0xff] %v17491_v61  ;;  %v21827_v31 = vand.u32 4294901760, %v17434_v20  ;;  %vm20494_vm6 = vcmask 720512  }
 0x3e4   : > { %7571 = vmatprep.subr.mxu0 %v20567_v32  ;;  %7975 = vmatprep.subr.mxu1 %v20567_v32  ;;  %v6808_v19 = vsub.f32 %v17338_v60, %v21816_v21  ;;  %v6803_v29 = vand.u32 4294901760, %v6802_v46  ;;  %v21818_v25 = vand.u32 4294901760, %v17362_v3  ;;  %v17466_v21 = vsub.f32 %v9983_v6, %v9983_v6 }
 0x3e5   : > { %v17454_v36 = vpop.f32.mrf.mxu1  ;;  %7574 = vmatpush1.msra.mxu0 %v21817_v40  ;;  %7977 = vmatpush1.msra.mxu1 %v21452_v37  ;;  %v9988_v40 = vsel %vm20408_vm14, 1.0, %v20567_v32 }
 0x3e6   : > { %v6817_v50 = vsub.f32 %v17362_v3, %v21818_v25  ;;  %10428 = vmatmul.mubr.msk.f32.gmra.mxu1 %vm20390_vm3, %v20903_v8  ;;  %v5316_v46 = vpop.f32.mrf.mxu0  ;;  %6795 = vmatmul.mubr.f32.gmra.mxu0 %v6794_v45  ;;  %v17489_v25 = vsub.f32 %v9986_v22, %v9986_v22  ;;  %v6809_v30 = vand.u32 4294901760, %v6808_v19  ;;  %v21823_v3 = vld [vmem:[#allocation35_spill] sm:$0xff]  ;;  %v21824_v22 = vand.u32 4294901760, %v17393_v5 }
 0x3e7   : > { %v17483_v6 = vadd.f32 %v5316_v46, %v21819_v47  ;;  %10429 = vmatprep.mubr.msk.f32.mxu1 %vm20384_vm5, %v20903_v8  ;;  %v5785_v45 = vpop.f32.mrf.mxu1  ;;  %6804 = vmatprep.mubr.f32.mxu0 %v6803_v29  ;;  %v21822_v46 = vand.u32 4294901760, %v17372_v23  ;;  %v17507_v19 = vadd.f32 %v17266_v27, %v17381_v49  ;;  %vm20415_vm5 = vcmp.eq.s32.totalorder %v20904_v57, %v17491_v61  ;;  %v21826_v27 = vld [vmem:[#allocation194_spill] sm:$0xff] }
 0x3e8   : > { %21820 = vst [vmem:[#allocation46_spill] sm:$0xff] %v17489_v25  ;;  %v5318_v28 = vpop.f32.mrf.mxu0  ;;  %7575 = vmatprep.subr.mxu0 %v20567_v32  ;;  %7978 = vmatprep.subr.mxu1 %v20567_v32  ;;  %v6818_v45 = vand.u32 4294901760, %v6817_v50  ;;  %v9987_v50 = vsel %vm20409_vm1, 1.0, %v20567_v32 }
 0x3e9   : > { %v6823_v47 = vsub.f32 %v17372_v23, %v21822_v46  ;;  %7578 = vmatpush1.msra.mxu0 %v21823_v3  ;;  %7980 = vmatpush1.msra.mxu1 %v21460_v24  ;;  %v6832_v28 = vsub.f32 %v17393_v5, %v21824_v22  ;;  %v17519_v46 = vsub.f32 %v9988_v40, %v9988_v40  ;;  %v17521_v22 = vpop.permute.xlu1 %1009  ;;  %v21828_v24 = vld [vmem:[#allocation40_spill] sm:$0xff] }
 0x3ea   : > { %v17509_v60 = vpop.f32.mrf.mxu1  ;;  %10430 = vmatmul.mubr.msk.f32.gmra.mxu1 %vm20387_vm15, %v20903_v8  ;;  %v5325_v3 = vpop.f32.mrf.mxu0  ;;  %6810 = vmatmul.mubr.f32.gmra.mxu0 %v6809_v30  ;;  %21825 = vst [vmem:[#allocation49_spill] sm:$0xff] %v17521_v22  ;;  %v17532_v30 = vsub.f32 %v9985_v10, %v9985_v10  ;;  %vm20412_vm15 = vcmp.eq.s32.totalorder %v21538_v35, %v17491_v61 }
 0x3eb   : > { %v17526_v49 = vadd.f32 %v5325_v3, %v21826_v27  ;;  %10431 = vmatprep.mubr.msk.f32.mxu1 %vm20389_vm4, %v20903_v8  ;;  %6819 = vmatprep.mubr.f32.mxu0 %v6818_v45  ;;  %v6824_v40 = vand.u32 4294901760, %v6823_v47  ;;  %v6838_v3 = vsub.f32 %v17434_v20, %v21827_v31  ;;  %v6833_v10 = vand.u32 4294901760, %v6832_v28 }
 0x3ec   : > { %v6274_v29 = vpop.f32.mrf.mxu1  ;;  %v5327_v37 = vpop.f32.mrf.mxu0  ;;  %7579 = vmatprep.subr.mxu0 %v20567_v32  ;;  %7981 = vmatprep.subr.mxu1 %v20567_v32  ;;  %v9990_v31 = vsel %vm20415_vm5, 1.0, %v20567_v32  ;;  %v17562_v28 = vadd.f32 %v17315_v59, %v17428_v62  ;;  %vm20416_vm4 = vcmp.eq.s32.totalorder %v21538_v35, %v17521_v22  ;;  %vm20414_vm3 = vcmp.eq.s32.totalorder %v20904_v57, %v17521_v22  ;;  %v21856_v22 = vld [vmem:[#allocation214_spill] sm:$0xff] }
 0x3ed   : > { %7582 = vmatpush1.msra.mxu0 %v21828_v24  ;;  %7983 = vmatpush1.msra.mxu1 %v21467_v51  ;;  %v21829_v37 = vand.u32 4294901760, %v17421_v26  ;;  %v17548_v29 = vsub.f32 %v9987_v50, %v9987_v50  ;;  %v21830_v50 = vld [vmem:[#allocation199_spill] sm:$0xff]  ;;  %v9989_v59 = vsel %vm20412_vm15, 1.0, %v20567_v32  ;;  %v6839_v45 = vand.u32 4294901760, %v6838_v3 }
 0x3ee   : > { %v17554_v27 = vpop.f32.mrf.mxu1  ;;  %10432 = vmatmul.mubr.msk.f32.gmra.mxu1 %vm20492_vm8, %v20903_v8  ;;  %v5334_v24 = vpop.f32.mrf.mxu0  ;;  %6825 = vmatmul.mubr.f32.gmra.mxu0 %v6824_v40  ;;  %v20407_v41 = vand.u32 4294901760, %v17532_v30  ;;  %v17585_v51 = vsub.f32 %v9990_v31, %v9990_v31  ;;  %vm20495_vm8 = vcmask 654912  }
 0x3ef   : > { %v6847_v47 = vsub.f32 %v17421_v26, %v21829_v37  ;;  %v17569_v37 = vadd.f32 %v5334_v24, %v21830_v50  ;;  %10433 = vmatprep.mubr.msk.f32.mxu1 %vm20491_vm9, %v20903_v8  ;;  %6834 = vmatprep.mubr.f32.mxu0 %v6833_v10  ;;  %v21831_v24 = vand.u32 4294901760, %v17466_v21  ;;  %v17587_v10 = vpop.permute.xlu0 %1012  ;;  %v21833_v26 = vld [vmem:[#allocation44_spill] sm:$0xff]  ;;  %vm20497_vm9 = vcmask 589312  }
 0x3f0   : > { %v6281_v62 = vpop.f32.mrf.mxu1  ;;  %v5336_v40 = vpop.f32.mrf.mxu0  ;;  %7583 = vmatprep.subr.mxu0 %v20567_v32  ;;  %7984 = vmatprep.subr.mxu1 %v20567_v32  ;;  %21832 = vst [vmem:[#allocation91_spill] sm:$0xff] %v17587_v10 }
 0x3f1   : > { %v6853_v50 = vsub.f32 %v17466_v21, %v21831_v24  ;;  %7586 = vmatpush2.msra.mxu0 %v21833_v26  ;;  %v6848_v20 = vand.u32 4294901760, %v6847_v47  ;;  %v21834_v62 = vld [vmem:[#allocation37_spill] sm:$0xff]  ;;  %v21835_v40 = vand.u32 4294901760, %v17489_v25  ;;  %v17603_v26 = vadd.f32 %v17364_v39, %v17483_v6 }
 0x3f2   : > { %7986 = vmatpush2.msra.mxu1 %v21834_v62  ;;  %v17595_v23 = vpop.f32.mrf.mxu1  ;;  %v5951_v31 = vpop.f32.mrf.mxu0  ;;  %6840 = vmatmul.mubr.f32.gmra.mxu0 %v6839_v45  ;;  %v9991_v47 = vsel %vm20416_vm4, 1.0, %v20567_v32  ;;  %v9992_v24 = vsel %vm20414_vm3, 1.0, %v20567_v32 }
 0x3f3   : > { %v6862_v3 = vsub.f32 %v17489_v25, %v21835_v40  ;;  %10434 = vmatmul.mubr.msk.f32.gmra.mxu1 %vm20402_vm10, %v20903_v8  ;;  %v17613_v40 = vsub.f32 %v9989_v59, %v9989_v59  ;;  %v5952_v5 = vadd.f32 %v5951_v31, %v16395_v56  ;;  %6849 = vmatprep.mubr.f32.mxu0 %v6848_v20  ;;  %v6854_v45 = vand.u32 4294901760, %v6853_v50  ;;  %v17628_v31 = vpop.permute.xlu1 %1015 }
 0x3f4   : > { %10435 = vmatprep.mubr.msk.f32.mxu1 %vm20408_vm14, %v20903_v8  ;;  %vm20417_vm10 = vcmp.eq.s32.totalorder %v20904_v57, %v17587_v10  ;;  %v6288_v39 = vpop.f32.mrf.mxu1  ;;  %v5953_v6 = vpop.f32.mrf.mxu0  ;;  %7587 = vmatprep.subr.mxu0 %v20567_v32  ;;  %v6868_v56 = vsub.f32 %v17532_v30, %v20407_v41  ;;  %21836 = vst [vmem:[#allocation64_spill] sm:$0xff] %v17628_v31 }
 0x3f5   : > { %7987 = vmatprep.subr.mxu1 %v20567_v32  ;;  %v6273_v20 = vadd.f32 %v17509_v60, %v5952_v5  ;;  %7590 = vmatpush2.msra.mxu0 %v21837_v11  ;;  %v6863_v62 = vand.u32 4294901760, %v6862_v3  ;;  %v21838_v39 = vand.u32 4294901760, %v17519_v46  ;;  %v20413_v6 = vand.u32 4294901760, %v17585_v51  ;;  %v21839_v3 = vld [vmem:[#allocation209_spill] sm:$0xff] }
 0x3f6   : > { %7989 = vmatpush2.msra.mxu1 %v21479_v2  ;;  %v17637_v25 = vsub.f32 %v9992_v24, %v9992_v24  ;;  %v17639_v41 = vsub.f32 %v9991_v47, %v9991_v47  ;;  %vm20427_vm14 = vcmp.eq.s32.totalorder %v21538_v35, %v17587_v10  ;;  %v17643_v59 = vpop.f32.mrf.mxu1  ;;  %v5958_v60 = vpop.f32.mrf.mxu0  ;;  %6855 = vmatmul.mubr.f32.gmra.mxu0 %v6854_v45  ;;  %v9994_v11 = vsel %vm20417_vm10, 1.0, %v20567_v32  ;;  %v21855_v10 = vld [vmem:[#allocation68_spill] sm:$0xff] }
 0x3f7   : > { %v6877_v50 = vsub.f32 %v17519_v46, %v21838_v39  ;;  %10436 = vmatmul.mubr.msk.f32.gmra.mxu1 %vm20409_vm1, %v20903_v8  ;;  %v5959_v5 = vadd.f32 %v5958_v60, %v16418_v48  ;;  %6864 = vmatprep.mubr.f32.mxu0 %v6863_v62  ;;  %v9091_v47 = vmul.f32 %v6273_v20, %v21839_v3  ;;  %v6869_v48 = vand.u32 4294901760, %v6868_v56 }
 0x3f8   : > { %10437 = vmatprep.mubr.msk.f32.mxu1 %vm20415_vm5, %v20903_v8  ;;  %v17661_v24 = vadd.f32 %v17413_v58, %v17526_v49  ;;  %vm20426_vm1 = vcmp.eq.s32.totalorder %v20904_v57, %v17628_v31  ;;  %v6295_v45 = vpop.f32.mrf.mxu1  ;;  %v5960_v39 = vpop.f32.mrf.mxu0  ;;  %7591 = vmatprep.subr.mxu0 %v20567_v32  ;;  %v21840_v60 = vand.u32 4294901760, %v17548_v29  ;;  %v9993_v58 = vsel %vm20427_vm14, 1.0, %v20567_v32 }
 0x3f9   : > { %7990 = vmatprep.subr.mxu1 %v20567_v32  ;;  %v17675_v49 = vpop.permute.xlu0 %1018  ;;  %v6280_v45 = vadd.f32 %v17554_v27, %v5959_v5  ;;  %9123 = vadd.xlane.f32.xlu0 %v9091_v47  ;;  %v21842_v39 = vld [vmem:[#allocation59_spill] sm:$0xff]  ;;  %v6878_v56 = vand.u32 4294901760, %v6877_v50  ;;  %v6892_v3 = vsub.f32 %v17585_v51, %v20413_v6  ;;  %v9996_v50 = vsel %vm20426_vm1, 1.0, %v20567_v32 }
 0x3fa   : > { %v6883_v62 = vsub.f32 %v17548_v29, %v21840_v60  ;;  %21841 = vst [vmem:[#allocation119_spill] sm:$0xff] %v17675_v49  ;;  %7594 = vmatpush2.msra.mxu0 %v21842_v39  ;;  %v17682_v60 = vsub.f32 %v9994_v11, %v9994_v11  ;;  %v17684_v20 = vpop.f32.mrf.mxu1  ;;  %v5965_v14 = vpop.f32.mrf.mxu0  ;;  %v21844_v11 = vld [vmem:[#allocation211_spill] sm:$0xff]  ;;  %v17707_v39 = vsub.f32 %v9993_v58, %v9993_v58  ;;  %v20418_v58 = vand.u32 4294901760, %v17639_v41 }
 0x3fb   : > { %10438 = vmatmul.mubr.msk.f32.gmra.mxu1 %vm20412_vm15, %v20903_v8  ;;  %6870 = vmatmul.mubr.f32.gmra.mxu0 %v6869_v48  ;;  %v5966_v5 = vadd.f32 %v5965_v14, %v16441_v17  ;;  %v9092_v47 = vmul.f32 %v6280_v45, %v21844_v11  ;;  %v17703_v48 = vadd.f32 %v17454_v36, %v17569_v37  ;;  %v21846_v14 = vand.u32 4294901760, %v17613_v40  ;;  %v21848_v37 = vld [vmem:[#allocation66_spill] sm:$0xff] }
 0x3fc   : > { %21843 = vst [vmem:[#allocation208_spill] sm:$0xff] %v17682_v60  ;;  %10439 = vmatprep.mubr.msk.f32.mxu1 %vm20414_vm3, %v20903_v8  ;;  %6879 = vmatprep.mubr.f32.mxu0 %v6878_v56  ;;  %vm20490_vm15 = vcmp.eq.s32.totalorder %v21538_v35, %v17628_v31  ;;  %21845 = vst [vmem:[#allocation123_spill] sm:$0xff] %v17707_v39  ;;  %v6302_v6 = vpop.f32.mrf.mxu1  ;;  %v5967_v27 = vpop.f32.mrf.mxu0  ;;  %v6884_v17 = vand.u32 4294901760, %v6883_v62  ;;  %vm20432_vm3 = vcmp.eq.s32.totalorder %v20904_v57, %v17675_v49 }
 0x3fd   : > { %7992 = vmatpush2.msra.mxu1 %v21484_v18  ;;  %7595 = vmatprep.subr.mxu0 %v20567_v32  ;;  %v6898_v45 = vsub.f32 %v17613_v40, %v21846_v14  ;;  %v17714_v56 = vpop.permute.xlu1 %1021  ;;  %v6287_v36 = vadd.f32 %v17595_v23, %v5966_v5  ;;  %v6893_v6 = vand.u32 4294901760, %v6892_v3  ;;  %v17721_v27 = vsub.f32 %v9996_v50, %v9996_v50 }
 0x3fe   : > { %21847 = vst [vmem:[#allocation187_spill] sm:$0xff] %v17714_v56  ;;  %9125 = vadd.xlane.f32.xlu1 %v9092_v47  ;;  %7598 = vmatpush2.msra.mxu0 %v21848_v37  ;;  %v17723_v62 = vpop.f32.mrf.mxu1  ;;  %v5972_v14 = vpop.f32.mrf.mxu0  ;;  %v21850_v11 = vand.u32 4294901760, %v17637_v25  ;;  %v9995_v3 = vsel %vm20490_vm15, 1.0, %v20567_v32  ;;  %vm20441_vm5 = vcmp.eq.s32.totalorder %v21538_v35, %v17675_v49  ;;  %v21851_v47 = vld [vmem:[#allocation212_spill] sm:$0xff]  ;;  %v21859_v61 = vand.u32 4294901760, %v17707_v39 }
 0x3ff   : > { %21849 = vst [vmem:[#allocation88_spill] sm:$0xff] %v17721_v27  ;;  %10440 = vmatmul.mubr.msk.f32.gmra.mxu1 %vm20416_vm4, %v20903_v8  ;;  %6885 = vmatmul.mubr.f32.gmra.mxu0 %v6884_v17  ;;  %v5973_v50 = vadd.f32 %v5972_v14, %v16464_v1  ;;  %vm20450_vm4 = vcmp.eq.s32.totalorder %v21538_v35, %v17714_v56  ;;  %v9998_v17 = vsel %vm20432_vm3, 1.0, %v20567_v32  ;;  %v6899_v14 = vand.u32 4294901760, %v6898_v45 }
 0x400   : > { %v6907_v23 = vsub.f32 %v17637_v25, %v21850_v11  ;;  %10441 = vmatprep.mubr.msk.f32.mxu1 %vm20417_vm10, %v20903_v8  ;;  %6894 = vmatprep.mubr.f32.mxu0 %v6893_v6  ;;  %v9093_v11 = vmul.f32 %v6287_v36, %v21851_v47  ;;  %v6309_v37 = vpop.f32.mrf.mxu1  ;;  %v5974_v1 = vpop.f32.mrf.mxu0  ;;  %vm20442_vm10 = vcmp.eq.s32.totalorder %v20904_v57, %v17714_v56  ;;  %v9997_v45 = vsel %vm20441_vm5, 1.0, %v20567_v32 }
 0x401   : > { %7993 = vmatprep.subr.mxu1 %v20567_v32  ;;  %7599 = vmatprep.subr.mxu0 %v20567_v32  ;;  %v6294_v36 = vadd.f32 %v17643_v59, %v5973_v50  ;;  %v6913_v6 = vsub.f32 %v17639_v41, %v20418_v58  ;;  %v17761_v5 = vsub.f32 %v9995_v3, %v9995_v3  ;;  %v17778_v37 = vpop.permute.xlu0 %1024 }
 0x402   : > { %7995 = vmatpush2.msra.mxu1 %v21490_v33  ;;  %9127 = vadd.xlane.f32.xlu0 %v9093_v11  ;;  %v17767_v1 = vpop.f32.mrf.mxu1  ;;  %v5979_v59 = vpop.f32.mrf.mxu0  ;;  %v6908_v50 = vand.u32 4294901760, %v6907_v23  ;;  %v21853_v11 = vand.u32 4294901760, %v17682_v60  ;;  %v17776_v58 = vsub.f32 %v9998_v17, %v9998_v17  ;;  %21854 = vst [vmem:[#allocation94_spill] sm:$0xff] %v17778_v37  ;;  %v9999_v17 = vsel %vm20450_vm4, 1.0, %v20567_v32  ;;  %v21858_v23 = vld [vmem:[#allocation62_spill] sm:$0xff] }
 0x403   : > { %21852 = vst [vmem:[#allocation128_spill] sm:$0xff] %v17761_v5  ;;  %10442 = vmatmul.mubr.msk.f32.gmra.mxu1 %vm20427_vm14, %v20903_v8  ;;  %6900 = vmatmul.mubr.f32.gmra.mxu0 %v6899_v14  ;;  %v5980_v47 = vadd.f32 %v5979_v59, %v16487_v34  ;;  %v9094_v14 = vmul.f32 %v6294_v36, %v21856_v22  ;;  %v10000_v34 = vsel %vm20442_vm10, 1.0, %v20567_v32  ;;  %v6914_v22 = vand.u32 4294901760, %v6913_v6  ;;  %v21864_v6 = vld [vmem:[#allocation80_spill] sm:$0xff] }
 0x404   : > { %v6922_v3 = vsub.f32 %v17682_v60, %v21853_v11  ;;  %10443 = vmatprep.mubr.msk.f32.mxu1 %vm20426_vm1, %v20903_v8  ;;  %7602 = vmatpush2.msra.mxu0 %v21855_v10  ;;  %v6316_v59 = vpop.f32.mrf.mxu1  ;;  %v5981_v11 = vpop.f32.mrf.mxu0  ;;  %v17797_v10 = vsub.f32 %v9997_v45, %v9997_v45  ;;  %v6928_v33 = vsub.f32 %v17707_v39, %v21859_v61 }
 0x405   : > { %6909 = vmatprep.mubr.f32.mxu0 %v6908_v50  ;;  %7996 = vmatprep.subr.mxu1 %v20567_v32  ;;  %v6301_v36 = vadd.f32 %v17684_v20, %v5980_v47  ;;  %vm20452_vm1 = vcmp.eq.s32.totalorder %v21538_v35, %v17778_v37  ;;  %vm20445_vm14 = vcmp.eq.s32.totalorder %v20904_v57, %v17778_v37  ;;  %v17816_v61 = vpop.permute.xlu1 %1027  ;;  %v21862_v11 = vand.u32 4294901760, %v17721_v27  ;;  %v21892_v37 = vld [vmem:[#allocation227_spill] sm:$0xff] }
 0x406   : > { %21857 = vst [vmem:[#allocation132_spill] sm:$0xff] %v17797_v10  ;;  %7998 = vmatpush2.msra.mxu1 %v21858_v23  ;;  %9129 = vadd.xlane.f32.xlu0 %v9094_v14  ;;  %v17808_v50 = vpop.f32.mrf.mxu1  ;;  %v5986_v20 = vpop.f32.mrf.mxu0  ;;  %v6923_v47 = vand.u32 4294901760, %v6922_v3  ;;  %21860 = vst [vmem:[#allocation95_spill] sm:$0xff] %v17816_v61  ;;  %v21861_v14 = vld [vmem:[#allocation218_spill] sm:$0xff]  ;;  %v17828_v23 = vsub.f32 %v10000_v34, %v10000_v34 }
 0x407   : > { %10444 = vmatmul.mubr.msk.f32.gmra.mxu1 %vm20490_vm15, %v20903_v8  ;;  %7603 = vmatprep.subr.mxu0 %v20567_v32  ;;  %v5987_v45 = vadd.f32 %v5986_v20, %v16510_v15  ;;  %v9095_v59 = vmul.f32 %v6301_v36, %v21861_v14  ;;  %v6937_v31 = vsub.f32 %v17721_v27, %v21862_v11  ;;  %v10002_v36 = vsel %vm20445_vm14, 1.0, %v20567_v32  ;;  %v21869_v14 = vld [vmem:[#allocation221_spill] sm:$0xff] }
 0x408   : > { %6915 = vmatmul.mubr.f32.gmra.mxu0 %v6914_v22  ;;  %10445 = vmatprep.mubr.msk.f32.mxu1 %vm20432_vm3, %v20903_v8  ;;  %21863 = vst [vmem:[#allocation135_spill] sm:$0xff] %v17828_v23  ;;  %v6323_v39 = vpop.f32.mrf.mxu1  ;;  %v5988_v15 = vpop.f32.mrf.mxu0  ;;  %v17831_v22 = vsub.f32 %v9999_v17, %v9999_v17  ;;  %v6929_v11 = vand.u32 4294901760, %v6928_v33  ;;  %vm20457_vm3 = vcmp.eq.s32.totalorder %v20904_v57, %v17816_v61  ;;  %v21865_v17 = vld [vmem:[#allocation70_spill] sm:$0xff]  ;;  %v21870_v27 = vand.u32 4294901760, %v17776_v58  ;;  %v21872_v33 = vld [vmem:[#allocation92_spill] sm:$0xff] }
 0x409   : > { %7606 = vmatpush2.msra.mxu0 %v21864_v6  ;;  %6924 = vmatprep.mubr.f32.mxu0 %v6923_v47  ;;  %v6308_v20 = vadd.f32 %v17723_v62, %v5987_v45  ;;  %v10001_v39 = vsel %vm20452_vm1, 1.0, %v20567_v32  ;;  %v21866_v62 = vand.u32 4294901760, %v17761_v5  ;;  %v17853_v45 = vpop.permute.xlu0 %1030  ;;  %v6938_v3 = vand.u32 4294901760, %v6937_v31 }
 0x40a   : > { %7999 = vmatprep.subr.mxu1 %v20567_v32  ;;  %9131 = vadd.xlane.f32.xlu1 %v9095_v59  ;;  %v17846_v34 = vpop.f32.mrf.mxu1  ;;  %v5993_v47 = vpop.f32.mrf.mxu0  ;;  %21867 = vst [vmem:[#allocation217_spill] sm:$0xff] %v17853_v45  ;;  %v21868_v59 = vld [vmem:[#allocation111_spill] sm:$0xff]  ;;  %v6952_v60 = vsub.f32 %v17776_v58, %v21870_v27  ;;  %v10004_v31 = vsel %vm20457_vm3, 1.0, %v20567_v32  ;;  %vm9366_vm15 = vcmask 523712  }
 0x40b   : > { %8001 = vmatpush2.msra.mxu1 %v21865_v17  ;;  %7607 = vmatprep.subr.mxu0 %v20567_v32  ;;  %v6943_v6 = vsub.f32 %v17761_v5, %v21866_v62  ;;  %v5994_v15 = vadd.f32 %v5993_v47, %v21868_v59  ;;  %v9096_v17 = vmul.f32 %v6308_v20, %v21869_v14  ;;  %v21878_v14 = vand.u32 4294901760, %v17828_v23 }
 0x40c   : > { %10446 = vmatmul.mubr.msk.f32.gmra.mxu1 %vm20441_vm5, %v20903_v8  ;;  %6930 = vmatmul.mubr.f32.gmra.mxu0 %v6929_v11  ;;  %v17864_v62 = vsub.f32 %v10002_v36, %v10002_v36  ;;  %v6330_v49 = vpop.f32.mrf.mxu1  ;;  %v5995_v5 = vpop.f32.mrf.mxu0  ;;  %vm20489_vm5 = vcmp.eq.s32.totalorder %v21538_v35, %v17816_v61  ;;  %v17880_v36 = vsub.f32 %v10001_v39, %v10001_v39  ;;  %v6953_v39 = vand.u32 4294901760, %v6952_v60 }
 0x40d   : > { %10447 = vmatprep.mubr.msk.f32.mxu1 %vm20442_vm10, %v20903_v8  ;;  %7610 = vmatpush2.msra.mxu0 %v21872_v33  ;;  %v6315_v27 = vadd.f32 %v17767_v1, %v5994_v15  ;;  %vm20458_vm10 = vcmp.eq.s32.totalorder %v20904_v57, %v17853_v45  ;;  %v21874_v49 = vld [vmem:[#allocation85_spill] sm:$0xff]  ;;  %v6944_v47 = vand.u32 4294901760, %v6943_v6  ;;  %v21875_v33 = vand.u32 4294901760, %v17797_v10  ;;  %v21877_v15 = vld [vmem:[#allocation222_spill] sm:$0xff] }
 0x40e   : > { %21871 = vst [vmem:[#allocation138_spill] sm:$0xff] %v17864_v62  ;;  %6939 = vmatprep.mubr.f32.mxu0 %v6938_v3  ;;  %8002 = vmatprep.subr.mxu1 %v20567_v32  ;;  %21873 = vst [vmem:[#allocation220_spill] sm:$0xff] %v17880_v36  ;;  %v17885_v5 = vpop.f32.mrf.mxu1  ;;  %v6000_v20 = vpop.f32.mrf.mxu0  ;;  %v21876_v1 = vld [vmem:[#allocation197_spill] sm:$0xff]  ;;  %v6967_v56 = vsub.f32 %v17828_v23, %v21878_v14  ;;  %v10003_v60 = vsel %vm20489_vm5, 1.0, %v20567_v32  ;;  %v10006_v14 = vsel %vm20458_vm10, 1.0, %v20567_v32 }
 0x40f   : > { %8004 = vmatpush2.msra.mxu1 %v21874_v49  ;;  %9133 = vadd.xlane.f32.xlu0 %v9096_v17  ;;  %v6958_v59 = vsub.f32 %v17797_v10, %v21875_v33  ;;  %v6001_v3 = vadd.f32 %v6000_v20, %v21876_v1  ;;  %v9097_v11 = vmul.f32 %v6315_v27, %v21877_v15  ;;  %v20451_v17 = vand.u32 4294901760, %v17831_v22  ;;  %v17912_v20 = vpop.permute.xlu1 %1033  ;;  %v21881_v1 = vld [vmem:[#allocation121_spill] sm:$0xff]  ;;  %v17950_v23 = vpop.permute.xlu0 %1036 }
 0x410   : > { %10448 = vmatmul.mubr.msk.f32.gmra.mxu1 %vm20450_vm4, %v20903_v8  ;;  %7611 = vmatprep.subr.mxu0 %v20567_v32  ;;  %v6337_v6 = vpop.f32.mrf.mxu1  ;;  %v6002_v33 = vpop.f32.mrf.mxu0  ;;  %v17910_v27 = vsub.f32 %v10004_v31, %v10004_v31  ;;  %21880 = vst [vmem:[#allocation101_spill] sm:$0xff] %v17912_v20  ;;  %v21882_v49 = vld [vmem:[#allocation93_spill] sm:$0xff]  ;;  %v17933_v10 = vsub.f32 %v10003_v60, %v10003_v60  ;;  %21888 = vst [vmem:[#allocation151_spill] sm:$0xff] %v17950_v23 }
 0x411   : > { %6945 = vmatmul.mubr.f32.gmra.mxu0 %v6944_v47  ;;  %10449 = vmatprep.mubr.msk.f32.mxu1 %vm20445_vm14, %v20903_v8  ;;  %v6322_v47 = vadd.f32 %v17808_v50, %v6001_v3  ;;  %vm20463_vm14 = vcmp.eq.s32.totalorder %v21538_v35, %v17853_v45  ;;  %v6959_v33 = vand.u32 4294901760, %v6958_v59  ;;  %v21883_v50 = vld [vmem:[#allocation202_spill] sm:$0xff]  ;;  %v6973_v15 = vsub.f32 %v17831_v22, %v20451_v17 }
 0x412   : > { %21879 = vst [vmem:[#allocation142_spill] sm:$0xff] %v17910_v27  ;;  %7614 = vmatpush2.msra.mxu0 %v21881_v1  ;;  %6954 = vmatprep.mubr.f32.mxu0 %v6953_v39  ;;  %v17923_v6 = vpop.f32.mrf.mxu1  ;;  %v6007_v31 = vpop.f32.mrf.mxu0  ;;  %v21884_v39 = vld [vmem:[#allocation224_spill] sm:$0xff]  ;;  %21885 = vst [vmem:[#allocation147_spill] sm:$0xff] %v17933_v10  ;;  %vm20472_vm4 = vcmp.eq.s32.totalorder %v20904_v57, %v17912_v20  ;;  %v6968_v59 = vand.u32 4294901760, %v6967_v56  ;;  %v10005_v60 = vsel %vm20463_vm14, 1.0, %v20567_v32  ;;  %v21889_v56 = vld [vmem:[#allocation126_spill] sm:$0xff] }
 0x413   : > { %8005 = vmatprep.subr.mxu1 %v20567_v32  ;;  %9135 = vadd.xlane.f32.xlu1 %v9097_v11  ;;  %v6008_v3 = vadd.f32 %v6007_v31, %v21883_v50  ;;  %v9098_v1 = vmul.f32 %v6322_v47, %v21884_v39  ;;  %v21886_v31 = vand.u32 4294901760, %v17864_v62  ;;  %v17948_v17 = vsub.f32 %v10006_v14, %v10006_v14 }
 0x414   : > { %8007 = vmatpush2.msra.mxu1 %v21882_v49  ;;  %7615 = vmatprep.subr.mxu0 %v20567_v32  ;;  %v6344_v11 = vpop.f32.mrf.mxu1  ;;  %v6009_v47 = vpop.f32.mrf.mxu0 }
 0x415   : > { %10450 = vmatmul.mubr.msk.f32.gmra.mxu1 %vm20452_vm1, %v20903_v8  ;;  %6960 = vmatmul.mubr.f32.gmra.mxu0 %v6959_v33  ;;  %v6982_v50 = vsub.f32 %v17864_v62, %v21886_v31  ;;  %21887 = vst [vmem:[#allocation105_spill] sm:$0xff] %v17948_v17  ;;  %v6329_v39 = vadd.f32 %v17846_v34, %v6008_v3  ;;  %v21890_v47 = vld [vmem:[#allocation122_spill] sm:$0xff]  ;;  %v21891_v34 = vld [vmem:[#allocation204_spill] sm:$0xff]  ;;  %v6974_v31 = vand.u32 4294901760, %v6973_v15 }
 0x416   : > { %10451 = vmatprep.mubr.msk.f32.mxu1 %vm20457_vm3, %v20903_v8  ;;  %7618 = vmatpush2.msra.mxu0 %v21889_v56  ;;  %vm20488_vm1 = vcmp.eq.s32.totalorder %v21538_v35, %v17912_v20  ;;  %v17962_v14 = vpop.f32.mrf.mxu1  ;;  %v6014_v11 = vpop.f32.mrf.mxu0  ;;  %v21893_v56 = vand.u32 4294901760, %v17880_v36  ;;  %v17974_v62 = vsub.f32 %v10005_v60, %v10005_v60  ;;  %vm20487_vm3 = vcmp.eq.s32.totalorder %v20904_v57, %v17950_v23 }
 0x417   : > { %6969 = vmatprep.mubr.f32.mxu0 %v6968_v59  ;;  %8008 = vmatprep.subr.mxu1 %v20567_v32  ;;  %v6015_v3 = vadd.f32 %v6014_v11, %v21891_v34  ;;  %v9099_v49 = vmul.f32 %v6329_v39, %v21892_v37  ;;  %v10008_v59 = vsel %vm20472_vm4, 1.0, %v20567_v32  ;;  %v6983_v39 = vand.u32 4294901760, %v6982_v50 }
 0x418   : > { %8010 = vmatpush2.msra.mxu1 %v21890_v47  ;;  %9137 = vadd.xlane.f32.xlu0 %v9098_v1  ;;  %v6988_v33 = vsub.f32 %v17880_v36, %v21893_v56  ;;  %v6351_v15 = vpop.f32.mrf.mxu1  ;;  %v6016_v1 = vpop.f32.mrf.mxu0  ;;  %v21894_v60 = vand.u32 4294901760, %v17910_v27  ;;  %v21899_v47 = vld [vmem:[#allocation228_spill] sm:$0xff] }
 0x419   : > { %10452 = vmatmul.mubr.msk.f32.gmra.mxu1 %vm20489_vm5, %v20903_v8  ;;  %7619 = vmatprep.subr.mxu0 %v20567_v32  ;;  %v6336_v34 = vadd.f32 %v17885_v5, %v6015_v3  ;;  %v21895_v15 = vld [vmem:[#allocation97_spill] sm:$0xff]  ;;  %v10007_v5 = vsel %vm20488_vm1, 1.0, %v20567_v32  ;;  %v18000_v3 = vsub.f32 %v10008_v59, %v10008_v59  ;;  %vm9359_vm5 = vcmask 458112  }
 0x41a   : > { %6975 = vmatmul.mubr.f32.gmra.mxu0 %v6974_v31  ;;  %10453 = vmatprep.mubr.msk.f32.mxu1 %vm20458_vm10, %v20903_v8  ;;  %v6997_v56 = vsub.f32 %v17910_v27, %v21894_v60  ;;  %v17994_v1 = vpop.f32.mrf.mxu1  ;;  %v6021_v11 = vpop.f32.mrf.mxu0  ;;  %v21897_v60 = vld [vmem:[#allocation206_spill] sm:$0xff]  ;;  %v6989_v37 = vand.u32 4294901760, %v6988_v33  ;;  %vm20486_vm10 = vcmp.eq.s32.totalorder %v21538_v35, %v17950_v23 }
 0x41b   : > { %7622 = vmatpush2.msra.mxu0 %v21895_v15  ;;  %6984 = vmatprep.mubr.f32.mxu0 %v6983_v39  ;;  %v18002_v31 = vpop.permute.xlu1 %1039  ;;  %v6022_v50 = vadd.f32 %v6021_v11, %v21897_v60  ;;  %v10010_v39 = vsel %vm20487_vm3, 1.0, %v20567_v32  ;;  %v21898_v15 = vld [vmem:[#allocation124_spill] sm:$0xff]  ;;  %v9100_v27 = vmul.f32 %v6336_v34, %v21899_v47  ;;  %v18027_v34 = vsub.f32 %v10007_v5, %v10007_v5 }
 0x41c   : > { %21896 = vst [vmem:[#allocation226_spill] sm:$0xff] %v18002_v31  ;;  %8011 = vmatprep.subr.mxu1 %v20567_v32  ;;  %9139 = vadd.xlane.f32.xlu1 %v9099_v49  ;;  %v6358_v59 = vpop.f32.mrf.mxu1  ;;  %v6023_v61 = vpop.f32.mrf.mxu0  ;;  %v21900_v49 = vand.u32 4294901760, %v17933_v10  ;;  %v6998_v60 = vand.u32 4294901760, %v6997_v56  ;;  %v21904_v56 = vld [vmem:[#allocation116_spill] sm:$0xff] }
 0x41d   : > { %8013 = vmatpush2.msra.mxu1 %v21898_v15  ;;  %7623 = vmatprep.subr.mxu0 %v20567_v32  ;;  %v6343_v11 = vadd.f32 %v17923_v6, %v6022_v50  ;;  %v21901_v15 = vand.u32 4294901760, %v17948_v17  ;;  %21902 = vst [vmem:[#allocation153_spill] sm:$0xff] %v18027_v34 }
 0x41e   : > { %v7003_v33 = vsub.f32 %v17933_v10, %v21900_v49  ;;  %10454 = vmatmul.mubr.msk.f32.gmra.mxu1 %vm20463_vm14, %v20903_v8  ;;  %6990 = vmatmul.mubr.f32.gmra.mxu0 %v6989_v37  ;;  %v21903_v49 = vld [vmem:[#allocation131_spill] sm:$0xff]  ;;  %v18034_v47 = vpop.f32.mrf.mxu1  ;;  %v6028_v6 = vpop.f32.mrf.mxu0  ;;  %vm20485_vm14 = vcmp.eq.s32.totalorder %v20904_v57, %v18002_v31  ;;  %v10009_v37 = vsel %vm20486_vm10, 1.0, %v20567_v32  ;;  %v21906_v10 = vld [vmem:[#allocation229_spill] sm:$0xff] }
 0x41f   : > { %v7012_v59 = vsub.f32 %v17948_v17, %v21901_v15  ;;  %10455 = vmatprep.mubr.msk.f32.mxu1 %vm20472_vm4, %v20903_v8  ;;  %7626 = vmatpush2.msra.mxu0 %v21903_v49  ;;  %v6029_v50 = vadd.f32 %v6028_v6, %v21904_v56  ;;  %v18045_v15 = vsub.f32 %v10010_v39, %v10010_v39  ;;  %v21905_v49 = vld [vmem:[#allocation127_spill] sm:$0xff]  ;;  %v21908_v56 = vld [vmem:[#allocation136_spill] sm:$0xff] }
 0x420   : > { %6999 = vmatprep.mubr.f32.mxu0 %v6998_v60  ;;  %8014 = vmatprep.subr.mxu1 %v20567_v32  ;;  %v7004_v61 = vand.u32 4294901760, %v7003_v33  ;;  %v6365_v45 = vpop.f32.mrf.mxu1  ;;  %v6030_v17 = vpop.f32.mrf.mxu0  ;;  %v9101_v36 = vmul.f32 %v6343_v11, %v21906_v10  ;;  %vm20484_vm4 = vcmp.eq.s32.totalorder %v21538_v35, %v18002_v31  ;;  %v21907_v60 = vand.u32 4294901760, %v17974_v62  ;;  %v21923_v31 = vld [vmem:[#allocation108_spill] sm:$0xff] }
 0x421   : > { %8016 = vmatpush2.msra.mxu1 %v21905_v49  ;;  %9141 = vadd.xlane.f32.xlu0 %v9100_v27  ;;  %v7013_v39 = vand.u32 4294901760, %v7012_v59  ;;  %v10012_v45 = vsel %vm20485_vm14, 1.0, %v20567_v32  ;;  %v18063_v17 = vsub.f32 %v10009_v37, %v10009_v37  ;;  %v6350_v33 = vadd.f32 %v17962_v14, %v6029_v50  ;;  %v21916_v49 = vld [vmem:[#allocation137_spill] sm:$0xff] }
 0x422   : > { %10456 = vmatmul.mubr.msk.f32.gmra.mxu1 %vm20488_vm1, %v20903_v8  ;;  %7627 = vmatprep.subr.mxu0 %v20567_v32  ;;  %v7018_v27 = vsub.f32 %v17974_v62, %v21907_v60  ;;  %v6370_v11 = vpop.f32.mrf.mxu1  ;;  %v6035_v59 = vpop.f32.mrf.mxu0  ;;  %v21909_v60 = vld [vmem:[#allocation213_spill] sm:$0xff]  ;;  %v21910_v37 = vand.u32 4294901760, %v18000_v3  ;;  %v10011_v14 = vsel %vm20484_vm4, 1.0, %v20567_v32  ;;  %v21917_v6 = vand.u32 4294901760, %v18045_v15 }
 0x423   : > { %7005 = vmatmul.mubr.f32.gmra.mxu0 %v7004_v61  ;;  %10457 = vmatprep.mubr.msk.f32.mxu1 %vm20487_vm3, %v20903_v8  ;;  %v6036_v5 = vadd.f32 %v6035_v59, %v21909_v60  ;;  %v18096_v20 = vsub.f32 %v10011_v14, %v10011_v14  ;;  %vm9345_vm3 = vcmask 326912   ;;  %vm9352_vm1 = vcmask 392512  }
 0x424   : > { %7630 = vmatpush2.msra.mxu0 %v21908_v56  ;;  %7014 = vmatprep.mubr.f32.mxu0 %v7013_v39  ;;  %v7027_v10 = vsub.f32 %v18000_v3, %v21910_v37  ;;  %v6372_v61 = vpop.f32.mrf.mxu1  ;;  %v6037_v50 = vpop.f32.mrf.mxu0  ;;  %v18082_v56 = vsub.f32 %v10012_v45, %v10012_v45  ;;  %v21911_v39 = vld [vmem:[#allocation133_spill] sm:$0xff]  ;;  %v7019_v59 = vand.u32 4294901760, %v7018_v27  ;;  %v7042_v14 = vsub.f32 %v18045_v15, %v21917_v6 }
 0x425   : > { %8017 = vmatprep.subr.mxu1 %v20567_v32  ;;  %9143 = vadd.xlane.f32.xlu1 %v9101_v36  ;;  %v21912_v36 = vld [vmem:[#allocation230_spill] sm:$0xff]  ;;  %v21913_v50 = vand.u32 4294901760, %v18027_v34  ;;  %v6357_v27 = vadd.f32 %v17994_v1, %v6036_v5  ;;  %v21918_v5 = vld [vmem:[#allocation141_spill] sm:$0xff] }
 0x426   : > { %8019 = vmatpush2.msra.mxu1 %v21911_v39  ;;  %7631 = vmatprep.subr.mxu0 %v20567_v32  ;;  %v6377_v60 = vpop.f32.mrf.mxu1  ;;  %v9102_v37 = vmul.f32 %v6350_v33, %v21912_v36  ;;  %v6042_v61 = vpop.f32.mrf.mxu0  ;;  %v7028_v23 = vand.u32 4294901760, %v7027_v10  ;;  %v21914_v39 = vld [vmem:[#allocation223_spill] sm:$0xff]  ;;  %v21915_v36 = vld [vmem:[#allocation140_spill] sm:$0xff]  ;;  %v7043_v1 = vand.u32 4294901760, %v7042_v14 }
 0x427   : > { %10458 = vmatmul.mubr.msk.f32.gmra.mxu1 %vm20486_vm10, %v20903_v8  ;;  %8020 = vmatprep.subr.mxu1 %v20567_v32  ;;  %v7033_v45 = vsub.f32 %v18027_v34, %v21913_v50  ;;  %v6043_v33 = vadd.f32 %v6042_v61, %v21914_v39  ;;  %vm9338_vm10 = vcmask 261312  }
 0x428   : > { %7020 = vmatmul.mubr.f32.gmra.mxu0 %v7019_v59  ;;  %10459 = vmatprep.mubr.msk.f32.mxu1 %vm20485_vm14, %v20903_v8  ;;  %v6379_v50 = vpop.f32.mrf.mxu1  ;;  %v6044_v34 = vpop.f32.mrf.mxu0  ;;  %vm9331_vm14 = vcmask 195712  }
 0x429   : > { %7634 = vmatpush2.msra.mxu0 %v21915_v36  ;;  %8022 = vmatpush2.msra.mxu1 %v21916_v49  ;;  %v7034_v10 = vand.u32 4294901760, %v7033_v45  ;;  %v21919_v36 = vand.u32 4294901760, %v18063_v17  ;;  %v21920_v34 = vld [vmem:[#allocation155_spill] sm:$0xff]  ;;  %v21921_v50 = vld [vmem:[#allocation56_spill] sm:$0xff]  ;;  %v20483_v45 = vand.u32 4294901760, %v18096_v20  ;;  %v21924_v49 = vand.u32 4294901760, %v18082_v56 }
 0x42a   : > { %7029 = vmatprep.mubr.f32.mxu0 %v7028_v23  ;;  %8023 = vmatprep.subr.mxu1 %v20567_v32  ;;  %v6384_v39 = vpop.f32.mrf.mxu1  ;;  %v6049_v59 = vpop.f32.mrf.mxu0  ;;  %v6364_v23 = vadd.f32 %v18034_v47, %v6043_v33  ;;  %v9103_v6 = vmul.f32 %v6357_v27, %v21920_v34  ;;  %v21925_v27 = vld [vmem:[#allocation205_spill] sm:$0xff] }
 0x42b   : > { %8025 = vmatpush2.msra.mxu1 %v21918_v5  ;;  %9145 = vadd.xlane.f32.xlu0 %v9102_v37  ;;  %v7048_v61 = vsub.f32 %v18063_v17, %v21919_v36  ;;  %v6050_v37 = vadd.f32 %v6049_v59, %v21921_v50  ;;  %v21922_v5 = vld [vmem:[#allocation144_spill] sm:$0xff]  ;;  %v7057_v47 = vsub.f32 %v18082_v56, %v21924_v49  ;;  %v21926_v33 = vand.u32 4294901760, %v21925_v27  ;;  %v21930_v34 = vld [vmem:[#allocation45_spill] sm:$0xff] }
 0x42c   : > { %10460 = vmatmul.mubr.msk.f32.gmra.mxu1 %vm20484_vm4, %v20903_v8  ;;  %7635 = vmatprep.subr.mxu0 %v20567_v32  ;;  %v6386_v36 = vpop.f32.mrf.mxu1  ;;  %v6051_v57 = vpop.f32.mrf.mxu0  ;;  %vm9324_vm4 = vcmask 130112  }
 0x42d   : > { %8026 = vmatprep.subr.mxu1 %v20567_v32  ;;  %7035 = vmatmul.mubr.f32.gmra.mxu0 %v7034_v10  ;;  %v6371_v8 = vadd.f32 %v6370_v11, %v6050_v37  ;;  %v7049_v14 = vand.u32 4294901760, %v7048_v61  ;;  %v21927_v57 = vld [vmem:[#allocation158_spill] sm:$0xff]  ;;  %v7063_v11 = vsub.f32 %v18096_v20, %v20483_v45  ;;  %v21928_v37 = vld [vmem:[#allocation145_spill] sm:$0xff]  ;;  %v7058_v61 = vand.u32 4294901760, %v7057_v47 }
 0x42e   : > { %7638 = vmatpush2.msra.mxu0 %v21922_v5  ;;  %8028 = vmatpush2.msra.mxu1 %v21923_v31  ;;  %v6391_v59 = vpop.f32.mrf.mxu1  ;;  %v6056_v50 = vpop.f32.mrf.mxu0  ;;  %v9104_v10 = vmul.f32 %v6364_v23, %v21927_v57  ;;  %v21929_v36 = vld [vmem:[#allocation154_spill] sm:$0xff]  ;;  %v21931_v31 = vand.u32 4294901760, %v21930_v34 }
 0x42f   : > { %8035 = vmatprep.mubr.f32.mxu1 %v21926_v33  ;;  %7044 = vmatprep.mubr.f32.mxu0 %v7043_v1  ;;  %v6057_v5 = vadd.f32 %v6056_v50, %v16922_v43  ;;  %v9105_v33 = vmul.f32 %v6371_v8, %v21929_v36  ;;  %v21933_v43 = vld [vmem:[#allocation76_spill] sm:$0xff] }
 0x430   : > { %8029 = vmatprep.subr.mxu1 %v20567_v32  ;;  %9147 = vadd.xlane.f32.xlu1 %v9103_v6  ;;  %v6393_v49 = vpop.f32.mrf.mxu1  ;;  %v6058_v1 = vpop.f32.mrf.mxu0  ;;  %v21932_v6 = vld [vmem:[#allocation110_spill] sm:$0xff]  ;;  %v21934_v50 = vand.u32 4294901760, %v21933_v43 }
 0x431   : > { %8031 = vmatpush2.msra.mxu1 %v21928_v37  ;;  %7639 = vmatprep.subr.mxu0 %v20567_v32  ;;  %v6378_v23 = vadd.f32 %v6377_v60, %v6057_v5  ;;  %v7064_v37 = vand.u32 4294901760, %v7063_v11  ;;  %v21936_v60 = vld [vmem:[#allocation215_spill] sm:$0xff]  ;;  %v21938_v1 = vld [vmem:[#allocation149_spill] sm:$0xff] }
 0x432   : > { %8039 = vmatmul.mubr.f32.vlgmr.msra.gmra.mxu1 %v21931_v31  ;;  %7050 = vmatmul.mubr.f32.gmra.mxu0 %v7049_v14  ;;  %v6398_v45 = vpop.f32.mrf.mxu1  ;;  %v6063_v57 = vpop.f32.mrf.mxu0  ;;  %v21935_v14 = vld [vmem:[#allocation163_spill] sm:$0xff]  ;;  %v21937_v5 = vand.u32 4294901760, %v21936_v60 }
 0x433   : > { %7642 = vmatpush2.msra.mxu0 %v21932_v6  ;;  %8046 = vmatprep.mubr.f32.mxu1 %v21934_v50  ;;  %v6064_v8 = vadd.f32 %v6063_v57, %v16966_v53  ;;  %v9106_v47 = vmul.f32 %v6378_v23, %v21935_v14  ;;  %v21939_v6 = vld [vmem:[#allocation219_spill] sm:$0xff]  ;;  %v22090_v14 = vld [vmem:[#allocation138_spill] sm:$0xff] }
 0x434   : > { %7059 = vmatprep.mubr.f32.mxu0 %v7058_v61  ;;  %9149 = vadd.xlane.f32.xlu0 %v9104_v10  ;;  %v6400_v49 = vpop.f32.mrf.mxu1  ;;  %v6065_v31 = vpop.f32.mrf.mxu0  ;;  %v21940_v50 = vand.u32 4294901760, %v21939_v6  ;;  %v21942_v23 = vld [vmem:[#allocation99_spill] sm:$0xff] }
 0x435   : > { %7643 = vmatprep.subr.mxu0 %v20567_v32  ;;  %9151 = vadd.xlane.f32.xlu1 %v9105_v33  ;;  %v6385_v53 = vadd.f32 %v6384_v39, %v6064_v8  ;;  %v21943_v49 = vand.u32 4294901760, %v21942_v23  ;;  %v21944_v31 = vld [vmem:[#allocation53_spill] sm:$0xff]  ;;  %v21945_v39 = vld [vmem:[#allocation50_spill] sm:$0xff]  ;;  %v21946_v8 = vld [vmem:[#allocation159_spill] sm:$0xff] }
 0x436   : > { %8050 = vmatmul.mubr.f32.gmra.mxu1 %v21937_v5  ;;  %7065 = vmatmul.mubr.f32.gmra.mxu0 %v7064_v37  ;;  %v6405_v10 = vpop.f32.mrf.mxu1  ;;  %v6070_v11 = vpop.f32.mrf.mxu0  ;;  %v21941_v37 = vand.u32 4294901760, %v16804_v12 }
 0x437   : > { %7646 = vmatpush2.msra.mxu0 %v21938_v1  ;;  %8057 = vmatprep.mubr.f32.mxu1 %v21940_v50  ;;  %v6071_v57 = vadd.f32 %v6070_v11, %v17008_v16  ;;  %v21947_v11 = vand.u32 4294901760, %v16842_v52 }
 0x438   : > { %7649 = vmatprep.mubr.f32.mxu0 %v21925_v27  ;;  %8385 = vmatprep.subr.mxu0 %v20567_v32  ;;  %v6407_v33 = vpop.f32.mrf.mxu1  ;;  %v6072_v61 = vpop.f32.mrf.mxu0 }
 0x439   : > { %8770 = vmatprep.subr.mxu1 %v20567_v32  ;;  %9153 = vadd.xlane.f32.xlu0 %v9106_v47  ;;  %v6392_v16 = vadd.f32 %v6391_v59, %v6071_v57  ;;  %v9107_v47 = vmul.f32 %v6385_v53, %v21946_v8  ;;  %v21949_v33 = vld [vmem:[#allocation5_spill] sm:$0xff] }
 0x43a   : > { %8061 = vmatmul.mubr.f32.gmra.mxu1 %v21941_v37  ;;  %7652 = vmatmul.mubr.f32.vlgmr.msra.gmra.mxu0 %v21930_v34  ;;  %v6412_v27 = vpop.f32.mrf.mxu1  ;;  %v6077_v5 = vpop.f32.mrf.mxu0  ;;  %v21950_v57 = vld [vmem:[#allocation61_spill] sm:$0xff] }
 0x43b   : > { %8068 = vmatprep.mubr.f32.mxu1 %v21943_v49  ;;  %8389 = vmatpush1.msra.mxu0 %v21944_v31  ;;  %v6078_v34 = vadd.f32 %v6077_v5, %v17052_v7  ;;  %v21951_v53 = vld [vmem:[#allocation165_spill] sm:$0xff] }
 0x43c   : > { %7658 = vmatprep.mubr.f32.mxu0 %v21933_v43  ;;  %8772 = vmatpush1.msra.mxu1 %v21945_v39  ;;  %v6414_v1 = vpop.f32.mrf.mxu1  ;;  %v6079_v50 = vpop.f32.mrf.mxu0  ;;  %v21948_v43 = vand.u32 4294901760, %v16858_v9  ;;  %v9108_v37 = vmul.f32 %v6392_v16, %v21951_v53  ;;  %v21958_v16 = vld [vmem:[#allocation161_spill] sm:$0xff] }
 0x43d   : > { %8390 = vmatprep.subr.mxu0 %v20567_v32  ;;  %8773 = vmatprep.subr.mxu1 %v20567_v32  ;;  %v6399_v7 = vadd.f32 %v6398_v45, %v6078_v34  ;;  %v21954_v1 = vld [vmem:[#allocation150_spill] sm:$0xff] }
 0x43e   : > { %8072 = vmatmul.mubr.f32.gmra.mxu1 %v21947_v11  ;;  %7661 = vmatmul.mubr.f32.gmra.mxu0 %v21936_v60  ;;  %v6419_v61 = vpop.f32.mrf.mxu1  ;;  %v6084_v59 = vpop.f32.mrf.mxu0  ;;  %v21952_v60 = vld [vmem:[#allocation6_spill] sm:$0xff]  ;;  %v21955_v50 = vand.u32 4294901760, %v21954_v1 }
 0x43f   : > { %8079 = vmatprep.mubr.f32.mxu1 %v21948_v43  ;;  %8394 = vmatpush1.msra.mxu0 %v21949_v33  ;;  %v21953_v5 = vand.u32 4294901760, %v21952_v60  ;;  %v6085_v39 = vadd.f32 %v6084_v59, %v17092_v42  ;;  %v21957_v45 = vld [vmem:[#allocation54_spill] sm:$0xff]  ;;  %v9109_v34 = vmul.f32 %v6399_v7, %v21958_v16  ;;  %v21959_v42 = vand.u32 4294901760, %v16924_v54 }
 0x440   : > { %7667 = vmatprep.mubr.f32.mxu0 %v21939_v6  ;;  %8775 = vmatpush1.msra.mxu1 %v21950_v57  ;;  %v6421_v49 = vpop.f32.mrf.mxu1  ;;  %v6086_v31 = vpop.f32.mrf.mxu0  ;;  %v21956_v6 = vld [vmem:[#allocation8_spill] sm:$0xff] }
 0x441   : > { %9155 = vadd.xlane.f32.xlu1 %v9107_v47  ;;  %8395 = vmatprep.subr.mxu0 %v20567_v32  ;;  %v6406_v33 = vadd.f32 %v6405_v10, %v6085_v39  ;;  %v21965_v39 = vld [vmem:[#allocation11_spill] sm:$0xff] }
 0x442   : > { %8083 = vmatmul.mubr.f32.gmra.mxu1 %v21953_v5  ;;  %7670 = vmatmul.mubr.f32.gmra.mxu0 %v16804_v12  ;;  %v6426_v47 = vpop.f32.mrf.mxu1  ;;  %v6091_v11 = vpop.f32.mrf.mxu0 }
 0x443   : > { %8090 = vmatprep.mubr.f32.mxu1 %v21955_v50  ;;  %8399 = vmatpush1.msra.mxu0 %v21956_v6  ;;  %v6092_v59 = vadd.f32 %v6091_v11, %v17145_v4  ;;  %v21963_v50 = vld [vmem:[#allocation55_spill] sm:$0xff]  ;;  %v21966_v6 = vand.u32 4294901760, %v21965_v39 }
 0x444   : > { %7676 = vmatprep.mubr.f32.mxu0 %v21942_v23  ;;  %8776 = vmatprep.subr.mxu1 %v20567_v32  ;;  %v6428_v43 = vpop.f32.mrf.mxu1  ;;  %v6093_v12 = vpop.f32.mrf.mxu0  ;;  %v21960_v23 = vld [vmem:[#allocation71_spill] sm:$0xff] }
 0x445   : > { %8778 = vmatpush1.msra.mxu1 %v21957_v45  ;;  %9157 = vadd.xlane.f32.xlu0 %v9108_v37  ;;  %v21961_v57 = vand.u32 4294901760, %v21960_v23  ;;  %v21962_v37 = vld [vmem:[#allocation9_spill] sm:$0xff]  ;;  %v6413_v4 = vadd.f32 %v6412_v27, %v6092_v59  ;;  %v21967_v43 = vld [vmem:[#allocation160_spill] sm:$0xff]  ;;  %v21969_v12 = vld [vmem:[#allocation75_spill] sm:$0xff] }
 0x446   : > { %8094 = vmatmul.mubr.f32.gmra.mxu1 %v21959_v42  ;;  %8400 = vmatprep.subr.mxu0 %v20567_v32  ;;  %v6433_v49 = vpop.f32.mrf.mxu1  ;;  %v6098_v31 = vpop.f32.mrf.mxu0  ;;  %v21971_v59 = vld [vmem:[#allocation167_spill] sm:$0xff] }
 0x447   : > { %7679 = vmatmul.mubr.f32.gmra.mxu0 %v16842_v52  ;;  %8101 = vmatprep.mubr.f32.mxu1 %v21961_v57  ;;  %v21964_v52 = vld [vmem:[#allocation164_spill] sm:$0xff]  ;;  %v6099_v11 = vadd.f32 %v6098_v31, %v17193_v0  ;;  %v21972_v57 = vld [vmem:[#allocation162_spill] sm:$0xff] }
 0x448   : > { %8404 = vmatpush1.msra.mxu0 %v21962_v37  ;;  %7685 = vmatprep.mubr.f32.mxu0 %v16858_v9  ;;  %v6435_v7 = vpop.f32.mrf.mxu1  ;;  %v6100_v5 = vpop.f32.mrf.mxu0  ;;  %v9110_v10 = vmul.f32 %v6406_v33, %v21964_v52  ;;  %v21970_v33 = vld [vmem:[#allocation69_spill] sm:$0xff]  ;;  %v21973_v0 = vand.u32 4294901760, %v21972_v57 }
 0x449   : > { %8779 = vmatprep.subr.mxu1 %v20567_v32  ;;  %9159 = vadd.xlane.f32.xlu1 %v9109_v34  ;;  %v21968_v34 = vand.u32 4294901760, %v21967_v43  ;;  %v6420_v31 = vadd.f32 %v6419_v61, %v6099_v11  ;;  %v21974_v37 = vld [vmem:[#allocation185_spill] sm:$0xff] }
 0x44a   : > { %8781 = vmatpush1.msra.mxu1 %v21963_v50  ;;  %8405 = vmatprep.subr.mxu0 %v20567_v32  ;;  %v6440_v9 = vpop.f32.mrf.mxu1  ;;  %v6105_v45 = vpop.f32.mrf.mxu0  ;;  %v21975_v50 = vld [vmem:[#allocation13_spill] sm:$0xff] }
 0x44b   : > { %8105 = vmatmul.mubr.f32.gmra.mxu1 %v21966_v6  ;;  %7688 = vmatmul.mubr.f32.gmra.mxu0 %v21952_v60  ;;  %v9111_v60 = vmul.f32 %v6413_v4, %v21971_v59  ;;  %v6106_v7 = vadd.f32 %v6105_v45, %v21974_v37  ;;  %v21976_v6 = vand.u32 4294901760, %v21975_v50  ;;  %v21978_v61 = vld [vmem:[#allocation73_spill] sm:$0xff] }
 0x44c   : > { %8112 = vmatprep.mubr.f32.mxu1 %v21968_v34  ;;  %8409 = vmatpush1.msra.mxu0 %v21969_v12  ;;  %v6442_v27 = vpop.f32.mrf.mxu1  ;;  %v6107_v42 = vpop.f32.mrf.mxu0  ;;  %v21977_v34 = vld [vmem:[#allocation79_spill] sm:$0xff]  ;;  %v21979_v45 = vld [vmem:[#allocation173_spill] sm:$0xff] }
 0x44d   : > { %7694 = vmatprep.mubr.f32.mxu0 %v21954_v1  ;;  %8782 = vmatprep.subr.mxu1 %v20567_v32  ;;  %v6427_v11 = vadd.f32 %v6426_v47, %v6106_v7  ;;  %v9112_v12 = vmul.f32 %v6420_v31, %v21979_v45  ;;  %v21980_v42 = vld [vmem:[#allocation87_spill] sm:$0xff]  ;;  %v21985_v47 = vld [vmem:[#allocation77_spill] sm:$0xff] }
 0x44e   : > { %8784 = vmatpush1.msra.mxu1 %v21970_v33  ;;  %9161 = vadd.xlane.f32.xlu0 %v9110_v10  ;;  %v18219_v5 = vpop.f32.mrf.mxu1  ;;  %v6112_v1 = vpop.f32.mrf.mxu0  ;;  %v21981_v33 = vand.u32 4294901760, %v21980_v42  ;;  %v21986_v31 = vld [vmem:[#allocation171_spill] sm:$0xff] }
 0x44f   : > { %8116 = vmatmul.mubr.f32.gmra.mxu1 %v21973_v0  ;;  %8410 = vmatprep.subr.mxu0 %v20567_v32  ;;  %v21982_v0 = vld [vmem:[#allocation168_spill] sm:$0xff]  ;;  %v9113_v7 = vmul.f32 %v6427_v11, %v21986_v31 }
 0x450   : > { %7697 = vmatmul.mubr.f32.gmra.mxu0 %v16924_v54  ;;  %8123 = vmatprep.mubr.f32.mxu1 %v21976_v6  ;;  %v6449_v4 = vpop.f32.mrf.mxu1  ;;  %v6114_v10 = vpop.f32.mrf.mxu0  ;;  %v21983_v37 = vand.u32 4294901760, %v21982_v0 }
 0x451   : > { %8414 = vmatpush1.msra.mxu0 %v21977_v34  ;;  %7703 = vmatprep.mubr.f32.mxu0 %v21960_v23  ;;  %v6113_v23 = vadd.f32 %v6112_v1, %v17301_v55  ;;  %v21987_v55 = vld [vmem:[#allocation169_spill] sm:$0xff] }
 0x452   : > { %8785 = vmatprep.subr.mxu1 %v20567_v32  ;;  %9163 = vadd.xlane.f32.xlu1 %v9111_v60  ;;  %v18230_v54 = vpop.f32.mrf.mxu1  ;;  %v6119_v27 = vpop.f32.mrf.mxu0  ;;  %v21984_v60 = vld [vmem:[#allocation84_spill] sm:$0xff]  ;;  %v21988_v1 = vand.u32 4294901760, %v21987_v55 }
 0x453   : > { %8787 = vmatpush1.msra.mxu1 %v21978_v61  ;;  %8415 = vmatprep.subr.mxu0 %v20567_v32  ;;  %v6434_v10 = vadd.f32 %v6433_v49, %v6113_v23  ;;  %v6120_v61 = vadd.f32 %v6119_v27, %v17360_v38  ;;  %v21992_v49 = vld [vmem:[#allocation81_spill] sm:$0xff]  ;;  %v21994_v23 = vand.u32 4294901760, %v17159_v44 }
 0x454   : > { %8127 = vmatmul.mubr.f32.gmra.mxu1 %v21981_v33  ;;  %7706 = vmatmul.mubr.f32.gmra.mxu0 %v21965_v39  ;;  %v6456_v6 = vpop.f32.mrf.mxu1  ;;  %v6121_v34 = vpop.f32.mrf.mxu0 }
 0x455   : > { %8134 = vmatprep.mubr.f32.mxu1 %v21983_v37  ;;  %8419 = vmatpush1.msra.mxu0 %v21984_v60  ;;  %v21991_v60 = vld [vmem:[#allocation15_spill] sm:$0xff]  ;;  %v6441_v38 = vadd.f32 %v6440_v9, %v6120_v61  ;;  %v21998_v61 = vld [vmem:[#allocation82_spill] sm:$0xff] }
 0x456   : > { %7712 = vmatprep.mubr.f32.mxu0 %v21967_v43  ;;  %8788 = vmatprep.subr.mxu1 %v20567_v32  ;;  %v18243_v4 = vpop.f32.mrf.mxu1  ;;  %v6126_v39 = vpop.f32.mrf.mxu0  ;;  %v21989_v43 = vld [vmem:[#allocation170_spill] sm:$0xff] }
 0x457   : > { %8790 = vmatpush1.msra.mxu1 %v21985_v47  ;;  %9165 = vadd.xlane.f32.xlu0 %v9112_v12  ;;  %v21990_v33 = vand.u32 4294901760, %v21989_v43 }
 0x458   : > { %8138 = vmatmul.mubr.f32.gmra.mxu1 %v21988_v1  ;;  %8420 = vmatprep.subr.mxu0 %v20567_v32  ;;  %v6463_v37 = vpop.f32.mrf.mxu1  ;;  %v6128_v12 = vpop.f32.mrf.mxu0 }
 0x459   : > { %7715 = vmatmul.mubr.f32.gmra.mxu0 %v21972_v57  ;;  %8145 = vmatprep.mubr.f32.mxu1 %v21990_v33  ;;  %v21993_v57 = vld [vmem:[#allocation177_spill] sm:$0xff]  ;;  %v21997_v33 = vld [vmem:[#allocation19_spill] sm:$0xff] }
 0x45a   : > { %8424 = vmatpush1.msra.mxu0 %v21991_v60  ;;  %7721 = vmatprep.mubr.f32.mxu0 %v21975_v50  ;;  %v18255_v11 = vpop.f32.mrf.mxu1  ;;  %v6133_v6 = vpop.f32.mrf.mxu0  ;;  %v9114_v27 = vmul.f32 %v6434_v10, %v21993_v57  ;;  %v6127_v50 = vadd.f32 %v6126_v39, %v17409_v63  ;;  %v22000_v63 = vld [vmem:[#allocation179_spill] sm:$0xff] }
 0x45b   : > { %8791 = vmatprep.subr.mxu1 %v20567_v32  ;;  %9167 = vadd.xlane.f32.xlu1 %v9113_v7  ;;  %v21995_v7 = vld [vmem:[#allocation22_spill] sm:$0xff]  ;;  %v22001_v39 = vand.u32 4294901760, %v22000_v63  ;;  %v6134_v60 = vadd.f32 %v6133_v6, %v17464_v13 }
 0x45c   : > { %8793 = vmatpush1.msra.mxu1 %v21992_v49  ;;  %8425 = vmatprep.subr.mxu0 %v20567_v32  ;;  %v6470_v34 = vpop.f32.mrf.mxu1  ;;  %v6135_v47 = vpop.f32.mrf.mxu0  ;;  %v21996_v1 = vand.u32 4294901760, %v21995_v7  ;;  %v6448_v12 = vadd.f32 %v18219_v5, %v6127_v50  ;;  %v22005_v5 = vld [vmem:[#allocation20_spill] sm:$0xff] }
 0x45d   : > { %8149 = vmatmul.mubr.f32.gmra.mxu1 %v21994_v23  ;;  %7724 = vmatmul.mubr.f32.gmra.mxu0 %v21980_v42  ;;  %v21999_v42 = vld [vmem:[#allocation172_spill] sm:$0xff]  ;;  %v22004_v47 = vld [vmem:[#allocation26_spill] sm:$0xff]  ;;  %v6455_v13 = vadd.f32 %v18230_v54, %v6134_v60  ;;  %v22012_v54 = vld [vmem:[#allocation89_spill] sm:$0xff] }
 0x45e   : > { %8156 = vmatprep.mubr.f32.mxu1 %v21996_v1  ;;  %8429 = vmatpush1.msra.mxu0 %v21997_v33  ;;  %v18269_v9 = vpop.f32.mrf.mxu1  ;;  %v6140_v10 = vpop.f32.mrf.mxu0  ;;  %v9115_v37 = vmul.f32 %v6441_v38, %v21999_v42  ;;  %v22002_v23 = vld [vmem:[#allocation32_spill] sm:$0xff]  ;;  %v22007_v33 = vld [vmem:[#allocation31_spill] sm:$0xff] }
 0x45f   : > { %7730 = vmatprep.mubr.f32.mxu0 %v21982_v0  ;;  %8794 = vmatprep.subr.mxu1 %v20567_v32  ;;  %v22003_v34 = vand.u32 4294901760, %v22002_v23  ;;  %v22129_v42 = vld [vmem:[#allocation112_spill] sm:$0xff] }
 0x460   : > { %8796 = vmatpush1.msra.mxu1 %v21998_v61  ;;  %9169 = vadd.xlane.f32.xlu0 %v9114_v27  ;;  %v6477_v0 = vpop.f32.mrf.mxu1  ;;  %v6142_v49 = vpop.f32.mrf.mxu0  ;;  %v22008_v61 = vand.u32 4294901760, %v22007_v33 }
 0x461   : > { %8160 = vmatmul.mubr.f32.gmra.mxu1 %v22001_v39  ;;  %8430 = vmatprep.subr.mxu0 %v20567_v32  ;;  %v22009_v39 = vld [vmem:[#allocation189_spill] sm:$0xff] }
 0x462   : > { %7733 = vmatmul.mubr.f32.gmra.mxu0 %v21987_v55  ;;  %8167 = vmatprep.mubr.f32.mxu1 %v22003_v34  ;;  %v18283_v38 = vpop.f32.mrf.mxu1  ;;  %v6147_v27 = vpop.f32.mrf.mxu0  ;;  %v22006_v55 = vld [vmem:[#allocation174_spill] sm:$0xff]  ;;  %v22010_v0 = vand.u32 4294901760, %v22009_v39 }
 0x463   : > { %8434 = vmatpush1.msra.mxu0 %v22004_v47  ;;  %7739 = vmatprep.mubr.f32.mxu0 %v21989_v43  ;;  %v9116_v6 = vmul.f32 %v6448_v12, %v22006_v55  ;;  %v6141_v43 = vadd.f32 %v6140_v10, %v17507_v19  ;;  %v22013_v12 = vld [vmem:[#allocation182_spill] sm:$0xff]  ;;  %v22014_v19 = vld [vmem:[#allocation113_spill] sm:$0xff] }
 0x464   : > { %8797 = vmatprep.subr.mxu1 %v20567_v32  ;;  %9171 = vadd.xlane.f32.xlu1 %v9115_v37  ;;  %v6484_v50 = vpop.f32.mrf.mxu1  ;;  %v6149_v1 = vpop.f32.mrf.mxu0  ;;  %v22011_v37 = vld [vmem:[#allocation25_spill] sm:$0xff]  ;;  %v9117_v60 = vmul.f32 %v6455_v13, %v22013_v12  ;;  %v22015_v10 = vand.u32 4294901760, %v22014_v19  ;;  %v22115_v12 = vand.u32 4294901760, %v18045_v15 }
 0x465   : > { %8799 = vmatpush1.msra.mxu1 %v22005_v5  ;;  %8435 = vmatprep.subr.mxu0 %v20567_v32  ;;  %v6462_v5 = vadd.f32 %v18243_v4, %v6141_v43  ;;  %v6148_v50 = vadd.f32 %v6147_v27, %v17562_v28  ;;  %v22020_v4 = vld [vmem:[#allocation176_spill] sm:$0xff]  ;;  %v22021_v27 = vld [vmem:[#allocation193_spill] sm:$0xff] }
 0x466   : > { %8171 = vmatmul.mubr.f32.gmra.mxu1 %v22008_v61  ;;  %7742 = vmatmul.mubr.f32.gmra.mxu0 %v17159_v44  ;;  %v18297_v49 = vpop.f32.mrf.mxu1  ;;  %v6154_v34 = vpop.f32.mrf.mxu0  ;;  %v22022_v43 = vand.u32 4294901760, %v22021_v27  ;;  %v22128_v55 = vld [vmem:[#allocation145_spill] sm:$0xff] }
 0x467   : > { %8178 = vmatprep.mubr.f32.mxu1 %v22010_v0  ;;  %8439 = vmatpush1.msra.mxu0 %v22011_v37  ;;  %v22018_v0 = vld [vmem:[#allocation29_spill] sm:$0xff]  ;;  %v6469_v28 = vadd.f32 %v18255_v11, %v6148_v50  ;;  %v22026_v50 = vld [vmem:[#allocation98_spill] sm:$0xff] }
 0x468   : > { %7748 = vmatprep.mubr.f32.mxu0 %v21995_v7  ;;  %8800 = vmatprep.subr.mxu1 %v20567_v32  ;;  %v6491_v44 = vpop.f32.mrf.mxu1  ;;  %v6156_v47 = vpop.f32.mrf.mxu0  ;;  %v22016_v7 = vld [vmem:[#allocation41_spill] sm:$0xff] }
 0x469   : > { %8802 = vmatpush1.msra.mxu1 %v22012_v54  ;;  %9173 = vadd.xlane.f32.xlu0 %v9116_v6  ;;  %v22017_v1 = vand.u32 4294901760, %v22016_v7  ;;  %v22019_v54 = vld [vmem:[#allocation96_spill] sm:$0xff] }
 0x46a   : > { %8182 = vmatmul.mubr.f32.gmra.mxu1 %v22015_v10  ;;  %8440 = vmatprep.subr.mxu0 %v20567_v32  ;;  %v7298_v61 = vpop.f32.mrf.mxu1  ;;  %v6161_v6 = vpop.f32.mrf.mxu0 }
 0x46b   : > { %7751 = vmatmul.mubr.f32.gmra.mxu0 %v22000_v63  ;;  %8189 = vmatprep.mubr.f32.mxu1 %v22017_v1  ;;  %v9118_v63 = vmul.f32 %v6462_v5, %v22020_v4  ;;  %v22025_v1 = vld [vmem:[#allocation104_spill] sm:$0xff]  ;;  %v22103_v4 = vld [vmem:[#allocation105_spill] sm:$0xff] }
 0x46c   : > { %8444 = vmatpush1.msra.mxu0 %v22018_v0  ;;  %7757 = vmatprep.mubr.f32.mxu0 %v22002_v23  ;;  %v7300_v13 = vpop.f32.mrf.mxu1  ;;  %v6163_v37 = vpop.f32.mrf.mxu0  ;;  %v6155_v23 = vadd.f32 %v6154_v34, %v17603_v26  ;;  %v22027_v0 = vld [vmem:[#allocation178_spill] sm:$0xff] }
 0x46d   : > { %8803 = vmatprep.subr.mxu1 %v20567_v32  ;;  %9175 = vadd.xlane.f32.xlu1 %v9117_v60  ;;  %v22023_v60 = vld [vmem:[#allocation43_spill] sm:$0xff]  ;;  %v6162_v37 = vadd.f32 %v6161_v6, %v17661_v24 }
 0x46e   : > { %8805 = vmatpush1.msra.mxu1 %v22019_v54  ;;  %8445 = vmatprep.subr.mxu0 %v20567_v32  ;;  %v7305_v44 = vpop.f32.mrf.mxu1  ;;  %v6168_v47 = vpop.f32.mrf.mxu0  ;;  %v22024_v10 = vand.u32 4294901760, %v22023_v60  ;;  %v22028_v13 = vld [vmem:[#allocation195_spill] sm:$0xff]  ;;  %v6476_v34 = vadd.f32 %v18269_v9, %v6155_v23 }
 0x46f   : > { %8193 = vmatmul.mubr.f32.gmra.mxu1 %v22022_v43  ;;  %7760 = vmatmul.mubr.f32.gmra.mxu0 %v22007_v33  ;;  %v9119_v33 = vmul.f32 %v6469_v28, %v22027_v0  ;;  %v22029_v26 = vand.u32 4294901760, %v22028_v13  ;;  %v22030_v43 = vld [vmem:[#allocation198_spill] sm:$0xff]  ;;  %v22033_v9 = vld [vmem:[#allocation103_spill] sm:$0xff]  ;;  %v6483_v24 = vadd.f32 %v18283_v38, %v6162_v37  ;;  %v22041_v37 = vld [vmem:[#allocation180_spill] sm:$0xff] }
 0x470   : > { %8200 = vmatprep.mubr.f32.mxu1 %v22024_v10  ;;  %8449 = vmatpush1.msra.mxu0 %v22025_v1  ;;  %v7307_v11 = vpop.f32.mrf.mxu1  ;;  %v6170_v5 = vpop.f32.mrf.mxu0  ;;  %v22031_v10 = vand.u32 4294901760, %v22030_v43 }
 0x471   : > { %7766 = vmatprep.mubr.f32.mxu0 %v22009_v39  ;;  %8806 = vmatprep.subr.mxu1 %v20567_v32  ;;  %v22035_v5 = vld [vmem:[#allocation72_spill] sm:$0xff] }
 0x472   : > { %8808 = vmatpush1.msra.mxu1 %v22026_v50  ;;  %9177 = vadd.xlane.f32.xlu0 %v9118_v63  ;;  %v7312_v54 = vpop.f32.mrf.mxu1  ;;  %v6601_v39 = vpop.f32.mrf.mxu0  ;;  %v22032_v63 = vld [vmem:[#allocation38_spill] sm:$0xff]  ;;  %v22036_v50 = vand.u32 4294901760, %v22035_v5 }
 0x473   : > { %8204 = vmatmul.mubr.f32.gmra.mxu1 %v22029_v26  ;;  %8450 = vmatprep.subr.mxu0 %v20567_v32  ;;  %v18337_v1 = vadd.f32 %v7298_v61, %v6601_v39 }
 0x474   : > { %7769 = vmatmul.mubr.f32.gmra.mxu0 %v22014_v19  ;;  %8211 = vmatprep.mubr.f32.mxu1 %v22031_v10  ;;  %v7314_v28 = vpop.f32.mrf.mxu1  ;;  %v6603_v11 = vpop.f32.mrf.mxu0  ;;  %v22034_v19 = vld [vmem:[#allocation186_spill] sm:$0xff] }
 0x475   : > { %8454 = vmatpush1.msra.mxu0 %v22032_v63  ;;  %7775 = vmatprep.mubr.f32.mxu0 %v22016_v7  ;;  %v9120_v6 = vmul.f32 %v6476_v34, %v22034_v19  ;;  %v6169_v7 = vadd.f32 %v6168_v47, %v17703_v48  ;;  %v22039_v10 = vld [vmem:[#allocation42_spill] sm:$0xff]  ;;  %v22040_v34 = vld [vmem:[#allocation36_spill] sm:$0xff] }
 0x476   : > { %8809 = vmatprep.subr.mxu1 %v20567_v32  ;;  %9179 = vadd.xlane.f32.xlu1 %v9119_v33  ;;  %v7319_v23 = vpop.f32.mrf.mxu1  ;;  %v6616_v61 = vpop.f32.mrf.mxu0  ;;  %v22037_v33 = vld [vmem:[#allocation200_spill] sm:$0xff] }
 0x477   : > { %8811 = vmatpush1.msra.mxu1 %v22033_v9  ;;  %8455 = vmatprep.subr.mxu0 %v20567_v32  ;;  %v18350_v26 = vadd.f32 %v7305_v44, %v6616_v61  ;;  %v22038_v39 = vand.u32 4294901760, %v22037_v33  ;;  %v22042_v44 = vand.u32 4294901760, %v17466_v21  ;;  %v6490_v47 = vadd.f32 %v18297_v49, %v6169_v7  ;;  %v22047_v49 = vld [vmem:[#allocation181_spill] sm:$0xff] }
 0x478   : > { %8215 = vmatmul.mubr.f32.gmra.mxu1 %v22036_v50  ;;  %7778 = vmatmul.mubr.f32.gmra.mxu0 %v22021_v27  ;;  %v7321_v63 = vpop.f32.mrf.mxu1  ;;  %v6618_v38 = vpop.f32.mrf.mxu0  ;;  %v9121_v27 = vmul.f32 %v6483_v24, %v22041_v37  ;;  %v22045_v50 = vld [vmem:[#allocation114_spill] sm:$0xff]  ;;  %v22048_v7 = vlaneseq }
 0x479   : > { %8222 = vmatprep.mubr.f32.mxu1 %v22038_v39  ;;  %8459 = vmatpush1.msra.mxu0 %v22039_v10  ;;  %v22046_v10 = vld [vmem:[#allocation107_spill] sm:$0xff]  ;;  %v9319_v38 = vadd.s32 4294967288, %v21538_v35  ;;  %v22097_v37 = vld [vmem:[#allocation142_spill] sm:$0xff] }
 0x47a   : > { %7784 = vmatprep.mubr.f32.mxu0 %v22023_v60  ;;  %8812 = vmatprep.subr.mxu1 %v20567_v32  ;;  %v7326_v28 = vpop.f32.mrf.mxu1  ;;  %v6631_v48 = vpop.f32.mrf.mxu0  ;;  %v22043_v60 = vld [vmem:[#allocation46_spill] sm:$0xff]  ;;  %v18377_v63 = vshrl.u32 %v22048_v7, 7 }
 0x47b   : > { %8814 = vmatpush1.msra.mxu1 %v22040_v34  ;;  %9181 = vadd.xlane.f32.xlu0 %v9120_v6  ;;  %v18363_v11 = vadd.f32 %v7312_v54, %v6631_v48  ;;  %v22044_v9 = vand.u32 4294901760, %v22043_v60  ;;  %v22050_v48 = vand.u32 4294901760, %v17519_v46 }
 0x47c   : > { %8226 = vmatmul.mubr.f32.gmra.mxu1 %v22042_v44  ;;  %8460 = vmatprep.subr.mxu0 %v20567_v32  ;;  %v7328_v61 = vpop.f32.mrf.mxu1  ;;  %v6633_v6 = vpop.f32.mrf.mxu0  ;;  %v22051_v44 = vld [vmem:[#allocation118_spill] sm:$0xff] }
 0x47d   : > { %7787 = vmatmul.mubr.f32.gmra.mxu0 %v22028_v13  ;;  %8233 = vmatprep.mubr.f32.mxu1 %v22044_v9  ;;  %v9122_v13 = vmul.f32 %v6490_v47, %v22047_v49  ;;  %v22052_v9 = vld [vmem:[#allocation37_spill] sm:$0xff]  ;;  %v22084_v49 = vld [vmem:[#allocation135_spill] sm:$0xff] }
 0x47e   : > { %8464 = vmatpush1.msra.mxu0 %v22045_v50  ;;  %7793 = vmatprep.mubr.f32.mxu0 %v22030_v43  ;;  %v7333_v24 = vpop.f32.mrf.mxu1  ;;  %v6646_v39 = vpop.f32.mrf.mxu0  ;;  %v22049_v43 = vand.u32 4294901760, %v17532_v30  ;;  %v18396_v50 = vsub.s32 %v9319_v38, %v18377_v63 }
 0x47f   : > { %8815 = vmatprep.subr.mxu1 %v20567_v32  ;;  %9183 = vadd.xlane.f32.xlu1 %v9121_v27  ;;  %v18374_v54 = vadd.f32 %v7319_v23, %v6646_v39  ;;  %v9326_v39 = vadd.s32 4294967280, %v21538_v35 }
 0x480   : > { %8817 = vmatpush1.msra.mxu1 %v22046_v10  ;;  %8465 = vmatprep.subr.mxu0 %v20567_v32  ;;  %v7335_v34 = vpop.f32.mrf.mxu1  ;;  %v6648_v27 = vpop.f32.mrf.mxu0 }
 0x481   : > { %8237 = vmatmul.mubr.f32.gmra.mxu1 %v22049_v43  ;;  %7796 = vmatmul.mubr.f32.gmra.mxu0 %v22035_v5  ;;  %v18393_v5 = vsub.s32 %v21538_v35, %v18377_v63 }
 0x482   : > { %8244 = vmatprep.mubr.f32.mxu1 %v22050_v48  ;;  %8469 = vmatpush2.msra.mxu0 %v22051_v44  ;;  %v7340_v23 = vpop.f32.mrf.mxu1  ;;  %v6661_v47 = vpop.f32.mrf.mxu0  ;;  %v9333_v44 = vadd.s32 4294967272, %v21538_v35 }
 0x483   : > { %7802 = vmatprep.mubr.f32.mxu0 %v22037_v33  ;;  %8818 = vmatprep.subr.mxu1 %v20567_v32  ;;  %v18389_v61 = vadd.f32 %v7326_v28, %v6661_v47  ;;  %22053 = vst [vmem:[#allocation117_spill] sm:$0xff] %v18393_v5  ;;  %v9124_v6 = vpop.xlane.xlu0 %9123  ;;  %v22054_v33 = vand.u32 4294901760, %v17548_v29  ;;  %v22055_v28 = vand.u32 4294901760, %v17585_v51 }
 0x484   : > { %8820 = vmatpush2.msra.mxu1 %v22052_v9  ;;  %9185 = vadd.xlane.f32.xlu0 %v9122_v13  ;;  %v7342_v10 = vpop.f32.mrf.mxu1  ;;  %v6663_v7 = vpop.f32.mrf.mxu0  ;;  %v22056_v13 = vld [vmem:[#allocation52_spill] sm:$0xff]  ;;  %v9318_v34 = vrot.slane %v9124_v6, %v18393_v5 }
 0x485   : > { %8248 = vmatmul.mubr.f32.gmra.mxu1 %v22054_v33  ;;  %8470 = vmatprep.subr.mxu0 %v20567_v32  ;;  %v22059_v33 = vand.u32 4294901760, %v17613_v40 }
 0x486   : > { %7805 = vmatmul.mubr.f32.gmra.mxu0 %v17466_v21  ;;  %8255 = vmatprep.mubr.f32.mxu1 %v22055_v28  ;;  %v7347_v38 = vpop.f32.mrf.mxu1  ;;  %v6676_v48 = vpop.f32.mrf.mxu0  ;;  %v18412_v21 = vsub.s32 %v9326_v39, %v18377_v63  ;;  %v22060_v39 = vand.u32 4294901760, %v17637_v25 }
 0x487   : > { %8474 = vmatpush2.msra.mxu0 %v22056_v13  ;;  %7811 = vmatprep.mubr.f32.mxu0 %v22043_v60  ;;  %v9126_v43 = vpop.xlane.xlu1 %9125  ;;  %v22058_v60 = vld [vmem:[#allocation65_spill] sm:$0xff]  ;;  %v18417_v47 = vadd.f32 %v7333_v24, %v6676_v48  ;;  %v9340_v13 = vadd.s32 4294967264, %v21538_v35 }
 0x488   : > { %8821 = vmatprep.subr.mxu1 %v20567_v32  ;;  %8475 = vmatprep.subr.mxu0 %v20567_v32  ;;  %v9323_v27 = vrot.slane %v9126_v43, %v18396_v50  ;;  %22057 = vst [vmem:[#allocation157_spill] sm:$0xff] %v18412_v21  ;;  %v7349_v9 = vpop.f32.mrf.mxu1  ;;  %v6678_v10 = vpop.f32.mrf.mxu0  ;;  %v22062_v43 = vld [vmem:[#allocation74_spill] sm:$0xff] }
 0x489   : > { %8823 = vmatpush2.msra.mxu1 %v21479_v2  ;;  %8479 = vmatpush2.msra.mxu0 %v22058_v60  ;;  %v22064_v9 = vld [vmem:[#allocation208_spill] sm:$0xff] }
 0x48a   : > { %8259 = vmatmul.mubr.f32.gmra.mxu1 %v22059_v33  ;;  %7814 = vmatmul.mubr.f32.gmra.mxu0 %v17532_v30  ;;  %v9325_v6 = vsel %vm9324_vm4, %v9323_v27, %v9318_v34  ;;  %v7354_v7 = vpop.f32.mrf.mxu1  ;;  %v6691_v24 = vpop.f32.mrf.mxu0  ;;  %v18430_v30 = vsub.s32 %v9333_v44, %v18377_v63  ;;  %v22063_v27 = vand.u32 4294901760, %v17639_v41  ;;  %v22065_v44 = vand.u32 4294901760, %v22064_v9 }
 0x48b   : > { %8266 = vmatprep.mubr.f32.mxu1 %v22060_v39  ;;  %7820 = vmatprep.mubr.f32.mxu0 %v17519_v46  ;;  %v9128_v2 = vpop.xlane.xlu0 %9127  ;;  %v18435_v46 = vadd.f32 %v7340_v23, %v6691_v24  ;;  %v22068_v39 = vld [vmem:[#allocation78_spill] sm:$0xff]  ;;  %v9347_v24 = vadd.s32 4294967256, %v21538_v35 }
 0x48c   : > { %8824 = vmatprep.subr.mxu1 %v20567_v32  ;;  %8480 = vmatprep.subr.mxu0 %v20567_v32  ;;  %v9330_v28 = vrot.slane %v9128_v2, %v18412_v21  ;;  %22061 = vst [vmem:[#allocation51_spill] sm:$0xff] %v18430_v30  ;;  %v7356_v34 = vpop.f32.mrf.mxu1  ;;  %v6693_v60 = vpop.f32.mrf.mxu0 }
 0x48d   : > { %8826 = vmatpush2.msra.mxu1 %v21484_v18  ;;  %8484 = vmatpush2.msra.mxu0 %v22062_v43  ;;  %v22071_v60 = vld [vmem:[#allocation88_spill] sm:$0xff] }
 0x48e   : > { %8270 = vmatmul.mubr.f32.gmra.mxu1 %v22063_v27  ;;  %7823 = vmatmul.mubr.f32.gmra.mxu0 %v17548_v29  ;;  %v9332_v48 = vsel %vm9331_vm14, %v9330_v28, %v9325_v6  ;;  %v7361_v33 = vpop.f32.mrf.mxu1  ;;  %v6706_v23 = vpop.f32.mrf.mxu0  ;;  %v18448_v29 = vsub.s32 %v9340_v13, %v18377_v63  ;;  %v22067_v6 = vld [vmem:[#allocation63_spill] sm:$0xff]  ;;  %v22072_v13 = vand.u32 4294901760, %v22071_v60 }
 0x48f   : > { %8277 = vmatprep.mubr.f32.mxu1 %v22065_v44  ;;  %7829 = vmatprep.mubr.f32.mxu0 %v17585_v51  ;;  %v9130_v18 = vpop.xlane.xlu0 %9129  ;;  %v18452_v2 = vadd.f32 %v7347_v38, %v6706_v23  ;;  %v22069_v28 = vld [vmem:[#allocation123_spill] sm:$0xff] }
 0x490   : > { %8827 = vmatprep.subr.mxu1 %v20567_v32  ;;  %8485 = vmatprep.subr.mxu0 %v20567_v32  ;;  %v9337_v10 = vrot.slane %v9130_v18, %v18430_v30  ;;  %22066 = vst [vmem:[#allocation60_spill] sm:$0xff] %v18448_v29  ;;  %v7363_v51 = vpop.f32.mrf.mxu1  ;;  %v22070_v43 = vand.u32 4294901760, %v22069_v28  ;;  %v6708_v27 = vpop.f32.mrf.mxu0 }
 0x491   : > { %8829 = vmatpush2.msra.mxu1 %v22067_v6  ;;  %8489 = vmatpush2.msra.mxu0 %v22068_v39  ;;  %v22073_v6 = vld [vmem:[#allocation62_spill] sm:$0xff]  ;;  %v18470_v39 = vsub.s32 %v9347_v24, %v18377_v63  ;;  %v22076_v51 = vld [vmem:[#allocation128_spill] sm:$0xff] }
 0x492   : > { %8281 = vmatmul.mubr.f32.gmra.mxu1 %v22070_v43  ;;  %7832 = vmatmul.mubr.f32.gmra.mxu0 %v17613_v40  ;;  %v9339_v34 = vsel %vm9338_vm10, %v9337_v10, %v9332_v48  ;;  %v7368_v44 = vpop.f32.mrf.mxu1  ;;  %v6721_v23 = vpop.f32.mrf.mxu0  ;;  %v22074_v40 = vld [vmem:[#allocation90_spill] sm:$0xff]  ;;  %v22077_v43 = vand.u32 4294901760, %v22076_v51 }
 0x493   : > { %8288 = vmatprep.mubr.f32.mxu1 %v22072_v13  ;;  %7838 = vmatprep.mubr.f32.mxu0 %v17637_v25  ;;  %v9132_v38 = vpop.xlane.xlu1 %9131  ;;  %v18467_v48 = vadd.f32 %v7354_v7, %v6721_v23  ;;  %22075 = vst [vmem:[#allocation7_spill] sm:$0xff] %v18470_v39  ;;  %v9354_v25 = vadd.s32 4294967248, %v21538_v35 }
 0x494   : > { %8830 = vmatprep.subr.mxu1 %v20567_v32  ;;  %8490 = vmatprep.subr.mxu0 %v20567_v32  ;;  %v9344_v18 = vrot.slane %v9132_v38, %v18448_v29  ;;  %v7370_v10 = vpop.f32.mrf.mxu1  ;;  %v6723_v13 = vpop.f32.mrf.mxu0  ;;  %v22078_v38 = vand.u32 4294901760, %v17776_v58 }
 0x495   : > { %8832 = vmatpush2.msra.mxu1 %v22073_v6  ;;  %8494 = vmatpush2.msra.mxu0 %v22074_v40  ;;  %v22079_v6 = vld [vmem:[#allocation70_spill] sm:$0xff]  ;;  %v22080_v40 = vld [vmem:[#allocation120_spill] sm:$0xff]  ;;  %v18488_v10 = vsub.s32 %v9354_v25, %v18377_v63 }
 0x496   : > { %8292 = vmatmul.mubr.f32.gmra.mxu1 %v22077_v43  ;;  %7841 = vmatmul.mubr.f32.gmra.mxu0 %v17639_v41  ;;  %v9346_v27 = vsel %vm9345_vm3, %v9344_v18, %v9339_v34  ;;  %v7375_v7 = vpop.f32.mrf.mxu1  ;;  %v6736_v24 = vpop.f32.mrf.mxu0 }
 0x497   : > { %8299 = vmatprep.mubr.f32.mxu1 %v22078_v38  ;;  %7847 = vmatprep.mubr.f32.mxu0 %v22064_v9  ;;  %v18484_v41 = vadd.f32 %v7361_v33, %v6736_v24  ;;  %22081 = vst [vmem:[#allocation67_spill] sm:$0xff] %v18488_v10  ;;  %v22082_v9 = vld [vmem:[#allocation132_spill] sm:$0xff]  ;;  %v9361_v38 = vadd.s32 4294967240, %v21538_v35 }
 0x498   : > { %8833 = vmatprep.subr.mxu1 %v20567_v32  ;;  %8495 = vmatprep.subr.mxu0 %v20567_v32  ;;  %v9134_v23 = vpop.xlane.xlu0 %9133  ;;  %v7377_v18 = vpop.f32.mrf.mxu1  ;;  %v22083_v43 = vand.u32 4294901760, %v22082_v9 }
 0x499   : > { %8835 = vmatpush2.msra.mxu1 %v22079_v6  ;;  %8499 = vmatpush2.msra.mxu0 %v22080_v40  ;;  %v9351_v34 = vrot.slane %v9134_v23, %v18470_v39  ;;  %v6738_v13 = vpop.f32.mrf.mxu0  ;;  %v22085_v6 = vand.u32 4294901760, %v22084_v49  ;;  %v22086_v40 = vld [vmem:[#allocation85_spill] sm:$0xff] }
 0x49a   : > { %8303 = vmatmul.mubr.f32.gmra.mxu1 %v22083_v43  ;;  %7850 = vmatmul.mubr.f32.gmra.mxu0 %v22069_v28  ;;  %v7382_v24 = vpop.f32.mrf.mxu1  ;;  %v22087_v28 = vld [vmem:[#allocation125_spill] sm:$0xff] }
 0x49b   : > { %8310 = vmatprep.mubr.f32.mxu1 %v22085_v6  ;;  %7856 = vmatprep.mubr.f32.mxu0 %v22071_v60  ;;  %v9353_v33 = vsel %vm9352_vm1, %v9351_v34, %v9346_v27  ;;  %v6751_v23 = vpop.f32.mrf.mxu0  ;;  %v22088_v60 = vand.u32 4294901760, %v17831_v22  ;;  %v18509_v34 = vsub.s32 %v9361_v38, %v18377_v63  ;;  %v9368_v6 = vadd.s32 4294967232, %v21538_v35 }
 0x49c   : > { %8836 = vmatprep.subr.mxu1 %v20567_v32  ;;  %8500 = vmatprep.subr.mxu0 %v20567_v32  ;;  %v9136_v25 = vpop.xlane.xlu1 %9135  ;;  %v18503_v43 = vadd.f32 %v7368_v44, %v6751_v23  ;;  %v7384_v13 = vpop.f32.mrf.mxu1 }
 0x49d   : > { %8838 = vmatpush2.msra.mxu1 %v22086_v40  ;;  %8504 = vmatpush2.msra.mxu0 %v22087_v28  ;;  %v9358_v18 = vrot.slane %v9136_v25, %v18488_v10  ;;  %v6753_v27 = vpop.f32.mrf.mxu0  ;;  %22089 = vst [vmem:[#allocation10_spill] sm:$0xff] %v18509_v34  ;;  %v22091_v40 = vand.u32 4294901760, %v22090_v14  ;;  %v22093_v28 = vld [vmem:[#allocation129_spill] sm:$0xff] }
 0x49e   : > { %8314 = vmatmul.mubr.f32.gmra.mxu1 %v22088_v60  ;;  %7859 = vmatmul.mubr.f32.gmra.mxu0 %v22076_v51  ;;  %v7389_v25 = vpop.f32.mrf.mxu1  ;;  %v22092_v51 = vld [vmem:[#allocation93_spill] sm:$0xff]  ;;  %v22094_v27 = vld [vmem:[#allocation220_spill] sm:$0xff] }
 0x49f   : > { %8321 = vmatprep.mubr.f32.mxu1 %v22091_v40  ;;  %7865 = vmatprep.mubr.f32.mxu0 %v17776_v58  ;;  %v9360_v44 = vsel %vm9359_vm5, %v9358_v18, %v9353_v33  ;;  %v6766_v23 = vpop.f32.mrf.mxu0  ;;  %v22095_v40 = vand.u32 4294901760, %v22094_v27  ;;  %v18527_v18 = vsub.s32 %v9368_v6, %v18377_v63 }
 0x4a0   : > { %8839 = vmatprep.subr.mxu1 %v20567_v32  ;;  %8505 = vmatprep.subr.mxu0 %v20567_v32  ;;  %v18520_v38 = vadd.f32 %v7375_v7, %v6766_v23  ;;  %v7391_v60 = vpop.f32.mrf.mxu1  ;;  %v9375_v23 = vadd.s32 4294967224, %v21538_v35 }
 0x4a1   : > { %8841 = vmatpush2.msra.mxu1 %v22092_v51  ;;  %8509 = vmatpush2.msra.mxu0 %v22093_v28  ;;  %v9138_v13 = vpop.xlane.xlu0 %9137  ;;  %v6768_v33 = vpop.f32.mrf.mxu0  ;;  %22096 = vst [vmem:[#allocation21_spill] sm:$0xff] %v18527_v18  ;;  %v22098_v51 = vand.u32 4294901760, %v22097_v37  ;;  %v22100_v60 = vld [vmem:[#allocation130_spill] sm:$0xff] }
 0x4a2   : > { %8325 = vmatmul.mubr.f32.gmra.mxu1 %v22095_v40  ;;  %7868 = vmatmul.mubr.f32.gmra.mxu0 %v22082_v9  ;;  %v9365_v58 = vrot.slane %v9138_v13, %v18509_v34  ;;  %v7396_v7 = vpop.f32.mrf.mxu1  ;;  %v22099_v13 = vld [vmem:[#allocation122_spill] sm:$0xff] }
 0x4a3   : > { %8332 = vmatprep.mubr.f32.mxu1 %v22098_v51  ;;  %7874 = vmatprep.mubr.f32.mxu0 %v22084_v49  ;;  %v6781_v28 = vpop.f32.mrf.mxu0  ;;  %v22101_v49 = vld [vmem:[#allocation147_spill] sm:$0xff] }
 0x4a4   : > { %8842 = vmatprep.subr.mxu1 %v20567_v32  ;;  %8510 = vmatprep.subr.mxu0 %v20567_v32  ;;  %v9367_v9 = vsel %vm9366_vm15, %v9365_v58, %v9360_v44  ;;  %v18538_v40 = vadd.f32 %v7382_v24, %v6781_v28  ;;  %v7398_v33 = vpop.f32.mrf.mxu1  ;;  %v22102_v51 = vand.u32 4294901760, %v22101_v49  ;;  %v22104_v44 = vand.u32 4294901760, %v22103_v4 }
 0x4a5   : > { %8844 = vmatpush2.msra.mxu1 %v22099_v13  ;;  %8514 = vmatpush2.msra.mxu0 %v22100_v60  ;;  %v9140_v6 = vpop.xlane.xlu1 %9139  ;;  %v6783_v0 = vpop.f32.mrf.mxu0  ;;  %v18548_v13 = vsub.s32 %v9375_v23, %v18377_v63  ;;  %v9382_v24 = vadd.s32 4294967216, %v21538_v35  ;;  %v22106_v60 = vld [vmem:[#allocation124_spill] sm:$0xff]  ;;  %v22108_v33 = vand.u32 4294901760, %v17974_v62 }
 0x4a6   : > { %8336 = vmatmul.mubr.f32.gmra.mxu1 %v22102_v51  ;;  %7877 = vmatmul.mubr.f32.gmra.mxu0 %v17831_v22  ;;  %v9372_v19 = vrot.slane %v9140_v6, %v18527_v18  ;;  %v7403_v58 = vpop.f32.mrf.mxu1  ;;  %v22107_v0 = vld [vmem:[#allocation134_spill] sm:$0xff] }
 0x4a7   : > { %8343 = vmatprep.mubr.f32.mxu1 %v22104_v44  ;;  %7883 = vmatprep.mubr.f32.mxu0 %v22090_v14  ;;  %22105 = vst [vmem:[#allocation12_spill] sm:$0xff] %v18548_v13  ;;  %v6796_v28 = vpop.f32.mrf.mxu0  ;;  %v22109_v44 = vand.u32 4294901760, %v18000_v3 }
 0x4a8   : > { %8845 = vmatprep.subr.mxu1 %v20567_v32  ;;  %8515 = vmatprep.subr.mxu0 %v20567_v32  ;;  %v9374_v22 = vsel %vm20497_vm9, %v9372_v19, %v9367_v9  ;;  %v18556_v6 = vadd.f32 %v7389_v25, %v6796_v28  ;;  %v7405_v14 = vpop.f32.mrf.mxu1  ;;  %v18566_v25 = vsub.s32 %v9382_v24, %v18377_v63  ;;  %vm9415_vm9 = vcmask 982912  }
 0x4a9   : > { %8847 = vmatpush2.msra.mxu1 %v22106_v60  ;;  %8519 = vmatpush2.msra.mxu0 %v22107_v0  ;;  %v6798_v51 = vpop.f32.mrf.mxu0  ;;  %v22112_v60 = vld [vmem:[#allocation139_spill] sm:$0xff] }
 0x4aa   : > { %8347 = vmatmul.mubr.f32.gmra.mxu1 %v22108_v33  ;;  %7886 = vmatmul.mubr.f32.gmra.mxu0 %v22094_v27  ;;  %v9142_v23 = vpop.xlane.xlu0 %9141  ;;  %v7410_v9 = vpop.f32.mrf.mxu1  ;;  %22110 = vst [vmem:[#allocation184_spill] sm:$0xff] %v18566_v25  ;;  %v22111_v27 = vld [vmem:[#allocation127_spill] sm:$0xff]  ;;  %v9389_v33 = vadd.s32 4294967208, %v21538_v35 }
 0x4ab   : > { %8354 = vmatprep.mubr.f32.mxu1 %v22109_v44  ;;  %7892 = vmatprep.mubr.f32.mxu0 %v22097_v37  ;;  %v9379_v19 = vrot.slane %v9142_v23, %v18548_v13  ;;  %v6811_v28 = vpop.f32.mrf.mxu0  ;;  %v22113_v23 = vld [vmem:[#allocation153_spill] sm:$0xff] }
 0x4ac   : > { %8848 = vmatprep.subr.mxu1 %v20567_v32  ;;  %8520 = vmatprep.subr.mxu0 %v20567_v32  ;;  %v18573_v14 = vadd.f32 %v7396_v7, %v6811_v28  ;;  %v7412_v37 = vpop.f32.mrf.mxu1  ;;  %v22114_v51 = vand.u32 4294901760, %v22113_v23  ;;  %v22116_v28 = vld [vmem:[#allocation133_spill] sm:$0xff] }
 0x4ad   : > { %8850 = vmatpush2.msra.mxu1 %v22111_v27  ;;  %8524 = vmatpush2.msra.mxu0 %v22112_v60  ;;  %v9381_v0 = vsel %vm20495_vm8, %v9379_v19, %v9374_v22  ;;  %v6813_v44 = vpop.f32.mrf.mxu0  ;;  %v22117_v27 = vld [vmem:[#allocation143_spill] sm:$0xff]  ;;  %v22118_v37 = vand.u32 4294901760, %v18063_v17  ;;  %vm20498_vm8 = vcmask 851712  }
 0x4ae   : > { %8358 = vmatmul.mubr.f32.gmra.mxu1 %v22114_v51  ;;  %7895 = vmatmul.mubr.f32.gmra.mxu0 %v22101_v49  ;;  %v9144_v24 = vpop.xlane.xlu1 %9143  ;;  %v7417_v7 = vpop.f32.mrf.mxu1  ;;  %v22119_v44 = vand.u32 4294901760, %v18082_v56 }
 0x4af   : > { %8365 = vmatprep.mubr.f32.mxu1 %v22115_v12  ;;  %7901 = vmatprep.mubr.f32.mxu0 %v22103_v4  ;;  %v9386_v22 = vrot.slane %v9144_v24, %v18566_v25  ;;  %v6826_v19 = vpop.f32.mrf.mxu0  ;;  %v18591_v12 = vsub.s32 %v9389_v33, %v18377_v63  ;;  %v9396_v24 = vadd.s32 4294967200, %v21538_v35 }
 0x4b0   : > { %8851 = vmatprep.subr.mxu1 %v20567_v32  ;;  %8525 = vmatprep.subr.mxu0 %v20567_v32  ;;  %v18588_v60 = vadd.f32 %v7403_v58, %v6826_v19  ;;  %v7419_v4 = vpop.f32.mrf.mxu1  ;;  %v22120_v58 = vld [vmem:[#allocation137_spill] sm:$0xff] }
 0x4b1   : > { %8853 = vmatpush2.msra.mxu1 %v22116_v28  ;;  %8529 = vmatpush2.msra.mxu0 %v22117_v27  ;;  %v9388_v49 = vsel %vm20494_vm6, %v9386_v22, %v9381_v0  ;;  %v6828_v51 = vpop.f32.mrf.mxu0  ;;  %vm20496_vm6 = vcmask 786112   ;;  %v22121_v27 = vld [vmem:[#allocation141_spill] sm:$0xff]  ;;  %v22122_v4 = vld [vmem:[#allocation148_spill] sm:$0xff] }
 0x4b2   : > { %8369 = vmatmul.mubr.f32.gmra.mxu1 %v22118_v37  ;;  %8854 = vmatprep.subr.mxu1 %v20567_v32  ;;  %v18610_v37 = vsub.s32 %v9396_v24, %v18377_v63  ;;  %v9403_v51 = vadd.s32 4294967192, %v21538_v35  ;;  %v22125_v24 = vmov 1.0  }
 0x4b3   : > { %7904 = vmatmul.mubr.f32.gmra.mxu0 %v17974_v62  ;;  %8376 = vmatprep.mubr.f32.mxu1 %v22119_v44  ;;  %v7424_v0 = vpop.f32.mrf.mxu1  ;;  %v6841_v22 = vpop.f32.mrf.mxu0  ;;  %v22123_v44 = vand.u32 4294901760, %v18096_v20 }
 0x4b4   : > { %8856 = vmatpush2.msra.mxu1 %v22120_v58  ;;  %7910 = vmatprep.mubr.f32.mxu0 %v18000_v3  ;;  %v9146_v33 = vpop.xlane.xlu0 %9145  ;;  %v18605_v28 = vadd.f32 %v7410_v9, %v6841_v22  ;;  %v22124_v22 = vld [vmem:[#allocation108_spill] sm:$0xff] }
 0x4b5   : > { %8857 = vmatprep.subr.mxu1 %v20567_v32  ;;  %8530 = vmatprep.subr.mxu0 %v20567_v32  ;;  %v9393_v19 = vrot.slane %v9146_v33, %v18591_v12  ;;  %v7426_v62 = vpop.f32.mrf.mxu1  ;;  %v6843_v3 = vpop.f32.mrf.mxu0  ;;  %v9410_v33 = vadd.s32 4294967184, %v21538_v35 }
 0x4b6   : > { %8859 = vmatpush2.msra.mxu1 %v22121_v27  ;;  %8534 = vmatpush2.msra.mxu0 %v22122_v4  ;;  %v22126_v27 = vld [vmem:[#allocation57_spill] sm:$0xff] }
 0x4b7   : > { %8380 = vmatmul.mubr.f32.gmra.mxu1 %v22123_v44  ;;  %8860 = vmatprep.subr.mxu1 %v20567_v32  ;;  %v9395_v58 = vsel %vm20496_vm6, %v9393_v19, %v9388_v49  ;;  %v7431_v9 = vpop.f32.mrf.mxu1  ;;  %v6856_v62 = vpop.f32.mrf.mxu0  ;;  %v18631_v19 = vsub.s32 %v9403_v51, %v18377_v63  ;;  %v18636_v57 = vsub.s32 %v9410_v33, %v18377_v63  ;;  %vm9408_vm6 = vcmask 917312  }
 0x4b8   : > { %7913 = vmatmul.mubr.f32.gmra.mxu0 %v22113_v23  ;;  %8862 = vmatpush2.msra.mxu1 %v22124_v22  ;;  %v18625_v44 = vadd.f32 %v7417_v7, %v6856_v62  ;;  %v9417_v7 = vadd.s32 4294967176, %v21538_v35 }
 0x4b9   : > { %10525 = vmatprep.mubr.msk.f32.mxu1 %vm1042_vm12, %v22125_v24  ;;  %7919 = vmatprep.mubr.f32.mxu0 %v18045_v15  ;;  %v9148_v3 = vpop.xlane.xlu1 %9147  ;;  %v7433_v49 = vpop.f32.mrf.mxu1 }
 0x4ba   : > { %8863 = vmatprep.subr.mxu1 %v20567_v32  ;;  %8535 = vmatprep.subr.mxu0 %v20567_v32  ;;  %v9400_v23 = vrot.slane %v9148_v3, %v18610_v37  ;;  %v6858_v22 = vpop.f32.mrf.mxu0  ;;  %v18657_v45 = vsub.s32 %v9417_v7, %v18377_v63 }
 0x4bb   : > { %8865 = vmatpush2.msra.mxu1 %v22128_v55  ;;  %8539 = vmatpush2.msra.mxu0 %v22129_v42  ;;  %v7438_v15 = vpop.f32.mrf.mxu1 }
 0x4bc   : > { %10526 = vmatmul.mubr.msk.f32.vlgmr.msra.gmra.mxu1 %vm1041_vm13, %v22125_v24  ;;  %7922 = vmatmul.mubr.f32.gmra.mxu0 %v18063_v17  ;;  %v9402_v51 = vsel %vm20498_vm8, %v9400_v23, %v9395_v58  ;;  %v6871_v62 = vpop.f32.mrf.mxu0  ;;  %v22131_v23 = vld [vmem:[#allocation152_spill] sm:$0xff]  ;;  %22132 = vst [vmem:[#allocation14_spill] sm:$0xff] %v18657_v45  ;;  %vm9422_vm8 = vcmask 1048512  }
 0x4bd   : > { %10527 = vmatprep.mubr.msk.f32.mxu1 %vm1044_vm2, %v22125_v24  ;;  %7928 = vmatprep.mubr.f32.mxu0 %v18082_v56  ;;  %v9150_v42 = vpop.xlane.xlu0 %9149  ;;  %v18650_v33 = vadd.f32 %v7424_v0, %v6871_v62  ;;  %v7440_v3 = vpop.f32.mrf.mxu1 }
 0x4be   : > { %8540 = vmatprep.subr.mxu0 %v20567_v32  ;;  %v9407_v49 = vrot.slane %v9150_v42, %v18631_v19  ;;  %v9152_v17 = vpop.xlane.xlu1 %9151  ;;  %v6873_v58 = vpop.f32.mrf.mxu0 }
 0x4bf   : > { %8544 = vmatpush2.msra.mxu0 %v22131_v23  ;;  %v9414_v22 = vrot.slane %v9152_v17, %v18636_v57  ;;  %v7445_v31 = vpop.f32.mrf.mxu1 }
 0x4c0   : > { %10528 = vmatmul.mubr.msk.f32.gmra.mxu1 %vm1043_vm11, %v22125_v24  ;;  %7931 = vmatmul.mubr.f32.gmra.mxu0 %v18096_v20  ;;  %v9409_v32 = vsel %vm9408_vm6, %v9407_v49, %v9402_v51  ;;  %v6886_v56 = vpop.f32.mrf.mxu0 }
 0x4c1   : > { %10529 = vmatprep.mubr.msk.f32.mxu1 %vm1046_vm7, %v22125_v24  ;;  %10461 = vmatprep.mubr.msk.f32.mxu0 %vm1042_vm12, %v22125_v24  ;;  %v9416_v63 = vsel %vm9415_vm9, %v9414_v22, %v9409_v32  ;;  %v18674_v7 = vadd.f32 %v7431_v9, %v6886_v56  ;;  %v7447_v62 = vpop.f32.mrf.mxu1  ;;  %v22134_v9 = vld [vmem:[#allocation207_spill] sm:$0xff]  ;;  %v22138_v56 = vld [vmem:[#allocation210_spill] sm:$0xff] }
 0x4c2   : > { %v9154_v20 = vpop.xlane.xlu0 %9153  ;;  %v6888_v42 = vpop.f32.mrf.mxu0  ;;  %vm22135_vm12 = vcmp.eq.s32.totalorder %v22126_v27, %v22134_v9 }
 0x4c3   : > { %v9421_v51 = vrot.slane %v9154_v20, %v18657_v45  ;;  %v7452_v3 = vpop.f32.mrf.mxu1 }
 0x4c4   : > { %10530 = vmatmul.mubr.msk.f32.gmra.mxu1 %vm1045_vm0, %v22125_v24  ;;  %10462 = vmatmul.mubr.msk.f32.vlgmr.msra.gmra.mxu0 %vm1041_vm13, %v22125_v24  ;;  %v6901_v49 = vpop.f32.mrf.mxu0  ;;  %vm22137_vm13 = vcmp.eq.s32.totalorder %v21538_v35, %v22134_v9 }
 0x4c5   : > { %10531 = vmatprep.mubr.msk.f32.mxu1 %vm22135_vm12, %v22125_v24  ;;  %10463 = vmatprep.mubr.msk.f32.mxu0 %vm1044_vm2, %v22125_v24  ;;  %v18694_v17 = vsel %vm9422_vm8, %v9421_v51, %v9416_v63  ;;  %v18696_v58 = vadd.f32 %v7438_v15, %v6901_v49  ;;  %v7454_v23 = vpop.f32.mrf.mxu1  ;;  %vm22139_vm2 = vcmp.eq.s32.totalorder %v22126_v27, %v22138_v56  ;;  %v22141_v51 = vld [vmem:[#allocation216_spill] sm:$0xff] }
 0x4c6   : > { %22136 = vst [vmem:[#allocation190_spill] sm:$0xff] %v18694_v17  ;;  %v6903_v22 = vpop.f32.mrf.mxu0 }
 0x4c7   : > { %v7459_v4 = vpop.f32.mrf.mxu1 }
 0x4c8   : > { %10532 = vmatmul.mubr.msk.f32.gmra.mxu1 %vm22137_vm13, %v22125_v24  ;;  %10464 = vmatmul.mubr.msk.f32.gmra.mxu0 %vm1043_vm11, %v22125_v24  ;;  %v6916_v32 = vpop.f32.mrf.mxu0  ;;  %vm22140_vm11 = vcmp.eq.s32.totalorder %v21538_v35, %v22138_v56 }
 0x4c9   : > { %10533 = vmatprep.mubr.msk.f32.mxu1 %vm22139_vm2, %v22125_v24  ;;  %10465 = vmatprep.mubr.msk.f32.mxu0 %vm1046_vm7, %v22125_v24  ;;  %v18714_v15 = vadd.f32 %v7445_v31, %v6916_v32  ;;  %v7461_v63 = vpop.f32.mrf.mxu1  ;;  %vm22142_vm7 = vcmp.eq.s32.totalorder %v22126_v27, %v22141_v51 }
 0x4ca   : > { %v6918_v62 = vpop.f32.mrf.mxu0  ;;  %v9156_v20 = vpop.xlane.xlu1 %9155 }
 0x4cb   : > { %v9427_v22 = vrot.slane %v9156_v20, %v18393_v5 }
 0x4cc   : > { %10534 = vmatmul.mubr.msk.f32.gmra.mxu1 %vm22140_vm11, %v22125_v24  ;;  %10466 = vmatmul.mubr.msk.f32.gmra.mxu0 %vm1045_vm0, %v22125_v24  ;;  %v7466_v55 = vpop.f32.mrf.mxu1  ;;  %v6931_v42 = vpop.f32.mrf.mxu0  ;;  %vm22143_vm0 = vcmp.eq.s32.totalorder %v21538_v35, %v22141_v51  ;;  %vm22146_vm11 = vcmp.eq.s32.totalorder %v22126_v27, %v22138_v56 }
 0x4cd   : > { %10535 = vmatprep.mubr.msk.f32.mxu1 %vm22142_vm7, %v22125_v24  ;;  %10467 = vmatprep.mubr.msk.f32.mxu0 %vm22135_vm12, %v22125_v24  ;;  %v18732_v31 = vadd.f32 %v7452_v3, %v6931_v42  ;;  %v22144_v3 = vld [vmem:[#allocation225_spill] sm:$0xff]  ;;  %vm22148_vm12 = vcmp.eq.s32.totalorder %v21538_v35, %v22138_v56 }
 0x4ce   : > { %v9158_v49 = vpop.xlane.xlu0 %9157  ;;  %v7468_v23 = vpop.f32.mrf.mxu1  ;;  %vm22145_vm2 = vcmp.eq.s32.totalorder %v22126_v27, %v22144_v3  ;;  %vm22147_vm7 = vcmp.eq.s32.totalorder %v21538_v35, %v22144_v3 }
 0x4cf   : > { %v9431_v0 = vrot.slane %v9158_v49, %v18396_v50  ;;  %v6933_v32 = vpop.f32.mrf.mxu0 }
 0x4d0   : > { %10536 = vmatmul.mubr.msk.f32.gmra.mxu1 %vm22143_vm0, %v22125_v24  ;;  %10468 = vmatmul.mubr.msk.f32.gmra.mxu0 %vm22137_vm13, %v22125_v24  ;;  %v7473_v63 = vpop.f32.mrf.mxu1  ;;  %vm22151_vm13 = vcmp.eq.s32.totalorder %v22126_v27, %v22141_v51 }
 0x4d1   : > { %10537 = vmatprep.mubr.msk.f32.mxu1 %vm22145_vm2, %v22125_v24  ;;  %10469 = vmatprep.mubr.msk.f32.mxu0 %vm22146_vm11, %v22125_v24  ;;  %v9432_v62 = vsel %vm9324_vm4, %v9431_v0, %v9427_v22  ;;  %v6946_v20 = vpop.f32.mrf.mxu0  ;;  %v22149_v22 = vld [vmem:[#allocation146_spill] sm:$0xff]  ;;  %vm22153_vm11 = vcmp.eq.s32.totalorder %v21538_v35, %v22141_v51 }
 0x4d2   : > { %v9160_v42 = vpop.xlane.xlu1 %9159  ;;  %v18753_v49 = vadd.f32 %v7459_v4, %v6946_v20  ;;  %v7475_v23 = vpop.f32.mrf.mxu1  ;;  %vm22150_vm0 = vcmp.eq.s32.totalorder %v22126_v27, %v22149_v22  ;;  %vm22152_vm2 = vcmp.eq.s32.totalorder %v21538_v35, %v22149_v22 }
 0x4d3   : > { %v9436_v9 = vrot.slane %v9160_v42, %v18412_v21  ;;  %v6948_v32 = vpop.f32.mrf.mxu0 }
 0x4d4   : > { %10538 = vmatmul.mubr.msk.f32.gmra.mxu1 %vm22147_vm7, %v22125_v24  ;;  %10470 = vmatmul.mubr.msk.f32.gmra.mxu0 %vm22148_vm12, %v22125_v24  ;;  %vm22156_vm12 = vcmp.eq.s32.totalorder %v22126_v27, %v22144_v3 }
 0x4d5   : > { %10539 = vmatprep.mubr.msk.f32.mxu1 %vm22150_vm0, %v22125_v24  ;;  %10471 = vmatprep.mubr.msk.f32.mxu0 %vm22151_vm13, %v22125_v24  ;;  %v9437_v4 = vsel %vm9331_vm14, %v9436_v9, %v9432_v62  ;;  %v7480_v0 = vpop.f32.mrf.mxu1  ;;  %v6961_v20 = vpop.f32.mrf.mxu0  ;;  %v22154_v62 = vld [vmem:[#allocation115_spill] sm:$0xff]  ;;  %vm22158_vm13 = vcmp.eq.s32.totalorder %v21538_v35, %v22144_v3 }
 0x4d6   : > { %v18773_v42 = vadd.f32 %v7466_v55, %v6961_v20  ;;  %vm22155_vm7 = vcmp.eq.s32.totalorder %v22126_v27, %v22154_v62  ;;  %vm22157_vm0 = vcmp.eq.s32.totalorder %v21538_v35, %v22154_v62 }
 0x4d7   : > { %v9162_v23 = vpop.xlane.xlu0 %9161  ;;  %v7482_v32 = vpop.f32.mrf.mxu1 }
 0x4d8   : > { %10540 = vmatmul.mubr.msk.f32.gmra.mxu1 %vm22152_vm2, %v22125_v24  ;;  %10472 = vmatmul.mubr.msk.f32.gmra.mxu0 %vm22153_vm11, %v22125_v24  ;;  %v9441_v56 = vrot.slane %v9162_v23, %v18430_v30  ;;  %v6963_v17 = vpop.f32.mrf.mxu0  ;;  %vm22161_vm11 = vcmp.eq.s32.totalorder %v22126_v27, %v22149_v22 }
 0x4d9   : > { %10541 = vmatprep.mubr.msk.f32.mxu1 %vm22155_vm7, %v22125_v24  ;;  %10473 = vmatprep.mubr.msk.f32.mxu0 %vm22156_vm12, %v22125_v24  ;;  %v7487_v55 = vpop.f32.mrf.mxu1  ;;  %vm22163_vm12 = vcmp.eq.s32.totalorder %v21538_v35, %v22149_v22 }
 0x4da   : > { %v9442_v9 = vsel %vm9338_vm10, %v9441_v56, %v9437_v4  ;;  %v6976_v20 = vpop.f32.mrf.mxu0  ;;  %v22159_v4 = vld [vmem:[#allocation156_spill] sm:$0xff] }
 0x4db   : > { %v9164_v32 = vpop.xlane.xlu1 %9163  ;;  %v18793_v51 = vadd.f32 %v7473_v63, %v6976_v20  ;;  %v7489_v5 = vpop.f32.mrf.mxu1  ;;  %vm22160_vm2 = vcmp.eq.s32.totalorder %v22126_v27, %v22159_v4  ;;  %vm22162_vm7 = vcmp.eq.s32.totalorder %v21538_v35, %v22159_v4 }
 0x4dc   : > { %10542 = vmatmul.mubr.msk.f32.gmra.mxu1 %vm22157_vm0, %v22125_v24  ;;  %10474 = vmatmul.mubr.msk.f32.gmra.mxu0 %vm22158_vm13, %v22125_v24  ;;  %v9446_v17 = vrot.slane %v9164_v32, %v18448_v29  ;;  %v6978_v23 = vpop.f32.mrf.mxu0  ;;  %vm22166_vm13 = vcmp.eq.s32.totalorder %v22126_v27, %v22154_v62 }
 0x4dd   : > { %10543 = vmatprep.mubr.msk.f32.mxu1 %vm22160_vm2, %v22125_v24  ;;  %10475 = vmatprep.mubr.msk.f32.mxu0 %vm22161_vm11, %v22125_v24  ;;  %v22164_v23 = vld [vmem:[#allocation16_spill] sm:$0xff]  ;;  %vm22168_vm11 = vcmp.eq.s32.totalorder %v21538_v35, %v22154_v62 }
 0x4de   : > { %v9447_v5 = vsel %vm9345_vm3, %v9446_v17, %v9442_v9  ;;  %v7494_v63 = vpop.f32.mrf.mxu1  ;;  %v6991_v56 = vpop.f32.mrf.mxu0  ;;  %vm22165_vm0 = vcmp.eq.s32.totalorder %v22126_v27, %v22164_v23  ;;  %vm22167_vm2 = vcmp.eq.s32.totalorder %v21538_v35, %v22164_v23 }
 0x4df   : > { %v18813_v20 = vadd.f32 %v7480_v0, %v6991_v56 }
 0x4e0   : > { %10544 = vmatmul.mubr.msk.f32.gmra.mxu1 %vm22162_vm7, %v22125_v24  ;;  %10476 = vmatmul.mubr.msk.f32.gmra.mxu0 %vm22163_vm12, %v22125_v24  ;;  %v9166_v3 = vpop.xlane.xlu0 %9165  ;;  %v7496_v32 = vpop.f32.mrf.mxu1  ;;  %vm22171_vm12 = vcmp.eq.s32.totalorder %v22126_v27, %v22159_v4 }
 0x4e1   : > { %10545 = vmatprep.mubr.msk.f32.mxu1 %vm22165_vm0, %v22125_v24  ;;  %10477 = vmatprep.mubr.msk.f32.mxu0 %vm22166_vm13, %v22125_v24  ;;  %v9451_v0 = vrot.slane %v9166_v3, %v18470_v39  ;;  %v6993_v9 = vpop.f32.mrf.mxu0  ;;  %v22169_v3 = vld [vmem:[#allocation166_spill] sm:$0xff]  ;;  %vm22173_vm13 = vcmp.eq.s32.totalorder %v21538_v35, %v22159_v4 }
 0x4e2   : > { %v7501_v17 = vpop.f32.mrf.mxu1  ;;  %vm22170_vm7 = vcmp.eq.s32.totalorder %v22126_v27, %v22169_v3  ;;  %vm22172_vm0 = vcmp.eq.s32.totalorder %v21538_v35, %v22169_v3 }
 0x4e3   : > { %v9452_v56 = vsel %vm9352_vm1, %v9451_v0, %v9447_v5  ;;  %v7006_v22 = vpop.f32.mrf.mxu0 }
 0x4e4   : > { %10546 = vmatmul.mubr.msk.f32.gmra.mxu1 %vm22167_vm2, %v22125_v24  ;;  %10478 = vmatmul.mubr.msk.f32.gmra.mxu0 %vm22168_vm11, %v22125_v24  ;;  %v9168_v32 = vpop.xlane.xlu1 %9167  ;;  %v18841_v29 = vadd.f32 %v7487_v55, %v7006_v22  ;;  %v7503_v30 = vpop.f32.mrf.mxu1  ;;  %v22174_v55 = vld [vmem:[#allocation17_spill] sm:$0xff]  ;;  %vm22176_vm11 = vcmp.eq.s32.totalorder %v22126_v27, %v22164_v23 }
 0x4e5   : > { %10547 = vmatprep.mubr.msk.f32.mxu1 %vm22170_vm7, %v22125_v24  ;;  %10479 = vmatprep.mubr.msk.f32.mxu0 %vm22171_vm12, %v22125_v24  ;;  %v9456_v5 = vrot.slane %v9168_v32, %v18488_v10  ;;  %v7008_v0 = vpop.f32.mrf.mxu0  ;;  %vm22175_vm2 = vcmp.eq.s32.totalorder %v22126_v27, %v22174_v55  ;;  %vm22177_vm7 = vcmp.eq.s32.totalorder %v21538_v35, %v22174_v55 }
 0x4e6   : > { %vm22178_vm12 = vcmp.eq.s32.totalorder %v21538_v35, %v22164_v23 }
 0x4e7   : > { %v9457_v62 = vsel %vm9359_vm5, %v9456_v5, %v9452_v56  ;;  %v7508_v9 = vpop.f32.mrf.mxu1 }
 0x4e8   : > { %10548 = vmatmul.mubr.msk.f32.gmra.mxu1 %vm22172_vm0, %v22125_v24  ;;  %10480 = vmatmul.mubr.msk.f32.gmra.mxu0 %vm22173_vm13, %v22125_v24  ;;  %v7021_v30 = vpop.f32.mrf.mxu0  ;;  %vm22181_vm13 = vcmp.eq.s32.totalorder %v22126_v27, %v22169_v3 }
 0x4e9   : > { %10549 = vmatprep.mubr.msk.f32.mxu1 %vm22175_vm2, %v22125_v24  ;;  %10481 = vmatprep.mubr.msk.f32.mxu0 %vm22176_vm11, %v22125_v24  ;;  %v9170_v56 = vpop.xlane.xlu0 %9169  ;;  %v18869_v22 = vadd.f32 %v7494_v63, %v7021_v30  ;;  %v7510_v32 = vpop.f32.mrf.mxu1  ;;  %v22179_v63 = vld [vmem:[#allocation175_spill] sm:$0xff]  ;;  %vm22183_vm11 = vcmp.eq.s32.totalorder %v21538_v35, %v22169_v3 }
 0x4ea   : > { %v9461_v5 = vrot.slane %v9170_v56, %v18509_v34  ;;  %v7023_v0 = vpop.f32.mrf.mxu0  ;;  %vm22180_vm0 = vcmp.eq.s32.totalorder %v22126_v27, %v22179_v63  ;;  %vm22182_vm2 = vcmp.eq.s32.totalorder %v21538_v35, %v22179_v63 }
 0x4ec   : > { %10550 = vmatmul.mubr.msk.f32.gmra.mxu1 %vm22177_vm7, %v22125_v24  ;;  %10482 = vmatmul.mubr.msk.f32.gmra.mxu0 %vm22178_vm12, %v22125_v24  ;;  %v9462_v4 = vsel %vm9366_vm15, %v9461_v5, %v9457_v62  ;;  %v7515_v10 = vpop.f32.mrf.mxu1  ;;  %vm22184_vm7 = vcmask 589312   ;;  %v22185_v5 = vld [vmem:[#allocation30_spill] sm:$0xff] }
 0x4ed   : > { %10551 = vmatprep.mubr.msk.f32.mxu1 %vm22180_vm0, %v22125_v24  ;;  %10483 = vmatprep.mubr.msk.f32.mxu0 %vm22181_vm13, %v22125_v24  ;;  %v9172_v30 = vpop.xlane.xlu1 %9171  ;;  %v7036_v56 = vpop.f32.mrf.mxu0  ;;  %vm22186_vm12 = vcmp.eq.s32.totalorder %v22126_v27, %v22185_v5  ;;  %vm22187_vm0 = vcmp.eq.s32.totalorder %v22126_v27, %v22174_v55  ;;  %vm22188_vm13 = vcmp.eq.s32.totalorder %v21538_v35, %v22185_v5 }
 0x4ee   : > { %v9466_v32 = vrot.slane %v9172_v30, %v18527_v18  ;;  %v18890_v0 = vadd.f32 %v7501_v17, %v7036_v56  ;;  %v7517_v23 = vpop.f32.mrf.mxu1 }
 0x4ef   : > { %v7038_v34 = vpop.f32.mrf.mxu0 }
 0x4f0   : > { %10552 = vmatmul.mubr.msk.f32.gmra.mxu1 %vm22182_vm2, %v22125_v24  ;;  %10484 = vmatmul.mubr.msk.f32.gmra.mxu0 %vm22183_vm11, %v22125_v24  ;;  %v9467_v62 = vsel %vm22184_vm7, %v9466_v32, %v9462_v4  ;;  %vm22189_vm2 = vcmp.eq.s32.totalorder %v21538_v35, %v22174_v55  ;;  %v22190_v32 = vld [vmem:[#allocation183_spill] sm:$0xff]  ;;  %vm22192_vm7 = vcmp.eq.s32.totalorder %v22126_v27, %v22179_v63 }
 0x4f1   : > { %10553 = vmatprep.mubr.msk.f32.mxu1 %vm22186_vm12, %v22125_v24  ;;  %10485 = vmatprep.mubr.msk.f32.mxu0 %vm22187_vm0, %v22125_v24  ;;  %vm22191_vm11 = vcmp.eq.s32.totalorder %v22126_v27, %v22190_v32  ;;  %vm22193_vm12 = vcmask 654912   ;;  %vm22194_vm0 = vcmp.eq.s32.totalorder %v21538_v35, %v22190_v32 }
 0x4f2   : > { %v9174_v34 = vpop.xlane.xlu0 %9173  ;;  %v8040_v17 = vpop.f32.mrf.mxu1 }
 0x4f3   : > { %v9471_v30 = vrot.slane %v9174_v34, %v18548_v13  ;;  %v7051_v56 = vpop.f32.mrf.mxu0 }
 0x4f4   : > { %10554 = vmatmul.mubr.msk.f32.gmra.mxu1 %vm22188_vm13, %v22125_v24  ;;  %10486 = vmatmul.mubr.msk.f32.gmra.mxu0 %vm22189_vm2, %v22125_v24  ;;  %v18918_v3 = vadd.f32 %v7508_v9, %v7051_v56  ;;  %v8042_v4 = vpop.f32.mrf.mxu1  ;;  %vm22195_vm13 = vcmp.eq.s32.totalorder %v21538_v35, %v22179_v63 }
 0x4f5   : > { %10555 = vmatprep.mubr.msk.f32.mxu1 %vm22191_vm11, %v22125_v24  ;;  %10487 = vmatprep.mubr.msk.f32.mxu0 %vm22192_vm7, %v22125_v24  ;;  %v9472_v23 = vsel %vm22193_vm12, %v9471_v30, %v9467_v62  ;;  %v7053_v34 = vpop.f32.mrf.mxu0  ;;  %v22196_v62 = vld [vmem:[#allocation109_spill] sm:$0xff]  ;;  %vm22198_vm11 = vcmp.eq.s32.totalorder %v22126_v27, %v22185_v5  ;;  %vm22199_vm7 = vcmask 720512  }
 0x4f6   : > { %v9176_v13 = vpop.xlane.xlu1 %9175  ;;  %v8051_v18 = vpop.f32.mrf.mxu1  ;;  %vm22197_vm2 = vcmp.eq.s32.totalorder %v22126_v27, %v22196_v62  ;;  %vm22200_vm12 = vcmp.eq.s32.totalorder %v21538_v35, %v22196_v62 }
 0x4f7   : > { %v9476_v55 = vrot.slane %v9176_v13, %v18566_v25  ;;  %v7066_v9 = vpop.f32.mrf.mxu0 }
 0x4f8   : > { %10556 = vmatmul.mubr.msk.f32.gmra.mxu1 %vm22194_vm0, %v22125_v24  ;;  %10488 = vmatmul.mubr.msk.f32.gmra.mxu0 %vm22195_vm13, %v22125_v24  ;;  %v18938_v56 = vadd.f32 %v7515_v10, %v7066_v9  ;;  %v8053_v4 = vpop.f32.mrf.mxu1  ;;  %vm22201_vm0 = vcmp.eq.s32.totalorder %v21538_v35, %v22185_v5 }
 0x4f9   : > { %10557 = vmatprep.mubr.msk.f32.mxu1 %vm22197_vm2, %v22125_v24  ;;  %10489 = vmatprep.mubr.msk.f32.mxu0 %vm22198_vm11, %v22125_v24  ;;  %v9477_v13 = vsel %vm22199_vm7, %v9476_v55, %v9472_v23  ;;  %v7068_v30 = vpop.f32.mrf.mxu0  ;;  %v22202_v23 = vld [vmem:[#allocation191_spill] sm:$0xff]  ;;  %vm22204_vm2 = vcmp.eq.s32.totalorder %v22126_v27, %v22190_v32  ;;  %vm22205_vm11 = vcmask 786112  }
 0x4fa   : > { %v8062_v34 = vpop.f32.mrf.mxu1  ;;  %vm22203_vm13 = vcmp.eq.s32.totalorder %v22126_v27, %v22202_v23  ;;  %vm22206_vm7 = vcmp.eq.s32.totalorder %v21538_v35, %v22202_v23 }
 0x4fb   : > { %v9178_v25 = vpop.xlane.xlu0 %9177  ;;  %v7653_v63 = vpop.f32.mrf.mxu0 }
 0x4fc   : > { %10558 = vmatmul.mubr.msk.f32.gmra.mxu1 %vm22200_vm12, %v22125_v24  ;;  %10490 = vmatmul.mubr.msk.f32.gmra.mxu0 %vm22201_vm0, %v22125_v24  ;;  %v9481_v10 = vrot.slane %v9178_v25, %v18591_v12  ;;  %v7654_v9 = vadd.f32 %v7653_v63, %v18337_v1  ;;  %v8064_v4 = vpop.f32.mrf.mxu1  ;;  %vm22207_vm12 = vcmp.eq.s32.totalorder %v21538_v35, %v22190_v32 }
 0x4fd   : > { %10559 = vmatprep.mubr.msk.f32.mxu1 %vm22203_vm13, %v22125_v24  ;;  %10491 = vmatprep.mubr.msk.f32.mxu0 %vm22204_vm2, %v22125_v24  ;;  %v7655_v55 = vpop.f32.mrf.mxu0  ;;  %vm22210_vm13 = vcmp.eq.s32.totalorder %v22126_v27, %v22196_v62  ;;  %vm22211_vm2 = vcmask 851712  }
 0x4fe   : > { %v9482_v30 = vsel %vm22205_vm11, %v9481_v10, %v9477_v13  ;;  %v8073_v5 = vpop.f32.mrf.mxu1  ;;  %v22208_v13 = vld [vmem:[#allocation47_spill] sm:$0xff]  ;;  %v18986_v4 = vadd.f32 %v8040_v17, %v7654_v9  ;;  %v22214_v17 = vld [vmem:[#allocation58_spill] sm:$0xff] }
 0x4ff   : > { %v9180_v39 = vpop.xlane.xlu1 %9179  ;;  %v7662_v21 = vpop.f32.mrf.mxu0  ;;  %vm22209_vm0 = vcmp.eq.s32.totalorder %v22126_v27, %v22208_v13  ;;  %vm22212_vm11 = vcmp.eq.s32.totalorder %v21538_v35, %v22208_v13 }
 0x500   : > { %10560 = vmatmul.mubr.msk.f32.gmra.mxu1 %vm22206_vm7, %v22125_v24  ;;  %10492 = vmatmul.mubr.msk.f32.gmra.mxu0 %vm22207_vm12, %v22125_v24  ;;  %v9486_v1 = vrot.slane %v9180_v39, %v18610_v37  ;;  %v7663_v25 = vadd.f32 %v7662_v21, %v18350_v26  ;;  %v8075_v63 = vpop.f32.mrf.mxu1  ;;  %vm22213_vm7 = vcmp.eq.s32.totalorder %v21538_v35, %v22196_v62 }
 0x501   : > { %10561 = vmatprep.mubr.msk.f32.mxu1 %vm22209_vm0, %v22125_v24  ;;  %10493 = vmatprep.mubr.msk.f32.mxu0 %vm22210_vm13, %v22125_v24  ;;  %v7664_v10 = vpop.f32.mrf.mxu0  ;;  %vm22215_vm12 = vcmp.eq.s32.totalorder %v22126_v27, %v22214_v17  ;;  %vm22216_vm0 = vcmp.eq.s32.totalorder %v22126_v27, %v22202_v23  ;;  %vm22217_vm13 = vcmp.eq.s32.totalorder %v21538_v35, %v22214_v17 }
 0x502   : > { %v9487_v32 = vsel %vm22211_vm2, %v9486_v1, %v9482_v30  ;;  %v8084_v55 = vpop.f32.mrf.mxu1  ;;  %v19007_v1 = vadd.f32 %v8051_v18, %v7663_v25  ;;  %vm22218_vm2 = vcmp.eq.s32.totalorder %v21538_v35, %v22202_v23  ;;  %v22219_v18 = vld [vmem:[#allocation83_spill] sm:$0xff] }
 0x503   : > { %v7671_v39 = vpop.f32.mrf.mxu0 }
 0x504   : > { %10562 = vmatmul.mubr.msk.f32.gmra.mxu1 %vm22212_vm11, %v22125_v24  ;;  %10494 = vmatmul.mubr.msk.f32.gmra.mxu0 %vm22213_vm7, %v22125_v24  ;;  %v9182_v26 = vpop.xlane.xlu0 %9181  ;;  %v7672_v21 = vadd.f32 %v7671_v39, %v18363_v11  ;;  %v8086_v63 = vpop.f32.mrf.mxu1  ;;  %vm22220_vm11 = vcmp.eq.s32.totalorder %v22126_v27, %v22219_v18  ;;  %vm22221_vm7 = vcmp.eq.s32.totalorder %v22126_v27, %v22208_v13 }
 0x505   : > { %10563 = vmatprep.mubr.msk.f32.mxu1 %vm22215_vm12, %v22125_v24  ;;  %10495 = vmatprep.mubr.msk.f32.mxu0 %vm22216_vm0, %v22125_v24  ;;  %v9491_v9 = vrot.slane %v9182_v26, %v18631_v19  ;;  %v7673_v30 = vpop.f32.mrf.mxu0  ;;  %vm22222_vm12 = vcmp.eq.s32.totalorder %v21538_v35, %v22219_v18  ;;  %vm22223_vm0 = vcmp.eq.s32.totalorder %v21538_v35, %v22208_v13 }
 0x506   : > { %v8095_v62 = vpop.f32.mrf.mxu1 }
 0x507   : > { %v9492_v10 = vsel %vm9408_vm6, %v9491_v9, %v9487_v32  ;;  %v7680_v11 = vpop.f32.mrf.mxu0  ;;  %v19027_v32 = vadd.f32 %v8062_v34, %v7672_v21  ;;  %v22224_v34 = vld [vmem:[#allocation49_spill] sm:$0xff] }
 0x508   : > { %10564 = vmatmul.mubr.msk.f32.gmra.mxu1 %vm22217_vm13, %v22125_v24  ;;  %10496 = vmatmul.mubr.msk.f32.gmra.mxu0 %vm22218_vm2, %v22125_v24  ;;  %v9184_v39 = vpop.xlane.xlu1 %9183  ;;  %v7681_v26 = vadd.f32 %v7680_v11, %v18374_v54  ;;  %v8097_v63 = vpop.f32.mrf.mxu1  ;;  %vm22225_vm13 = vcmp.eq.s32.totalorder %v22126_v27, %v22224_v34  ;;  %vm22226_vm2 = vcmp.eq.s32.totalorder %v22126_v27, %v22214_v17 }
 0x509   : > { %10565 = vmatprep.mubr.msk.f32.mxu1 %vm22220_vm11, %v22125_v24  ;;  %10497 = vmatprep.mubr.msk.f32.mxu0 %vm22221_vm7, %v22125_v24  ;;  %v7682_v25 = vpop.f32.mrf.mxu0  ;;  %v9496_v23 = vrot.slane %v9184_v39, %v18636_v57  ;;  %vm22227_vm11 = vcmp.eq.s32.totalorder %v21538_v35, %v22224_v34  ;;  %vm22228_vm7 = vcmp.eq.s32.totalorder %v21538_v35, %v22214_v17 }
 0x50a   : > { %v19047_v39 = vadd.f32 %v8073_v5, %v7681_v26  ;;  %v22230_v26 = vld [vmem:[#allocation91_spill] sm:$0xff] }
 0x50b   : > { %v8106_v9 = vpop.f32.mrf.mxu1  ;;  %v7689_v30 = vpop.f32.mrf.mxu0  ;;  %v9497_v25 = vsel %vm9415_vm9, %v9496_v23, %v9492_v10 }
 0x50c   : > { %10566 = vmatmul.mubr.msk.f32.gmra.mxu1 %vm22222_vm12, %v22125_v24  ;;  %10498 = vmatmul.mubr.msk.f32.gmra.mxu0 %vm22223_vm0, %v22125_v24  ;;  %v7690_v54 = vadd.f32 %v7689_v30, %v18389_v61  ;;  %vm22231_vm12 = vcmp.eq.s32.totalorder %v22126_v27, %v22230_v26  ;;  %vm22232_vm0 = vcmp.eq.s32.totalorder %v22126_v27, %v22219_v18 }
 0x50d   : > { %10567 = vmatprep.mubr.msk.f32.mxu1 %vm22225_vm13, %v22125_v24  ;;  %10499 = vmatprep.mubr.msk.f32.mxu0 %vm22226_vm2, %v22125_v24  ;;  %v9186_v21 = vpop.xlane.xlu0 %9185  ;;  %v8108_v11 = vpop.f32.mrf.mxu1  ;;  %vm22233_vm13 = vcmp.eq.s32.totalorder %v21538_v35, %v22230_v26  ;;  %vm22234_vm2 = vcmp.eq.s32.totalorder %v21538_v35, %v22219_v18 }
 0x50e   : > { %v9501_v63 = vrot.slane %v9186_v21, %v18657_v45  ;;  %v7691_v13 = vpop.f32.mrf.mxu0  ;;  %v19071_v21 = vadd.f32 %v8084_v55, %v7690_v54 }
 0x50f   : > { %v8117_v61 = vpop.f32.mrf.mxu1  ;;  %v22235_v13 = vld [vmem:[#allocation64_spill] sm:$0xff] }
 0x510   : > { %10568 = vmatmul.mubr.msk.f32.gmra.mxu1 %vm22227_vm11, %v22125_v24  ;;  %10500 = vmatmul.mubr.msk.f32.gmra.mxu0 %vm22228_vm7, %v22125_v24  ;;  %v19060_v30 = vsel %vm9422_vm8, %v9501_v63, %v9497_v25  ;;  %v7698_v5 = vpop.f32.mrf.mxu0  ;;  %vm22236_vm11 = vcmp.eq.s32.totalorder %v22126_v27, %v22235_v13  ;;  %vm22237_vm7 = vcmp.eq.s32.totalorder %v22126_v27, %v22224_v34 }
 0x511   : > { %22229 = vst [vmem:[#allocation86_spill] sm:$0xff] %v19060_v30  ;;  %10569 = vmatprep.mubr.msk.f32.mxu1 %vm22231_vm12, %v22125_v24  ;;  %10501 = vmatprep.mubr.msk.f32.mxu0 %vm22232_vm0, %v22125_v24  ;;  %v7699_v10 = vadd.f32 %v7698_v5, %v18417_v47  ;;  %v8119_v23 = vpop.f32.mrf.mxu1  ;;  %vm22238_vm12 = vcmp.eq.s32.totalorder %v21538_v35, %v22235_v13  ;;  %v22240_v5 = vld [vmem:[#allocation119_spill] sm:$0xff] }
 0x512   : > { %v7700_v17 = vpop.f32.mrf.mxu0  ;;  %vm22239_vm0 = vcmp.eq.s32.totalorder %v21538_v35, %v22224_v34  ;;  %v22245_v34 = vld [vmem:[#allocation187_spill] sm:$0xff] }
 0x513   : > { %v19090_v55 = vadd.f32 %v8095_v62, %v7699_v10 }
 0x514   : > { %10570 = vmatmul.mubr.msk.f32.gmra.mxu1 %vm22233_vm13, %v22125_v24  ;;  %10502 = vmatmul.mubr.msk.f32.gmra.mxu0 %vm22234_vm2, %v22125_v24  ;;  %v8128_v11 = vpop.f32.mrf.mxu1  ;;  %v7707_v63 = vpop.f32.mrf.mxu0  ;;  %vm22241_vm13 = vcmp.eq.s32.totalorder %v22126_v27, %v22240_v5  ;;  %vm22242_vm2 = vcmp.eq.s32.totalorder %v22126_v27, %v22230_v26 }
 0x515   : > { %10571 = vmatprep.mubr.msk.f32.mxu1 %vm22236_vm11, %v22125_v24  ;;  %10503 = vmatprep.mubr.msk.f32.mxu0 %vm22237_vm7, %v22125_v24  ;;  %v7708_v47 = vadd.f32 %v7707_v63, %v18435_v46  ;;  %vm22243_vm11 = vcmp.eq.s32.totalorder %v21538_v35, %v22240_v5  ;;  %vm22244_vm7 = vcmp.eq.s32.totalorder %v21538_v35, %v22230_v26  ;;  %v22250_v26 = vld [vmem:[#allocation94_spill] sm:$0xff] }
 0x516   : > { %v8130_v54 = vpop.f32.mrf.mxu1  ;;  %v7709_v25 = vpop.f32.mrf.mxu0 }
 0x517   : > { %v19108_v62 = vadd.f32 %v8106_v9, %v7708_v47 }
 0x518   : > { %10572 = vmatmul.mubr.msk.f32.gmra.mxu1 %vm22238_vm12, %v22125_v24  ;;  %10504 = vmatmul.mubr.msk.f32.gmra.mxu0 %vm22239_vm0, %v22125_v24  ;;  %v8139_v18 = vpop.f32.mrf.mxu1  ;;  %vm22246_vm12 = vcmp.eq.s32.totalorder %v22126_v27, %v22245_v34  ;;  %vm22247_vm0 = vcmp.eq.s32.totalorder %v22126_v27, %v22235_v13 }
 0x519   : > { %10573 = vmatprep.mubr.msk.f32.mxu1 %vm22241_vm13, %v22125_v24  ;;  %10505 = vmatprep.mubr.msk.f32.mxu0 %vm22242_vm2, %v22125_v24  ;;  %v7716_v46 = vpop.f32.mrf.mxu0  ;;  %vm22248_vm13 = vcmp.eq.s32.totalorder %v21538_v35, %v22245_v34  ;;  %vm22249_vm2 = vcmp.eq.s32.totalorder %v21538_v35, %v22235_v13 }
 0x51a   : > { %v7717_v10 = vadd.f32 %v7716_v46, %v18452_v2  ;;  %v8141_v23 = vpop.f32.mrf.mxu1 }
 0x51b   : > { %v7718_v17 = vpop.f32.mrf.mxu0 }
 0x51c   : > { %10574 = vmatmul.mubr.msk.f32.gmra.mxu1 %vm22243_vm11, %v22125_v24  ;;  %10506 = vmatmul.mubr.msk.f32.gmra.mxu0 %vm22244_vm7, %v22125_v24  ;;  %v19127_v63 = vadd.f32 %v8117_v61, %v7717_v10  ;;  %vm22251_vm11 = vcmp.eq.s32.totalorder %v22126_v27, %v22250_v26  ;;  %vm22252_vm7 = vcmp.eq.s32.totalorder %v22126_v27, %v22240_v5  ;;  %v22255_v17 = vld [vmem:[#allocation95_spill] sm:$0xff] }
 0x51d   : > { %10575 = vmatprep.mubr.msk.f32.mxu1 %vm22246_vm12, %v22125_v24  ;;  %10507 = vmatprep.mubr.msk.f32.mxu0 %vm22247_vm0, %v22125_v24  ;;  %v8150_v2 = vpop.f32.mrf.mxu1  ;;  %v7725_v9 = vpop.f32.mrf.mxu0  ;;  %vm22253_vm12 = vcmp.eq.s32.totalorder %v21538_v35, %v22250_v26  ;;  %vm22254_vm0 = vcmp.eq.s32.totalorder %v21538_v35, %v22240_v5 }
 0x51e   : > { %v7726_v47 = vadd.f32 %v7725_v9, %v18467_v48 }
 0x51f   : > { %v8152_v54 = vpop.f32.mrf.mxu1  ;;  %v7727_v25 = vpop.f32.mrf.mxu0 }
 0x520   : > { %10576 = vmatmul.mubr.msk.f32.gmra.mxu1 %vm22248_vm13, %v22125_v24  ;;  %10508 = vmatmul.mubr.msk.f32.gmra.mxu0 %vm22249_vm2, %v22125_v24  ;;  %v19146_v61 = vadd.f32 %v8128_v11, %v7726_v47  ;;  %vm22256_vm13 = vcmp.eq.s32.totalorder %v22126_v27, %v22255_v17  ;;  %vm22257_vm2 = vcmp.eq.s32.totalorder %v22126_v27, %v22245_v34 }
 0x521   : > { %10577 = vmatprep.mubr.msk.f32.mxu1 %vm22251_vm11, %v22125_v24  ;;  %10509 = vmatprep.mubr.msk.f32.mxu0 %vm22252_vm7, %v22125_v24  ;;  %v8161_v48 = vpop.f32.mrf.mxu1  ;;  %vm22258_vm11 = vcmp.eq.s32.totalorder %v21538_v35, %v22255_v17  ;;  %vm22259_vm7 = vcmp.eq.s32.totalorder %v21538_v35, %v22245_v34 }
 0x522   : > { %v7734_v46 = vpop.f32.mrf.mxu0 }
 0x523   : > { %v7735_v10 = vadd.f32 %v7734_v46, %v18484_v41  ;;  %v8163_v23 = vpop.f32.mrf.mxu1 }
 0x524   : > { %10578 = vmatmul.mubr.msk.f32.gmra.mxu1 %vm22253_vm12, %v22125_v24  ;;  %10510 = vmatmul.mubr.msk.f32.gmra.mxu0 %vm22254_vm0, %v22125_v24  ;;  %v7736_v13 = vpop.f32.mrf.mxu0  ;;  %vm22262_vm0 = vcmp.eq.s32.totalorder %v22126_v27, %v22250_v26  ;;  %v22265_v23 = vld [vmem:[#allocation101_spill] sm:$0xff] }
 0x525   : > { %10579 = vmatprep.mubr.msk.f32.mxu1 %vm22256_vm13, %v22125_v24  ;;  %10511 = vmatprep.mubr.msk.f32.mxu0 %vm22257_vm2, %v22125_v24  ;;  %v19165_v41 = vadd.f32 %v8139_v18, %v7735_v10  ;;  %v22260_v18 = vld [vmem:[#allocation217_spill] sm:$0xff]  ;;  %vm22264_vm2 = vcmp.eq.s32.totalorder %v21538_v35, %v22250_v26  ;;  %v22270_v26 = vld [vmem:[#allocation151_spill] sm:$0xff] }
 0x526   : > { %v8172_v11 = vpop.f32.mrf.mxu1  ;;  %v7743_v9 = vpop.f32.mrf.mxu0  ;;  %vm22261_vm12 = vcmp.eq.s32.totalorder %v22126_v27, %v22260_v18  ;;  %vm22263_vm13 = vcmp.eq.s32.totalorder %v21538_v35, %v22260_v18 }
 0x527   : > { %v7744_v47 = vadd.f32 %v7743_v9, %v18503_v43 }
 0x528   : > { %10580 = vmatmul.mubr.msk.f32.gmra.mxu1 %vm22258_vm11, %v22125_v24  ;;  %10512 = vmatmul.mubr.msk.f32.gmra.mxu0 %vm22259_vm7, %v22125_v24  ;;  %v8174_v5 = vpop.f32.mrf.mxu1  ;;  %v7745_v54 = vpop.f32.mrf.mxu0  ;;  %vm22266_vm11 = vcmp.eq.s32.totalorder %v22126_v27, %v22265_v23  ;;  %vm22267_vm7 = vcmp.eq.s32.totalorder %v22126_v27, %v22255_v17 }
 0x529   : > { %10581 = vmatprep.mubr.msk.f32.mxu1 %vm22261_vm12, %v22125_v24  ;;  %10513 = vmatprep.mubr.msk.f32.mxu0 %vm22262_vm0, %v22125_v24  ;;  %v19184_v43 = vadd.f32 %v8150_v2, %v7744_v47  ;;  %vm22268_vm12 = vcmp.eq.s32.totalorder %v21538_v35, %v22265_v23  ;;  %vm22269_vm0 = vcmp.eq.s32.totalorder %v21538_v35, %v22255_v17  ;;  %v22275_v17 = vld [vmem:[#allocation226_spill] sm:$0xff] }
 0x52a   : > { %v8183_v25 = vpop.f32.mrf.mxu1 }
 0x52b   : > { %v7752_v46 = vpop.f32.mrf.mxu0 }
 0x52c   : > { %10582 = vmatmul.mubr.msk.f32.gmra.mxu1 %vm22263_vm13, %v22125_v24  ;;  %10514 = vmatmul.mubr.msk.f32.gmra.mxu0 %vm22264_vm2, %v22125_v24  ;;  %v7753_v34 = vadd.f32 %v7752_v46, %v18520_v38  ;;  %v8185_v10 = vpop.f32.mrf.mxu1  ;;  %vm22271_vm13 = vcmp.eq.s32.totalorder %v22126_v27, %v22270_v26  ;;  %vm22272_vm2 = vcmp.eq.s32.totalorder %v22126_v27, %v22260_v18 }
 0x52d   : > { %10583 = vmatprep.mubr.msk.f32.mxu1 %vm22266_vm11, %v22125_v24  ;;  %10515 = vmatprep.mubr.msk.f32.mxu0 %vm22267_vm7, %v22125_v24  ;;  %v7754_v2 = vpop.f32.mrf.mxu0  ;;  %vm22273_vm11 = vcmp.eq.s32.totalorder %v21538_v35, %v22270_v26  ;;  %vm22274_vm7 = vcmp.eq.s32.totalorder %v21538_v35, %v22260_v18 }
 0x52e   : > { %v19203_v13 = vadd.f32 %v8161_v48, %v7753_v34 }
 0x52f   : > { %v8194_v9 = vpop.f32.mrf.mxu1  ;;  %v7761_v47 = vpop.f32.mrf.mxu0 }
 0x530   : > { %10584 = vmatmul.mubr.msk.f32.gmra.mxu1 %vm22268_vm12, %v22125_v24  ;;  %10516 = vmatmul.mubr.msk.f32.gmra.mxu0 %vm22269_vm0, %v22125_v24  ;;  %v7762_v38 = vadd.f32 %v7761_v47, %v18538_v40  ;;  %vm22276_vm12 = vcmp.eq.s32.totalorder %v22126_v27, %v22275_v17  ;;  %vm22277_vm0 = vcmp.eq.s32.totalorder %v22126_v27, %v22265_v23 }
 0x531   : > { %10585 = vmatprep.mubr.msk.f32.mxu1 %vm22271_vm13, %v22125_v24  ;;  %10517 = vmatprep.mubr.msk.f32.mxu0 %vm22272_vm2, %v22125_v24  ;;  %v8196_v48 = vpop.f32.mrf.mxu1  ;;  %v7763_v5 = vpop.f32.mrf.mxu0  ;;  %vm22278_vm13 = vcmp.eq.s32.totalorder %v21538_v35, %v22275_v17  ;;  %vm22279_vm2 = vcmp.eq.s32.totalorder %v21538_v35, %v22265_v23 }
 0x532   : > { %v19222_v54 = vadd.f32 %v8172_v11, %v7762_v38 }
 0x533   : > { %v8205_v46 = vpop.f32.mrf.mxu1 }
 0x534   : > { %10586 = vmatmul.mubr.msk.f32.gmra.mxu1 %vm22273_vm11, %v22125_v24  ;;  %10518 = vmatmul.mubr.msk.f32.gmra.mxu0 %vm22274_vm7, %v22125_v24  ;;  %v7770_v40 = vpop.f32.mrf.mxu0  ;;  %vm22280_vm11 = vcmp.eq.s32.totalorder %v22126_v27, %v22270_v26  ;;  %vm22281_vm7 = vcmp.eq.s32.totalorder %v21538_v35, %v22270_v26 }
 0x535   : > { %10587 = vmatprep.mubr.msk.f32.mxu1 %vm22276_vm12, %v22125_v24  ;;  %10519 = vmatprep.mubr.msk.f32.mxu0 %vm22277_vm0, %v22125_v24  ;;  %v7771_v11 = vadd.f32 %v7770_v40, %v18556_v6  ;;  %v8207_v34 = vpop.f32.mrf.mxu1  ;;  %vm22282_vm0 = vmmov %vm22278_vm13 }
 0x536   : > { %v7772_v10 = vpop.f32.mrf.mxu0 }
 0x537   : > { %v19241_v2 = vadd.f32 %v8183_v25, %v7771_v11 }
 0x538   : > { %10588 = vmatmul.mubr.msk.f32.gmra.mxu1 %vm22278_vm13, %v22125_v24  ;;  %10520 = vmatmul.mubr.msk.f32.gmra.mxu0 %vm22279_vm2, %v22125_v24  ;;  %v8216_v18 = vpop.f32.mrf.mxu1  ;;  %v7779_v47 = vpop.f32.mrf.mxu0  ;;  %vm22327_vm2 = vcmask 851712  }
 0x539   : > { %10521 = vmatprep.mubr.msk.f32.mxu0 %vm22280_vm11, %v22125_v24  ;;  %v7780_v6 = vadd.f32 %v7779_v47, %v18573_v14  ;;  %vm22328_vm11 = vmmov %vm22327_vm2 }
 0x53a   : > { %v8218_v25 = vpop.f32.mrf.mxu1  ;;  %v7781_v38 = vpop.f32.mrf.mxu0 }
 0x53b   : > { %v19256_v48 = vadd.f32 %v8194_v9, %v7780_v6 }
 0x53c   : > { %10522 = vmatmul.mubr.msk.f32.gmra.mxu0 %vm22281_vm7, %v22125_v24  ;;  %v8227_v23 = vpop.f32.mrf.mxu1  ;;  %vm9697_vm7 = vcmask 1040384  }
 0x53d   : > { %10523 = vmatprep.mubr.msk.f32.mxu0 %vm22276_vm12, %v22125_v24  ;;  %v7788_v5 = vpop.f32.mrf.mxu0 }
 0x53e   : > { %v7789_v40 = vadd.f32 %v7788_v5, %v18588_v60  ;;  %v8229_v11 = vpop.f32.mrf.mxu1 }
 0x53f   : > { %v7790_v14 = vpop.f32.mrf.mxu0 }
 0x540   : > { %10524 = vmatmul.mubr.msk.f32.gmra.mxu0 %vm22282_vm0, %v22125_v24  ;;  %v19271_v9 = vadd.f32 %v8205_v46, %v7789_v40 }
 0x541   : > { %v8238_v26 = vpop.f32.mrf.mxu1  ;;  %v7797_v34 = vpop.f32.mrf.mxu0 }
 0x542   : > { %v7798_v10 = vadd.f32 %v7797_v34, %v18605_v28 }
 0x543   : > { %v8240_v47 = vpop.f32.mrf.mxu1  ;;  %v7799_v6 = vpop.f32.mrf.mxu0 }
 0x544   : > { %v19274_v27 = vadd.f32 %v8216_v18, %v7798_v10 }
 0x545   : > { %v8249_v25 = vpop.f32.mrf.mxu1 }
 0x546   : > { %v7806_v38 = vpop.f32.mrf.mxu0 }
 0x547   : > { %v7807_v60 = vadd.f32 %v7806_v38, %v18625_v44  ;;  %v8251_v5 = vpop.f32.mrf.mxu1 }
 0x548   : > { %v7808_v11 = vpop.f32.mrf.mxu0 }
 0x549   : > { %v19277_v14 = vadd.f32 %v8227_v23, %v7807_v60 }
 0x54a   : > { %v8260_v35 = vpop.f32.mrf.mxu1  ;;  %v7815_v24 = vpop.f32.mrf.mxu0 }
 0x54b   : > { %v7816_v46 = vadd.f32 %v7815_v24, %v18650_v33 }
 0x54c   : > { %v8262_v17 = vpop.f32.mrf.mxu1  ;;  %v7817_v40 = vpop.f32.mrf.mxu0 }
 0x54d   : > { %v19280_v30 = vadd.f32 %v8238_v26, %v7816_v46 }
 0x54e   : > { %v8271_v28 = vpop.f32.mrf.mxu1  ;;  %v7824_v34 = vpop.f32.mrf.mxu0 }
 0x54f   : > { %v7825_v18 = vadd.f32 %v7824_v34, %v18674_v7 }
 0x550   : > { %v8273_v10 = vpop.f32.mrf.mxu1  ;;  %v7826_v47 = vpop.f32.mrf.mxu0 }
 0x551   : > { %v19283_v6 = vadd.f32 %v8249_v25, %v7825_v18 }
 0x552   : > { %v8282_v44 = vpop.f32.mrf.mxu1  ;;  %v7833_v38 = vpop.f32.mrf.mxu0 }
 0x553   : > { %v7834_v23 = vadd.f32 %v7833_v38, %v18696_v58 }
 0x554   : > { %v8284_v60 = vpop.f32.mrf.mxu1  ;;  %v7835_v5 = vpop.f32.mrf.mxu0 }
 0x555   : > { %v19286_v11 = vadd.f32 %v8260_v35, %v7834_v23 }
 0x556   : > { %v8293_v33 = vpop.f32.mrf.mxu1  ;;  %v7842_v24 = vpop.f32.mrf.mxu0 }
 0x557   : > { %v7843_v26 = vadd.f32 %v7842_v24, %v18714_v15 }
 0x558   : > { %v8295_v46 = vpop.f32.mrf.mxu1  ;;  %v7844_v17 = vpop.f32.mrf.mxu0 }
 0x559   : > { %v19289_v40 = vadd.f32 %v8271_v28, %v7843_v26 }
 0x55a   : > { %v8304_v7 = vpop.f32.mrf.mxu1  ;;  %v7851_v34 = vpop.f32.mrf.mxu0 }
 0x55b   : > { %v7852_v25 = vadd.f32 %v7851_v34, %v18732_v31 }
 0x55c   : > { %v8306_v18 = vpop.f32.mrf.mxu1  ;;  %v7853_v10 = vpop.f32.mrf.mxu0 }
 0x55d   : > { %v19292_v47 = vadd.f32 %v8282_v44, %v7852_v25 }
 0x55e   : > { %v8315_v58 = vpop.f32.mrf.mxu1  ;;  %v7860_v38 = vpop.f32.mrf.mxu0 }
 0x55f   : > { %v7861_v35 = vadd.f32 %v7860_v38, %v18753_v49 }
 0x560   : > { %v8317_v23 = vpop.f32.mrf.mxu1  ;;  %v7862_v60 = vpop.f32.mrf.mxu0 }
 0x561   : > { %v19295_v5 = vadd.f32 %v8293_v33, %v7861_v35 }
 0x562   : > { %v8326_v15 = vpop.f32.mrf.mxu1  ;;  %v7869_v24 = vpop.f32.mrf.mxu0 }
 0x563   : > { %v7870_v28 = vadd.f32 %v7869_v24, %v18773_v42 }
 0x564   : > { %v8328_v26 = vpop.f32.mrf.mxu1  ;;  %v7871_v46 = vpop.f32.mrf.mxu0 }
 0x565   : > { %v19298_v17 = vadd.f32 %v8304_v7, %v7870_v28 }
 0x566   : > { %v8337_v31 = vpop.f32.mrf.mxu1  ;;  %v7878_v34 = vpop.f32.mrf.mxu0 }
 0x567   : > { %v7879_v44 = vadd.f32 %v7878_v34, %v18793_v51 }
 0x568   : > { %v8339_v25 = vpop.f32.mrf.mxu1  ;;  %v7880_v18 = vpop.f32.mrf.mxu0 }
 0x569   : > { %v19301_v10 = vadd.f32 %v8315_v58, %v7879_v44 }
 0x56a   : > { %v8348_v49 = vpop.f32.mrf.mxu1  ;;  %v7887_v38 = vpop.f32.mrf.mxu0 }
 0x56b   : > { %v7888_v33 = vadd.f32 %v7887_v38, %v18813_v20 }
 0x56c   : > { %v8350_v35 = vpop.f32.mrf.mxu1  ;;  %v7889_v23 = vpop.f32.mrf.mxu0 }
 0x56d   : > { %v19304_v60 = vadd.f32 %v8326_v15, %v7888_v33 }
 0x56e   : > { %v8359_v42 = vpop.f32.mrf.mxu1  ;;  %v7896_v24 = vpop.f32.mrf.mxu0 }
 0x56f   : > { %v7897_v7 = vadd.f32 %v7896_v24, %v18841_v29 }
 0x570   : > { %v8361_v28 = vpop.f32.mrf.mxu1  ;;  %v7898_v26 = vpop.f32.mrf.mxu0 }
 0x571   : > { %v19307_v46 = vadd.f32 %v8337_v31, %v7897_v7 }
 0x572   : > { %v8370_v51 = vpop.f32.mrf.mxu1 }
 0x573   : > { %v7905_v34 = vpop.f32.mrf.mxu0 }
 0x574   : > { %v7906_v58 = vadd.f32 %v7905_v34, %v18869_v22  ;;  %v8372_v44 = vpop.f32.mrf.mxu1 }
 0x575   : > { %v7907_v25 = vpop.f32.mrf.mxu0 }
 0x576   : > { %v19310_v18 = vadd.f32 %v8348_v49, %v7906_v58 }
 0x577   : > { %v8381_v20 = vpop.f32.mrf.mxu1 }
 0x578   : > { %v7914_v38 = vpop.f32.mrf.mxu0 }
 0x579   : > { %v7915_v15 = vadd.f32 %v7914_v38, %v18890_v0  ;;  %v8383_v33 = vpop.f32.mrf.mxu1 }
 0x57a   : > { %v7916_v35 = vpop.f32.mrf.mxu0 }
 0x57b   : > { %v19313_v23 = vadd.f32 %v8359_v42, %v7915_v15 }
 0x57c   : > { %v8870_v29 = vpop.f32.mrf.mxu1  ;;  %v7923_v24 = vpop.f32.mrf.mxu0 }
 0x57d   : > { %v7924_v31 = vadd.f32 %v7923_v24, %v18918_v3 }
 0x57e   : > { %v8872_v7 = vpop.f32.mrf.mxu1  ;;  %v7925_v28 = vpop.f32.mrf.mxu0 }
 0x57f   : > { %v19316_v26 = vadd.f32 %v8370_v51, %v7924_v31  ;;  %v22283_v31 = vld [vmem:[#allocation209_spill] sm:$0xff] }
 0x580   : > { %v8877_v22 = vpop.f32.mrf.mxu1  ;;  %v7932_v34 = vpop.f32.mrf.mxu0 }
 0x581   : > { %v7933_v49 = vadd.f32 %v7932_v34, %v18938_v56 }
 0x582   : > { %v8879_v58 = vpop.f32.mrf.mxu1  ;;  %v7934_v44 = vpop.f32.mrf.mxu0 }
 0x583   : > { %v19319_v25 = vadd.f32 %v8381_v20, %v7933_v49  ;;  %v22284_v58 = vld [vmem:[#allocation211_spill] sm:$0xff] }
 0x584   : > { %v8884_v0 = vpop.f32.mrf.mxu1  ;;  %v8549_v38 = vpop.f32.mrf.mxu0 }
 0x585   : > { %v8550_v42 = vadd.f32 %v8549_v38, %v18986_v4 }
 0x586   : > { %v8886_v15 = vpop.f32.mrf.mxu1  ;;  %v8551_v33 = vpop.f32.mrf.mxu0 }
 0x587   : > { %v8871_v35 = vadd.f32 %v8870_v29, %v8550_v42  ;;  %v22285_v33 = vld [vmem:[#allocation212_spill] sm:$0xff] }
 0x588   : > { %v8891_v3 = vpop.f32.mrf.mxu1  ;;  %v8556_v24 = vpop.f32.mrf.mxu0 }
 0x589   : > { %v8557_v51 = vadd.f32 %v8556_v24, %v19007_v1  ;;  %v9187_v7 = vmul.f32 %v8871_v35, %v22283_v31 }
 0x58a   : > { %v8893_v28 = vpop.f32.mrf.mxu1  ;;  %v8558_v45 = vpop.f32.mrf.mxu0 }
 0x58b   : > { %v8878_v56 = vadd.f32 %v8877_v22, %v8557_v51  ;;  %9219 = vadd.xlane.f32.xlu0 %v9187_v7  ;;  %v22286_v7 = vld [vmem:[#allocation214_spill] sm:$0xff] }
 0x58c   : > { %v8898_v34 = vpop.f32.mrf.mxu1  ;;  %v8563_v20 = vpop.f32.mrf.mxu0 }
 0x58d   : > { %v8564_v49 = vadd.f32 %v8563_v20, %v19027_v32  ;;  %v9188_v44 = vmul.f32 %v8878_v56, %v22284_v58 }
 0x58e   : > { %v8900_v4 = vpop.f32.mrf.mxu1  ;;  %v8565_v38 = vpop.f32.mrf.mxu0 }
 0x58f   : > { %v8885_v15 = vadd.f32 %v8884_v0, %v8564_v49  ;;  %9221 = vadd.xlane.f32.xlu1 %v9188_v44  ;;  %v22287_v44 = vld [vmem:[#allocation218_spill] sm:$0xff] }
 0x590   : > { %v8905_v29 = vpop.f32.mrf.mxu1  ;;  %v8570_v42 = vpop.f32.mrf.mxu0 }
 0x591   : > { %v8571_v1 = vadd.f32 %v8570_v42, %v19047_v39  ;;  %v9189_v35 = vmul.f32 %v8885_v15, %v22285_v33  ;;  %v22288_v33 = vld [vmem:[#allocation221_spill] sm:$0xff] }
 0x592   : > { %v8907_v24 = vpop.f32.mrf.mxu1  ;;  %v8572_v45 = vpop.f32.mrf.mxu0 }
 0x593   : > { %v8892_v22 = vadd.f32 %v8891_v3, %v8571_v1  ;;  %9223 = vadd.xlane.f32.xlu0 %v9189_v35 }
 0x594   : > { %v8912_v51 = vpop.f32.mrf.mxu1  ;;  %v8577_v31 = vpop.f32.mrf.mxu0 }
 0x595   : > { %v8578_v32 = vadd.f32 %v8577_v31, %v19071_v21  ;;  %v9190_v28 = vmul.f32 %v8892_v22, %v22286_v7 }
 0x596   : > { %v8914_v56 = vpop.f32.mrf.mxu1  ;;  %v8579_v20 = vpop.f32.mrf.mxu0 }
 0x597   : > { %v8899_v0 = vadd.f32 %v8898_v34, %v8578_v32  ;;  %9225 = vadd.xlane.f32.xlu1 %v9190_v28  ;;  %v22289_v32 = vld [vmem:[#allocation222_spill] sm:$0xff] }
 0x598   : > { %v8919_v49 = vpop.f32.mrf.mxu1  ;;  %v8584_v58 = vpop.f32.mrf.mxu0 }
 0x599   : > { %v8585_v39 = vadd.f32 %v8584_v58, %v19090_v55  ;;  %v9191_v4 = vmul.f32 %v8899_v0, %v22287_v44  ;;  %v22290_v58 = vld [vmem:[#allocation224_spill] sm:$0xff] }
 0x59a   : > { %v8921_v38 = vpop.f32.mrf.mxu1  ;;  %v8586_v15 = vpop.f32.mrf.mxu0 }
 0x59b   : > { %v8906_v3 = vadd.f32 %v8905_v29, %v8585_v39  ;;  %9227 = vadd.xlane.f32.xlu0 %v9191_v4 }
 0x59c   : > { %v8926_v42 = vpop.f32.mrf.mxu1  ;;  %v8591_v1 = vpop.f32.mrf.mxu0 }
 0x59d   : > { %v8592_v21 = vadd.f32 %v8591_v1, %v19108_v62  ;;  %v9192_v35 = vmul.f32 %v8906_v3, %v22288_v33  ;;  %v22291_v3 = vld [vmem:[#allocation227_spill] sm:$0xff] }
 0x59e   : > { %v8928_v24 = vpop.f32.mrf.mxu1  ;;  %v8593_v45 = vpop.f32.mrf.mxu0 }
 0x59f   : > { %v8913_v34 = vadd.f32 %v8912_v51, %v8592_v21  ;;  %9229 = vadd.xlane.f32.xlu1 %v9192_v35  ;;  %v22292_v45 = vld [vmem:[#allocation228_spill] sm:$0xff] }
 0x5a0   : > { %v8933_v22 = vpop.f32.mrf.mxu1  ;;  %v8598_v31 = vpop.f32.mrf.mxu0 }
 0x5a1   : > { %v8599_v55 = vadd.f32 %v8598_v31, %v19127_v63  ;;  %v9193_v7 = vmul.f32 %v8913_v34, %v22289_v32 }
 0x5a2   : > { %v8935_v28 = vpop.f32.mrf.mxu1  ;;  %v8600_v56 = vpop.f32.mrf.mxu0 }
 0x5a3   : > { %v8920_v29 = vadd.f32 %v8919_v49, %v8599_v55  ;;  %9231 = vadd.xlane.f32.xlu0 %v9193_v7  ;;  %v22293_v28 = vld [vmem:[#allocation229_spill] sm:$0xff] }
 0x5a4   : > { %v8940_v20 = vpop.f32.mrf.mxu1  ;;  %v8605_v0 = vpop.f32.mrf.mxu0 }
 0x5a5   : > { %v8606_v62 = vadd.f32 %v8605_v0, %v19146_v61  ;;  %v9194_v39 = vmul.f32 %v8920_v29, %v22290_v58 }
 0x5a6   : > { %v8942_v44 = vpop.f32.mrf.mxu1  ;;  %v8607_v4 = vpop.f32.mrf.mxu0 }
 0x5a7   : > { %v8927_v51 = vadd.f32 %v8926_v42, %v8606_v62  ;;  %9233 = vadd.xlane.f32.xlu1 %v9194_v39  ;;  %v22294_v39 = vld [vmem:[#allocation230_spill] sm:$0xff] }
 0x5a8   : > { %v8947_v38 = vpop.f32.mrf.mxu1  ;;  %v8612_v15 = vpop.f32.mrf.mxu0 }
 0x5a9   : > { %v8613_v63 = vadd.f32 %v8612_v15, %v19165_v41  ;;  %v9195_v1 = vmul.f32 %v8927_v51, %v22291_v3  ;;  %v22295_v3 = vld [vmem:[#allocation155_spill] sm:$0xff] }
 0x5aa   : > { %v8949_v21 = vpop.f32.mrf.mxu1  ;;  %v8614_v33 = vpop.f32.mrf.mxu0 }
 0x5ab   : > { %v8934_v49 = vadd.f32 %v8933_v22, %v8613_v63  ;;  %9235 = vadd.xlane.f32.xlu0 %v9195_v1 }
 0x5ac   : > { %v8954_v35 = vpop.f32.mrf.mxu1  ;;  %v8619_v24 = vpop.f32.mrf.mxu0 }
 0x5ad   : > { %v8620_v61 = vadd.f32 %v8619_v24, %v19184_v43  ;;  %v9196_v34 = vmul.f32 %v8934_v49, %v22292_v45 }
 0x5ae   : > { %v8956_v31 = vpop.f32.mrf.mxu1  ;;  %v8621_v55 = vpop.f32.mrf.mxu0 }
 0x5af   : > { %v8941_v42 = vadd.f32 %v8940_v20, %v8620_v61  ;;  %9237 = vadd.xlane.f32.xlu1 %v9196_v34  ;;  %v22296_v61 = vld [vmem:[#allocation158_spill] sm:$0xff] }
 0x5b0   : > { %v8961_v32 = vpop.f32.mrf.mxu1  ;;  %v8626_v7 = vpop.f32.mrf.mxu0 }
 0x5b1   : > { %v8627_v41 = vadd.f32 %v8626_v7, %v19203_v13  ;;  %v9197_v56 = vmul.f32 %v8941_v42, %v22293_v28 }
 0x5b2   : > { %v8963_v29 = vpop.f32.mrf.mxu1  ;;  %v8628_v0 = vpop.f32.mrf.mxu0 }
 0x5b3   : > { %v8948_v22 = vadd.f32 %v8947_v38, %v8627_v41  ;;  %9239 = vadd.xlane.f32.xlu0 %v9197_v56 }
 0x5b4   : > { %v8968_v62 = vpop.f32.mrf.mxu1  ;;  %v8633_v58 = vpop.f32.mrf.mxu0 }
 0x5b5   : > { %v8634_v43 = vadd.f32 %v8633_v58, %v19222_v54  ;;  %v9198_v44 = vmul.f32 %v8948_v22, %v22294_v39 }
 0x5b6   : > { %v8970_v4 = vpop.f32.mrf.mxu1  ;;  %v8635_v51 = vpop.f32.mrf.mxu0 }
 0x5b7   : > { %v8955_v20 = vadd.f32 %v8954_v35, %v8634_v43  ;;  %9241 = vadd.xlane.f32.xlu1 %v9198_v44 }
 0x5b8   : > { %v8975_v15 = vpop.f32.mrf.mxu1  ;;  %v8640_v63 = vpop.f32.mrf.mxu0 }
 0x5b9   : > { %v8641_v13 = vadd.f32 %v8640_v63, %v19241_v2  ;;  %v9199_v1 = vmul.f32 %v8955_v20, %v22295_v3 }
 0x5ba   : > { %v8977_v21 = vpop.f32.mrf.mxu1  ;;  %v8642_v33 = vpop.f32.mrf.mxu0 }
 0x5bb   : > { %v8962_v38 = vadd.f32 %v8961_v32, %v8641_v13  ;;  %9243 = vadd.xlane.f32.xlu0 %v9199_v1 }
 0x5bc   : > { %v8982_v49 = vpop.f32.mrf.mxu1  ;;  %v8647_v24 = vpop.f32.mrf.mxu0 }
 0x5bd   : > { %v8648_v54 = vadd.f32 %v8647_v24, %v19256_v48  ;;  %v9200_v45 = vmul.f32 %v8962_v38, %v22296_v61 }
 0x5be   : > { %v8984_v34 = vpop.f32.mrf.mxu1  ;;  %v8649_v31 = vpop.f32.mrf.mxu0 }
 0x5bf   : > { %v8969_v35 = vadd.f32 %v8968_v62, %v8648_v54  ;;  %9245 = vadd.xlane.f32.xlu1 %v9200_v45 }
 0x5c0   : > { %v8989_v55 = vpop.f32.mrf.mxu1  ;;  %v8654_v42 = vpop.f32.mrf.mxu0 }
 0x5c1   : > { %v8655_v2 = vadd.f32 %v8654_v42, %v19271_v9  ;;  %v9201_v7 = vmul.f32 %v8969_v35, %v21929_v36 }
 0x5c2   : > { %v8991_v41 = vpop.f32.mrf.mxu1  ;;  %v8656_v28 = vpop.f32.mrf.mxu0 }
 0x5c3   : > { %v19352_v32 = vadd.f32 %v8975_v15, %v8655_v2  ;;  %9247 = vadd.xlane.f32.xlu0 %v9201_v7  ;;  %v22297_v28 = vld [vmem:[#allocation173_spill] sm:$0xff] }
 0x5c4   : > { %v8996_v56 = vpop.f32.mrf.mxu1  ;;  %v8661_v29 = vpop.f32.mrf.mxu0 }
 0x5c5   : > { %v8662_v48 = vadd.f32 %v8661_v29, %v19274_v27 }
 0x5c6   : > { %v8998_v0 = vpop.f32.mrf.mxu1  ;;  %v8663_v22 = vpop.f32.mrf.mxu0 }
 0x5c7   : > { %v8983_v58 = vadd.f32 %v8982_v49, %v8662_v48 }
 0x5c8   : > { %v9003_v62 = vpop.f32.mrf.mxu1  ;;  %v8668_v43 = vpop.f32.mrf.mxu0 }
 0x5c9   : > { %v8669_v39 = vadd.f32 %v8668_v43, %v19277_v14  ;;  %v9203_v9 = vmul.f32 %v8983_v58, %v21946_v8  ;;  %v22298_v58 = vld [vmem:[#allocation171_spill] sm:$0xff] }
 0x5ca   : > { %v9005_v44 = vpop.f32.mrf.mxu1  ;;  %v8670_v36 = vpop.f32.mrf.mxu0 }
 0x5cb   : > { %v8990_v4 = vadd.f32 %v8989_v55, %v8669_v39  ;;  %9251 = vadd.xlane.f32.xlu0 %v9203_v9  ;;  %v22299_v36 = vld [vmem:[#allocation177_spill] sm:$0xff] }
 0x5cc   : > { %v9010_v51 = vpop.f32.mrf.mxu1  ;;  %v8675_v20 = vpop.f32.mrf.mxu0 }
 0x5cd   : > { %v8676_v15 = vadd.f32 %v8675_v20, %v19280_v30  ;;  %v9204_v63 = vmul.f32 %v8990_v4, %v21951_v53 }
 0x5ce   : > { %v9012_v27 = vpop.f32.mrf.mxu1  ;;  %v8677_v13 = vpop.f32.mrf.mxu0 }
 0x5cf   : > { %v8997_v3 = vadd.f32 %v8996_v56, %v8676_v15  ;;  %9253 = vadd.xlane.f32.xlu1 %v9204_v63  ;;  %v22300_v13 = vld [vmem:[#allocation172_spill] sm:$0xff] }
 0x5d0   : > { %v9017_v1 = vpop.f32.mrf.mxu1  ;;  %v8682_v21 = vpop.f32.mrf.mxu0 }
 0x5d1   : > { %v8683_v14 = vadd.f32 %v8682_v21, %v19283_v6  ;;  %v9205_v8 = vmul.f32 %v8997_v3, %v21958_v16 }
 0x5d2   : > { %v9019_v33 = vpop.f32.mrf.mxu1  ;;  %v8684_v38 = vpop.f32.mrf.mxu0 }
 0x5d3   : > { %v9004_v49 = vadd.f32 %v9003_v62, %v8683_v14  ;;  %9255 = vadd.xlane.f32.xlu1 %v9205_v8  ;;  %v22301_v38 = vld [vmem:[#allocation174_spill] sm:$0xff] }
 0x5d4   : > { %v9024_v24 = vpop.f32.mrf.mxu1  ;;  %v8689_v54 = vpop.f32.mrf.mxu0 }
 0x5d5   : > { %v8690_v30 = vadd.f32 %v8689_v54, %v19286_v11  ;;  %v9206_v53 = vmul.f32 %v9004_v49, %v21964_v52 }
 0x5d6   : > { %v9026_v61 = vpop.f32.mrf.mxu1  ;;  %v8691_v45 = vpop.f32.mrf.mxu0 }
 0x5d7   : > { %v9011_v34 = vadd.f32 %v9010_v51, %v8690_v30  ;;  %9257 = vadd.xlane.f32.xlu0 %v9206_v53  ;;  %v22302_v45 = vld [vmem:[#allocation182_spill] sm:$0xff] }
 0x5d8   : > { %v9031_v31 = vpop.f32.mrf.mxu1  ;;  %v8696_v35 = vpop.f32.mrf.mxu0 }
 0x5d9   : > { %v8697_v6 = vadd.f32 %v8696_v35, %v19289_v40  ;;  %v9207_v16 = vmul.f32 %v9011_v34, %v21971_v59 }
 0x5da   : > { %v9033_v55 = vpop.f32.mrf.mxu1  ;;  %v8698_v42 = vpop.f32.mrf.mxu0 }
 0x5db   : > { %v9018_v2 = vadd.f32 %v9017_v1, %v8697_v6  ;;  %9259 = vadd.xlane.f32.xlu1 %v9207_v16  ;;  %v22303_v42 = vld [vmem:[#allocation176_spill] sm:$0xff] }
 0x5dc   : > { %v9038_v7 = vpop.f32.mrf.mxu1  ;;  %v8703_v41 = vpop.f32.mrf.mxu0 }
 0x5dd   : > { %v8704_v11 = vadd.f32 %v8703_v41, %v19292_v47  ;;  %v9208_v52 = vmul.f32 %v9018_v2, %v22297_v28 }
 0x5de   : > { %v9040_v56 = vpop.f32.mrf.mxu1  ;;  %v8705_v29 = vpop.f32.mrf.mxu0 }
 0x5df   : > { %v9025_v48 = vadd.f32 %v9024_v24, %v8704_v11  ;;  %9261 = vadd.xlane.f32.xlu0 %v9208_v52  ;;  %v22304_v56 = vld [vmem:[#allocation178_spill] sm:$0xff] }
 0x5e0   : > { %v9045_v0 = vpop.f32.mrf.mxu1  ;;  %v8710_v22 = vpop.f32.mrf.mxu0 }
 0x5e1   : > { %v8711_v40 = vadd.f32 %v8710_v22, %v19295_v5  ;;  %v9209_v59 = vmul.f32 %v9025_v48, %v22298_v58 }
 0x5e2   : > { %v9047_v62 = vpop.f32.mrf.mxu1  ;;  %v8712_v43 = vpop.f32.mrf.mxu0 }
 0x5e3   : > { %v9032_v39 = vadd.f32 %v9031_v31, %v8711_v40  ;;  %9263 = vadd.xlane.f32.xlu1 %v9209_v59 }
 0x5e4   : > { %v9052_v9 = vpop.f32.mrf.mxu1  ;;  %v8717_v44 = vpop.f32.mrf.mxu0 }
 0x5e5   : > { %v8718_v47 = vadd.f32 %v8717_v44, %v19298_v17  ;;  %v9210_v4 = vmul.f32 %v9032_v39, %v22299_v36  ;;  %v22306_v44 = vld [vmem:[#allocation180_spill] sm:$0xff] }
 0x5e6   : > { %v9054_v51 = vpop.f32.mrf.mxu1  ;;  %v8719_v20 = vpop.f32.mrf.mxu0 }
 0x5e7   : > { %v9039_v15 = vadd.f32 %v9038_v7, %v8718_v47  ;;  %9265 = vadd.xlane.f32.xlu0 %v9210_v4  ;;  %v22307_v4 = vld [vmem:[#allocation163_spill] sm:$0xff]  ;;  %v22308_v20 = vld [vmem:[#allocation181_spill] sm:$0xff] }
 0x5e8   : > { %v9059_v63 = vpop.f32.mrf.mxu1  ;;  %v8724_v27 = vpop.f32.mrf.mxu0  ;;  %v9202_v51 = vmul.f32 %v19352_v32, %v22307_v4 }
 0x5e9   : > { %v8725_v5 = vadd.f32 %v8724_v27, %v19301_v10  ;;  %v9211_v3 = vmul.f32 %v9039_v15, %v22300_v13 }
 0x5ea   : > { %v9061_v1 = vpop.f32.mrf.mxu1  ;;  %v8726_v21 = vpop.f32.mrf.mxu0 }
 0x5eb   : > { %v9046_v14 = vadd.f32 %v9045_v0, %v8725_v5  ;;  %9267 = vadd.xlane.f32.xlu1 %v9211_v3 }
 0x5ec   : > { %v9066_v8 = vpop.f32.mrf.mxu1  ;;  %v8731_v33 = vpop.f32.mrf.mxu0 }
 0x5ed   : > { %v8732_v17 = vadd.f32 %v8731_v33, %v19304_v60  ;;  %v9212_v49 = vmul.f32 %v9046_v14, %v22301_v38 }
 0x5ee   : > { %v9068_v24 = vpop.f32.mrf.mxu1  ;;  %v8733_v54 = vpop.f32.mrf.mxu0 }
 0x5ef   : > { %v9053_v30 = vadd.f32 %v9052_v9, %v8732_v17  ;;  %9269 = vadd.xlane.f32.xlu0 %v9212_v49 }
 0x5f0   : > { %v9073_v53 = vpop.f32.mrf.mxu1  ;;  %v8738_v61 = vpop.f32.mrf.mxu0 }
 0x5f1   : > { %v8739_v10 = vadd.f32 %v8738_v61, %v19307_v46  ;;  %v9213_v34 = vmul.f32 %v9053_v30, %v22302_v45 }
 0x5f2   : > { %v9075_v31 = vpop.f32.mrf.mxu1  ;;  %v8740_v35 = vpop.f32.mrf.mxu0 }
 0x5f3   : > { %v9060_v6 = vadd.f32 %v9059_v63, %v8739_v10  ;;  %9271 = vadd.xlane.f32.xlu1 %v9213_v34 }
 0x5f4   : > { %v9080_v16 = vpop.f32.mrf.mxu1  ;;  %v8745_v55 = vpop.f32.mrf.mxu0 }
 0x5f5   : > { %v8746_v60 = vadd.f32 %v8745_v55, %v19310_v18  ;;  %v9214_v2 = vmul.f32 %v9060_v6, %v22303_v42  ;;  %v22305_v18 = vld [vmem:[#allocation186_spill] sm:$0xff]  ;;  %v22309_v6 = vld [vmem:[#allocation157_spill] sm:$0xff] }
 0x5f6   : > { %v9082_v7 = vpop.f32.mrf.mxu1  ;;  %v8747_v41 = vpop.f32.mrf.mxu0  ;;  %v22310_v42 = vld [vmem:[#allocation117_spill] sm:$0xff] }
 0x5f7   : > { %v9067_v11 = vadd.f32 %v9066_v8, %v8746_v60  ;;  %9273 = vadd.xlane.f32.xlu0 %v9214_v2  ;;  %v22311_v7 = vld [vmem:[#allocation51_spill] sm:$0xff] }
 0x5f8   : > { %v9087_v28 = vpop.f32.mrf.mxu1  ;;  %v8752_v52 = vpop.f32.mrf.mxu0 }
 0x5f9   : > { %v8753_v46 = vadd.f32 %v8752_v52, %v19313_v23  ;;  %v9215_v29 = vmul.f32 %v9067_v11, %v22304_v56  ;;  %v22312_v52 = vld [vmem:[#allocation60_spill] sm:$0xff] }
 0x5fa   : > { %v9089_v48 = vpop.f32.mrf.mxu1  ;;  %v8754_v0 = vpop.f32.mrf.mxu0 }
 0x5fb   : > { %v9074_v22 = vadd.f32 %v9073_v53, %v8753_v46  ;;  %9275 = vadd.xlane.f32.xlu1 %v9215_v29  ;;  %v22313_v48 = vld [vmem:[#allocation7_spill] sm:$0xff] }
 0x5fc   : > { %v8759_v40 = vpop.f32.mrf.mxu0 }
 0x5fd   : > { %v8760_v58 = vadd.f32 %v8759_v40, %v19316_v26  ;;  %v9216_v59 = vmul.f32 %v9074_v22, %v22305_v18  ;;  %v22314_v18 = vld [vmem:[#allocation67_spill] sm:$0xff] }
 0x5fe   : > { %v8761_v62 = vpop.f32.mrf.mxu0 }
 0x5ff   : > { %v9081_v43 = vadd.f32 %v9080_v16, %v8760_v58  ;;  %9277 = vadd.xlane.f32.xlu0 %v9216_v59 }
 0x600   : > { %v8766_v39 = vpop.f32.mrf.mxu0 }
 0x601   : > { %v8767_v9 = vadd.f32 %v8766_v39, %v19319_v25  ;;  %v9217_v47 = vmul.f32 %v9081_v43, %v22306_v44  ;;  %v22315_v44 = vld [vmem:[#allocation10_spill] sm:$0xff] }
 0x602   : > { %v8768_v23 = vpop.f32.mrf.mxu0 }
 0x603   : > { %v9088_v36 = vadd.f32 %v9087_v28, %v8767_v9  ;;  %9279 = vadd.xlane.f32.xlu1 %v9217_v47 }
 0x605   : > { %v9218_v15 = vmul.f32 %v9088_v36, %v22308_v20 }
 0x607   : > { %9249 = vadd.xlane.f32.xlu1 %v9202_v51  ;;  %9281 = vadd.xlane.f32.xlu0 %v9218_v15  ;;  %v22316_v51 = vld [vmem:[#allocation21_spill] sm:$0xff] }
 0x614   : > { %v9220_v26 = vpop.xlane.xlu0 %9219 }
 0x615   : > { %v9540_v2 = vrot.slane %v9220_v26, %v22310_v42 }
 0x618   : > { %v9222_v63 = vpop.xlane.xlu1 %9221 }
 0x619   : > { %v9544_v31 = vrot.slane %v9222_v63, %v18396_v50 }
 0x61c   : > { %v9224_v27 = vpop.xlane.xlu0 %9223 }
 0x61d   : > { %v9549_v16 = vrot.slane %v9224_v27, %v22309_v6 }
 0x620   : > { %v9226_v5 = vpop.xlane.xlu1 %9225 }
 0x621   : > { %v9554_v41 = vrot.slane %v9226_v5, %v22311_v7  ;;  %v22317_v5 = vld [vmem:[#allocation12_spill] sm:$0xff] }
 0x624   : > { %v9228_v13 = vpop.xlane.xlu0 %9227 }
 0x625   : > { %v9559_v46 = vrot.slane %v9228_v13, %v22312_v52 }
 0x628   : > { %v9230_v3 = vpop.xlane.xlu1 %9229 }
 0x629   : > { %v9564_v0 = vrot.slane %v9230_v3, %v22313_v48 }
 0x62c   : > { %v9232_v1 = vpop.xlane.xlu0 %9231 }
 0x62d   : > { %v9569_v59 = vrot.slane %v9232_v1, %v22314_v18 }
 0x630   : > { %v9234_v25 = vpop.xlane.xlu1 %9233 }
 0x631   : > { %v9574_v47 = vrot.slane %v9234_v25, %v22315_v44 }
 0x634   : > { %v9236_v21 = vpop.xlane.xlu0 %9235 }
 0x635   : > { %v9579_v20 = vrot.slane %v9236_v21, %v22316_v51 }
 0x638   : > { %v19388_v14 = vpop.xlane.xlu1 %9237 }
 0x639   : > { %v9584_v13 = vrot.slane %v19388_v14, %v22317_v5 }
 0x63c   : > { %v19390_v8 = vpop.xlane.xlu0 %9239 }
 0x640   : > { %v19392_v33 = vpop.xlane.xlu1 %9241 }
 0x641   : > { %v9594_v14 = vrot.slane %v19392_v33, %v18591_v12 }
 0x644   : > { %v19394_v32 = vpop.xlane.xlu0 %9243 }
 0x648   : > { %v19396_v17 = vpop.xlane.xlu1 %9245 }
 0x649   : > { %v9604_v33 = vrot.slane %v19396_v17, %v18631_v19 }
 0x64c   : > { %v19398_v38 = vpop.xlane.xlu0 %9247 }
 0x654   : > { %v9252_v24 = vpop.xlane.xlu0 %9251 }
 0x655   : > { %v9619_v11 = vrot.slane %v9252_v24, %v22310_v42 }
 0x658   : > { %v9254_v49 = vpop.xlane.xlu1 %9253 }
 0x659   : > { %v9623_v35 = vrot.slane %v9254_v49, %v18396_v50  ;;  %v9545_v50 = vsel %vm9324_vm4, %v9544_v31, %v9540_v2  ;;  %v22318_v49 = vld [vmem:[#allocation184_spill] sm:$0xff] }
 0x65a   : > { %v9550_v58 = vsel %vm9331_vm14, %v9549_v16, %v9545_v50  ;;  %v9589_v21 = vrot.slane %v19390_v8, %v22318_v49 }
 0x65b   : > { %v9624_v22 = vsel %vm9324_vm4, %v9623_v35, %v9619_v11  ;;  %v9555_v9 = vsel %vm9338_vm10, %v9554_v41, %v9550_v58 }
 0x65c   : > { %v9256_v54 = vpop.xlane.xlu1 %9255  ;;  %v9560_v4 = vsel %vm9345_vm3, %v9559_v46, %v9555_v9 }
 0x65d   : > { %v9628_v55 = vrot.slane %v9256_v54, %v22309_v6  ;;  %v9565_v27 = vsel %vm9352_vm1, %v9564_v0, %v9560_v4 }
 0x65e   : > { %v9570_v25 = vsel %vm9359_vm5, %v9569_v59, %v9565_v27 }
 0x65f   : > { %v9629_v62 = vsel %vm9331_vm14, %v9628_v55, %v9624_v22  ;;  %vm22319_vm14 = vcmask 589312   ;;  %v22331_v22 = vld [vmem:[#allocation86_spill] sm:$0xff] }
 0x660   : > { %v9258_v30 = vpop.xlane.xlu0 %9257  ;;  %vm22320_vm4 = vmmov %vm22319_vm14 }
 0x661   : > { %v9633_v28 = vrot.slane %v9258_v30, %v22311_v7 }
 0x663   : > { %v9634_v23 = vsel %vm9338_vm10, %v9633_v28, %v9629_v62  ;;  %vm22321_vm10 = vcmask 654912   ;;  %v22329_v28 = vld [vmem:[#allocation14_spill] sm:$0xff] }
 0x664   : > { %v9260_v53 = vpop.xlane.xlu1 %9259 }
 0x665   : > { %v9638_v56 = vrot.slane %v9260_v53, %v22312_v52  ;;  %v9575_v53 = vsel %vm9366_vm15, %v9574_v47, %v9570_v25 }
 0x667   : > { %v9639_v15 = vsel %vm9345_vm3, %v9638_v56, %v9634_v23 }
 0x668   : > { %v9262_v61 = vpop.xlane.xlu0 %9261 }
 0x669   : > { %v9643_v40 = vrot.slane %v9262_v61, %v22313_v48  ;;  %v22330_v48 = vld [vmem:[#allocation190_spill] sm:$0xff] }
 0x66b   : > { %v9644_v3 = vsel %vm9352_vm1, %v9643_v40, %v9639_v15  ;;  %vm22322_vm1 = vmmov %vm22321_vm10 }
 0x66c   : > { %v9264_v10 = vpop.xlane.xlu1 %9263 }
 0x66d   : > { %v9648_v43 = vrot.slane %v9264_v10, %v22314_v18 }
 0x66f   : > { %v9649_v24 = vsel %vm9359_vm5, %v9648_v43, %v9644_v3  ;;  %vm22325_vm5 = vcmask 786112  }
 0x670   : > { %v9266_v45 = vpop.xlane.xlu0 %9265  ;;  %vm22326_vm13 = vmmov %vm22325_vm5 }
 0x671   : > { %v9653_v36 = vrot.slane %v9266_v45, %v22315_v44  ;;  %v9580_v45 = vsel %vm22319_vm14, %v9579_v20, %v9575_v53 }
 0x672   : > { %v9585_v6 = vsel %vm22321_vm10, %v9584_v13, %v9580_v45 }
 0x673   : > { %v9654_v61 = vsel %vm9366_vm15, %v9653_v36, %v9649_v24  ;;  %vm22323_vm15 = vcmask 720512  }
 0x674   : > { %v9268_v34 = vpop.xlane.xlu1 %9267  ;;  %v9590_v55 = vsel %vm22323_vm15, %v9589_v21, %v9585_v6  ;;  %vm22324_vm3 = vmmov %vm22323_vm15 }
 0x675   : > { %v9658_v26 = vrot.slane %v9268_v34, %v22316_v51  ;;  %v9599_v34 = vrot.slane %v19394_v32, %v18610_v37  ;;  %v9609_v32 = vrot.slane %v19398_v38, %v18636_v57  ;;  %v9595_v42 = vsel %vm22325_vm5, %v9594_v14, %v9590_v55 }
 0x677   : > { %v9659_v8 = vsel %vm22320_vm4, %v9658_v26, %v9654_v61  ;;  %v9600_v17 = vsel %vm22327_vm2, %v9599_v34, %v9595_v42 }
 0x678   : > { %v9270_v60 = vpop.xlane.xlu0 %9269  ;;  %v9605_v11 = vsel %vm9408_vm6, %v9604_v33, %v9600_v17 }
 0x679   : > { %v9663_v1 = vrot.slane %v9270_v60, %v22317_v5  ;;  %v9610_v46 = vsel %vm9415_vm9, %v9609_v32, %v9605_v11 }
 0x67c   : > { %v9272_v29 = vpop.xlane.xlu1 %9271 }
 0x67d   : > { %v9668_v54 = vrot.slane %v9272_v29, %v22318_v49 }
 0x680   : > { %v9274_v39 = vpop.xlane.xlu0 %9273 }
 0x681   : > { %v9673_v10 = vrot.slane %v9274_v39, %v18591_v12  ;;  %v9664_v12 = vsel %vm22322_vm1, %v9663_v1, %v9659_v8 }
 0x684   : > { %v9276_v63 = vpop.xlane.xlu1 %9275 }
 0x685   : > { %v9678_v31 = vrot.slane %v9276_v63, %v18610_v37  ;;  %v9669_v37 = vsel %vm22324_vm3, %v9668_v54, %v9664_v12 }
 0x686   : > { %v9674_v2 = vsel %vm22326_vm13, %v9673_v10, %v9669_v37 }
 0x687   : > { %v9679_v7 = vsel %vm22328_vm11, %v9678_v31, %v9674_v2 }
 0x688   : > { %v9278_v30 = vpop.xlane.xlu0 %9277 }
 0x689   : > { %v9683_v16 = vrot.slane %v9278_v30, %v18631_v19 }
 0x68b   : > { %v9684_v38 = vsel %vm9408_vm6, %v9683_v16, %v9679_v7 }
 0x68c   : > { %v9280_v35 = vpop.xlane.xlu1 %9279 }
 0x68d   : > { %v9688_v60 = vrot.slane %v9280_v35, %v18636_v57 }
 0x68f   : > { %v9689_v56 = vsel %vm9415_vm9, %v9688_v60, %v9684_v38 }
 0x690   : > { %v9250_v19 = vpop.xlane.xlu1 %9249  ;;  %v9282_v41 = vpop.xlane.xlu0 %9281 }
 0x691   : > { %v9614_v52 = vrot.slane %v9250_v19, %v22329_v28  ;;  %v9693_v57 = vrot.slane %v9282_v41, %v22329_v28 }
 0x693   : > { %v9615_v29 = vsel %vm9422_vm8, %v9614_v52, %v9610_v46  ;;  %v9694_v50 = vsel %vm9422_vm8, %v9693_v57, %v9689_v56 }
 0x694   : > { %v9698_v0 = vsel %vm9697_vm7, %v22330_v48, %v9615_v29  ;;  %v9699_v40 = vsel %vm9697_vm7, %v22331_v22, %v9694_v50 }
 0x695   : > { %v9702_v58 = vcombine.low %v9698_v0, %v9699_v40 }
 0x697   : > { %10589 = vst.sshfl [vmem:[%s250_s9] sm:$0x33 pattern:$0x76325410] %v9702_v58 }
 0x698   : > { %10653 = shalt.err (!%p10650_p3)
}
 0x699   : > { %s10654_s17 = scalar_lea.hbm %s9725_s8, 64  ;;  %s10658_s6 = scalar_lea.hbm %s19516_s5, 128 }
 0x69a   : > { %p10655_p4 = scmp.ne.s32.totalorder %s9725_s8, %s10654_s17  ;;  %p10659_p9 = scmp.lt.s32.totalorder %s9725_s8, %s19516_s5 }
 0x69b   : > { %p10660_p10 = scmp.lt.s32.totalorder %s10658_s6, %s10654_s17 }
 0x69c   : > { %p10656_p7 = pnand %p10655_p4, %p10774_p5 }
 0x69d   : > { %p10661_p11 = por %p10660_p10, %p10659_p9 }
 0x69e   : > { %p10657_p8 = pneg %p10656_p7 }
 0x6a0   : > { %p10662_p12 = pnand %p10661_p11, %p10657_p8 }
 0x6a2   : > { %10665 = shalt.err (!%p10662_p12)
}
 0x6a3   : > { %10596 = dma.vmem_to_hbm [thread:$0]  (%p10774_p5), %s9728_s10, 64, %s9725_s8, %s9713_s13  }
 0x6a4 PF: > { %p10602_p13 = scmp.ge.s32.totalorder %s10700_s21, 2  ;;  %s9739_s30 = sand.u32 1, %s10688_s18  }
 0x6a5   : > { %s9740_s9 = scalar_lea.sflag [#allocation3], %s9739_s30 }
 0x6a6   : > { %p10599_p0 = pnand %p10602_p13, %p10778_p6 }
 0x6a8   : > { %p10600_p1 = pneg %p10599_p0 }
 0x6aa   : > { %10683 = dma.done.wait (%p10600_p1), %s9740_s9, 64  }
 0x6ab   : > { %10685 = vsyncadd (%p10600_p1), %s9740_s9, 4294967232  ;;  %p15_p2 = scmp.ge.s32.totalorder %s10761_s24, 4   ;;  %s22332_s18 = smov %s10692_s19 }
 0x6ac   : > { %s22333_s19 = smov %s10696_s20  ;;  %s22334_s20 = smov %s10772_s27 }
 0x6ad   : > { %s22335_s21 = smov %s10761_s24  ;;  %17 = sbr.rel (!%p15_p2) target bundleno = 3 (0x3), region = 81 }
 0x6b2   :  { %9745 = vsyncpa [#allocation3], 1 }
 0x6b3   :  { %9747 = vsyncpa [#allocation3 + $0x1], 1 }

</bundles_post_ra>
